<compile_context>
chip_gen: v5e
topology: v5e:2x2
jax: 0.10.0
libtpu: 0.0.40
codegen_flags: <defaults>
</compile_context>

<pallas_src>
import functools

import jax
import jax.numpy as jnp
from jax.experimental import pallas as pl
from jax.experimental.pallas import tpu as pltpu


# ----------------------------------------------------------------------------
# Pallas kernels
# ----------------------------------------------------------------------------
def _enc_bank_kernel(len_ref, x_ref, wih_ref, whh_ref, b_ref,
                     h_out_ref, c_out_ref):
    """All 9 encoder runs fused.  grid=(num_enc,).

    len_ref  : (NE,) int32 in SMEM — true sequence length per encoder.
    x_ref    : (maxT, B, E)  embedded (padded) sequence of encoder e.
    wih_ref  : (E, 4H)  fused input weights of encoder e.
    whh_ref  : (H, 4H)  fused recurrent weights of encoder e.
    b_ref    : (1, 4H)  fused bias of encoder e.
    h_out/c_out : (B, H)  final LSTM state of encoder e.
    """
    e = pl.program_id(0)
    maxT, B, _ = x_ref.shape
    H = h_out_ref.shape[-1]

    wih = wih_ref[...]                      # hoisted out of the time loop
    whh = whh_ref[...]
    b = b_ref[...]
    seq_len = len_ref[e]

    h = jnp.zeros((B, H), jnp.float32)
    c = jnp.zeros((B, H), jnp.float32)
    # Fully-unrolled in-kernel scan (maxT is small & static); padded steps are
    # masked out with the per-encoder true length.
    for t in range(maxT):
        x = x_ref[t]                                                  # (B, E)
        gates = (jnp.dot(x, wih, preferred_element_type=jnp.float32)
                 + jnp.dot(h, whh, preferred_element_type=jnp.float32)
                 + b)                                                 # (B, 4H)
        i_g = jax.nn.sigmoid(gates[:, 0 * H:1 * H])
        f_g = jax.nn.sigmoid(gates[:, 1 * H:2 * H])
        g_g = jnp.tanh(gates[:, 2 * H:3 * H])
        o_g = jax.nn.sigmoid(gates[:, 3 * H:4 * H])
        c_new = f_g * c + i_g * g_g
        h_new = o_g * jnp.tanh(c_new)
        valid = t < seq_len
        h = jnp.where(valid, h_new, h)
        c = jnp.where(valid, c_new, c)

    h_out_ref[...] = h
    c_out_ref[...] = c


def _decoder_loop_kernel(tf_ref, tgt_oh_ref, h0_ref, c0_ref, emb_ref,
                         wih_ref, whh_ref, b_ref, wfc_ref, bfc_ref,
                         pred_ref):
    """Entire decoder loop in one grid step.  grid=(1,).

    tf_ref     : (TL,) int32 in SMEM — teacher-forcing coin flips (0/1).
    tgt_oh_ref : (TL, B, V) one-hot of the target tokens.
    h0/c0      : (B, Hd) initial state from the encoder bank.
    emb_ref    : (V, E) decoder embedding table.
    wih/whh/b  : fused LSTM weights (E, 4Hd) / (Hd, 4Hd) / (1, 4Hd).
    wfc/bfc    : output projection (Hd, V) / (1, V).
    pred_ref   : (TL, B, V) outputs; outputs[0] stays zero.
    """
    TL, B, V = pred_ref.shape
    Hd = h0_ref.shape[-1]

    # Hoist all weight reads / broadcasts out of the recurrence.
    emb = emb_ref[...]
    wih = wih_ref[...]
    whh = whh_ref[...]
    b = b_ref[...]
    wfc = wfc_ref[...]
    bfc = bfc_ref[...]
    lane = jax.lax.broadcasted_iota(jnp.int32, (B, V), 1)

    pred_ref[0] = jnp.zeros((B, V), pred_ref.dtype)        # outputs[0] = 0

    h = h0_ref[...]
    c = c0_ref[...]
    x_oh = tgt_oh_ref[0]                                   # one-hot(target[0])

    # Fully-unrolled serial recurrence (TL is small & static).
    for s in range(1, TL):
        # In-kernel embedding lookup: one-hot @ table on the MXU (no gather).
        x = jnp.dot(x_oh, emb, preferred_element_type=jnp.float32)    # (B, E)
        gates = (jnp.dot(x, wih, preferred_element_type=jnp.float32)
                 + jnp.dot(h, whh, preferred_element_type=jnp.float32)
                 + b)                                                 # (B, 4Hd)
        i_g = jax.nn.sigmoid(gates[:, 0 * Hd:1 * Hd])
        f_g = jax.nn.sigmoid(gates[:, 1 * Hd:2 * Hd])
        g_g = jnp.tanh(gates[:, 2 * Hd:3 * Hd])
        o_g = jax.nn.sigmoid(gates[:, 3 * Hd:4 * Hd])
        c = f_g * c + i_g * g_g
        h = o_g * jnp.tanh(c)

        pred = (jnp.dot(h, wfc, preferred_element_type=jnp.float32)
                + bfc)                                                # (B, V)
        pred_ref[s] = pred

        # In-kernel argmax → one-hot (first max index wins, like torch.argmax).
        is_max = pred == jnp.max(pred, axis=-1, keepdims=True)
        best_idx = jnp.min(jnp.where(is_max, lane, V), axis=-1, keepdims=True)
        best_oh = (lane == best_idx).astype(jnp.float32)

        use_tf = tf_ref[s] == 1
        x_oh = jnp.where(use_tf, tgt_oh_ref[s], best_oh)


# ----------------------------------------------------------------------------
# pallas_call wrappers
# ----------------------------------------------------------------------------
def encoder_bank(lens, emb, w_ih, w_hh, b):
    """emb: (NE, maxT, B, E); fused weights stacked per encoder.

    Returns final h, c of shape (NE, B, H)."""
    NE, maxT, B, E = emb.shape
    H = w_hh.shape[1]
    H4 = w_hh.shape[-1]
    h, c = pl.pallas_call(
        _enc_bank_kernel,
        out_shape=(jax.ShapeDtypeStruct((NE, B, H), jnp.float32),
                   jax.ShapeDtypeStruct((NE, B, H), jnp.float32)),
        grid_spec=pltpu.PrefetchScalarGridSpec(
            num_scalar_prefetch=1,
            grid=(NE,),
            in_specs=[
                pl.BlockSpec((None, maxT, B, E), lambda e, lens: (e, 0, 0, 0)),
                pl.BlockSpec((None, E, H4), lambda e, lens: (e, 0, 0)),
                pl.BlockSpec((None, H, H4), lambda e, lens: (e, 0, 0)),
                pl.BlockSpec((None, 1, H4), lambda e, lens: (e, 0, 0)),
            ],
            out_specs=(pl.BlockSpec((None, B, H), lambda e, lens: (e, 0, 0)),
                       pl.BlockSpec((None, B, H), lambda e, lens: (e, 0, 0))),
        ),
        # TODO(synk): on v7x, pltpu.CORE_PARALLEL could be used to force the
        # 9 independent encoder scans across the two TensorCores.
        compiler_params=pltpu.CompilerParams(
            dimension_semantics=("parallel",)),
    )(lens, emb, w_ih, w_hh, b)
    return h, c


def decoder_run(tf_flags, tgt_oh, h0, c0, dp):
    """Fused decoder loop. Returns outputs (TL, B, V) with outputs[0] == 0."""
    TL, B, V = tgt_oh.shape
    E = dp["w_ih"].shape[0]
    Hd = dp["w_hh"].shape[0]
    H4 = dp["w_hh"].shape[-1]
    return pl.pallas_call(
        _decoder_loop_kernel,
        out_shape=jax.ShapeDtypeStruct((TL, B, V), jnp.float32),
        grid_spec=pltpu.PrefetchScalarGridSpec(
            num_scalar_prefetch=1,
            grid=(1,),
            in_specs=[
                pl.BlockSpec((TL, B, V), lambda s, tf: (0, 0, 0)),  # tgt_oh
                pl.BlockSpec((B, Hd), lambda s, tf: (0, 0)),        # h0
                pl.BlockSpec((B, Hd), lambda s, tf: (0, 0)),        # c0
                pl.BlockSpec((V, E), lambda s, tf: (0, 0)),         # emb
                pl.BlockSpec((E, H4), lambda s, tf: (0, 0)),        # w_ih
                pl.BlockSpec((Hd, H4), lambda s, tf: (0, 0)),       # w_hh
                pl.BlockSpec((1, H4), lambda s, tf: (0, 0)),        # b
                pl.BlockSpec((Hd, V), lambda s, tf: (0, 0)),        # w_fc
                pl.BlockSpec((1, V), lambda s, tf: (0, 0)),         # b_fc
            ],
            out_specs=pl.BlockSpec((TL, B, V), lambda s, tf: (0, 0, 0)),
        ),
        compiler_params=pltpu.CompilerParams(
            dimension_semantics=("arbitrary",)),
    )(tf_flags, tgt_oh, h0, c0, dp["emb"], dp["w_ih"], dp["w_hh"],
      dp["b"], dp["w_fc"], dp["b_fc"])


# ----------------------------------------------------------------------------
# Forward pass (semantics of the PyTorch Seq2Seq.forward)
# ----------------------------------------------------------------------------
def seq2seq_forward(prepped, source1, source2, source3, target, key,
                    teacher_forcing_ratio=0.5):
    batch_size = target.shape[1]
    target_length = 8 if batch_size == 1 else target.shape[0]

    bank = prepped["enc_bank"]
    dp = prepped["dec"]

    # ---------------- encoders (all 9 runs in one pallas_call) --------------
    seqs = ([source1]
            + [source2[i * 4:i * 4 + 4] for i in range(7)]
            + [source3])
    NE = len(seqs)
    maxT = max(s.shape[0] for s in seqs)
    lens = jnp.array([s.shape[0] for s in seqs], jnp.int32)

    toks = jnp.stack([jnp.pad(s, ((0, maxT - s.shape[0]), (0, 0)))
                      for s in seqs])                            # (NE, maxT, B)
    emb = jax.vmap(lambda tbl, tk: tbl[tk])(bank["emb"], toks)   # (NE,maxT,B,E)

    h_all, c_all = encoder_bank(lens, emb, bank["w_ih"], bank["w_hh"],
                                bank["b"])                       # (NE, B, H)
    H = h_all.shape[-1]
    hidden = jnp.transpose(h_all, (1, 0, 2)).reshape(batch_size, NE * H)
    cell = jnp.transpose(c_all, (1, 0, 2)).reshape(batch_size, NE * H)

    # ---------------- decoder (whole loop in one pallas_call) ---------------
    V = dp["emb"].shape[0]

    # TODO(synk): PyTorch uses Python random.random() per step; replaced with
    # precomputed jax.random Bernoulli(teacher_forcing_ratio) flips (same law).
    flips = jax.random.uniform(key, (target_length,)) < teacher_forcing_ratio
    if batch_size == 1:
        flips = jnp.zeros_like(flips)          # reference never teacher-forces
    tf_flags = flips.astype(jnp.int32)

    tgt = target
    if tgt.shape[0] < target_length:
        tgt = jnp.pad(tgt, ((0, target_length - tgt.shape[0]), (0, 0)))
    else:
        tgt = tgt[:target_length]
    tgt_oh = jax.nn.one_hot(tgt, V, dtype=jnp.float32)           # (TL, B, V)

    return decoder_run(tf_flags, tgt_oh, hidden, cell, dp)


# ----------------------------------------------------------------------------
# Parameter construction (fused gate-major, pre-transposed layouts)
# ----------------------------------------------------------------------------
def make_encoder_params(key, vocab, emb_dim, hid):
    k = jax.random.split(key, 4)
    return {
        "emb": 0.1 * jax.random.normal(k[0], (vocab, emb_dim), jnp.float32),
        "w_ih": 0.1 * jax.random.normal(k[1], (emb_dim, 4 * hid), jnp.float32),
        "w_hh": 0.1 * jax.random.normal(k[2], (hid, 4 * hid), jnp.float32),
        "b": 0.1 * jax.random.normal(k[3], (1, 4 * hid), jnp.float32),
    }


def make_decoder_params(key, vocab, emb_dim, hid):
    k = jax.random.split(key, 6)
    return {
        "emb": 0.1 * jax.random.normal(k[0], (vocab, emb_dim), jnp.float32),
        "w_ih": 0.1 * jax.random.normal(k[1], (emb_dim, 4 * hid), jnp.float32),
        "w_hh": 0.1 * jax.random.normal(k[2], (hid, 4 * hid), jnp.float32),
        "b": 0.1 * jax.random.normal(k[3], (1, 4 * hid), jnp.float32),
        "w_fc": 0.1 * jax.random.normal(k[4], (hid, vocab), jnp.float32),
        "b_fc": 0.1 * jax.random.normal(k[5], (1, vocab), jnp.float32),
    }


def prepare_params(params):
    """One-time prep: stack the 9 encoder runs' weights (enc1, 7 world, enc1)
    so the per-call graph has no concats/copies in front of the kernel."""
    enc1 = params["enc1"]
    encs = [enc1] + list(params["enc_world"]) + [enc1]
    bank = {name: jnp.stack([p[name] for p in encs])
            for name in ("emb", "w_ih", "w_hh", "b")}
    return {"enc_bank": bank, "dec": params["dec"]}


if __name__ == "__main__":
    VOCAB = 32
    EMB = 16
    ENC_HID = 16
    DEC_HID = 9 * ENC_HID          # enc1 + 7 world encoders + enc1 again
    BATCH = 4
    SRC_LEN = 6
    TGT_LEN = 8

    root = jax.random.PRNGKey(0)
    keys = jax.random.split(root, 16)

    params = {
        "enc1": make_encoder_params(keys[0], VOCAB, EMB, ENC_HID),
        "enc_world": [make_encoder_params(keys[1 + i], VOCAB, EMB, ENC_HID)
                      for i in range(7)],
        "dec": make_decoder_params(keys[8], VOCAB, EMB, DEC_HID),
    }
    prepped = prepare_params(params)   # stack encoder bank once at init

    source1 = jax.random.randint(keys[9], (SRC_LEN, BATCH), 0, VOCAB, jnp.int32)
    source2 = jax.random.randint(keys[10], (7 * 4, BATCH), 0, VOCAB, jnp.int32)
    source3 = jax.random.randint(keys[11], (SRC_LEN, BATCH), 0, VOCAB, jnp.int32)
    target = jax.random.randint(keys[12], (TGT_LEN, BATCH), 0, VOCAB, jnp.int32)

    forward = jax.jit(functools.partial(seq2seq_forward,
                                        teacher_forcing_ratio=0.5))
    out = forward(prepped, source1, source2, source3, target, keys[13])
    out = jax.block_until_ready(out)
    assert out.shape == (TGT_LEN, BATCH, VOCAB)
    assert bool(jnp.all(out[0] == 0.0))
    assert bool(jnp.all(jnp.isfinite(out)))
    print("KERNEL_OK")
</pallas_src>

<mosaic_0001>
module attributes {stable_mosaic.version = 11 : i64} {
  func.func @_enc_bank_kernel(%arg0: i32, %arg1: memref<9xi32, #tpu.memory_space<smem>>, %arg2: memref<1x6x4x16xf32, #tpu.memory_space<vmem>>, %arg3: memref<1x16x64xf32, #tpu.memory_space<vmem>>, %arg4: memref<1x16x64xf32, #tpu.memory_space<vmem>>, %arg5: memref<1x1x64xf32, #tpu.memory_space<vmem>>, %arg6: memref<1x4x16xf32, #tpu.memory_space<vmem>>, %arg7: memref<1x4x16xf32, #tpu.memory_space<vmem>>) attributes {dimension_semantics = [#tpu.dimension_semantics<parallel>], iteration_bounds = array<i64: 9>, scalar_prefetch = 1 : i64, scratch_operands = 0 : i64, tpu.core_type = #tpu.core_type<tc>, window_params = [{transform_indices = @transform_0, window_bounds = array<i64: 1, 6, 4, 16>}, {transform_indices = @transform_1, window_bounds = array<i64: 1, 16, 64>}, {transform_indices = @transform_2, window_bounds = array<i64: 1, 16, 64>}, {transform_indices = @transform_3, window_bounds = array<i64: 1, 1, 64>}, {transform_indices = @transform_4, window_bounds = array<i64: 1, 4, 16>}, {transform_indices = @transform_5, window_bounds = array<i64: 1, 4, 16>}]} {
    %c0 = arith.constant 0 : index
    %c0_0 = arith.constant 0 : index
    %c0_1 = arith.constant 0 : index
    %0 = vector.load %arg3[%c0, %c0_0, %c0_1] : memref<1x16x64xf32, #tpu.memory_space<vmem>>, vector<1x16x64xf32>
    %1 = vector.shape_cast %0 : vector<1x16x64xf32> to vector<16x64xf32>
    %c0_2 = arith.constant 0 : index
    %c0_3 = arith.constant 0 : index
    %c0_4 = arith.constant 0 : index
    %2 = vector.load %arg4[%c0_2, %c0_3, %c0_4] : memref<1x16x64xf32, #tpu.memory_space<vmem>>, vector<1x16x64xf32>
    %3 = vector.shape_cast %2 : vector<1x16x64xf32> to vector<16x64xf32>
    %c0_5 = arith.constant 0 : index
    %c0_6 = arith.constant 0 : index
    %c0_7 = arith.constant 0 : index
    %4 = vector.load %arg5[%c0_5, %c0_6, %c0_7] : memref<1x1x64xf32, #tpu.memory_space<vmem>>, vector<1x1x64xf32>
    %5 = vector.shape_cast %4 : vector<1x1x64xf32> to vector<1x64xf32>
    %6 = arith.index_cast %arg0 : i32 to index
    %7 = memref.load %arg1[%6] : memref<9xi32, #tpu.memory_space<smem>>
    %cst = arith.constant 0.000000e+00 : f32
    %8 = vector.broadcast %cst : f32 to vector<4x16xf32>
    %cst_8 = arith.constant 0.000000e+00 : f32
    %9 = vector.broadcast %cst_8 : f32 to vector<4x16xf32>
    %c0_9 = arith.constant 0 : index
    %c0_10 = arith.constant 0 : index
    %c0_11 = arith.constant 0 : index
    %c0_12 = arith.constant 0 : index
    %10 = vector.load %arg2[%c0_9, %c0_10, %c0_11, %c0_12] : memref<1x6x4x16xf32, #tpu.memory_space<vmem>>, vector<1x1x4x16xf32>
    %11 = vector.shape_cast %10 : vector<1x1x4x16xf32> to vector<4x16xf32>
    %cst_13 = arith.constant dense<0.000000e+00> : vector<4x64xf32>
    %12 = tpu.matmul %11, %1, %cst_13 {dimension_numbers = #tpu.dot_dimension_numbers<[1], [0], [0], [1], [0, 0, 1, 1], [], []>} : vector<4x16xf32>, vector<16x64xf32>, vector<4x64xf32> -> vector<4x64xf32>
    %cst_14 = arith.constant dense<0.000000e+00> : vector<4x64xf32>
    %13 = tpu.matmul %8, %3, %cst_14 {dimension_numbers = #tpu.dot_dimension_numbers<[1], [0], [0], [1], [0, 0, 1, 1], [], []>} : vector<4x16xf32>, vector<16x64xf32>, vector<4x64xf32> -> vector<4x64xf32>
    %14 = arith.addf %12, %13 : vector<4x64xf32>
    %15 = vector.broadcast %5 : vector<1x64xf32> to vector<4x64xf32>
    %16 = arith.addf %14, %15 : vector<4x64xf32>
    %17 = vector.extract_strided_slice %16 {offsets = [0, 0], sizes = [4, 16], strides = [1, 1]} : vector<4x64xf32> to vector<4x16xf32>
    %18 = arith.negf %17 : vector<4x16xf32>
    %19 = math.exp %18 : vector<4x16xf32>
    %cst_15 = arith.constant 1.000000e+00 : f32
    %20 = vector.broadcast %cst_15 : f32 to vector<4x16xf32>
    %21 = arith.addf %20, %19 : vector<4x16xf32>
    %22 = arith.divf %20, %21 : vector<4x16xf32>
    %23 = vector.extract_strided_slice %16 {offsets = [0, 16], sizes = [4, 16], strides = [1, 1]} : vector<4x64xf32> to vector<4x16xf32>
    %24 = arith.negf %23 : vector<4x16xf32>
    %25 = math.exp %24 : vector<4x16xf32>
    %cst_16 = arith.constant 1.000000e+00 : f32
    %26 = vector.broadcast %cst_16 : f32 to vector<4x16xf32>
    %27 = arith.addf %26, %25 : vector<4x16xf32>
    %28 = arith.divf %26, %27 : vector<4x16xf32>
    %29 = vector.extract_strided_slice %16 {offsets = [0, 32], sizes = [4, 16], strides = [1, 1]} : vector<4x64xf32> to vector<4x16xf32>
    %30 = math.tanh %29 : vector<4x16xf32>
    %31 = vector.extract_strided_slice %16 {offsets = [0, 48], sizes = [4, 16], strides = [1, 1]} : vector<4x64xf32> to vector<4x16xf32>
    %32 = arith.negf %31 : vector<4x16xf32>
    %33 = math.exp %32 : vector<4x16xf32>
    %cst_17 = arith.constant 1.000000e+00 : f32
    %34 = vector.broadcast %cst_17 : f32 to vector<4x16xf32>
    %35 = arith.addf %34, %33 : vector<4x16xf32>
    %36 = arith.divf %34, %35 : vector<4x16xf32>
    %37 = arith.mulf %28, %9 : vector<4x16xf32>
    %38 = arith.mulf %22, %30 : vector<4x16xf32>
    %39 = arith.addf %37, %38 : vector<4x16xf32>
    %40 = math.tanh %39 : vector<4x16xf32>
    %41 = arith.mulf %36, %40 : vector<4x16xf32>
    %c0_i32 = arith.constant 0 : i32
    %42 = arith.cmpi sgt, %7, %c0_i32 : i32
    %43 = arith.select %42, %41, %8 : vector<4x16xf32>
    %44 = arith.select %42, %39, %9 : vector<4x16xf32>
    %c0_18 = arith.constant 0 : index
    %c1 = arith.constant 1 : index
    %c0_19 = arith.constant 0 : index
    %c0_20 = arith.constant 0 : index
    %45 = vector.load %arg2[%c0_18, %c1, %c0_19, %c0_20] : memref<1x6x4x16xf32, #tpu.memory_space<vmem>>, vector<1x1x4x16xf32>
    %46 = vector.shape_cast %45 : vector<1x1x4x16xf32> to vector<4x16xf32>
    %cst_21 = arith.constant dense<0.000000e+00> : vector<4x64xf32>
    %47 = tpu.matmul %46, %1, %cst_21 {dimension_numbers = #tpu.dot_dimension_numbers<[1], [0], [0], [1], [0, 0, 1, 1], [], []>} : vector<4x16xf32>, vector<16x64xf32>, vector<4x64xf32> -> vector<4x64xf32>
    %cst_22 = arith.constant dense<0.000000e+00> : vector<4x64xf32>
    %48 = tpu.matmul %43, %3, %cst_22 {dimension_numbers = #tpu.dot_dimension_numbers<[1], [0], [0], [1], [0, 0, 1, 1], [], []>} : vector<4x16xf32>, vector<16x64xf32>, vector<4x64xf32> -> vector<4x64xf32>
    %49 = arith.addf %47, %48 : vector<4x64xf32>
    %50 = vector.broadcast %5 : vector<1x64xf32> to vector<4x64xf32>
    %51 = arith.addf %49, %50 : vector<4x64xf32>
    %52 = vector.extract_strided_slice %51 {offsets = [0, 0], sizes = [4, 16], strides = [1, 1]} : vector<4x64xf32> to vector<4x16xf32>
    %53 = arith.negf %52 : vector<4x16xf32>
    %54 = math.exp %53 : vector<4x16xf32>
    %cst_23 = arith.constant 1.000000e+00 : f32
    %55 = vector.broadcast %cst_23 : f32 to vector<4x16xf32>
    %56 = arith.addf %55, %54 : vector<4x16xf32>
    %57 = arith.divf %55, %56 : vector<4x16xf32>
    %58 = vector.extract_strided_slice %51 {offsets = [0, 16], sizes = [4, 16], strides = [1, 1]} : vector<4x64xf32> to vector<4x16xf32>
    %59 = arith.negf %58 : vector<4x16xf32>
    %60 = math.exp %59 : vector<4x16xf32>
    %cst_24 = arith.constant 1.000000e+00 : f32
    %61 = vector.broadcast %cst_24 : f32 to vector<4x16xf32>
    %62 = arith.addf %61, %60 : vector<4x16xf32>
    %63 = arith.divf %61, %62 : vector<4x16xf32>
    %64 = vector.extract_strided_slice %51 {offsets = [0, 32], sizes = [4, 16], strides = [1, 1]} : vector<4x64xf32> to vector<4x16xf32>
    %65 = math.tanh %64 : vector<4x16xf32>
    %66 = vector.extract_strided_slice %51 {offsets = [0, 48], sizes = [4, 16], strides = [1, 1]} : vector<4x64xf32> to vector<4x16xf32>
    %67 = arith.negf %66 : vector<4x16xf32>
    %68 = math.exp %67 : vector<4x16xf32>
    %cst_25 = arith.constant 1.000000e+00 : f32
    %69 = vector.broadcast %cst_25 : f32 to vector<4x16xf32>
    %70 = arith.addf %69, %68 : vector<4x16xf32>
    %71 = arith.divf %69, %70 : vector<4x16xf32>
    %72 = arith.mulf %63, %44 : vector<4x16xf32>
    %73 = arith.mulf %57, %65 : vector<4x16xf32>
    %74 = arith.addf %72, %73 : vector<4x16xf32>
    %75 = math.tanh %74 : vector<4x16xf32>
    %76 = arith.mulf %71, %75 : vector<4x16xf32>
    %c1_i32 = arith.constant 1 : i32
    %77 = arith.cmpi sgt, %7, %c1_i32 : i32
    %78 = arith.select %77, %76, %43 : vector<4x16xf32>
    %79 = arith.select %77, %74, %44 : vector<4x16xf32>
    %c0_26 = arith.constant 0 : index
    %c2 = arith.constant 2 : index
    %c0_27 = arith.constant 0 : index
    %c0_28 = arith.constant 0 : index
    %80 = vector.load %arg2[%c0_26, %c2, %c0_27, %c0_28] : memref<1x6x4x16xf32, #tpu.memory_space<vmem>>, vector<1x1x4x16xf32>
    %81 = vector.shape_cast %80 : vector<1x1x4x16xf32> to vector<4x16xf32>
    %cst_29 = arith.constant dense<0.000000e+00> : vector<4x64xf32>
    %82 = tpu.matmul %81, %1, %cst_29 {dimension_numbers = #tpu.dot_dimension_numbers<[1], [0], [0], [1], [0, 0, 1, 1], [], []>} : vector<4x16xf32>, vector<16x64xf32>, vector<4x64xf32> -> vector<4x64xf32>
    %cst_30 = arith.constant dense<0.000000e+00> : vector<4x64xf32>
    %83 = tpu.matmul %78, %3, %cst_30 {dimension_numbers = #tpu.dot_dimension_numbers<[1], [0], [0], [1], [0, 0, 1, 1], [], []>} : vector<4x16xf32>, vector<16x64xf32>, vector<4x64xf32> -> vector<4x64xf32>
    %84 = arith.addf %82, %83 : vector<4x64xf32>
    %85 = vector.broadcast %5 : vector<1x64xf32> to vector<4x64xf32>
    %86 = arith.addf %84, %85 : vector<4x64xf32>
    %87 = vector.extract_strided_slice %86 {offsets = [0, 0], sizes = [4, 16], strides = [1, 1]} : vector<4x64xf32> to vector<4x16xf32>
    %88 = arith.negf %87 : vector<4x16xf32>
    %89 = math.exp %88 : vector<4x16xf32>
    %cst_31 = arith.constant 1.000000e+00 : f32
    %90 = vector.broadcast %cst_31 : f32 to vector<4x16xf32>
    %91 = arith.addf %90, %89 : vector<4x16xf32>
    %92 = arith.divf %90, %91 : vector<4x16xf32>
    %93 = vector.extract_strided_slice %86 {offsets = [0, 16], sizes = [4, 16], strides = [1, 1]} : vector<4x64xf32> to vector<4x16xf32>
    %94 = arith.negf %93 : vector<4x16xf32>
    %95 = math.exp %94 : vector<4x16xf32>
    %cst_32 = arith.constant 1.000000e+00 : f32
    %96 = vector.broadcast %cst_32 : f32 to vector<4x16xf32>
    %97 = arith.addf %96, %95 : vector<4x16xf32>
    %98 = arith.divf %96, %97 : vector<4x16xf32>
    %99 = vector.extract_strided_slice %86 {offsets = [0, 32], sizes = [4, 16], strides = [1, 1]} : vector<4x64xf32> to vector<4x16xf32>
    %100 = math.tanh %99 : vector<4x16xf32>
    %101 = vector.extract_strided_slice %86 {offsets = [0, 48], sizes = [4, 16], strides = [1, 1]} : vector<4x64xf32> to vector<4x16xf32>
    %102 = arith.negf %101 : vector<4x16xf32>
    %103 = math.exp %102 : vector<4x16xf32>
    %cst_33 = arith.constant 1.000000e+00 : f32
    %104 = vector.broadcast %cst_33 : f32 to vector<4x16xf32>
    %105 = arith.addf %104, %103 : vector<4x16xf32>
    %106 = arith.divf %104, %105 : vector<4x16xf32>
    %107 = arith.mulf %98, %79 : vector<4x16xf32>
    %108 = arith.mulf %92, %100 : vector<4x16xf32>
    %109 = arith.addf %107, %108 : vector<4x16xf32>
    %110 = math.tanh %109 : vector<4x16xf32>
    %111 = arith.mulf %106, %110 : vector<4x16xf32>
    %c2_i32 = arith.constant 2 : i32
    %112 = arith.cmpi sgt, %7, %c2_i32 : i32
    %113 = arith.select %112, %111, %78 : vector<4x16xf32>
    %114 = arith.select %112, %109, %79 : vector<4x16xf32>
    %c0_34 = arith.constant 0 : index
    %c3 = arith.constant 3 : index
    %c0_35 = arith.constant 0 : index
    %c0_36 = arith.constant 0 : index
    %115 = vector.load %arg2[%c0_34, %c3, %c0_35, %c0_36] : memref<1x6x4x16xf32, #tpu.memory_space<vmem>>, vector<1x1x4x16xf32>
    %116 = vector.shape_cast %115 : vector<1x1x4x16xf32> to vector<4x16xf32>
    %cst_37 = arith.constant dense<0.000000e+00> : vector<4x64xf32>
    %117 = tpu.matmul %116, %1, %cst_37 {dimension_numbers = #tpu.dot_dimension_numbers<[1], [0], [0], [1], [0, 0, 1, 1], [], []>} : vector<4x16xf32>, vector<16x64xf32>, vector<4x64xf32> -> vector<4x64xf32>
    %cst_38 = arith.constant dense<0.000000e+00> : vector<4x64xf32>
    %118 = tpu.matmul %113, %3, %cst_38 {dimension_numbers = #tpu.dot_dimension_numbers<[1], [0], [0], [1], [0, 0, 1, 1], [], []>} : vector<4x16xf32>, vector<16x64xf32>, vector<4x64xf32> -> vector<4x64xf32>
    %119 = arith.addf %117, %118 : vector<4x64xf32>
    %120 = vector.broadcast %5 : vector<1x64xf32> to vector<4x64xf32>
    %121 = arith.addf %119, %120 : vector<4x64xf32>
    %122 = vector.extract_strided_slice %121 {offsets = [0, 0], sizes = [4, 16], strides = [1, 1]} : vector<4x64xf32> to vector<4x16xf32>
    %123 = arith.negf %122 : vector<4x16xf32>
    %124 = math.exp %123 : vector<4x16xf32>
    %cst_39 = arith.constant 1.000000e+00 : f32
    %125 = vector.broadcast %cst_39 : f32 to vector<4x16xf32>
    %126 = arith.addf %125, %124 : vector<4x16xf32>
    %127 = arith.divf %125, %126 : vector<4x16xf32>
    %128 = vector.extract_strided_slice %121 {offsets = [0, 16], sizes = [4, 16], strides = [1, 1]} : vector<4x64xf32> to vector<4x16xf32>
    %129 = arith.negf %128 : vector<4x16xf32>
    %130 = math.exp %129 : vector<4x16xf32>
    %cst_40 = arith.constant 1.000000e+00 : f32
    %131 = vector.broadcast %cst_40 : f32 to vector<4x16xf32>
    %132 = arith.addf %131, %130 : vector<4x16xf32>
    %133 = arith.divf %131, %132 : vector<4x16xf32>
    %134 = vector.extract_strided_slice %121 {offsets = [0, 32], sizes = [4, 16], strides = [1, 1]} : vector<4x64xf32> to vector<4x16xf32>
    %135 = math.tanh %134 : vector<4x16xf32>
    %136 = vector.extract_strided_slice %121 {offsets = [0, 48], sizes = [4, 16], strides = [1, 1]} : vector<4x64xf32> to vector<4x16xf32>
    %137 = arith.negf %136 : vector<4x16xf32>
    %138 = math.exp %137 : vector<4x16xf32>
    %cst_41 = arith.constant 1.000000e+00 : f32
    %139 = vector.broadcast %cst_41 : f32 to vector<4x16xf32>
    %140 = arith.addf %139, %138 : vector<4x16xf32>
    %141 = arith.divf %139, %140 : vector<4x16xf32>
    %142 = arith.mulf %133, %114 : vector<4x16xf32>
    %143 = arith.mulf %127, %135 : vector<4x16xf32>
    %144 = arith.addf %142, %143 : vector<4x16xf32>
    %145 = math.tanh %144 : vector<4x16xf32>
    %146 = arith.mulf %141, %145 : vector<4x16xf32>
    %c3_i32 = arith.constant 3 : i32
    %147 = arith.cmpi sgt, %7, %c3_i32 : i32
    %148 = arith.select %147, %146, %113 : vector<4x16xf32>
    %149 = arith.select %147, %144, %114 : vector<4x16xf32>
    %c0_42 = arith.constant 0 : index
    %c4 = arith.constant 4 : index
    %c0_43 = arith.constant 0 : index
    %c0_44 = arith.constant 0 : index
    %150 = vector.load %arg2[%c0_42, %c4, %c0_43, %c0_44] : memref<1x6x4x16xf32, #tpu.memory_space<vmem>>, vector<1x1x4x16xf32>
    %151 = vector.shape_cast %150 : vector<1x1x4x16xf32> to vector<4x16xf32>
    %cst_45 = arith.constant dense<0.000000e+00> : vector<4x64xf32>
    %152 = tpu.matmul %151, %1, %cst_45 {dimension_numbers = #tpu.dot_dimension_numbers<[1], [0], [0], [1], [0, 0, 1, 1], [], []>} : vector<4x16xf32>, vector<16x64xf32>, vector<4x64xf32> -> vector<4x64xf32>
    %cst_46 = arith.constant dense<0.000000e+00> : vector<4x64xf32>
    %153 = tpu.matmul %148, %3, %cst_46 {dimension_numbers = #tpu.dot_dimension_numbers<[1], [0], [0], [1], [0, 0, 1, 1], [], []>} : vector<4x16xf32>, vector<16x64xf32>, vector<4x64xf32> -> vector<4x64xf32>
    %154 = arith.addf %152, %153 : vector<4x64xf32>
    %155 = vector.broadcast %5 : vector<1x64xf32> to vector<4x64xf32>
    %156 = arith.addf %154, %155 : vector<4x64xf32>
    %157 = vector.extract_strided_slice %156 {offsets = [0, 0], sizes = [4, 16], strides = [1, 1]} : vector<4x64xf32> to vector<4x16xf32>
    %158 = arith.negf %157 : vector<4x16xf32>
    %159 = math.exp %158 : vector<4x16xf32>
    %cst_47 = arith.constant 1.000000e+00 : f32
    %160 = vector.broadcast %cst_47 : f32 to vector<4x16xf32>
    %161 = arith.addf %160, %159 : vector<4x16xf32>
    %162 = arith.divf %160, %161 : vector<4x16xf32>
    %163 = vector.extract_strided_slice %156 {offsets = [0, 16], sizes = [4, 16], strides = [1, 1]} : vector<4x64xf32> to vector<4x16xf32>
    %164 = arith.negf %163 : vector<4x16xf32>
    %165 = math.exp %164 : vector<4x16xf32>
    %cst_48 = arith.constant 1.000000e+00 : f32
    %166 = vector.broadcast %cst_48 : f32 to vector<4x16xf32>
    %167 = arith.addf %166, %165 : vector<4x16xf32>
    %168 = arith.divf %166, %167 : vector<4x16xf32>
    %169 = vector.extract_strided_slice %156 {offsets = [0, 32], sizes = [4, 16], strides = [1, 1]} : vector<4x64xf32> to vector<4x16xf32>
    %170 = math.tanh %169 : vector<4x16xf32>
    %171 = vector.extract_strided_slice %156 {offsets = [0, 48], sizes = [4, 16], strides = [1, 1]} : vector<4x64xf32> to vector<4x16xf32>
    %172 = arith.negf %171 : vector<4x16xf32>
    %173 = math.exp %172 : vector<4x16xf32>
    %cst_49 = arith.constant 1.000000e+00 : f32
    %174 = vector.broadcast %cst_49 : f32 to vector<4x16xf32>
    %175 = arith.addf %174, %173 : vector<4x16xf32>
    %176 = arith.divf %174, %175 : vector<4x16xf32>
    %177 = arith.mulf %168, %149 : vector<4x16xf32>
    %178 = arith.mulf %162, %170 : vector<4x16xf32>
    %179 = arith.addf %177, %178 : vector<4x16xf32>
    %180 = math.tanh %179 : vector<4x16xf32>
    %181 = arith.mulf %176, %180 : vector<4x16xf32>
    %c4_i32 = arith.constant 4 : i32
    %182 = arith.cmpi sgt, %7, %c4_i32 : i32
    %183 = arith.select %182, %181, %148 : vector<4x16xf32>
    %184 = arith.select %182, %179, %149 : vector<4x16xf32>
    %c0_50 = arith.constant 0 : index
    %c5 = arith.constant 5 : index
    %c0_51 = arith.constant 0 : index
    %c0_52 = arith.constant 0 : index
    %185 = vector.load %arg2[%c0_50, %c5, %c0_51, %c0_52] : memref<1x6x4x16xf32, #tpu.memory_space<vmem>>, vector<1x1x4x16xf32>
    %186 = vector.shape_cast %185 : vector<1x1x4x16xf32> to vector<4x16xf32>
    %cst_53 = arith.constant dense<0.000000e+00> : vector<4x64xf32>
    %187 = tpu.matmul %186, %1, %cst_53 {dimension_numbers = #tpu.dot_dimension_numbers<[1], [0], [0], [1], [0, 0, 1, 1], [], []>} : vector<4x16xf32>, vector<16x64xf32>, vector<4x64xf32> -> vector<4x64xf32>
    %cst_54 = arith.constant dense<0.000000e+00> : vector<4x64xf32>
    %188 = tpu.matmul %183, %3, %cst_54 {dimension_numbers = #tpu.dot_dimension_numbers<[1], [0], [0], [1], [0, 0, 1, 1], [], []>} : vector<4x16xf32>, vector<16x64xf32>, vector<4x64xf32> -> vector<4x64xf32>
    %189 = arith.addf %187, %188 : vector<4x64xf32>
    %190 = vector.broadcast %5 : vector<1x64xf32> to vector<4x64xf32>
    %191 = arith.addf %189, %190 : vector<4x64xf32>
    %192 = vector.extract_strided_slice %191 {offsets = [0, 0], sizes = [4, 16], strides = [1, 1]} : vector<4x64xf32> to vector<4x16xf32>
    %193 = arith.negf %192 : vector<4x16xf32>
    %194 = math.exp %193 : vector<4x16xf32>
    %cst_55 = arith.constant 1.000000e+00 : f32
    %195 = vector.broadcast %cst_55 : f32 to vector<4x16xf32>
    %196 = arith.addf %195, %194 : vector<4x16xf32>
    %197 = arith.divf %195, %196 : vector<4x16xf32>
    %198 = vector.extract_strided_slice %191 {offsets = [0, 16], sizes = [4, 16], strides = [1, 1]} : vector<4x64xf32> to vector<4x16xf32>
    %199 = arith.negf %198 : vector<4x16xf32>
    %200 = math.exp %199 : vector<4x16xf32>
    %cst_56 = arith.constant 1.000000e+00 : f32
    %201 = vector.broadcast %cst_56 : f32 to vector<4x16xf32>
    %202 = arith.addf %201, %200 : vector<4x16xf32>
    %203 = arith.divf %201, %202 : vector<4x16xf32>
    %204 = vector.extract_strided_slice %191 {offsets = [0, 32], sizes = [4, 16], strides = [1, 1]} : vector<4x64xf32> to vector<4x16xf32>
    %205 = math.tanh %204 : vector<4x16xf32>
    %206 = vector.extract_strided_slice %191 {offsets = [0, 48], sizes = [4, 16], strides = [1, 1]} : vector<4x64xf32> to vector<4x16xf32>
    %207 = arith.negf %206 : vector<4x16xf32>
    %208 = math.exp %207 : vector<4x16xf32>
    %cst_57 = arith.constant 1.000000e+00 : f32
    %209 = vector.broadcast %cst_57 : f32 to vector<4x16xf32>
    %210 = arith.addf %209, %208 : vector<4x16xf32>
    %211 = arith.divf %209, %210 : vector<4x16xf32>
    %212 = arith.mulf %203, %184 : vector<4x16xf32>
    %213 = arith.mulf %197, %205 : vector<4x16xf32>
    %214 = arith.addf %212, %213 : vector<4x16xf32>
    %215 = math.tanh %214 : vector<4x16xf32>
    %216 = arith.mulf %211, %215 : vector<4x16xf32>
    %c5_i32 = arith.constant 5 : i32
    %217 = arith.cmpi sgt, %7, %c5_i32 : i32
    %218 = arith.select %217, %216, %183 : vector<4x16xf32>
    %219 = arith.select %217, %214, %184 : vector<4x16xf32>
    %c0_58 = arith.constant 0 : index
    %c0_59 = arith.constant 0 : index
    %c0_60 = arith.constant 0 : index
    %220 = vector.load %arg6[%c0_58, %c0_59, %c0_60] : memref<1x4x16xf32, #tpu.memory_space<vmem>>, vector<1x4x16xf32>
    %221 = vector.shape_cast %220 : vector<1x4x16xf32> to vector<4x16xf32>
    %222 = vector.shape_cast %218 : vector<4x16xf32> to vector<1x4x16xf32>
    tpu.vector_store %arg6[%c0_58, %c0_59, %c0_60], %222 {strides = array<i32>} : memref<1x4x16xf32, #tpu.memory_space<vmem>>, vector<1x4x16xf32>,
    %c0_61 = arith.constant 0 : index
    %c0_62 = arith.constant 0 : index
    %c0_63 = arith.constant 0 : index
    %223 = vector.load %arg7[%c0_61, %c0_62, %c0_63] : memref<1x4x16xf32, #tpu.memory_space<vmem>>, vector<1x4x16xf32>
    %224 = vector.shape_cast %223 : vector<1x4x16xf32> to vector<4x16xf32>
    %225 = vector.shape_cast %219 : vector<4x16xf32> to vector<1x4x16xf32>
    tpu.vector_store %arg7[%c0_61, %c0_62, %c0_63], %225 {strides = array<i32>} : memref<1x4x16xf32, #tpu.memory_space<vmem>>, vector<1x4x16xf32>,
    return
  }
  func.func @transform_0(%arg0: i32, %arg1: memref<9xi32, #tpu.memory_space<smem>>) -> (i32, i32, i32, i32) {
    %c0_i32 = arith.constant 0 : i32
    %c0_i32_0 = arith.constant 0 : i32
    %c0_i32_1 = arith.constant 0 : i32
    %c0_i32_2 = arith.constant 0 : i32
    return %arg0, %c0_i32, %c0_i32_0, %c0_i32_1 : i32, i32, i32, i32
  }
  func.func @transform_1(%arg0: i32, %arg1: memref<9xi32, #tpu.memory_space<smem>>) -> (i32, i32, i32) {
    %c0_i32 = arith.constant 0 : i32
    %c0_i32_0 = arith.constant 0 : i32
    %c0_i32_1 = arith.constant 0 : i32
    return %arg0, %c0_i32, %c0_i32_0 : i32, i32, i32
  }
  func.func @transform_2(%arg0: i32, %arg1: memref<9xi32, #tpu.memory_space<smem>>) -> (i32, i32, i32) {
    %c0_i32 = arith.constant 0 : i32
    %c0_i32_0 = arith.constant 0 : i32
    %c0_i32_1 = arith.constant 0 : i32
    return %arg0, %c0_i32, %c0_i32_0 : i32, i32, i32
  }
  func.func @transform_3(%arg0: i32, %arg1: memref<9xi32, #tpu.memory_space<smem>>) -> (i32, i32, i32) {
    %c0_i32 = arith.constant 0 : i32
    %c0_i32_0 = arith.constant 0 : i32
    %c0_i32_1 = arith.constant 0 : i32
    return %arg0, %c0_i32, %c0_i32_0 : i32, i32, i32
  }
  func.func @transform_4(%arg0: i32, %arg1: memref<9xi32, #tpu.memory_space<smem>>) -> (i32, i32, i32) {
    %c0_i32 = arith.constant 0 : i32
    %c0_i32_0 = arith.constant 0 : i32
    %c0_i32_1 = arith.constant 0 : i32
    return %arg0, %c0_i32, %c0_i32_0 : i32, i32, i32
  }
  func.func @transform_5(%arg0: i32, %arg1: memref<9xi32, #tpu.memory_space<smem>>) -> (i32, i32, i32) {
    %c0_i32 = arith.constant 0 : i32
    %c0_i32_0 = arith.constant 0 : i32
    %c0_i32_1 = arith.constant 0 : i32
    return %arg0, %c0_i32, %c0_i32_0 : i32, i32, i32
  }
}

module attributes {stable_mosaic.version = 11 : i64} {
  func.func @_decoder_loop_kernel(%arg0: i32, %arg1: memref<8xi32, #tpu.memory_space<smem>>, %arg2: memref<8x4x32xf32, #tpu.memory_space<vmem>>, %arg3: memref<4x144xf32, #tpu.memory_space<vmem>>, %arg4: memref<4x144xf32, #tpu.memory_space<vmem>>, %arg5: memref<32x16xf32, #tpu.memory_space<vmem>>, %arg6: memref<16x576xf32, #tpu.memory_space<vmem>>, %arg7: memref<144x576xf32, #tpu.memory_space<vmem>>, %arg8: memref<1x576xf32, #tpu.memory_space<vmem>>, %arg9: memref<144x32xf32, #tpu.memory_space<vmem>>, %arg10: memref<1x32xf32, #tpu.memory_space<vmem>>, %arg11: memref<8x4x32xf32, #tpu.memory_space<vmem>>) attributes {dimension_semantics = [#tpu.dimension_semantics<arbitrary>], iteration_bounds = array<i64: 1>, scalar_prefetch = 1 : i64, scratch_operands = 0 : i64, tpu.core_type = #tpu.core_type<tc>, window_params = [{pipeline_mode = #tpu.pipeline_mode<synchronous>, transform_indices = @transform_0, window_bounds = array<i64: 8, 4, 32>}, {pipeline_mode = #tpu.pipeline_mode<synchronous>, transform_indices = @transform_1, window_bounds = array<i64: 4, 144>}, {pipeline_mode = #tpu.pipeline_mode<synchronous>, transform_indices = @transform_2, window_bounds = array<i64: 4, 144>}, {pipeline_mode = #tpu.pipeline_mode<synchronous>, transform_indices = @transform_3, window_bounds = array<i64: 32, 16>}, {pipeline_mode = #tpu.pipeline_mode<synchronous>, transform_indices = @transform_4, window_bounds = array<i64: 16, 576>}, {pipeline_mode = #tpu.pipeline_mode<synchronous>, transform_indices = @transform_5, window_bounds = array<i64: 144, 576>}, {pipeline_mode = #tpu.pipeline_mode<synchronous>, transform_indices = @transform_6, window_bounds = array<i64: 1, 576>}, {pipeline_mode = #tpu.pipeline_mode<synchronous>, transform_indices = @transform_7, window_bounds = array<i64: 144, 32>}, {pipeline_mode = #tpu.pipeline_mode<synchronous>, transform_indices = @transform_8, window_bounds = array<i64: 1, 32>}, {pipeline_mode = #tpu.pipeline_mode<synchronous>, transform_indices = @transform_9, window_bounds = array<i64: 8, 4, 32>}]} {
    %c0 = arith.constant 0 : index
    %c0_0 = arith.constant 0 : index
    %0 = vector.load %arg5[%c0, %c0_0] : memref<32x16xf32, #tpu.memory_space<vmem>>, vector<32x16xf32>
    %c0_1 = arith.constant 0 : index
    %c0_2 = arith.constant 0 : index
    %1 = vector.load %arg6[%c0_1, %c0_2] : memref<16x576xf32, #tpu.memory_space<vmem>>, vector<16x576xf32>
    %c0_3 = arith.constant 0 : index
    %c0_4 = arith.constant 0 : index
    %2 = vector.load %arg7[%c0_3, %c0_4] : memref<144x576xf32, #tpu.memory_space<vmem>>, vector<144x576xf32>
    %c0_5 = arith.constant 0 : index
    %c0_6 = arith.constant 0 : index
    %3 = vector.load %arg8[%c0_5, %c0_6] : memref<1x576xf32, #tpu.memory_space<vmem>>, vector<1x576xf32>
    %c0_7 = arith.constant 0 : index
    %c0_8 = arith.constant 0 : index
    %4 = vector.load %arg9[%c0_7, %c0_8] : memref<144x32xf32, #tpu.memory_space<vmem>>, vector<144x32xf32>
    %c0_9 = arith.constant 0 : index
    %c0_10 = arith.constant 0 : index
    %5 = vector.load %arg10[%c0_9, %c0_10] : memref<1x32xf32, #tpu.memory_space<vmem>>, vector<1x32xf32>
    %6 = tpu.iota {dimensions = array<i32: 1>} : vector<4x32xi32>
    %cst = arith.constant 0.000000e+00 : f32
    %7 = vector.broadcast %cst : f32 to vector<4x32xf32>
    %c0_11 = arith.constant 0 : index
    %c0_12 = arith.constant 0 : index
    %c0_13 = arith.constant 0 : index
    %8 = vector.load %arg11[%c0_11, %c0_12, %c0_13] : memref<8x4x32xf32, #tpu.memory_space<vmem>>, vector<1x4x32xf32>
    %9 = vector.shape_cast %8 : vector<1x4x32xf32> to vector<4x32xf32>
    %10 = vector.shape_cast %7 : vector<4x32xf32> to vector<1x4x32xf32>
    tpu.vector_store %arg11[%c0_11, %c0_12, %c0_13], %10 {strides = array<i32>} : memref<8x4x32xf32, #tpu.memory_space<vmem>>, vector<1x4x32xf32>,
    %c0_14 = arith.constant 0 : index
    %c0_15 = arith.constant 0 : index
    %11 = vector.load %arg3[%c0_14, %c0_15] : memref<4x144xf32, #tpu.memory_space<vmem>>, vector<4x144xf32>
    %c0_16 = arith.constant 0 : index
    %c0_17 = arith.constant 0 : index
    %12 = vector.load %arg4[%c0_16, %c0_17] : memref<4x144xf32, #tpu.memory_space<vmem>>, vector<4x144xf32>
    %c0_18 = arith.constant 0 : index
    %c0_19 = arith.constant 0 : index
    %c0_20 = arith.constant 0 : index
    %13 = vector.load %arg2[%c0_18, %c0_19, %c0_20] : memref<8x4x32xf32, #tpu.memory_space<vmem>>, vector<1x4x32xf32>
    %14 = vector.shape_cast %13 : vector<1x4x32xf32> to vector<4x32xf32>
    %cst_21 = arith.constant dense<0.000000e+00> : vector<4x16xf32>
    %15 = tpu.matmul %14, %0, %cst_21 {dimension_numbers = #tpu.dot_dimension_numbers<[1], [0], [0], [1], [0, 0, 1, 1], [], []>} : vector<4x32xf32>, vector<32x16xf32>, vector<4x16xf32> -> vector<4x16xf32>
    %cst_22 = arith.constant dense<0.000000e+00> : vector<4x576xf32>
    %16 = tpu.matmul %15, %1, %cst_22 {dimension_numbers = #tpu.dot_dimension_numbers<[1], [0], [0], [1], [0, 0, 1, 1], [], []>} : vector<4x16xf32>, vector<16x576xf32>, vector<4x576xf32> -> vector<4x576xf32>
    %cst_23 = arith.constant dense<0.000000e+00> : vector<4x576xf32>
    %17 = tpu.matmul %11, %2, %cst_23 {dimension_numbers = #tpu.dot_dimension_numbers<[1], [0], [0], [1], [0, 0, 1, 1], [], []>} : vector<4x144xf32>, vector<144x576xf32>, vector<4x576xf32> -> vector<4x576xf32>
    %18 = arith.addf %16, %17 : vector<4x576xf32>
    %19 = vector.broadcast %3 : vector<1x576xf32> to vector<4x576xf32>
    %20 = arith.addf %18, %19 : vector<4x576xf32>
    %21 = vector.extract_strided_slice %20 {offsets = [0, 0], sizes = [4, 144], strides = [1, 1]} : vector<4x576xf32> to vector<4x144xf32>
    %22 = arith.negf %21 : vector<4x144xf32>
    %23 = math.exp %22 : vector<4x144xf32>
    %cst_24 = arith.constant 1.000000e+00 : f32
    %24 = vector.broadcast %cst_24 : f32 to vector<4x144xf32>
    %25 = arith.addf %24, %23 : vector<4x144xf32>
    %26 = arith.divf %24, %25 : vector<4x144xf32>
    %27 = vector.extract_strided_slice %20 {offsets = [0, 144], sizes = [4, 144], strides = [1, 1]} : vector<4x576xf32> to vector<4x144xf32>
    %28 = arith.negf %27 : vector<4x144xf32>
    %29 = math.exp %28 : vector<4x144xf32>
    %cst_25 = arith.constant 1.000000e+00 : f32
    %30 = vector.broadcast %cst_25 : f32 to vector<4x144xf32>
    %31 = arith.addf %30, %29 : vector<4x144xf32>
    %32 = arith.divf %30, %31 : vector<4x144xf32>
    %33 = vector.extract_strided_slice %20 {offsets = [0, 288], sizes = [4, 144], strides = [1, 1]} : vector<4x576xf32> to vector<4x144xf32>
    %34 = math.tanh %33 : vector<4x144xf32>
    %35 = vector.extract_strided_slice %20 {offsets = [0, 432], sizes = [4, 144], strides = [1, 1]} : vector<4x576xf32> to vector<4x144xf32>
    %36 = arith.negf %35 : vector<4x144xf32>
    %37 = math.exp %36 : vector<4x144xf32>
    %cst_26 = arith.constant 1.000000e+00 : f32
    %38 = vector.broadcast %cst_26 : f32 to vector<4x144xf32>
    %39 = arith.addf %38, %37 : vector<4x144xf32>
    %40 = arith.divf %38, %39 : vector<4x144xf32>
    %41 = arith.mulf %32, %12 : vector<4x144xf32>
    %42 = arith.mulf %26, %34 : vector<4x144xf32>
    %43 = arith.addf %41, %42 : vector<4x144xf32>
    %44 = math.tanh %43 : vector<4x144xf32>
    %45 = arith.mulf %40, %44 : vector<4x144xf32>
    %cst_27 = arith.constant dense<0.000000e+00> : vector<4x32xf32>
    %46 = tpu.matmul %45, %4, %cst_27 {dimension_numbers = #tpu.dot_dimension_numbers<[1], [0], [0], [1], [0, 0, 1, 1], [], []>} : vector<4x144xf32>, vector<144x32xf32>, vector<4x32xf32> -> vector<4x32xf32>
    %47 = vector.broadcast %5 : vector<1x32xf32> to vector<4x32xf32>
    %48 = arith.addf %46, %47 : vector<4x32xf32>
    %c1 = arith.constant 1 : index
    %c0_28 = arith.constant 0 : index
    %c0_29 = arith.constant 0 : index
    %49 = vector.load %arg11[%c1, %c0_28, %c0_29] : memref<8x4x32xf32, #tpu.memory_space<vmem>>, vector<1x4x32xf32>
    %50 = vector.shape_cast %49 : vector<1x4x32xf32> to vector<4x32xf32>
    %51 = vector.shape_cast %48 : vector<4x32xf32> to vector<1x4x32xf32>
    tpu.vector_store %arg11[%c1, %c0_28, %c0_29], %51 {strides = array<i32>} : memref<8x4x32xf32, #tpu.memory_space<vmem>>, vector<1x4x32xf32>,
    %cst_30 = arith.constant dense<0xFF800000> : vector<4xf32>
    %52 = vector.multi_reduction <maximumf>, %48, %cst_30 [1] : vector<4x32xf32> to vector<4xf32>
    %53 = vector.shape_cast %52 : vector<4xf32> to vector<4x1xf32>
    %54 = vector.broadcast %53 : vector<4x1xf32> to vector<4x32xf32>
    %55 = arith.cmpf oeq, %48, %54 : vector<4x32xf32>
    %c32_i32 = arith.constant 32 : i32
    %56 = vector.broadcast %c32_i32 : i32 to vector<4x32xi32>
    %57 = arith.select %55, %6, %56 : vector<4x32xi1>, vector<4x32xi32>
    %cst_31 = arith.constant dense<2147483647> : vector<4xi32>
    %58 = vector.multi_reduction <minsi>, %57, %cst_31 [1] : vector<4x32xi32> to vector<4xi32>
    %59 = vector.shape_cast %58 : vector<4xi32> to vector<4x1xi32>
    %60 = vector.broadcast %59 : vector<4x1xi32> to vector<4x32xi32>
    %61 = arith.cmpi eq, %6, %60 : vector<4x32xi32>
    %62 = arith.extui %61 : vector<4x32xi1> to vector<4x32xi32>
    %63 = arith.sitofp %62 : vector<4x32xi32> to vector<4x32xf32>
    %c1_32 = arith.constant 1 : index
    %64 = memref.load %arg1[%c1_32] : memref<8xi32, #tpu.memory_space<smem>>
    %c1_i32 = arith.constant 1 : i32
    %65 = arith.cmpi eq, %64, %c1_i32 : i32
    %c1_33 = arith.constant 1 : index
    %c0_34 = arith.constant 0 : index
    %c0_35 = arith.constant 0 : index
    %66 = vector.load %arg2[%c1_33, %c0_34, %c0_35] : memref<8x4x32xf32, #tpu.memory_space<vmem>>, vector<1x4x32xf32>
    %67 = vector.shape_cast %66 : vector<1x4x32xf32> to vector<4x32xf32>
    %68 = arith.select %65, %67, %63 : vector<4x32xf32>
    %cst_36 = arith.constant dense<0.000000e+00> : vector<4x16xf32>
    %69 = tpu.matmul %68, %0, %cst_36 {dimension_numbers = #tpu.dot_dimension_numbers<[1], [0], [0], [1], [0, 0, 1, 1], [], []>} : vector<4x32xf32>, vector<32x16xf32>, vector<4x16xf32> -> vector<4x16xf32>
    %cst_37 = arith.constant dense<0.000000e+00> : vector<4x576xf32>
    %70 = tpu.matmul %69, %1, %cst_37 {dimension_numbers = #tpu.dot_dimension_numbers<[1], [0], [0], [1], [0, 0, 1, 1], [], []>} : vector<4x16xf32>, vector<16x576xf32>, vector<4x576xf32> -> vector<4x576xf32>
    %cst_38 = arith.constant dense<0.000000e+00> : vector<4x576xf32>
    %71 = tpu.matmul %45, %2, %cst_38 {dimension_numbers = #tpu.dot_dimension_numbers<[1], [0], [0], [1], [0, 0, 1, 1], [], []>} : vector<4x144xf32>, vector<144x576xf32>, vector<4x576xf32> -> vector<4x576xf32>
    %72 = arith.addf %70, %71 : vector<4x576xf32>
    %73 = vector.broadcast %3 : vector<1x576xf32> to vector<4x576xf32>
    %74 = arith.addf %72, %73 : vector<4x576xf32>
    %75 = vector.extract_strided_slice %74 {offsets = [0, 0], sizes = [4, 144], strides = [1, 1]} : vector<4x576xf32> to vector<4x144xf32>
    %76 = arith.negf %75 : vector<4x144xf32>
    %77 = math.exp %76 : vector<4x144xf32>
    %cst_39 = arith.constant 1.000000e+00 : f32
    %78 = vector.broadcast %cst_39 : f32 to vector<4x144xf32>
    %79 = arith.addf %78, %77 : vector<4x144xf32>
    %80 = arith.divf %78, %79 : vector<4x144xf32>
    %81 = vector.extract_strided_slice %74 {offsets = [0, 144], sizes = [4, 144], strides = [1, 1]} : vector<4x576xf32> to vector<4x144xf32>
    %82 = arith.negf %81 : vector<4x144xf32>
    %83 = math.exp %82 : vector<4x144xf32>
    %cst_40 = arith.constant 1.000000e+00 : f32
    %84 = vector.broadcast %cst_40 : f32 to vector<4x144xf32>
    %85 = arith.addf %84, %83 : vector<4x144xf32>
    %86 = arith.divf %84, %85 : vector<4x144xf32>
    %87 = vector.extract_strided_slice %74 {offsets = [0, 288], sizes = [4, 144], strides = [1, 1]} : vector<4x576xf32> to vector<4x144xf32>
    %88 = math.tanh %87 : vector<4x144xf32>
    %89 = vector.extract_strided_slice %74 {offsets = [0, 432], sizes = [4, 144], strides = [1, 1]} : vector<4x576xf32> to vector<4x144xf32>
    %90 = arith.negf %89 : vector<4x144xf32>
    %91 = math.exp %90 : vector<4x144xf32>
    %cst_41 = arith.constant 1.000000e+00 : f32
    %92 = vector.broadcast %cst_41 : f32 to vector<4x144xf32>
    %93 = arith.addf %92, %91 : vector<4x144xf32>
    %94 = arith.divf %92, %93 : vector<4x144xf32>
    %95 = arith.mulf %86, %43 : vector<4x144xf32>
    %96 = arith.mulf %80, %88 : vector<4x144xf32>
    %97 = arith.addf %95, %96 : vector<4x144xf32>
    %98 = math.tanh %97 : vector<4x144xf32>
    %99 = arith.mulf %94, %98 : vector<4x144xf32>
    %cst_42 = arith.constant dense<0.000000e+00> : vector<4x32xf32>
    %100 = tpu.matmul %99, %4, %cst_42 {dimension_numbers = #tpu.dot_dimension_numbers<[1], [0], [0], [1], [0, 0, 1, 1], [], []>} : vector<4x144xf32>, vector<144x32xf32>, vector<4x32xf32> -> vector<4x32xf32>
    %101 = vector.broadcast %5 : vector<1x32xf32> to vector<4x32xf32>
    %102 = arith.addf %100, %101 : vector<4x32xf32>
    %c2 = arith.constant 2 : index
    %c0_43 = arith.constant 0 : index
    %c0_44 = arith.constant 0 : index
    %103 = vector.load %arg11[%c2, %c0_43, %c0_44] : memref<8x4x32xf32, #tpu.memory_space<vmem>>, vector<1x4x32xf32>
    %104 = vector.shape_cast %103 : vector<1x4x32xf32> to vector<4x32xf32>
    %105 = vector.shape_cast %102 : vector<4x32xf32> to vector<1x4x32xf32>
    tpu.vector_store %arg11[%c2, %c0_43, %c0_44], %105 {strides = array<i32>} : memref<8x4x32xf32, #tpu.memory_space<vmem>>, vector<1x4x32xf32>,
    %cst_45 = arith.constant dense<0xFF800000> : vector<4xf32>
    %106 = vector.multi_reduction <maximumf>, %102, %cst_45 [1] : vector<4x32xf32> to vector<4xf32>
    %107 = vector.shape_cast %106 : vector<4xf32> to vector<4x1xf32>
    %108 = vector.broadcast %107 : vector<4x1xf32> to vector<4x32xf32>
    %109 = arith.cmpf oeq, %102, %108 : vector<4x32xf32>
    %c32_i32_46 = arith.constant 32 : i32
    %110 = vector.broadcast %c32_i32_46 : i32 to vector<4x32xi32>
    %111 = arith.select %109, %6, %110 : vector<4x32xi1>, vector<4x32xi32>
    %cst_47 = arith.constant dense<2147483647> : vector<4xi32>
    %112 = vector.multi_reduction <minsi>, %111, %cst_47 [1] : vector<4x32xi32> to vector<4xi32>
    %113 = vector.shape_cast %112 : vector<4xi32> to vector<4x1xi32>
    %114 = vector.broadcast %113 : vector<4x1xi32> to vector<4x32xi32>
    %115 = arith.cmpi eq, %6, %114 : vector<4x32xi32>
    %116 = arith.extui %115 : vector<4x32xi1> to vector<4x32xi32>
    %117 = arith.sitofp %116 : vector<4x32xi32> to vector<4x32xf32>
    %c2_48 = arith.constant 2 : index
    %118 = memref.load %arg1[%c2_48] : memref<8xi32, #tpu.memory_space<smem>>
    %c1_i32_49 = arith.constant 1 : i32
    %119 = arith.cmpi eq, %118, %c1_i32_49 : i32
    %c2_50 = arith.constant 2 : index
    %c0_51 = arith.constant 0 : index
    %c0_52 = arith.constant 0 : index
    %120 = vector.load %arg2[%c2_50, %c0_51, %c0_52] : memref<8x4x32xf32, #tpu.memory_space<vmem>>, vector<1x4x32xf32>
    %121 = vector.shape_cast %120 : vector<1x4x32xf32> to vector<4x32xf32>
    %122 = arith.select %119, %121, %117 : vector<4x32xf32>
    %cst_53 = arith.constant dense<0.000000e+00> : vector<4x16xf32>
    %123 = tpu.matmul %122, %0, %cst_53 {dimension_numbers = #tpu.dot_dimension_numbers<[1], [0], [0], [1], [0, 0, 1, 1], [], []>} : vector<4x32xf32>, vector<32x16xf32>, vector<4x16xf32> -> vector<4x16xf32>
    %cst_54 = arith.constant dense<0.000000e+00> : vector<4x576xf32>
    %124 = tpu.matmul %123, %1, %cst_54 {dimension_numbers = #tpu.dot_dimension_numbers<[1], [0], [0], [1], [0, 0, 1, 1], [], []>} : vector<4x16xf32>, vector<16x576xf32>, vector<4x576xf32> -> vector<4x576xf32>
    %cst_55 = arith.constant dense<0.000000e+00> : vector<4x576xf32>
    %125 = tpu.matmul %99, %2, %cst_55 {dimension_numbers = #tpu.dot_dimension_numbers<[1], [0], [0], [1], [0, 0, 1, 1], [], []>} : vector<4x144xf32>, vector<144x576xf32>, vector<4x576xf32> -> vector<4x576xf32>
    %126 = arith.addf %124, %125 : vector<4x576xf32>
    %127 = vector.broadcast %3 : vector<1x576xf32> to vector<4x576xf32>
    %128 = arith.addf %126, %127 : vector<4x576xf32>
    %129 = vector.extract_strided_slice %128 {offsets = [0, 0], sizes = [4, 144], strides = [1, 1]} : vector<4x576xf32> to vector<4x144xf32>
    %130 = arith.negf %129 : vector<4x144xf32>
    %131 = math.exp %130 : vector<4x144xf32>
    %cst_56 = arith.constant 1.000000e+00 : f32
    %132 = vector.broadcast %cst_56 : f32 to vector<4x144xf32>
    %133 = arith.addf %132, %131 : vector<4x144xf32>
    %134 = arith.divf %132, %133 : vector<4x144xf32>
    %135 = vector.extract_strided_slice %128 {offsets = [0, 144], sizes = [4, 144], strides = [1, 1]} : vector<4x576xf32> to vector<4x144xf32>
    %136 = arith.negf %135 : vector<4x144xf32>
    %137 = math.exp %136 : vector<4x144xf32>
    %cst_57 = arith.constant 1.000000e+00 : f32
    %138 = vector.broadcast %cst_57 : f32 to vector<4x144xf32>
    %139 = arith.addf %138, %137 : vector<4x144xf32>
    %140 = arith.divf %138, %139 : vector<4x144xf32>
    %141 = vector.extract_strided_slice %128 {offsets = [0, 288], sizes = [4, 144], strides = [1, 1]} : vector<4x576xf32> to vector<4x144xf32>
    %142 = math.tanh %141 : vector<4x144xf32>
    %143 = vector.extract_strided_slice %128 {offsets = [0, 432], sizes = [4, 144], strides = [1, 1]} : vector<4x576xf32> to vector<4x144xf32>
    %144 = arith.negf %143 : vector<4x144xf32>
    %145 = math.exp %144 : vector<4x144xf32>
    %cst_58 = arith.constant 1.000000e+00 : f32
    %146 = vector.broadcast %cst_58 : f32 to vector<4x144xf32>
    %147 = arith.addf %146, %145 : vector<4x144xf32>
    %148 = arith.divf %146, %147 : vector<4x144xf32>
    %149 = arith.mulf %140, %97 : vector<4x144xf32>
    %150 = arith.mulf %134, %142 : vector<4x144xf32>
    %151 = arith.addf %149, %150 : vector<4x144xf32>
    %152 = math.tanh %151 : vector<4x144xf32>
    %153 = arith.mulf %148, %152 : vector<4x144xf32>
    %cst_59 = arith.constant dense<0.000000e+00> : vector<4x32xf32>
    %154 = tpu.matmul %153, %4, %cst_59 {dimension_numbers = #tpu.dot_dimension_numbers<[1], [0], [0], [1], [0, 0, 1, 1], [], []>} : vector<4x144xf32>, vector<144x32xf32>, vector<4x32xf32> -> vector<4x32xf32>
    %155 = vector.broadcast %5 : vector<1x32xf32> to vector<4x32xf32>
    %156 = arith.addf %154, %155 : vector<4x32xf32>
    %c3 = arith.constant 3 : index
    %c0_60 = arith.constant 0 : index
    %c0_61 = arith.constant 0 : index
    %157 = vector.load %arg11[%c3, %c0_60, %c0_61] : memref<8x4x32xf32, #tpu.memory_space<vmem>>, vector<1x4x32xf32>
    %158 = vector.shape_cast %157 : vector<1x4x32xf32> to vector<4x32xf32>
    %159 = vector.shape_cast %156 : vector<4x32xf32> to vector<1x4x32xf32>
    tpu.vector_store %arg11[%c3, %c0_60, %c0_61], %159 {strides = array<i32>} : memref<8x4x32xf32, #tpu.memory_space<vmem>>, vector<1x4x32xf32>,
    %cst_62 = arith.constant dense<0xFF800000> : vector<4xf32>
    %160 = vector.multi_reduction <maximumf>, %156, %cst_62 [1] : vector<4x32xf32> to vector<4xf32>
    %161 = vector.shape_cast %160 : vector<4xf32> to vector<4x1xf32>
    %162 = vector.broadcast %161 : vector<4x1xf32> to vector<4x32xf32>
    %163 = arith.cmpf oeq, %156, %162 : vector<4x32xf32>
    %c32_i32_63 = arith.constant 32 : i32
    %164 = vector.broadcast %c32_i32_63 : i32 to vector<4x32xi32>
    %165 = arith.select %163, %6, %164 : vector<4x32xi1>, vector<4x32xi32>
    %cst_64 = arith.constant dense<2147483647> : vector<4xi32>
    %166 = vector.multi_reduction <minsi>, %165, %cst_64 [1] : vector<4x32xi32> to vector<4xi32>
    %167 = vector.shape_cast %166 : vector<4xi32> to vector<4x1xi32>
    %168 = vector.broadcast %167 : vector<4x1xi32> to vector<4x32xi32>
    %169 = arith.cmpi eq, %6, %168 : vector<4x32xi32>
    %170 = arith.extui %169 : vector<4x32xi1> to vector<4x32xi32>
    %171 = arith.sitofp %170 : vector<4x32xi32> to vector<4x32xf32>
    %c3_65 = arith.constant 3 : index
    %172 = memref.load %arg1[%c3_65] : memref<8xi32, #tpu.memory_space<smem>>
    %c1_i32_66 = arith.constant 1 : i32
    %173 = arith.cmpi eq, %172, %c1_i32_66 : i32
    %c3_67 = arith.constant 3 : index
    %c0_68 = arith.constant 0 : index
    %c0_69 = arith.constant 0 : index
    %174 = vector.load %arg2[%c3_67, %c0_68, %c0_69] : memref<8x4x32xf32, #tpu.memory_space<vmem>>, vector<1x4x32xf32>
    %175 = vector.shape_cast %174 : vector<1x4x32xf32> to vector<4x32xf32>
    %176 = arith.select %173, %175, %171 : vector<4x32xf32>
    %cst_70 = arith.constant dense<0.000000e+00> : vector<4x16xf32>
    %177 = tpu.matmul %176, %0, %cst_70 {dimension_numbers = #tpu.dot_dimension_numbers<[1], [0], [0], [1], [0, 0, 1, 1], [], []>} : vector<4x32xf32>, vector<32x16xf32>, vector<4x16xf32> -> vector<4x16xf32>
    %cst_71 = arith.constant dense<0.000000e+00> : vector<4x576xf32>
    %178 = tpu.matmul %177, %1, %cst_71 {dimension_numbers = #tpu.dot_dimension_numbers<[1], [0], [0], [1], [0, 0, 1, 1], [], []>} : vector<4x16xf32>, vector<16x576xf32>, vector<4x576xf32> -> vector<4x576xf32>
    %cst_72 = arith.constant dense<0.000000e+00> : vector<4x576xf32>
    %179 = tpu.matmul %153, %2, %cst_72 {dimension_numbers = #tpu.dot_dimension_numbers<[1], [0], [0], [1], [0, 0, 1, 1], [], []>} : vector<4x144xf32>, vector<144x576xf32>, vector<4x576xf32> -> vector<4x576xf32>
    %180 = arith.addf %178, %179 : vector<4x576xf32>
    %181 = vector.broadcast %3 : vector<1x576xf32> to vector<4x576xf32>
    %182 = arith.addf %180, %181 : vector<4x576xf32>
    %183 = vector.extract_strided_slice %182 {offsets = [0, 0], sizes = [4, 144], strides = [1, 1]} : vector<4x576xf32> to vector<4x144xf32>
    %184 = arith.negf %183 : vector<4x144xf32>
    %185 = math.exp %184 : vector<4x144xf32>
    %cst_73 = arith.constant 1.000000e+00 : f32
    %186 = vector.broadcast %cst_73 : f32 to vector<4x144xf32>
    %187 = arith.addf %186, %185 : vector<4x144xf32>
    %188 = arith.divf %186, %187 : vector<4x144xf32>
    %189 = vector.extract_strided_slice %182 {offsets = [0, 144], sizes = [4, 144], strides = [1, 1]} : vector<4x576xf32> to vector<4x144xf32>
    %190 = arith.negf %189 : vector<4x144xf32>
    %191 = math.exp %190 : vector<4x144xf32>
    %cst_74 = arith.constant 1.000000e+00 : f32
    %192 = vector.broadcast %cst_74 : f32 to vector<4x144xf32>
    %193 = arith.addf %192, %191 : vector<4x144xf32>
    %194 = arith.divf %192, %193 : vector<4x144xf32>
    %195 = vector.extract_strided_slice %182 {offsets = [0, 288], sizes = [4, 144], strides = [1, 1]} : vector<4x576xf32> to vector<4x144xf32>
    %196 = math.tanh %195 : vector<4x144xf32>
    %197 = vector.extract_strided_slice %182 {offsets = [0, 432], sizes = [4, 144], strides = [1, 1]} : vector<4x576xf32> to vector<4x144xf32>
    %198 = arith.negf %197 : vector<4x144xf32>
    %199 = math.exp %198 : vector<4x144xf32>
    %cst_75 = arith.constant 1.000000e+00 : f32
    %200 = vector.broadcast %cst_75 : f32 to vector<4x144xf32>
    %201 = arith.addf %200, %199 : vector<4x144xf32>
    %202 = arith.divf %200, %201 : vector<4x144xf32>
    %203 = arith.mulf %194, %151 : vector<4x144xf32>
    %204 = arith.mulf %188, %196 : vector<4x144xf32>
    %205 = arith.addf %203, %204 : vector<4x144xf32>
    %206 = math.tanh %205 : vector<4x144xf32>
    %207 = arith.mulf %202, %206 : vector<4x144xf32>
    %cst_76 = arith.constant dense<0.000000e+00> : vector<4x32xf32>
    %208 = tpu.matmul %207, %4, %cst_76 {dimension_numbers = #tpu.dot_dimension_numbers<[1], [0], [0], [1], [0, 0, 1, 1], [], []>} : vector<4x144xf32>, vector<144x32xf32>, vector<4x32xf32> -> vector<4x32xf32>
    %209 = vector.broadcast %5 : vector<1x32xf32> to vector<4x32xf32>
    %210 = arith.addf %208, %209 : vector<4x32xf32>
    %c4 = arith.constant 4 : index
    %c0_77 = arith.constant 0 : index
    %c0_78 = arith.constant 0 : index
    %211 = vector.load %arg11[%c4, %c0_77, %c0_78] : memref<8x4x32xf32, #tpu.memory_space<vmem>>, vector<1x4x32xf32>
    %212 = vector.shape_cast %211 : vector<1x4x32xf32> to vector<4x32xf32>
    %213 = vector.shape_cast %210 : vector<4x32xf32> to vector<1x4x32xf32>
    tpu.vector_store %arg11[%c4, %c0_77, %c0_78], %213 {strides = array<i32>} : memref<8x4x32xf32, #tpu.memory_space<vmem>>, vector<1x4x32xf32>,
    %cst_79 = arith.constant dense<0xFF800000> : vector<4xf32>
    %214 = vector.multi_reduction <maximumf>, %210, %cst_79 [1] : vector<4x32xf32> to vector<4xf32>
    %215 = vector.shape_cast %214 : vector<4xf32> to vector<4x1xf32>
    %216 = vector.broadcast %215 : vector<4x1xf32> to vector<4x32xf32>
    %217 = arith.cmpf oeq, %210, %216 : vector<4x32xf32>
    %c32_i32_80 = arith.constant 32 : i32
    %218 = vector.broadcast %c32_i32_80 : i32 to vector<4x32xi32>
    %219 = arith.select %217, %6, %218 : vector<4x32xi1>, vector<4x32xi32>
    %cst_81 = arith.constant dense<2147483647> : vector<4xi32>
    %220 = vector.multi_reduction <minsi>, %219, %cst_81 [1] : vector<4x32xi32> to vector<4xi32>
    %221 = vector.shape_cast %220 : vector<4xi32> to vector<4x1xi32>
    %222 = vector.broadcast %221 : vector<4x1xi32> to vector<4x32xi32>
    %223 = arith.cmpi eq, %6, %222 : vector<4x32xi32>
    %224 = arith.extui %223 : vector<4x32xi1> to vector<4x32xi32>
    %225 = arith.sitofp %224 : vector<4x32xi32> to vector<4x32xf32>
    %c4_82 = arith.constant 4 : index
    %226 = memref.load %arg1[%c4_82] : memref<8xi32, #tpu.memory_space<smem>>
    %c1_i32_83 = arith.constant 1 : i32
    %227 = arith.cmpi eq, %226, %c1_i32_83 : i32
    %c4_84 = arith.constant 4 : index
    %c0_85 = arith.constant 0 : index
    %c0_86 = arith.constant 0 : index
    %228 = vector.load %arg2[%c4_84, %c0_85, %c0_86] : memref<8x4x32xf32, #tpu.memory_space<vmem>>, vector<1x4x32xf32>
    %229 = vector.shape_cast %228 : vector<1x4x32xf32> to vector<4x32xf32>
    %230 = arith.select %227, %229, %225 : vector<4x32xf32>
    %cst_87 = arith.constant dense<0.000000e+00> : vector<4x16xf32>
    %231 = tpu.matmul %230, %0, %cst_87 {dimension_numbers = #tpu.dot_dimension_numbers<[1], [0], [0], [1], [0, 0, 1, 1], [], []>} : vector<4x32xf32>, vector<32x16xf32>, vector<4x16xf32> -> vector<4x16xf32>
    %cst_88 = arith.constant dense<0.000000e+00> : vector<4x576xf32>
    %232 = tpu.matmul %231, %1, %cst_88 {dimension_numbers = #tpu.dot_dimension_numbers<[1], [0], [0], [1], [0, 0, 1, 1], [], []>} : vector<4x16xf32>, vector<16x576xf32>, vector<4x576xf32> -> vector<4x576xf32>
    %cst_89 = arith.constant dense<0.000000e+00> : vector<4x576xf32>
    %233 = tpu.matmul %207, %2, %cst_89 {dimension_numbers = #tpu.dot_dimension_numbers<[1], [0], [0], [1], [0, 0, 1, 1], [], []>} : vector<4x144xf32>, vector<144x576xf32>, vector<4x576xf32> -> vector<4x576xf32>
    %234 = arith.addf %232, %233 : vector<4x576xf32>
    %235 = vector.broadcast %3 : vector<1x576xf32> to vector<4x576xf32>
    %236 = arith.addf %234, %235 : vector<4x576xf32>
    %237 = vector.extract_strided_slice %236 {offsets = [0, 0], sizes = [4, 144], strides = [1, 1]} : vector<4x576xf32> to vector<4x144xf32>
    %238 = arith.negf %237 : vector<4x144xf32>
    %239 = math.exp %238 : vector<4x144xf32>
    %cst_90 = arith.constant 1.000000e+00 : f32
    %240 = vector.broadcast %cst_90 : f32 to vector<4x144xf32>
    %241 = arith.addf %240, %239 : vector<4x144xf32>
    %242 = arith.divf %240, %241 : vector<4x144xf32>
    %243 = vector.extract_strided_slice %236 {offsets = [0, 144], sizes = [4, 144], strides = [1, 1]} : vector<4x576xf32> to vector<4x144xf32>
    %244 = arith.negf %243 : vector<4x144xf32>
    %245 = math.exp %244 : vector<4x144xf32>
    %cst_91 = arith.constant 1.000000e+00 : f32
    %246 = vector.broadcast %cst_91 : f32 to vector<4x144xf32>
    %247 = arith.addf %246, %245 : vector<4x144xf32>
    %248 = arith.divf %246, %247 : vector<4x144xf32>
    %249 = vector.extract_strided_slice %236 {offsets = [0, 288], sizes = [4, 144], strides = [1, 1]} : vector<4x576xf32> to vector<4x144xf32>
    %250 = math.tanh %249 : vector<4x144xf32>
    %251 = vector.extract_strided_slice %236 {offsets = [0, 432], sizes = [4, 144], strides = [1, 1]} : vector<4x576xf32> to vector<4x144xf32>
    %252 = arith.negf %251 : vector<4x144xf32>
    %253 = math.exp %252 : vector<4x144xf32>
    %cst_92 = arith.constant 1.000000e+00 : f32
    %254 = vector.broadcast %cst_92 : f32 to vector<4x144xf32>
    %255 = arith.addf %254, %253 : vector<4x144xf32>
    %256 = arith.divf %254, %255 : vector<4x144xf32>
    %257 = arith.mulf %248, %205 : vector<4x144xf32>
    %258 = arith.mulf %242, %250 : vector<4x144xf32>
    %259 = arith.addf %257, %258 : vector<4x144xf32>
    %260 = math.tanh %259 : vector<4x144xf32>
    %261 = arith.mulf %256, %260 : vector<4x144xf32>
    %cst_93 = arith.constant dense<0.000000e+00> : vector<4x32xf32>
    %262 = tpu.matmul %261, %4, %cst_93 {dimension_numbers = #tpu.dot_dimension_numbers<[1], [0], [0], [1], [0, 0, 1, 1], [], []>} : vector<4x144xf32>, vector<144x32xf32>, vector<4x32xf32> -> vector<4x32xf32>
    %263 = vector.broadcast %5 : vector<1x32xf32> to vector<4x32xf32>
    %264 = arith.addf %262, %263 : vector<4x32xf32>
    %c5 = arith.constant 5 : index
    %c0_94 = arith.constant 0 : index
    %c0_95 = arith.constant 0 : index
    %265 = vector.load %arg11[%c5, %c0_94, %c0_95] : memref<8x4x32xf32, #tpu.memory_space<vmem>>, vector<1x4x32xf32>
    %266 = vector.shape_cast %265 : vector<1x4x32xf32> to vector<4x32xf32>
    %267 = vector.shape_cast %264 : vector<4x32xf32> to vector<1x4x32xf32>
    tpu.vector_store %arg11[%c5, %c0_94, %c0_95], %267 {strides = array<i32>} : memref<8x4x32xf32, #tpu.memory_space<vmem>>, vector<1x4x32xf32>,
    %cst_96 = arith.constant dense<0xFF800000> : vector<4xf32>
    %268 = vector.multi_reduction <maximumf>, %264, %cst_96 [1] : vector<4x32xf32> to vector<4xf32>
    %269 = vector.shape_cast %268 : vector<4xf32> to vector<4x1xf32>
    %270 = vector.broadcast %269 : vector<4x1xf32> to vector<4x32xf32>
    %271 = arith.cmpf oeq, %264, %270 : vector<4x32xf32>
    %c32_i32_97 = arith.constant 32 : i32
    %272 = vector.broadcast %c32_i32_97 : i32 to vector<4x32xi32>
    %273 = arith.select %271, %6, %272 : vector<4x32xi1>, vector<4x32xi32>
    %cst_98 = arith.constant dense<2147483647> : vector<4xi32>
    %274 = vector.multi_reduction <minsi>, %273, %cst_98 [1] : vector<4x32xi32> to vector<4xi32>
    %275 = vector.shape_cast %274 : vector<4xi32> to vector<4x1xi32>
    %276 = vector.broadcast %275 : vector<4x1xi32> to vector<4x32xi32>
    %277 = arith.cmpi eq, %6, %276 : vector<4x32xi32>
    %278 = arith.extui %277 : vector<4x32xi1> to vector<4x32xi32>
    %279 = arith.sitofp %278 : vector<4x32xi32> to vector<4x32xf32>
    %c5_99 = arith.constant 5 : index
    %280 = memref.load %arg1[%c5_99] : memref<8xi32, #tpu.memory_space<smem>>
    %c1_i32_100 = arith.constant 1 : i32
    %281 = arith.cmpi eq, %280, %c1_i32_100 : i32
    %c5_101 = arith.constant 5 : index
    %c0_102 = arith.constant 0 : index
    %c0_103 = arith.constant 0 : index
    %282 = vector.load %arg2[%c5_101, %c0_102, %c0_103] : memref<8x4x32xf32, #tpu.memory_space<vmem>>, vector<1x4x32xf32>
    %283 = vector.shape_cast %282 : vector<1x4x32xf32> to vector<4x32xf32>
    %284 = arith.select %281, %283, %279 : vector<4x32xf32>
    %cst_104 = arith.constant dense<0.000000e+00> : vector<4x16xf32>
    %285 = tpu.matmul %284, %0, %cst_104 {dimension_numbers = #tpu.dot_dimension_numbers<[1], [0], [0], [1], [0, 0, 1, 1], [], []>} : vector<4x32xf32>, vector<32x16xf32>, vector<4x16xf32> -> vector<4x16xf32>
    %cst_105 = arith.constant dense<0.000000e+00> : vector<4x576xf32>
    %286 = tpu.matmul %285, %1, %cst_105 {dimension_numbers = #tpu.dot_dimension_numbers<[1], [0], [0], [1], [0, 0, 1, 1], [], []>} : vector<4x16xf32>, vector<16x576xf32>, vector<4x576xf32> -> vector<4x576xf32>
    %cst_106 = arith.constant dense<0.000000e+00> : vector<4x576xf32>
    %287 = tpu.matmul %261, %2, %cst_106 {dimension_numbers = #tpu.dot_dimension_numbers<[1], [0], [0], [1], [0, 0, 1, 1], [], []>} : vector<4x144xf32>, vector<144x576xf32>, vector<4x576xf32> -> vector<4x576xf32>
    %288 = arith.addf %286, %287 : vector<4x576xf32>
    %289 = vector.broadcast %3 : vector<1x576xf32> to vector<4x576xf32>
    %290 = arith.addf %288, %289 : vector<4x576xf32>
    %291 = vector.extract_strided_slice %290 {offsets = [0, 0], sizes = [4, 144], strides = [1, 1]} : vector<4x576xf32> to vector<4x144xf32>
    %292 = arith.negf %291 : vector<4x144xf32>
    %293 = math.exp %292 : vector<4x144xf32>
    %cst_107 = arith.constant 1.000000e+00 : f32
    %294 = vector.broadcast %cst_107 : f32 to vector<4x144xf32>
    %295 = arith.addf %294, %293 : vector<4x144xf32>
    %296 = arith.divf %294, %295 : vector<4x144xf32>
    %297 = vector.extract_strided_slice %290 {offsets = [0, 144], sizes = [4, 144], strides = [1, 1]} : vector<4x576xf32> to vector<4x144xf32>
    %298 = arith.negf %297 : vector<4x144xf32>
    %299 = math.exp %298 : vector<4x144xf32>
    %cst_108 = arith.constant 1.000000e+00 : f32
    %300 = vector.broadcast %cst_108 : f32 to vector<4x144xf32>
    %301 = arith.addf %300, %299 : vector<4x144xf32>
    %302 = arith.divf %300, %301 : vector<4x144xf32>
    %303 = vector.extract_strided_slice %290 {offsets = [0, 288], sizes = [4, 144], strides = [1, 1]} : vector<4x576xf32> to vector<4x144xf32>
    %304 = math.tanh %303 : vector<4x144xf32>
    %305 = vector.extract_strided_slice %290 {offsets = [0, 432], sizes = [4, 144], strides = [1, 1]} : vector<4x576xf32> to vector<4x144xf32>
    %306 = arith.negf %305 : vector<4x144xf32>
    %307 = math.exp %306 : vector<4x144xf32>
    %cst_109 = arith.constant 1.000000e+00 : f32
    %308 = vector.broadcast %cst_109 : f32 to vector<4x144xf32>
    %309 = arith.addf %308, %307 : vector<4x144xf32>
    %310 = arith.divf %308, %309 : vector<4x144xf32>
    %311 = arith.mulf %302, %259 : vector<4x144xf32>
    %312 = arith.mulf %296, %304 : vector<4x144xf32>
    %313 = arith.addf %311, %312 : vector<4x144xf32>
    %314 = math.tanh %313 : vector<4x144xf32>
    %315 = arith.mulf %310, %314 : vector<4x144xf32>
    %cst_110 = arith.constant dense<0.000000e+00> : vector<4x32xf32>
    %316 = tpu.matmul %315, %4, %cst_110 {dimension_numbers = #tpu.dot_dimension_numbers<[1], [0], [0], [1], [0, 0, 1, 1], [], []>} : vector<4x144xf32>, vector<144x32xf32>, vector<4x32xf32> -> vector<4x32xf32>
    %317 = vector.broadcast %5 : vector<1x32xf32> to vector<4x32xf32>
    %318 = arith.addf %316, %317 : vector<4x32xf32>
    %c6 = arith.constant 6 : index
    %c0_111 = arith.constant 0 : index
    %c0_112 = arith.constant 0 : index
    %319 = vector.load %arg11[%c6, %c0_111, %c0_112] : memref<8x4x32xf32, #tpu.memory_space<vmem>>, vector<1x4x32xf32>
    %320 = vector.shape_cast %319 : vector<1x4x32xf32> to vector<4x32xf32>
    %321 = vector.shape_cast %318 : vector<4x32xf32> to vector<1x4x32xf32>
    tpu.vector_store %arg11[%c6, %c0_111, %c0_112], %321 {strides = array<i32>} : memref<8x4x32xf32, #tpu.memory_space<vmem>>, vector<1x4x32xf32>,
    %cst_113 = arith.constant dense<0xFF800000> : vector<4xf32>
    %322 = vector.multi_reduction <maximumf>, %318, %cst_113 [1] : vector<4x32xf32> to vector<4xf32>
    %323 = vector.shape_cast %322 : vector<4xf32> to vector<4x1xf32>
    %324 = vector.broadcast %323 : vector<4x1xf32> to vector<4x32xf32>
    %325 = arith.cmpf oeq, %318, %324 : vector<4x32xf32>
    %c32_i32_114 = arith.constant 32 : i32
    %326 = vector.broadcast %c32_i32_114 : i32 to vector<4x32xi32>
    %327 = arith.select %325, %6, %326 : vector<4x32xi1>, vector<4x32xi32>
    %cst_115 = arith.constant dense<2147483647> : vector<4xi32>
    %328 = vector.multi_reduction <minsi>, %327, %cst_115 [1] : vector<4x32xi32> to vector<4xi32>
    %329 = vector.shape_cast %328 : vector<4xi32> to vector<4x1xi32>
    %330 = vector.broadcast %329 : vector<4x1xi32> to vector<4x32xi32>
    %331 = arith.cmpi eq, %6, %330 : vector<4x32xi32>
    %332 = arith.extui %331 : vector<4x32xi1> to vector<4x32xi32>
    %333 = arith.sitofp %332 : vector<4x32xi32> to vector<4x32xf32>
    %c6_116 = arith.constant 6 : index
    %334 = memref.load %arg1[%c6_116] : memref<8xi32, #tpu.memory_space<smem>>
    %c1_i32_117 = arith.constant 1 : i32
    %335 = arith.cmpi eq, %334, %c1_i32_117 : i32
    %c6_118 = arith.constant 6 : index
    %c0_119 = arith.constant 0 : index
    %c0_120 = arith.constant 0 : index
    %336 = vector.load %arg2[%c6_118, %c0_119, %c0_120] : memref<8x4x32xf32, #tpu.memory_space<vmem>>, vector<1x4x32xf32>
    %337 = vector.shape_cast %336 : vector<1x4x32xf32> to vector<4x32xf32>
    %338 = arith.select %335, %337, %333 : vector<4x32xf32>
    %cst_121 = arith.constant dense<0.000000e+00> : vector<4x16xf32>
    %339 = tpu.matmul %338, %0, %cst_121 {dimension_numbers = #tpu.dot_dimension_numbers<[1], [0], [0], [1], [0, 0, 1, 1], [], []>} : vector<4x32xf32>, vector<32x16xf32>, vector<4x16xf32> -> vector<4x16xf32>
    %cst_122 = arith.constant dense<0.000000e+00> : vector<4x576xf32>
    %340 = tpu.matmul %339, %1, %cst_122 {dimension_numbers = #tpu.dot_dimension_numbers<[1], [0], [0], [1], [0, 0, 1, 1], [], []>} : vector<4x16xf32>, vector<16x576xf32>, vector<4x576xf32> -> vector<4x576xf32>
    %cst_123 = arith.constant dense<0.000000e+00> : vector<4x576xf32>
    %341 = tpu.matmul %315, %2, %cst_123 {dimension_numbers = #tpu.dot_dimension_numbers<[1], [0], [0], [1], [0, 0, 1, 1], [], []>} : vector<4x144xf32>, vector<144x576xf32>, vector<4x576xf32> -> vector<4x576xf32>
    %342 = arith.addf %340, %341 : vector<4x576xf32>
    %343 = vector.broadcast %3 : vector<1x576xf32> to vector<4x576xf32>
    %344 = arith.addf %342, %343 : vector<4x576xf32>
    %345 = vector.extract_strided_slice %344 {offsets = [0, 0], sizes = [4, 144], strides = [1, 1]} : vector<4x576xf32> to vector<4x144xf32>
    %346 = arith.negf %345 : vector<4x144xf32>
    %347 = math.exp %346 : vector<4x144xf32>
    %cst_124 = arith.constant 1.000000e+00 : f32
    %348 = vector.broadcast %cst_124 : f32 to vector<4x144xf32>
    %349 = arith.addf %348, %347 : vector<4x144xf32>
    %350 = arith.divf %348, %349 : vector<4x144xf32>
    %351 = vector.extract_strided_slice %344 {offsets = [0, 144], sizes = [4, 144], strides = [1, 1]} : vector<4x576xf32> to vector<4x144xf32>
    %352 = arith.negf %351 : vector<4x144xf32>
    %353 = math.exp %352 : vector<4x144xf32>
    %cst_125 = arith.constant 1.000000e+00 : f32
    %354 = vector.broadcast %cst_125 : f32 to vector<4x144xf32>
    %355 = arith.addf %354, %353 : vector<4x144xf32>
    %356 = arith.divf %354, %355 : vector<4x144xf32>
    %357 = vector.extract_strided_slice %344 {offsets = [0, 288], sizes = [4, 144], strides = [1, 1]} : vector<4x576xf32> to vector<4x144xf32>
    %358 = math.tanh %357 : vector<4x144xf32>
    %359 = vector.extract_strided_slice %344 {offsets = [0, 432], sizes = [4, 144], strides = [1, 1]} : vector<4x576xf32> to vector<4x144xf32>
    %360 = arith.negf %359 : vector<4x144xf32>
    %361 = math.exp %360 : vector<4x144xf32>
    %cst_126 = arith.constant 1.000000e+00 : f32
    %362 = vector.broadcast %cst_126 : f32 to vector<4x144xf32>
    %363 = arith.addf %362, %361 : vector<4x144xf32>
    %364 = arith.divf %362, %363 : vector<4x144xf32>
    %365 = arith.mulf %356, %313 : vector<4x144xf32>
    %366 = arith.mulf %350, %358 : vector<4x144xf32>
    %367 = arith.addf %365, %366 : vector<4x144xf32>
    %368 = math.tanh %367 : vector<4x144xf32>
    %369 = arith.mulf %364, %368 : vector<4x144xf32>
    %cst_127 = arith.constant dense<0.000000e+00> : vector<4x32xf32>
    %370 = tpu.matmul %369, %4, %cst_127 {dimension_numbers = #tpu.dot_dimension_numbers<[1], [0], [0], [1], [0, 0, 1, 1], [], []>} : vector<4x144xf32>, vector<144x32xf32>, vector<4x32xf32> -> vector<4x32xf32>
    %371 = vector.broadcast %5 : vector<1x32xf32> to vector<4x32xf32>
    %372 = arith.addf %370, %371 : vector<4x32xf32>
    %c7 = arith.constant 7 : index
    %c0_128 = arith.constant 0 : index
    %c0_129 = arith.constant 0 : index
    %373 = vector.load %arg11[%c7, %c0_128, %c0_129] : memref<8x4x32xf32, #tpu.memory_space<vmem>>, vector<1x4x32xf32>
    %374 = vector.shape_cast %373 : vector<1x4x32xf32> to vector<4x32xf32>
    %375 = vector.shape_cast %372 : vector<4x32xf32> to vector<1x4x32xf32>
    tpu.vector_store %arg11[%c7, %c0_128, %c0_129], %375 {strides = array<i32>} : memref<8x4x32xf32, #tpu.memory_space<vmem>>, vector<1x4x32xf32>,
    return
  }
  func.func @transform_0(%arg0: i32, %arg1: memref<8xi32, #tpu.memory_space<smem>>) -> (i32, i32, i32) {
    %c0_i32 = arith.constant 0 : i32
    %c0_i32_0 = arith.constant 0 : i32
    %c0_i32_1 = arith.constant 0 : i32
    %c0_i32_2 = arith.constant 0 : i32
    return %c0_i32, %c0_i32_0, %c0_i32_1 : i32, i32, i32
  }
  func.func @transform_1(%arg0: i32, %arg1: memref<8xi32, #tpu.memory_space<smem>>) -> (i32, i32) {
    %c0_i32 = arith.constant 0 : i32
    %c0_i32_0 = arith.constant 0 : i32
    %c0_i32_1 = arith.constant 0 : i32
    return %c0_i32, %c0_i32_0 : i32, i32
  }
  func.func @transform_2(%arg0: i32, %arg1: memref<8xi32, #tpu.memory_space<smem>>) -> (i32, i32) {
    %c0_i32 = arith.constant 0 : i32
    %c0_i32_0 = arith.constant 0 : i32
    %c0_i32_1 = arith.constant 0 : i32
    return %c0_i32, %c0_i32_0 : i32, i32
  }
  func.func @transform_3(%arg0: i32, %arg1: memref<8xi32, #tpu.memory_space<smem>>) -> (i32, i32) {
    %c0_i32 = arith.constant 0 : i32
    %c0_i32_0 = arith.constant 0 : i32
    %c0_i32_1 = arith.constant 0 : i32
    return %c0_i32, %c0_i32_0 : i32, i32
  }
  func.func @transform_4(%arg0: i32, %arg1: memref<8xi32, #tpu.memory_space<smem>>) -> (i32, i32) {
    %c0_i32 = arith.constant 0 : i32
    %c0_i32_0 = arith.constant 0 : i32
    %c0_i32_1 = arith.constant 0 : i32
    return %c0_i32, %c0_i32_0 : i32, i32
  }
  func.func @transform_5(%arg0: i32, %arg1: memref<8xi32, #tpu.memory_space<smem>>) -> (i32, i32) {
    %c0_i32 = arith.constant 0 : i32
    %c0_i32_0 = arith.constant 0 : i32
    %c0_i32_1 = arith.constant 0 : i32
    return %c0_i32, %c0_i32_0 : i32, i32
  }
  func.func @transform_6(%arg0: i32, %arg1: memref<8xi32, #tpu.memory_space<smem>>) -> (i32, i32) {
    %c0_i32 = arith.constant 0 : i32
    %c0_i32_0 = arith.constant 0 : i32
    %c0_i32_1 = arith.constant 0 : i32
    return %c0_i32, %c0_i32_0 : i32, i32
  }
  func.func @transform_7(%arg0: i32, %arg1: memref<8xi32, #tpu.memory_space<smem>>) -> (i32, i32) {
    %c0_i32 = arith.constant 0 : i32
    %c0_i32_0 = arith.constant 0 : i32
    %c0_i32_1 = arith.constant 0 : i32
    return %c0_i32, %c0_i32_0 : i32, i32
  }
  func.func @transform_8(%arg0: i32, %arg1: memref<8xi32, #tpu.memory_space<smem>>) -> (i32, i32) {
    %c0_i32 = arith.constant 0 : i32
    %c0_i32_0 = arith.constant 0 : i32
    %c0_i32_1 = arith.constant 0 : i32
    return %c0_i32, %c0_i32_0 : i32, i32
  }
  func.func @transform_9(%arg0: i32, %arg1: memref<8xi32, #tpu.memory_space<smem>>) -> (i32, i32, i32) {
    %c0_i32 = arith.constant 0 : i32
    %c0_i32_0 = arith.constant 0 : i32
    %c0_i32_1 = arith.constant 0 : i32
    %c0_i32_2 = arith.constant 0 : i32
    return %c0_i32, %c0_i32_0, %c0_i32_1 : i32, i32, i32
  }
}

</mosaic_0001>

<bundles_post_ra>
// kernel: seq2seq_forward.2
= control target key start
LH: loop header
LB: loop body
LE: loop exit
PB: predicated region body
PF: predicated region fallthrough
CT: control target
= control target key end

     0   :  { %s1121_s24 = smov [#allocation3]   ;;  %s1345_s0 = inlined_call_operand.vmem [shape: s32[9], index: 0, kind: input, shape index: {}]   ;;  %s1346_s1 = inlined_call_operand.vmem [shape: f32[9,6,4,16], index: 1, kind: input, shape index: {}]   ;;  %s1347_s2 = inlined_call_operand.vmem [shape: f32[9,16,64], index: 2, kind: input, shape index: {}]   ;;  %s1348_s3 = inlined_call_operand.vmem [shape: f32[9,16,64], index: 3, kind: input, shape index: {}]   ;;  %s1349_s4 = inlined_call_operand.vmem [shape: f32[9,1,64], index: 4, kind: input, shape index: {}]   ;;  %s1350_s5 = inlined_call_operand.vmem [shape: f32[9,4,16], index: 5, kind: output, shape index: {0}]   ;;  %s1351_s6 = inlined_call_operand.vmem [shape: f32[9,4,16], index: 6, kind: output, shape index: {1}]  }
   0x1   :  { %s13_s23 = sshll.u32 %s1345_s0, 4  ;;  %s14_s23 = int_to_ptr.vmem [resolvable:$true] %s13_s23 }
   0x2   :  { %16 = dma.vmem_to_smem %s14_s23, 16, %s1121_s24, [#allocation2] }
   0x3   :  { %1115 = dma.done.wait [#allocation2], 16 }
   0x4   :  { %1116 = vsyncadd [#allocation2], 4294967280 }
   0x5   :  { %19 = sfence }
   0x6   :  { %s1166_s25 = smov 0  }
   0x7 LB: > { %s1172_s26 = sadd.s32 4294967295, %s1119_s25   ;;  %p1000_p0 = scmp.ge.s32.totalorder %s1119_s25, 1  ;;  %s1119_s25 = sphi %s1166_s25, %s25_s25  }
   0x8   : > { %p227_p1 = scmp.lt.s32.totalorder %s1119_s25, 10 }
   0xa   : > { %p228_p2 = pnand %p1000_p0, %p227_p1 }
   0xb   : > { %p271_p3 = scmp.lt.s32.totalorder (!%p228_p2), %s1172_s26, 8  ;;  %s1123_s17 = smov (!%p228_p2), 96  }
   0xc   : > { %231 = sbr.rel (%p228_p2) target bundleno = 3519 (0xdbf), region = 36  ;;  %s1124_s18 = smov (!%p228_p2), 16  }
   0xd   : > { %s1125_s19 = smov (!%p228_p2), 32   ;;  %s1234_s20 = sld [smem:[#allocation3 + %s1172_s26]] (!%p228_p2) }
   0xe   : > { %s1126_s22 = smov (!%p228_p2), 80   ;;  %s1127_s29 = smov (!%p228_p2), 112  }
  0x11   : > { %s1178_s0 = scalar_select %p271_p3, %s1172_s26, 8  ;;  %vm304_vm0 = vcmask 130048   ;;  %v1122_v5 = vmov 0.0  }
  0x13   : > { %s1032_s27 = sshll.u32 %s1178_s0, 4  ;;  %s1034_s28 = smul.u32 24, %s1178_s0 }
  0x14   : > { %s285_s7 = scalar_lea.vmem %s1348_s3, %s1032_s27  ;;  %s280_s10 = scalar_lea.vmem %s1347_s2, %s1032_s27 }
  0x15   : > { %v1188_v0 = vld [vmem:[%s285_s7 + $0x8] sm:$0xff]  ;;  %v1192_v2 = vld [vmem:[%s285_s7] sm:$0xff]  ;;  %s1197_s13 = scalar_lea.vmem %s1346_s1, %s1034_s28  ;;  %s288_s16 = scalar_lea.vmem %s1349_s4, %s1178_s0 }
  0x16   : > { %v1190_v1 = vld [vmem:[%s280_s10 + $0x8] sm:$0xff]  ;;  %322 = vmatpush.msra.mxu0 %v1188_v0  ;;  %v1201_v3 = vld [vmem:[%s280_s10] sm:$0xff]  ;;  %419 = vmatpush.msra.mxu2 %v1188_v0  ;;  %p392_p4 = scmp.gt.s32.totalorder %s1234_s20, 0  ;;  %p486_p5 = scmp.gt.s32.totalorder %s1234_s20, 1 }
  0x17   : > { %345 = vmatpush.msra.mxu1 %v1190_v1  ;;  %v303_v4 = vld [vmem:[%s1197_s13] sm:$0xf]  ;;  %442 = vmatpush.msra.mxu3 %v1190_v1  ;;  %v1010_v36 = vld [vmem:[%s1197_s13 + $0x4] sm:$0xf]  ;;  %p580_p6 = scmp.gt.s32.totalorder %s1234_s20, 2  ;;  %p674_p7 = scmp.gt.s32.totalorder %s1234_s20, 3 }
  0x18   : > { %323 = vmatpush.msra.mxu0 %v1192_v2  ;;  %420 = vmatpush.msra.mxu2 %v1192_v2  ;;  %v1227_v6 = vld [vmem:[%s288_s16] ss:$0 sm:$0xff]  ;;  %s393_s21 = scalar_select %p392_p4, 1, 0 }
  0x19   : > { %346 = vmatpush.msra.mxu1 %v1201_v3  ;;  %324 = vmatmul.f32.vlgmr.msra.gmra.mxu0 %v1122_v5  ;;  %s487_s23 = scalar_select %p486_p5, 1, 0 }
  0x1a   : > { %1008 = vmatmul.msk.f32.vlgmr.msra.gmra.mxu1 %vm304_vm0, %v303_v4  ;;  %443 = vmatpush.msra.mxu3 %v1201_v3  ;;  %v394_v31 = vstv %s393_s21  ;;  %v1014_v4 = vld [vmem:[%s1197_s13 + $0x8] sm:$0xf]  ;;  %s581_s24 = scalar_select %p580_p6, 1, 0 }
  0x1b   : > { %513 = vmatpush.msrb.mxu0 %v1188_v0  ;;  %536 = vmatpush.msrb.mxu1 %v1190_v1  ;;  %vm1237_vm5 = vcmp.eq.s32.totalorder %v394_v31, 1  ;;  %v488_v63 = vstv %s487_s23  ;;  %s675_s26 = scalar_select %p674_p7, 1, 0 }
  0x1c   : > { %607 = vmatpush.msrb.mxu2 %v1188_v0  ;;  %630 = vmatpush.msrb.mxu3 %v1190_v1  ;;  %vm1258_vm10 = vcmp.eq.s32.totalorder %v488_v63, 1  ;;  %p768_p8 = scmp.gt.s32.totalorder %s1234_s20, 4  ;;  %p862_p9 = scmp.gt.s32.totalorder %s1234_s20, 5 }
  0x1d   : > { %514 = vmatpush.msrb.mxu0 %v1192_v2  ;;  %537 = vmatpush.msrb.mxu1 %v1201_v3  ;;  %s1006_s30 = sshll.u32 %s1178_s0, 2 }
  0x1e   : > { %608 = vmatpush.msrb.mxu2 %v1192_v2  ;;  %631 = vmatpush.msrb.mxu3 %v1201_v3  ;;  %s769_s27 = scalar_select %p768_p8, 1, 0 }
  0x1f   : > { %701 = vmatpush.msra.mxu0 %v1188_v0  ;;  %724 = vmatpush.msra.mxu1 %v1190_v1  ;;  %s863_s28 = scalar_select %p862_p9, 1, 0 }
  0x20   : > { %1012 = vmatmul.msk.f32.vlgmr.msra.gmra.mxu3 %vm304_vm0, %v1010_v36  ;;  %s296_s9 = scalar_lea.vmem %s1351_s6, %s1006_s30  ;;  %s292_s12 = scalar_lea.vmem %s1350_s5, %s1006_s30 }
  0x21   : > { %702 = vmatpush.msra.mxu0 %v1192_v2  ;;  %725 = vmatpush.msra.mxu1 %v1201_v3 }
  0x22   : > { %818 = vmatpush.msra.mxu3 %v1190_v1  ;;  %1016 = vmatmul.msk.f32.vlgmr.msrb.gmra.mxu1 %vm304_vm0, %v1014_v4 }
  0x24   : > { %819 = vmatpush.msra.mxu3 %v1201_v3 }
  0x96   : > { %v325_v7 = vpop.f32.mrf.mxu0 }
  0x97   : > { %v348_v8 = vpop.f32.mrf.mxu1 }
  0x98   : > { %v349_v9 = vadd.f32 %v348_v8, %v325_v7 }
  0x9a   : > { %v354_v10 = vadd.f32 %v1227_v6, %v349_v9 }
  0x9c   : > { %1051 = vtanh.f32 %v354_v10  ;;  %v1009_v12 = vmul.f32 -1.442695, %v354_v10 }
  0x9e   : > { %1053 = vpow2.f32 %v1009_v12 }
  0x9f   : > { %v539_v7 = vpop.f32.mrf.mxu1 }
  0xa2   : > { %v1052_v11 = vpop.eup %1051 }
  0xa3   : > { %377 = vrot.lane.b32.xlu0 %v1052_v11, %s1123_s17  ;;  %v445_v38 = vpop.f32.mrf.mxu3 }
  0xa4   : > { %v1054_v13 = vpop.eup %1053 }
  0xa5   : > { %v358_v14 = vadd.f32 1.0, %v1054_v13 }
  0xa7   : > { %1055 = vrcp.f32 %v358_v14  ;;  %v370_v20 = vand.u32 2147483648, %v358_v14  ;;  %vm364_vm2 = vweird.f32 %v358_v14  ;;  %v368_v21 = vand.u32 2147483647, %v358_v14 }
  0xa9   : > { %v371_v23 = vor.u32 1.1754944e-38, %v370_v20  ;;  %vm369_vm4 = vcmp.eq.f32.partialorder %v368_v21, 8.507059e+37 }
  0xad   : > { %v1056_v15 = vpop.eup %1055 }
  0xae   : > { %v360_v16 = vmul.f32 %v1056_v15, %v358_v14  ;;  %vm365_vm1 = vweird.f32 %v1056_v15 }
  0xaf   : > { %vm366_vm3 = vmor %vm364_vm2, %vm365_vm1 }
  0xb0   : > { %v361_v17 = vsub.f32 1.0, %v360_v16 }
  0xb2   : > { %v362_v18 = vmul.f32 %v1056_v15, %v361_v17 }
  0xb4   : > { %v363_v19 = vadd.f32 %v1056_v15, %v362_v18 }
  0xb6   : > { %v367_v22 = vsel %vm366_vm3, %v1056_v15, %v363_v19 }
  0xb7   : > { %v372_v25 = vsel %vm369_vm4, %v371_v23, %v367_v22 }
  0xb8   : > { %v375_v27 = vmul.f32 0.0, %v372_v25 }
 0x115   : > { %v378_v24 = vpop.permute.xlu0 %377 }
 0x116   : > { %v380_v26 = vmul.f32 %v378_v24, %v372_v25 }
 0x118   : > { %382 = vrot.lane.b32.xlu0 %v380_v26, %s1124_s18 }
 0x18a   : > { %v383_v28 = vpop.permute.xlu0 %382 }
 0x18b   : > { %v385_v29 = vadd.f32 %v383_v28, %v375_v27 }
 0x18d   : > { %1057 = vtanh.f32 %v385_v29  ;;  %v397_v58 = vsel %vm1237_vm5, %v385_v29, 0.0 }
 0x193   : > { %v1058_v30 = vpop.eup %1057 }
 0x194   : > { %388 = vrot.lane.b32.xlu1 %v1058_v30, %s1125_s19 }
 0x206   : > { %v389_v32 = vpop.permute.xlu1 %388 }
 0x207   : > { %v391_v33 = vmul.f32 %v389_v32, %v372_v25  ;;  %v582_v32 = vstv %s581_s24 }
 0x208   : > { %vm1275_vm15 = vcmp.eq.s32.totalorder %v582_v32, 1 }
 0x209   : > { %v396_v35 = vsel %vm1237_vm5, %v391_v33, 0.0 }
 0x20a   : > { %401 = vrot.lane.b32.xlu1 %v396_v35, %s1126_s22 }
 0x27c   : > { %v402_v37 = vpop.permute.xlu1 %401 }
 0x27d   : > { %1011 = vmatmul.msk.f32.vlgmr.msra.gmra.mxu2 %vm304_vm0, %v402_v37  ;;  %v1018_v37 = vld [vmem:[%s1197_s13 + $0xc] sm:$0xf] }
 0x27e   : > { %795 = vmatpush.msra.mxu2 %v1188_v0  ;;  %1020 = vmatmul.msk.f32.vlgmr.msrb.gmra.mxu3 %vm304_vm0, %v1018_v37 }
 0x280   : > { %796 = vmatpush.msra.mxu2 %v1192_v2 }
 0x300   : > { %v422_v39 = vpop.f32.mrf.mxu2 }
 0x301   : > { %v446_v40 = vadd.f32 %v445_v38, %v422_v39  ;;  %v633_v39 = vpop.f32.mrf.mxu3 }
 0x303   : > { %v448_v41 = vadd.f32 %v1227_v6, %v446_v40 }
 0x305   : > { %1059 = vtanh.f32 %v448_v41  ;;  %v1013_v43 = vmul.f32 -1.442695, %v448_v41 }
 0x307   : > { %1061 = vpow2.f32 %v1013_v43 }
 0x30b   : > { %v1060_v42 = vpop.eup %1059 }
 0x30c   : > { %471 = vrot.lane.b32.xlu2 %v1060_v42, %s1123_s17 }
 0x30d   : > { %v1062_v44 = vpop.eup %1061 }
 0x30e   : > { %v452_v45 = vadd.f32 1.0, %v1062_v44 }
 0x310   : > { %1063 = vrcp.f32 %v452_v45  ;;  %v464_v51 = vand.u32 2147483648, %v452_v45  ;;  %vm458_vm7 = vweird.f32 %v452_v45  ;;  %v462_v52 = vand.u32 2147483647, %v452_v45 }
 0x312   : > { %v465_v54 = vor.u32 1.1754944e-38, %v464_v51  ;;  %vm463_vm9 = vcmp.eq.f32.partialorder %v462_v52, 8.507059e+37 }
 0x316   : > { %v1064_v46 = vpop.eup %1063 }
 0x317   : > { %v454_v47 = vmul.f32 %v1064_v46, %v452_v45  ;;  %vm459_vm6 = vweird.f32 %v1064_v46 }
 0x318   : > { %vm460_vm8 = vmor %vm458_vm7, %vm459_vm6 }
 0x319   : > { %v455_v48 = vsub.f32 1.0, %v454_v47 }
 0x31b   : > { %v456_v49 = vmul.f32 %v1064_v46, %v455_v48 }
 0x31d   : > { %v457_v50 = vadd.f32 %v1064_v46, %v456_v49 }
 0x31f   : > { %v461_v53 = vsel %vm460_vm8, %v1064_v46, %v457_v50 }
 0x320   : > { %v466_v56 = vsel %vm463_vm9, %v465_v54, %v461_v53 }
 0x321   : > { %v469_v59 = vmul.f32 %v466_v56, %v397_v58 }
 0x366   : > { %v472_v55 = vpop.permute.xlu2 %471 }
 0x367   : > { %v474_v57 = vmul.f32 %v472_v55, %v466_v56 }
 0x369   : > { %476 = vrot.lane.b32.xlu2 %v474_v57, %s1124_s18 }
 0x3c3   : > { %v477_v60 = vpop.permute.xlu2 %476 }
 0x3c4   : > { %v479_v61 = vadd.f32 %v477_v60, %v469_v59 }
 0x3c6   : > { %1065 = vtanh.f32 %v479_v61  ;;  %v491_v27 = vsel %vm1258_vm10, %v479_v61, %v397_v58 }
 0x3cc   : > { %v1066_v62 = vpop.eup %1065 }
 0x3cd   : > { %482 = vrot.lane.b32.xlu0 %v1066_v62, %s1125_s19 }
 0x43f   : > { %v483_v0 = vpop.permute.xlu0 %482 }
 0x440   : > { %v485_v1 = vmul.f32 %v483_v0, %v466_v56  ;;  %v676_v0 = vstv %s675_s26 }
 0x441   : > { %vm1292_vm5 = vcmp.eq.s32.totalorder %v676_v0, 1 }
 0x442   : > { %v490_v3 = vsel %vm1258_vm10, %v485_v1, %v396_v35 }
 0x443   : > { %495 = vrot.lane.b32.xlu1 %v490_v3, %s1126_s22 }
 0x4b5   : > { %v496_v5 = vpop.permute.xlu1 %495 }
 0x4b6   : > { %1015 = vmatmul.msk.f32.vlgmr.msrb.gmra.mxu0 %vm304_vm0, %v496_v5  ;;  %v1022_v5 = vld [vmem:[%s1197_s13 + $0x10] sm:$0xf] }
 0x4b7   : > { %1024 = vmatmul.msk.f32.vlgmr.msra.gmra.mxu1 %vm304_vm0, %v1022_v5 }
 0x533   : > { %v516_v8 = vpop.f32.mrf.mxu0 }
 0x534   : > { %v540_v9 = vadd.f32 %v539_v7, %v516_v8  ;;  %v727_v8 = vpop.f32.mrf.mxu1 }
 0x536   : > { %v542_v10 = vadd.f32 %v1227_v6, %v540_v9 }
 0x538   : > { %1067 = vtanh.f32 %v542_v10  ;;  %v1017_v12 = vmul.f32 -1.442695, %v542_v10 }
 0x53a   : > { %1069 = vpow2.f32 %v1017_v12 }
 0x53e   : > { %v1068_v11 = vpop.eup %1067 }
 0x53f   : > { %565 = vrot.lane.b32.xlu2 %v1068_v11, %s1123_s17 }
 0x540   : > { %v1070_v13 = vpop.eup %1069 }
 0x541   : > { %v546_v14 = vadd.f32 1.0, %v1070_v13 }
 0x543   : > { %1071 = vrcp.f32 %v546_v14  ;;  %v558_v20 = vand.u32 2147483648, %v546_v14  ;;  %vm552_vm12 = vweird.f32 %v546_v14  ;;  %v556_v21 = vand.u32 2147483647, %v546_v14 }
 0x545   : > { %v559_v23 = vor.u32 1.1754944e-38, %v558_v20  ;;  %vm557_vm14 = vcmp.eq.f32.partialorder %v556_v21, 8.507059e+37 }
 0x549   : > { %v1072_v15 = vpop.eup %1071 }
 0x54a   : > { %v548_v16 = vmul.f32 %v1072_v15, %v546_v14  ;;  %vm553_vm11 = vweird.f32 %v1072_v15 }
 0x54b   : > { %vm554_vm13 = vmor %vm552_vm12, %vm553_vm11 }
 0x54c   : > { %v549_v17 = vsub.f32 1.0, %v548_v16 }
 0x54e   : > { %v550_v18 = vmul.f32 %v1072_v15, %v549_v17 }
 0x550   : > { %v551_v19 = vadd.f32 %v1072_v15, %v550_v18 }
 0x552   : > { %v555_v22 = vsel %vm554_vm13, %v1072_v15, %v551_v19 }
 0x553   : > { %v560_v25 = vsel %vm557_vm14, %v559_v23, %v555_v22 }
 0x554   : > { %v563_v28 = vmul.f32 %v560_v25, %v491_v27 }
 0x599   : > { %v566_v24 = vpop.permute.xlu2 %565 }
 0x59a   : > { %v568_v26 = vmul.f32 %v566_v24, %v560_v25 }
 0x59c   : > { %570 = vrot.lane.b32.xlu0 %v568_v26, %s1124_s18 }
 0x60e   : > { %v571_v29 = vpop.permute.xlu0 %570 }
 0x60f   : > { %v573_v30 = vadd.f32 %v571_v29, %v563_v28 }
 0x611   : > { %1073 = vtanh.f32 %v573_v30  ;;  %v585_v59 = vsel %vm1275_vm15, %v573_v30, %v491_v27 }
 0x617   : > { %v1074_v31 = vpop.eup %1073 }
 0x618   : > { %576 = vrot.lane.b32.xlu1 %v1074_v31, %s1125_s19 }
 0x68a   : > { %v577_v33 = vpop.permute.xlu1 %576 }
 0x68b   : > { %v579_v34 = vmul.f32 %v577_v33, %v560_v25  ;;  %v770_v33 = vstv %s769_s27 }
 0x68c   : > { %vm1309_vm10 = vcmp.eq.s32.totalorder %v770_v33, 1 }
 0x68d   : > { %v584_v36 = vsel %vm1275_vm15, %v579_v34, %v490_v3  ;;  %vm872_vm15 = vcmask 125952  }
 0x68e   : > { %589 = vrot.lane.b32.xlu2 %v584_v36, %s1126_s22 }
 0x6e8   : > { %v590_v38 = vpop.permute.xlu2 %589 }
 0x6e9   : > { %1019 = vmatmul.msk.f32.vlgmr.msrb.gmra.mxu2 %vm304_vm0, %v590_v38  ;;  %v1026_v38 = vld [vmem:[%s1197_s13 + $0x14] sm:$0xf] }
 0x6ea   : > { %1028 = vmatmul.msk.f32.vlgmr.msra.gmra.mxu3 %vm304_vm0, %v1026_v38 }
 0x76c   : > { %v610_v40 = vpop.f32.mrf.mxu2 }
 0x76d   : > { %v634_v41 = vadd.f32 %v633_v39, %v610_v40  ;;  %v821_v40 = vpop.f32.mrf.mxu3 }
 0x76f   : > { %v636_v42 = vadd.f32 %v1227_v6, %v634_v41 }
 0x771   : > { %1075 = vtanh.f32 %v636_v42  ;;  %v1021_v44 = vmul.f32 -1.442695, %v636_v42 }
 0x773   : > { %1077 = vpow2.f32 %v1021_v44 }
 0x777   : > { %v1076_v43 = vpop.eup %1075 }
 0x778   : > { %659 = vrot.lane.b32.xlu0 %v1076_v43, %s1123_s17 }
 0x779   : > { %v1078_v45 = vpop.eup %1077 }
 0x77a   : > { %v640_v46 = vadd.f32 1.0, %v1078_v45 }
 0x77c   : > { %1079 = vrcp.f32 %v640_v46  ;;  %v652_v52 = vand.u32 2147483648, %v640_v46  ;;  %vm646_vm2 = vweird.f32 %v640_v46  ;;  %v650_v53 = vand.u32 2147483647, %v640_v46 }
 0x77e   : > { %v653_v55 = vor.u32 1.1754944e-38, %v652_v52  ;;  %vm651_vm4 = vcmp.eq.f32.partialorder %v650_v53, 8.507059e+37 }
 0x782   : > { %v1080_v47 = vpop.eup %1079 }
 0x783   : > { %v642_v48 = vmul.f32 %v1080_v47, %v640_v46  ;;  %vm647_vm1 = vweird.f32 %v1080_v47 }
 0x784   : > { %vm648_vm3 = vmor %vm646_vm2, %vm647_vm1 }
 0x785   : > { %v643_v49 = vsub.f32 1.0, %v642_v48 }
 0x787   : > { %v644_v50 = vmul.f32 %v1080_v47, %v643_v49 }
 0x789   : > { %v645_v51 = vadd.f32 %v1080_v47, %v644_v50 }
 0x78b   : > { %v649_v54 = vsel %vm648_vm3, %v1080_v47, %v645_v51 }
 0x78c   : > { %v654_v57 = vsel %vm651_vm4, %v653_v55, %v649_v54 }
 0x78d   : > { %v657_v60 = vmul.f32 %v654_v57, %v585_v59 }
 0x7ea   : > { %v660_v56 = vpop.permute.xlu0 %659 }
 0x7eb   : > { %v662_v58 = vmul.f32 %v660_v56, %v654_v57 }
 0x7ed   : > { %664 = vrot.lane.b32.xlu1 %v662_v58, %s1124_s18 }
 0x85f   : > { %v665_v61 = vpop.permute.xlu1 %664 }
 0x860   : > { %v667_v62 = vadd.f32 %v665_v61, %v657_v60 }
 0x862   : > { %1081 = vtanh.f32 %v667_v62  ;;  %v679_v28 = vsel %vm1292_vm5, %v667_v62, %v585_v59  ;;  %v864_v59 = vstv %s863_s28 }
 0x863   : > { %vm1325_vm14 = vcmp.eq.s32.totalorder %v864_v59, 1 }
 0x868   : > { %v1082_v63 = vpop.eup %1081 }
 0x869   : > { %670 = vrot.lane.b32.xlu2 %v1082_v63, %s1125_s19 }
 0x8c3   : > { %v671_v1 = vpop.permute.xlu2 %670 }
 0x8c4   : > { %v673_v2 = vmul.f32 %v671_v1, %v654_v57 }
 0x8c6   : > { %v678_v4 = vsel %vm1292_vm5, %v673_v2, %v584_v36 }
 0x8c7   : > { %683 = vrot.lane.b32.xlu0 %v678_v4, %s1126_s22 }
 0x939   : > { %v684_v7 = vpop.permute.xlu0 %683 }
 0x93a   : > { %1023 = vmatmul.msk.f32.vlgmr.msra.gmra.mxu0 %vm304_vm0, %v684_v7 }
 0x9b7   : > { %v704_v9 = vpop.f32.mrf.mxu0 }
 0x9b8   : > { %v728_v10 = vadd.f32 %v727_v8, %v704_v9 }
 0x9ba   : > { %v730_v11 = vadd.f32 %v1227_v6, %v728_v10 }
 0x9bc   : > { %1083 = vtanh.f32 %v730_v11  ;;  %v1025_v13 = vmul.f32 -1.442695, %v730_v11 }
 0x9be   : > { %1085 = vpow2.f32 %v1025_v13 }
 0x9c2   : > { %v1084_v12 = vpop.eup %1083 }
 0x9c3   : > { %753 = vrot.lane.b32.xlu1 %v1084_v12, %s1123_s17 }
 0x9c4   : > { %v1086_v14 = vpop.eup %1085 }
 0x9c5   : > { %v734_v15 = vadd.f32 1.0, %v1086_v14 }
 0x9c7   : > { %1087 = vrcp.f32 %v734_v15  ;;  %v746_v21 = vand.u32 2147483648, %v734_v15  ;;  %vm740_vm7 = vweird.f32 %v734_v15  ;;  %v744_v22 = vand.u32 2147483647, %v734_v15 }
 0x9c9   : > { %v747_v24 = vor.u32 1.1754944e-38, %v746_v21  ;;  %vm745_vm9 = vcmp.eq.f32.partialorder %v744_v22, 8.507059e+37 }
 0x9cd   : > { %v1088_v16 = vpop.eup %1087 }
 0x9ce   : > { %v736_v17 = vmul.f32 %v1088_v16, %v734_v15  ;;  %vm741_vm6 = vweird.f32 %v1088_v16 }
 0x9cf   : > { %vm742_vm8 = vmor %vm740_vm7, %vm741_vm6 }
 0x9d0   : > { %v737_v18 = vsub.f32 1.0, %v736_v17 }
 0x9d2   : > { %v738_v19 = vmul.f32 %v1088_v16, %v737_v18 }
 0x9d4   : > { %v739_v20 = vadd.f32 %v1088_v16, %v738_v19 }
 0x9d6   : > { %v743_v23 = vsel %vm742_vm8, %v1088_v16, %v739_v20 }
 0x9d7   : > { %v748_v26 = vsel %vm745_vm9, %v747_v24, %v743_v23 }
 0x9d8   : > { %v751_v29 = vmul.f32 %v748_v26, %v679_v28 }
 0xa35   : > { %v754_v25 = vpop.permute.xlu1 %753 }
 0xa36   : > { %v756_v27 = vmul.f32 %v754_v25, %v748_v26 }
 0xa38   : > { %758 = vrot.lane.b32.xlu2 %v756_v27, %s1124_s18 }
 0xa92   : > { %v759_v30 = vpop.permute.xlu2 %758 }
 0xa93   : > { %v761_v31 = vadd.f32 %v759_v30, %v751_v29 }
 0xa95   : > { %1089 = vtanh.f32 %v761_v31  ;;  %v773_v60 = vsel %vm1309_vm10, %v761_v31, %v679_v28 }
 0xa9b   : > { %v1090_v32 = vpop.eup %1089 }
 0xa9c   : > { %764 = vrot.lane.b32.xlu0 %v1090_v32, %s1125_s19 }
 0xb0e   : > { %v765_v34 = vpop.permute.xlu0 %764 }
 0xb0f   : > { %v767_v35 = vmul.f32 %v765_v34, %v748_v26 }
 0xb11   : > { %v772_v37 = vsel %vm1309_vm10, %v767_v35, %v678_v4 }
 0xb12   : > { %777 = vrot.lane.b32.xlu1 %v772_v37, %s1126_s22 }
 0xb84   : > { %v778_v39 = vpop.permute.xlu1 %777 }
 0xb85   : > { %1027 = vmatmul.msk.f32.vlgmr.msra.gmra.mxu2 %vm304_vm0, %v778_v39 }
 0xc08   : > { %v798_v41 = vpop.f32.mrf.mxu2 }
 0xc09   : > { %v822_v42 = vadd.f32 %v821_v40, %v798_v41 }
 0xc0b   : > { %v824_v43 = vadd.f32 %v1227_v6, %v822_v42 }
 0xc0d   : > { %1091 = vtanh.f32 %v824_v43  ;;  %v1029_v45 = vmul.f32 -1.442695, %v824_v43 }
 0xc0f   : > { %1093 = vpow2.f32 %v1029_v45 }
 0xc13   : > { %v1092_v44 = vpop.eup %1091 }
 0xc14   : > { %847 = vrot.lane.b32.xlu2 %v1092_v44, %s1123_s17 }
 0xc15   : > { %v1094_v46 = vpop.eup %1093 }
 0xc16   : > { %v828_v47 = vadd.f32 1.0, %v1094_v46 }
 0xc18   : > { %1095 = vrcp.f32 %v828_v47  ;;  %v840_v53 = vand.u32 2147483648, %v828_v47  ;;  %vm834_vm11 = vweird.f32 %v828_v47  ;;  %v838_v54 = vand.u32 2147483647, %v828_v47 }
 0xc1a   : > { %v841_v55 = vor.u32 1.1754944e-38, %v840_v53  ;;  %vm839_vm13 = vcmp.eq.f32.partialorder %v838_v54, 8.507059e+37 }
 0xc1e   : > { %v1096_v48 = vpop.eup %1095 }
 0xc1f   : > { %v830_v49 = vmul.f32 %v1096_v48, %v828_v47  ;;  %vm835_vm0 = vweird.f32 %v1096_v48 }
 0xc20   : > { %vm836_vm12 = vmor %vm834_vm11, %vm835_vm0 }
 0xc21   : > { %v831_v50 = vsub.f32 1.0, %v830_v49 }
 0xc23   : > { %v832_v51 = vmul.f32 %v1096_v48, %v831_v50 }
 0xc25   : > { %v833_v52 = vadd.f32 %v1096_v48, %v832_v51 }
 0xc27   : > { %v837_v6 = vsel %vm836_vm12, %v1096_v48, %v833_v52 }
 0xc28   : > { %v842_v57 = vsel %vm839_vm13, %v841_v55, %v837_v6 }
 0xc29   : > { %v845_v61 = vmul.f32 %v842_v57, %v773_v60 }
 0xc6e   : > { %v848_v56 = vpop.permute.xlu2 %847 }
 0xc6f   : > { %v850_v58 = vmul.f32 %v848_v56, %v842_v57 }
 0xc71   : > { %852 = vrot.lane.b32.xlu0 %v850_v58, %s1124_s18 }
 0xce3   : > { %v853_v62 = vpop.permute.xlu0 %852 }
 0xce4   : > { %v855_v0 = vadd.f32 %v853_v62, %v845_v61 }
 0xce6   : > { %1097 = vtanh.f32 %v855_v0  ;;  %v867_v1 = vsel %vm1325_vm14, %v855_v0, %v773_v60 }
 0xce7   : > { %875 = vrot.lane.b32.xlu0 %v867_v1, %s1127_s29 }
 0xcec   : > { %v1098_v2 = vpop.eup %1097 }
 0xced   : > { %858 = vrot.lane.b32.xlu1 %v1098_v2, %s1125_s19 }
 0xd59   : > { %v876_v3 = vpop.permute.xlu0 %875 }
 0xd5a   : > { %878 = vst.msk [vmem:[%s296_s9] sm:$0xf] %vm872_vm15, %v876_v3 }
 0xd5f   : > { %v859_v4 = vpop.permute.xlu1 %858 }
 0xd60   : > { %v861_v5 = vmul.f32 %v859_v4, %v842_v57 }
 0xd62   : > { %v866_v7 = vsel %vm1325_vm14, %v861_v5, %v772_v37 }
 0xd63   : > { %869 = vrot.lane.b32.xlu2 %v866_v7, %s1126_s22 }
 0xdbd   : > { %v870_v8 = vpop.permute.xlu2 %869 }
 0xdbe   : > { %873 = vst.msk [vmem:[%s292_s12] sm:$0xf] %vm872_vm15, %v870_v8 }
 0xdbf PF: > { %s25_s25 = sadd.s32 1, %s1119_s25  }
 0xdc0   : > { %p22_p10 = scmp.ge.s32.totalorder %s25_s25, 11  }
 0xdc2   :  { %24 = sbr.rel (!%p22_p10) target bundleno = 7 (0x7), region = 92 }

// kernel: seq2seq_forward.3
= control target key start
LH: loop header
LB: loop body
LE: loop exit
PB: predicated region body
PF: predicated region fallthrough
CT: control target
= control target key end

     0   :  { %s4770_s16 = smov [#allocation3]   ;;  %s8239_s0 = inlined_call_operand.vmem [shape: s32[8], index: 0, kind: input, shape index: {}]   ;;  %s8240_s1 = inlined_call_operand.vmem [shape: f32[8,4,32], index: 1, kind: input, shape index: {}]   ;;  %s8241_s2 = inlined_call_operand.vmem [shape: f32[4,144], index: 2, kind: input, shape index: {}]   ;;  %s8242_s3 = inlined_call_operand.vmem [shape: f32[4,144], index: 3, kind: input, shape index: {}]   ;;  %s8243_s4 = inlined_call_operand.vmem [shape: f32[32,16], index: 4, kind: input, shape index: {}]   ;;  %s8244_s5 = inlined_call_operand.vmem [shape: f32[16,576], index: 5, kind: input, shape index: {}]   ;;  %s8245_s6 = inlined_call_operand.vmem [shape: f32[144,576], index: 6, kind: input, shape index: {}]   ;;  %s8246_s7 = inlined_call_operand.vmem [shape: f32[1,576], index: 7, kind: input, shape index: {}]   ;;  %s8247_s8 = inlined_call_operand.vmem [shape: f32[144,32], index: 8, kind: input, shape index: {}]   ;;  %s8248_s9 = inlined_call_operand.vmem [shape: f32[1,32], index: 9, kind: input, shape index: {}]   ;;  %s8249_s10 = inlined_call_operand.hbm [shape: f32[8,4,32], index: 10, kind: output, shape index: {}]  }
   0x1   :  { %s16_s15 = sshll.u32 %s8239_s0, 4  ;;  %s17_s15 = int_to_ptr.vmem [resolvable:$true] %s16_s15 }
   0x2   :  { %19 = dma.vmem_to_smem %s17_s15, 16, %s4770_s16, [#allocation2] }
   0x3   :  { %4766 = dma.done.wait [#allocation2], 16 }
   0x4   :  { %4767 = vsyncadd [#allocation2], 4294967280 }
   0x5   :  { %22 = sfence }
   0x6   :  { %v4840_v0 = vld [vmem:[%s8243_s4 + $0x18] sm:$0xff]  ;;  %v4845_v1 = vld [vmem:[%s8243_s4 + $0x10] sm:$0xff]  ;;  %v4851_v2 = vld [vmem:[%s8243_s4 + $0x8] sm:$0xff]  ;;  %vm173_vm0 = vcmask 261120   ;;  %vm202_vm1 = vcmask 130048  }
   0x7   :  { %189 = vmatpush.msra.mxu0 %v4840_v0  ;;  %v4856_v3 = vld [vmem:[%s8245_s6 + $0x258] sm:$0xff]  ;;  %v4862_v4 = vld [vmem:[%s8245_s6 + $0x260] sm:$0xff]  ;;  %v4867_v5 = vld [vmem:[%s8245_s6 + $0x230] sm:$0xff] }
   0x8   :  { %205 = vmatpush.msra.mxu1 %v4856_v3  ;;  %v4872_v6 = vld [vmem:[%s8245_s6 + $0x238] sm:$0xff]  ;;  %245 = vmatpush.msra.mxu3 %v4862_v4  ;;  %v4879_v7 = vld [vmem:[%s8245_s6 + $0x208] sm:$0xff]  ;;  %v4884_v8 = vld [vmem:[%s8243_s4] sm:$0xff] }
   0x9   :  { %190 = vmatpush.msra.mxu0 %v4845_v1  ;;  %v4890_v9 = vld [vmem:[%s8245_s6 + $0x210] sm:$0xff]  ;;  %v4895_v10 = vld [vmem:[%s8245_s6 + $0x2a8] sm:$0xff]  ;;  %v172_v11 = vld [vmem:[%s8240_s1] sm:$0xf] }
   0xa   :  { %206 = vmatpush.msra.mxu1 %v4867_v5  ;;  %246 = vmatpush.msra.mxu3 %v4872_v6  ;;  %v4905_v12 = vld [vmem:[%s8245_s6 + $0x1e0] sm:$0xff]  ;;  %v4915_v14 = vld [vmem:[%s8245_s6 + $0x1e8] sm:$0xff]  ;;  %v4927_v16 = vld [vmem:[%s8245_s6 + $0x1b8] sm:$0xff] }
   0xb   :  { %191 = vmatpush.msra.mxu0 %v4851_v2  ;;  %v170_v13 = vld [vmem:[%s8241_s2] sm:$0xff]  ;;  %239 = vmatpush.msra.mxu2 %v4895_v10  ;;  %v4932_v17 = vld [vmem:[%s8245_s6 + $0x2b0] sm:$0xff]  ;;  %v4951_v20 = vld [vmem:[%s8245_s6 + $0x288] sm:$0xff] }
   0xc   :  { %207 = vmatpush.msra.mxu1 %v4879_v7  ;;  %v4920_v15 = vld [vmem:[%s8245_s6 + $0x280] sm:$0xff]  ;;  %198 = vst [vmem:[#allocation1] ss:$2 sm:$0xff] %v170_v13  ;;  %247 = vmatpush.msra.mxu3 %v4890_v9  ;;  %v4946_v19 = vld [vmem:[%s8245_s6 + $0x190] sm:$0xff]  ;;  %v4956_v21 = vld [vmem:[%s8245_s6 + $0x268] sm:$0xff] }
   0xd   :  { %192 = vmatpush.msra.mxu0 %v4884_v8  ;;  %v4939_v18 = vld [vmem:[%s8245_s6 + $0x1c0] sm:$0xff]  ;;  %240 = vmatpush.msra.mxu2 %v4920_v15  ;;  %v4962_v22 = vld [vmem:[%s8245_s6 + $0x198] sm:$0xff]  ;;  %v4974_v24 = vld [vmem:[%s8245_s6 + $0x168] sm:$0xff] }
   0xe   :  { %4032 = vmatmul.msk.f32.vlgmr.msra.gmra.mxu0 %vm173_vm0, %v172_v11  ;;  %208 = vmatpush.msra.mxu1 %v4905_v12  ;;  %v4968_v23 = vld [vmem:[%s8245_s6 + $0x240] sm:$0xff]  ;;  %v4981_v25 = vld [vmem:[%s8245_s6 + $0x170] sm:$0xff]  ;;  %v4987_v26 = vld [vmem:[%s8245_s6 + $0x2b8] sm:$0xff] }
   0xf   :  { %248 = vmatpush.msra.mxu3 %v4915_v14  ;;  %279 = vmatpush.msrb.mxu2 %v4932_v17  ;;  %v4995_v28 = vld [vmem:[%s8245_s6 + $0x140] sm:$0xff]  ;;  %v5001_v29 = vld [vmem:[%s8245_s6 + $0x218] sm:$0xff]  ;;  %v5009_v30 = vld [vmem:[%s8245_s6 + $0x148] sm:$0xff] }
  0x10   :  { %209 = vmatpush.msra.mxu1 %v4927_v16  ;;  %285 = vmatpush.msrb.mxu0 %v4956_v21  ;;  %v5014_v31 = vld [vmem:[%s8245_s6 + $0x290] sm:$0xff]  ;;  %v5021_v32 = vld [vmem:[%s8245_s6 + $0x118] sm:$0xff]  ;;  %v5032_v34 = vld [vmem:[%s8245_s6 + $0x120] sm:$0xff] }
  0x11   :  { %249 = vmatpush.msra.mxu3 %v4939_v18  ;;  %280 = vmatpush.msrb.mxu2 %v4951_v20  ;;  %v5026_v33 = vld [vmem:[%s8245_s6 + $0x1f0] sm:$0xff]  ;;  %v5045_v36 = vld [vmem:[%s8245_s6 + $0x1c8] sm:$0xff]  ;;  %v5051_v37 = vld [vmem:[%s8245_s6 + $0xf8] sm:$0xff] }
  0x12   :  { %210 = vmatpush.msra.mxu1 %v4946_v19  ;;  %286 = vmatpush.msrb.mxu0 %v4968_v23  ;;  %v5040_v35 = vld [vmem:[%s8245_s6 + $0xf0] sm:$0xff]  ;;  %v5063_v39 = vld [vmem:[%s8245_s6 + $0xc8] sm:$0xff]  ;;  %v171_v41 = vld [vmem:[%s8242_s3] sm:$0xff] }
  0x13   :  { %v4989_v27 = vld.sshfl [vmem:[#allocation1 + $0x8] sm:$0xff pattern:$0x75316420]  ;;  %250 = vmatpush.msra.mxu3 %v4962_v22  ;;  %v5058_v38 = vld [vmem:[%s8245_s6 + $0x270] sm:$0xff]  ;;  %v5081_v43 = vld [vmem:[%s8245_s6 + $0xa0] sm:$0xff] }
  0x14   :  { %4033 = vmatmul.msk.f32.vlgmr.msra.gmra.mxu2 %vm202_vm1, %v4989_v27  ;;  %211 = vmatpush.msra.mxu1 %v4974_v24  ;;  %v5069_v40 = vld [vmem:[%s8245_s6 + $0xd0] sm:$0xff]  ;;  %v5075_v42 = vld.sshfl [vmem:[#allocation1] sm:$0xff pattern:$0x75316420]  ;;  %v5093_v45 = vld [vmem:[%s8245_s6 + $0x248] sm:$0xff] }
  0x15   :  { %251 = vmatpush.msra.mxu3 %v4981_v25  ;;  %319 = vmatpush.msra.mxu2 %v4987_v26  ;;  %v5086_v44 = vld [vmem:[%s8245_s6 + $0x1a0] sm:$0xff]  ;;  %622 = vst [vmem:[#allocation1] ss:$2 sm:$0xff] %v171_v41  ;;  %v5099_v46 = vld [vmem:[%s8245_s6 + $0xa8] sm:$0xff]  ;;  %v5106_v47 = vld [vmem:[%s8245_s6 + $0x78] sm:$0xff] }
  0x16   :  { %212 = vmatpush.msra.mxu1 %v4995_v28  ;;  %287 = vmatpush.msrb.mxu0 %v5001_v29  ;;  %v5111_v48 = vld [vmem:[%s8245_s6 + $0x178] sm:$0xff]  ;;  %v5116_v49 = vld [vmem:[%s8245_s6 + $0x220] sm:$0xff]  ;;  %v5130_v51 = vld [vmem:[%s8245_s6 + $0x50] sm:$0xff] }
  0x17   :  { %252 = vmatpush.msra.mxu3 %v5009_v30  ;;  %320 = vmatpush.msra.mxu2 %v5014_v31  ;;  %v5122_v50 = vld [vmem:[%s8245_s6 + $0x80] sm:$0xff]  ;;  %v5135_v52 = vld [vmem:[%s8245_s6 + $0x150] sm:$0xff]  ;;  %v5140_v53 = vld [vmem:[%s8245_s6 + $0x1f8] sm:$0xff] }
  0x18   :  { %213 = vmatpush.msra.mxu1 %v5021_v32  ;;  %288 = vmatpush.msrb.mxu0 %v5026_v33  ;;  %8412 = vst [vmem:[#allocation8_spill] sm:$0xff] %v5135_v52  ;;  %v5146_v54 = vld [vmem:[%s8245_s6 + $0x58] sm:$0xff]  ;;  %v5154_v55 = vld [vmem:[%s8245_s6 + $0x28] sm:$0xff]  ;;  %v5164_v57 = vld [vmem:[%s8245_s6 + $0x1d0] sm:$0xff] }
  0x19   :  { %253 = vmatpush.msra.mxu3 %v5032_v34  ;;  %8413 = vst [vmem:[#allocation9_spill] sm:$0xff] %v5140_v53  ;;  %v5159_v56 = vld [vmem:[%s8245_s6 + $0x128] sm:$0xff]  ;;  %v5170_v58 = vld [vmem:[%s8245_s6 + $0x30] sm:$0xff]  ;;  %v5178_v59 = vld [vmem:[%s8245_s6] sm:$0xff] }
  0x1a   :  { %214 = vmatpush.msra.mxu1 %v5040_v35  ;;  %289 = vmatpush.msrb.mxu0 %v5045_v36  ;;  %8414 = vst [vmem:[#allocation10_spill] sm:$0xff] %v5159_v56  ;;  %v5183_v60 = vld [vmem:[%s8245_s6 + $0x100] sm:$0xff]  ;;  %v5188_v61 = vld [vmem:[%s8245_s6 + $0x1a8] sm:$0xff]  ;;  %v5202_v63 = vld [vmem:[%s8245_s6 + $0x278] sm:$0xff] }
  0x1b   :  { %254 = vmatpush.msra.mxu3 %v5051_v37  ;;  %8415 = vst [vmem:[#allocation11_spill] sm:$0xff] %v5164_v57  ;;  %v5194_v62 = vld [vmem:[%s8245_s6 + $0x8] sm:$0xff]  ;;  %v5207_v11 = vld [vmem:[%s8245_s6 + $0x180] sm:$0xff]  ;;  %v5216_v13 = vld [vmem:[%s8245_s6 + $0x158] sm:$0xff] }
  0x1c   :  { %4034 = vmatmul.msk.f32.vlgmr.msrb.gmra.mxu2 %vm202_vm1, %v4989_v27  ;;  %215 = vmatpush.msra.mxu1 %v5063_v39  ;;  %8416 = vst [vmem:[#allocation12_spill] sm:$0xff] %v5183_v60  ;;  %v5221_v41 = vld [vmem:[%s8245_s6 + $0x250] sm:$0xff] }
  0x1d   :  { %325 = vmatpush.msrb.mxu2 %v5058_v38  ;;  %255 = vmatpush.msra.mxu3 %v5069_v40  ;;  %8417 = vst [vmem:[#allocation13_spill] sm:$0xff] %v5188_v61 }
  0x1e   :  { %216 = vmatpush.msra.mxu1 %v5081_v43  ;;  %290 = vmatpush.msrb.mxu0 %v5086_v44  ;;  %8418 = vst [vmem:[#allocation14_spill] sm:$0xff] %v5202_v63 }
  0x1f   :  { %326 = vmatpush.msrb.mxu2 %v5093_v45  ;;  %256 = vmatpush.msra.mxu3 %v5099_v46  ;;  %8419 = vst [vmem:[#allocation15_spill] sm:$0xff] %v5207_v11 }
  0x20   :  { %217 = vmatpush.msra.mxu1 %v5106_v47  ;;  %291 = vmatpush.msrb.mxu0 %v5111_v48  ;;  %8420 = vst [vmem:[#allocation16_spill] sm:$0xff] %v5216_v13 }
  0x21   :  { %327 = vmatpush.msrb.mxu2 %v5116_v49  ;;  %257 = vmatpush.msra.mxu3 %v5122_v50  ;;  %8421 = vst [vmem:[#allocation17_spill] sm:$0xff] %v5221_v41 }
  0x22   :  { %218 = vmatpush.msra.mxu1 %v5130_v51  ;;  %292 = vmatpush.msrb.mxu0 %v5135_v52 }
  0x23   :  { %328 = vmatpush.msrb.mxu2 %v5140_v53  ;;  %258 = vmatpush.msra.mxu3 %v5146_v54 }
  0x24   :  { %219 = vmatpush.msra.mxu1 %v5154_v55  ;;  %293 = vmatpush.msrb.mxu0 %v5159_v56  ;;  %v5226_v56 = vld [vmem:[%s8245_s6 + $0xd8] sm:$0xff] }
  0x25   :  { %329 = vmatpush.msrb.mxu2 %v5164_v57  ;;  %259 = vmatpush.msra.mxu3 %v5170_v58  ;;  %8422 = vst [vmem:[#allocation18_spill] sm:$0xff] %v5226_v56 }
  0x26   :  { %220 = vmatpush.msra.mxu1 %v5178_v59  ;;  %294 = vmatpush.msrb.mxu0 %v5183_v60  ;;  %v5233_v60 = vld [vmem:[%s8245_s6 + $0x2c0] sm:$0xff] }
  0x27   :  { %330 = vmatpush.msrb.mxu2 %v5188_v61  ;;  %260 = vmatpush.msra.mxu3 %v5194_v62  ;;  %8423 = vst [vmem:[#allocation19_spill] sm:$0xff] %v5233_v60 }
  0x28   :  { %221 = vmatmul.f32.vlgmr.msra.gmra.mxu1 %v5075_v42 }
  0x29   :  { %365 = vmatpush.msrb.mxu3 %v5202_v63 }
  0x2a   :  { %23 = vsyncpa [#allocation5], 0  ;;  %331 = vmatpush.msrb.mxu2 %v5207_v11  ;;  %261 = vmatmul.f32.vlgmr.msra.gmra.mxu3 %v5075_v42  ;;  %v5240_v61 = vld [vmem:[%s8245_s6 + $0x228] sm:$0xff]  ;;  %v5245_v57 = vld [vmem:[%s8245_s6 + $0xb0] sm:$0xff]  ;;  %s4771_s2 = smov 16   ;;  %vm640_vm5 = vcmask 785408  }
  0x2b   :  { %8424 = vst [vmem:[#allocation20_spill] sm:$0xff] %v5240_v61  ;;  %v5250_v63 = vld [vmem:[%s8245_s6 + $0x130] sm:$0xff]  ;;  %366 = vmatpush.msrb.mxu3 %v5221_v41  ;;  %295 = vmatpush.msrb.mxu0 %v5226_v56  ;;  %v5257_v11 = vld [vmem:[%s8245_s6 + $0x298] sm:$0xff]  ;;  %v5263_v52 = vld [vmem:[%s8245_s6 + $0x200] sm:$0xff]  ;;  %s4773_s29 = smov 32   ;;  %s4774_s13 = smov 80  }
  0x2c   :  { %8425 = vst [vmem:[#allocation21_spill] sm:$0xff] %v5245_v57  ;;  %332 = vmatpush.msrb.mxu2 %v5216_v13  ;;  %v5268_v53 = vld [vmem:[%s8245_s6 + $0x88] sm:$0xff]  ;;  %359 = vmatpush.msrb.mxu1 %v5233_v60  ;;  %v5287_v60 = vld [vmem:[%s8245_s6 + $0x1d8] sm:$0xff]  ;;  %s4050_s19 = sld [smem:[#allocation3 + $0x1]]  ;;  %s4778_s23 = smov 4  }
  0x2d   :  { %8426 = vst [vmem:[#allocation22_spill] sm:$0xff] %v5250_v63  ;;  %v5274_v41 = vld [vmem:[%s8245_s6 + $0x108] sm:$0xff]  ;;  %367 = vmatpush.msrb.mxu3 %v5240_v61  ;;  %296 = vmatpush.msrb.mxu0 %v5245_v57  ;;  %v5293_v61 = vld [vmem:[%s8245_s6 + $0xe0] sm:$0xff]  ;;  %v5337_v57 = vld [vmem:[%s8245_s6 + $0x90] sm:$0xff]  ;;  %s4090_s14 = sld [smem:[#allocation3 + $0x3]] }
  0x2e   :  { %8427 = vst [vmem:[#allocation23_spill] sm:$0xff] %v5257_v11  ;;  %v5281_v13 = vld [vmem:[%s8244_s5 + $0x28] sm:$0xff]  ;;  %333 = vmatpush.msrb.mxu2 %v5250_v63  ;;  %360 = vmatpush.msrb.mxu1 %v5257_v11  ;;  %v5300_v63 = vld [vmem:[%s8245_s6 + $0x60] sm:$0xff]  ;;  %v5306_v11 = vld [vmem:[%s8245_s6 + $0x1b0] sm:$0xff]  ;;  %s4130_s26 = sld [smem:[#allocation3 + $0x5]] }
  0x2f   :  { %8428 = vst [vmem:[#allocation24_spill] sm:$0xff] %v5263_v52  ;;  %368 = vmatpush.msrb.mxu3 %v5263_v52  ;;  %297 = vmatpush.msrb.mxu0 %v5268_v53  ;;  %v5312_v52 = vld [vmem:[%s8245_s6 + $0xb8] sm:$0xff]  ;;  %v5363_v56 = vld [vmem:[%s8245_s6 + $0x2c8] sm:$0xff] }
  0x30   :  { %8429 = vst [vmem:[#allocation25_spill] sm:$0xff] %v5268_v53  ;;  %334 = vmatpush.msrb.mxu2 %v5274_v41  ;;  %422 = vmatpush.msra.mxu1 %v5281_v13  ;;  %v5327_v53 = vld [vmem:[%s8245_s6 + $0x188] sm:$0xff] }
  0x31   :  { %8430 = vst [vmem:[#allocation26_spill] sm:$0xff] %v5274_v41  ;;  %369 = vmatpush.msrb.mxu3 %v5287_v60  ;;  %4035 = vmatmul.msk.f32.vlgmr.msra.gmra.mxu2 %vm202_vm1, %v4989_v27  ;;  %v5320_v41 = vld [vmem:[%s8245_s6 + $0x38] sm:$0xff] }
  0x32   :  { %8431 = vst [vmem:[#allocation27_spill] sm:$0xff] %v5287_v60  ;;  %335 = vmatpush.msrb.mxu2 %v5293_v61  ;;  %298 = vmatpush.msrb.mxu0 %v5300_v63  ;;  %v5332_v60 = vld [vmem:[%s8244_s5] sm:$0xff]  ;;  %p750_p0 = scmp.eq.s32.totalorder %s4050_s19, 1  ;;  %s4070_s19 = sld [smem:[#allocation3 + $0x2]] }
  0x33   :  { %8432 = vst [vmem:[#allocation28_spill] sm:$0xff] %v5293_v61  ;;  %370 = vmatpush.msrb.mxu3 %v5306_v11  ;;  %v5343_v61 = vld [vmem:[%s8245_s6 + $0x10] sm:$0xff]  ;;  %4036 = vmatmul.msk.f32.vlgmr.msrb.gmra.mxu1 %vm202_vm1, %v4989_v27  ;;  %p1846_p2 = scmp.eq.s32.totalorder %s4090_s14, 1  ;;  %s4110_s14 = sld [smem:[#allocation3 + $0x4]] }
  0x34   :  { %8433 = vst [vmem:[#allocation29_spill] sm:$0xff] %v5300_v63  ;;  %336 = vmatpush.msrb.mxu2 %v5312_v52  ;;  %299 = vmatpush.msrb.mxu0 %v5320_v41  ;;  %v5352_v63 = vld [vmem:[%s8245_s6 + $0x160] sm:$0xff]  ;;  %s753_s20 = scalar_select %p750_p0, 1, 0 }
  0x35   :  { %8434 = vst [vmem:[#allocation30_spill] sm:$0xff] %v5306_v11  ;;  %v5357_v11 = vld [vmem:[%s8245_s6 + $0x68] sm:$0xff]  ;;  %371 = vmatpush.msrb.mxu3 %v5327_v53  ;;  %423 = vmatpush.msra.mxu1 %v5332_v60  ;;  %s1849_s15 = scalar_select %p1846_p2, 1, 0 }
  0x36   :  { %8435 = vst [vmem:[#allocation31_spill] sm:$0xff] %v5312_v52  ;;  %337 = vmatpush.msrb.mxu2 %v5337_v57  ;;  %300 = vmatpush.msrb.mxu0 %v5343_v61  ;;  %v5371_v52 = vld [vmem:[%s8245_s6 + $0x138] sm:$0xff]  ;;  %p2942_p4 = scmp.eq.s32.totalorder %s4130_s26, 1 }
  0x37   :  { %8436 = vst [vmem:[#allocation32_spill] sm:$0xff] %v5320_v41  ;;  %372 = vmatpush.msrb.mxu3 %v5352_v63  ;;  %301 = vmatmul.f32.vlgmr.msrb.gmra.mxu0 %v5075_v42  ;;  %v5400_v41 = vld [vmem:[%s8245_s6 + $0x18] sm:$0xff] }
  0x38   :  { %8437 = vst [vmem:[#allocation33_spill] sm:$0xff] %v5327_v53  ;;  %v5376_v53 = vld [vmem:[%s8245_s6 + $0x40] sm:$0xff]  ;;  %338 = vmatpush.msrb.mxu2 %v5357_v11  ;;  %399 = vmatpush.msra.mxu0 %v5363_v56  ;;  %p1298_p1 = scmp.eq.s32.totalorder %s4070_s19, 1 }
  0x39   :  { %8438 = vst [vmem:[#allocation34_spill] sm:$0xff] %v5337_v57  ;;  %v5383_v57 = vld [vmem:[%s8245_s6 + $0x2a0] sm:$0xff]  ;;  %373 = vmatpush.msrb.mxu3 %v5371_v52  ;;  %p2394_p3 = scmp.eq.s32.totalorder %s4110_s14, 1 }
  0x3a   :  { %8439 = vst [vmem:[#allocation35_spill] sm:$0xff] %v5343_v61  ;;  %v5389_v61 = vld [vmem:[%s8245_s6 + $0x110] sm:$0xff]  ;;  %339 = vmatpush.msrb.mxu2 %v5376_v53  ;;  %400 = vmatpush.msra.mxu0 %v5383_v57  ;;  %s2945_s27 = scalar_select %p2942_p4, 1, 0 }
  0x3b   :  { %8440 = vst [vmem:[#allocation36_spill] sm:$0xff] %v5352_v63  ;;  %v5395_v63 = vld [vmem:[%s8244_s5 + $0x30] sm:$0xff]  ;;  %374 = vmatpush.msrb.mxu3 %v5389_v61 }
  0x3c   :  { %8441 = vst [vmem:[#allocation37_spill] sm:$0xff] %v5357_v11  ;;  %v5407_v11 = vld [vmem:[%s8245_s6 + $0xe8] sm:$0xff]  ;;  %442 = vmatpush.msrb.mxu0 %v5395_v63  ;;  %340 = vmatpush.msrb.mxu2 %v5400_v41 }
  0x3d   :  { %8442 = vst [vmem:[#allocation38_spill] sm:$0xff] %v5363_v56  ;;  %v5415_v56 = vld [vmem:[%s8244_s5 + $0x40] sm:$0xff]  ;;  %341 = vmatmul.f32.vlgmr.msrb.gmra.mxu2 %v5075_v42  ;;  %375 = vmatpush.msrb.mxu3 %v5407_v11 }
  0x3e   :  { %8443 = vst [vmem:[#allocation39_spill] sm:$0xff] %v5371_v52  ;;  %v5421_v52 = vld [vmem:[%s8245_s6 + $0xc0] sm:$0xff]  ;;  %482 = vmatpush.msra.mxu2 %v5415_v56 }
  0x3f   :  { %8444 = vst [vmem:[#allocation40_spill] sm:$0xff] %v5383_v57  ;;  %376 = vmatpush.msrb.mxu3 %v5421_v52  ;;  %4037 = vmatmul.msk.f32.vlgmr.msra.gmra.mxu0 %vm202_vm1, %v4989_v27  ;;  %v5437_v57 = vld [vmem:[%s8245_s6 + $0x70] sm:$0xff]  ;;  %v5450_v27 = vld [vmem:[%s8245_s6 + $0x20] sm:$0xff] }
  0x40   :  { %8445 = vst [vmem:[#allocation41_spill] sm:$0xff] %v5389_v61  ;;  %v5428_v61 = vld [vmem:[%s8245_s6 + $0x98] sm:$0xff] }
  0x41   :  { %8446 = vst [vmem:[#allocation42_spill] sm:$0xff] %v5407_v11  ;;  %377 = vmatpush.msrb.mxu3 %v5428_v61  ;;  %v5443_v11 = vld [vmem:[%s8245_s6 + $0x48] sm:$0xff] }
  0x42   :  { %8447 = vst [vmem:[#allocation43_spill] sm:$0xff] %v5421_v52  ;;  %v5455_v52 = vld [vmem:[%s8244_s5 + $0x8] sm:$0xff] }
  0x43   :  { %8448 = vst [vmem:[#allocation44_spill] sm:$0xff] %v5428_v61  ;;  %378 = vmatpush.msrb.mxu3 %v5437_v57  ;;  %v5460_v61 = vld [vmem:[%s8244_s5 + $0x18] sm:$0xff]  ;;  %443 = vmatpush.msrb.mxu0 %v5455_v52 }
  0x44   :  { %8449 = vst [vmem:[#allocation45_spill] sm:$0xff] %v5437_v57  ;;  %483 = vmatpush.msra.mxu2 %v5460_v61  ;;  %v5475_v57 = vld [vmem:[%s8244_s5 + $0x10] sm:$0xff] }
  0x45   :  { %8450 = vst [vmem:[#allocation46_spill] sm:$0xff] %v5443_v11  ;;  %379 = vmatpush.msrb.mxu3 %v5443_v11  ;;  %v5469_v11 = vld [vmem:[%s8244_s5 + $0x38] sm:$0xff] }
  0x46   :  { %8451 = vst [vmem:[#allocation47_spill] sm:$0xff] %v5450_v27  ;;  %462 = vmatpush.msrb.mxu1 %v5469_v11 }
  0x47   :  { %8452 = vst [vmem:[#allocation48_spill] sm:$0xff] %v5460_v61  ;;  %380 = vmatpush.msrb.mxu3 %v5450_v27  ;;  %v5480_v27 = vld [vmem:[%s8244_s5 + $0x48] sm:$0xff]  ;;  %v623_v61 = vld.sshfl [vmem:[#allocation1] sm:$0xff pattern:$0x75316420] }
  0x48   :  { %381 = vmatmul.f32.vlgmr.msrb.gmra.mxu3 %v5075_v42  ;;  %v5485_v42 = vld [vmem:[%s8244_s5 + $0x20] sm:$0xff]  ;;  %502 = vmatpush.msra.mxu0 %v5480_v27 }
  0x49   :  { %780 = vmatpush.msra.mxu3 %v4856_v3  ;;  %463 = vmatpush.msrb.mxu1 %v5475_v57  ;;  %v624_v3 = vld.sshfl [vmem:[#allocation1 + $0x8] sm:$0xff pattern:$0x75316420] }
  0x4a   :  { %503 = vmatpush.msra.mxu0 %v5485_v42  ;;  %625 = vrot.lane.b32.xlu1 %v623_v61, %s4771_s2 }
  0x4b   :  { %781 = vmatpush.msra.mxu3 %v4867_v5 }
  0x4d   :  { %782 = vmatpush.msra.mxu3 %v4879_v7 }
  0x4f   :  { %783 = vmatpush.msra.mxu3 %v4905_v12 }
  0x51   :  { %784 = vmatpush.msra.mxu3 %v4927_v16  ;;  %v5538_v16 = vld [vmem:[%s8246_s7] sm:$0x1f]  ;;  %s4772_s7 = smov 96  }
  0x52   :  { %627 = vrot.lane.b32.xlu1 %v624_v3, %s4771_s2  ;;  %v5559_v61 = vperm.slane %v5538_v16, 0 }
  0x53   :  { %785 = vmatpush.msra.mxu3 %v4946_v19  ;;  %v5541_v19 = vperm.slane %v5538_v16, 2 }
  0x54   :  { %8455 = vst [vmem:[#allocation51_spill] sm:$0xff] %v5559_v61 }
  0x55   :  { %786 = vmatpush.msra.mxu3 %v4974_v24  ;;  %8453 = vst [vmem:[#allocation49_spill] sm:$0xff] %v5541_v19 }
  0x57   :  { %787 = vmatpush.msra.mxu3 %v4995_v28 }
  0x59   :  { %788 = vmatpush.msra.mxu3 %v5021_v32 }
  0x5b   :  { %789 = vmatpush.msra.mxu3 %v5040_v35 }
  0x5d   :  { %790 = vmatpush.msra.mxu3 %v5063_v39 }
  0x5f   :  { %791 = vmatpush.msra.mxu3 %v5081_v43 }
  0x61   :  { %792 = vmatpush.msra.mxu3 %v5106_v47 }
  0x63   :  { %793 = vmatpush.msra.mxu3 %v5130_v51 }
  0x65   :  { %794 = vmatpush.msra.mxu3 %v5154_v55 }
  0x67   :  { %795 = vmatpush.msra.mxu3 %v5178_v59 }
  0x69   :  { %997 = vmatpush.msrb.mxu3 %v5281_v13 }
  0x6b   :  { %998 = vmatpush.msrb.mxu3 %v5332_v60 }
  0x8b   :  { %v194_v5 = vpop.f32.mrf.mxu0 }
  0x8c   :  { %4038 = vmatmul.msk.f32.vlgmr.msra.gmra.mxu1 %vm202_vm1, %v194_v5  ;;  %4039 = vmatmul.msk.f32.vlgmr.msrb.gmra.mxu0 %vm202_vm1, %v194_v5 }
  0x8d   :  { %4041 = vmatmul.msk.f32.vlgmr.msra.gmra.mxu2 %vm202_vm1, %v194_v5  ;;  %772 = vmatpush.msrb.mxu0 %v4840_v0 }
  0x8f   :  { %773 = vmatpush.msrb.mxu0 %v4845_v1 }
  0x91   :  { %774 = vmatpush.msrb.mxu0 %v4851_v2 }
  0x93   :  { %775 = vmatpush.msrb.mxu0 %v4884_v8 }
  0x94   :  { %4040 = vmatmul.msk.f32.vlgmr.msrb.gmra.mxu1 %vm202_vm1, %v194_v5  ;;  %4042 = vmatmul.msk.f32.vlgmr.msra.gmra.mxu0 %vm202_vm1, %v194_v5 }
  0x95   :  { %820 = vmatpush.msra.mxu0 %v4862_v4 }
  0x97   :  { %821 = vmatpush.msra.mxu0 %v4872_v6  ;;  %v242_v0 = vpop.f32.mrf.mxu2 }
  0x99   :  { %822 = vmatpush.msra.mxu0 %v4890_v9 }
  0x9b   :  { %823 = vmatpush.msra.mxu0 %v4915_v14 }
  0x9d   :  { %824 = vmatpush.msra.mxu0 %v4939_v18 }
  0x9f   :  { %825 = vmatpush.msra.mxu0 %v4962_v22  ;;  %v282_v2 = vpop.f32.mrf.mxu2 }
  0xa1   :  { %826 = vmatpush.msra.mxu0 %v4981_v25 }
  0xa3   :  { %827 = vmatpush.msra.mxu0 %v5009_v30 }
  0xa5   :  { %828 = vmatpush.msra.mxu0 %v5032_v34  ;;  %v222_v1 = vpop.f32.mrf.mxu1 }
  0xa6   :  { %v243_v7 = vadd.f32 %v242_v0, %v222_v1 }
  0xa7   :  { %829 = vmatpush.msra.mxu0 %v5051_v37 }
  0xa9   :  { %830 = vmatpush.msra.mxu0 %v5069_v40 }
  0xab   :  { %831 = vmatpush.msra.mxu0 %v5099_v46  ;;  %v5547_v46 = vperm.slane %v5538_v16, 3 }
  0xad   :  { %832 = vmatpush.msra.mxu0 %v5122_v50  ;;  %8454 = vst [vmem:[#allocation50_spill] sm:$0xff] %v5547_v46 }
  0xaf   :  { %833 = vmatpush.msra.mxu0 %v5146_v54 }
  0xb0   :  { %v362_v4 = vpop.f32.mrf.mxu1 }
  0xb1   :  { %834 = vmatpush.msra.mxu0 %v5170_v58 }
  0xb3   :  { %835 = vmatpush.msra.mxu0 %v5194_v62  ;;  %v262_v62 = vpop.f32.mrf.mxu3 }
  0xb4   :  { %v322_v6 = vpop.f32.mrf.mxu2  ;;  %v302_v14 = vpop.f32.mrf.mxu0  ;;  %v283_v5 = vadd.f32 %v282_v2, %v262_v62 }
  0xb5   :  { %v323_v18 = vadd.f32 %v322_v6, %v302_v14 }
  0xbc   :  { %v5556_v60 = vpop.f32.mrf.mxu0 }
  0xc0   :  { %v342_v12 = vpop.f32.mrf.mxu2 }
  0xc1   :  { %v363_v34 = vadd.f32 %v362_v4, %v342_v12  ;;  %v5563_v4 = vperm.slane %v5538_v16, 1 }
  0xc3   :  { %8456 = vst [vmem:[#allocation52_spill] sm:$0xff] %v5563_v4 }
 0x109   :  { %v425_v8 = vpop.f32.mrf.mxu1  ;;  %v445_v3 = vpop.f32.mrf.mxu0 }
 0x10a   :  { %v426_v9 = vadd.f32 %v425_v8, %v243_v7  ;;  %v446_v1 = vadd.f32 %v445_v3, %v283_v5 }
 0x10c   :  { %v519_v13 = vadd.f32 %v5559_v61, %v426_v9  ;;  %v520_v6 = vadd.f32 %v5563_v4, %v446_v1 }
 0x10e   :  { %v4043_v0 = vmul.f32 -1.442695, %v519_v13  ;;  %v4044_v7 = vmul.f32 -1.442695, %v520_v6 }
 0x110   :  { %v485_v30 = vpop.f32.mrf.mxu2 }
 0x111   :  { %v465_v22 = vpop.f32.mrf.mxu1  ;;  %v486_v40 = vadd.f32 %v485_v30, %v363_v34 }
 0x112   :  { %v466_v25 = vadd.f32 %v465_v22, %v323_v18 }
 0x113   :  { %v5551_v50 = vadd.f32 %v5547_v46, %v486_v40 }
 0x114   :  { %v5544_v37 = vadd.f32 %v5541_v19, %v466_v25 }
 0x116   :  { %4179 = vtanh.f32 %v5544_v37 }
 0x117   :  { %4181 = vtanh.f32 %v5551_v50 }
 0x118   :  { %4183 = vpow2.f32 %v4043_v0 }
 0x119   :  { %4185 = vpow2.f32 %v4044_v7 }
 0x11c   :  { %v4180_v54 = vpop.eup %4179 }
 0x11d   :  { %636 = vrot.lane.b32.xlu0 %v4180_v54, %s4772_s7  ;;  %v4182_v58 = vpop.eup %4181 }
 0x11e   :  { %v4184_v8 = vpop.eup %4183 }
 0x11f   :  { %v530_v12 = vadd.f32 1.0, %v4184_v8  ;;  %v4186_v14 = vpop.eup %4185 }
 0x120   :  { %v531_v18 = vadd.f32 1.0, %v4186_v14 }
 0x121   :  { %4187 = vrcp.f32 %v530_v12  ;;  %v543_v62 = vand.u32 2147483648, %v530_v12  ;;  %vm537_vm3 = vweird.f32 %v530_v12  ;;  %v541_v13 = vand.u32 2147483647, %v530_v12 }
 0x122   :  { %4189 = vrcp.f32 %v531_v18  ;;  %vm552_vm8 = vweird.f32 %v531_v18 }
 0x123   :  { %v544_v0 = vor.u32 1.1754944e-38, %v543_v62  ;;  %vm542_vm6 = vcmp.eq.f32.partialorder %v541_v13, 8.507059e+37 }
 0x125   :  { %638 = vrot.lane.b32.xlu0 %v4182_v58, %s4772_s7 }
 0x127   :  { %v4188_v22 = vpop.eup %4187 }
 0x128   :  { %v533_v9 = vmul.f32 %v4188_v22, %v530_v12  ;;  %v4190_v2 = vpop.eup %4189  ;;  %vm538_vm2 = vweird.f32 %v4188_v22 }
 0x129   :  { %v548_v30 = vmul.f32 %v4190_v2, %v531_v18  ;;  %vm539_vm4 = vmor %vm537_vm3, %vm538_vm2  ;;  %vm553_vm7 = vweird.f32 %v4190_v2 }
 0x12a   :  { %v534_v25 = vsub.f32 1.0, %v533_v9  ;;  %v558_v9 = vand.u32 2147483648, %v531_v18  ;;  %vm554_vm9 = vmor %vm552_vm8, %vm553_vm7 }
 0x12b   :  { %v549_v54 = vsub.f32 1.0, %v548_v30 }
 0x12c   :  { %v535_v34 = vmul.f32 %v4188_v22, %v534_v25  ;;  %v556_v25 = vand.u32 2147483647, %v531_v18  ;;  %v559_v30 = vor.u32 1.1754944e-38, %v558_v9  ;;  %v626_v18 = vpop.permute.xlu1 %625 }
 0x12d   :  { %v550_v3 = vmul.f32 %v4190_v2, %v549_v54  ;;  %v4045_v54 = vmul.f32 -1.442695, %v5544_v37 }
 0x12e   :  { %v536_v58 = vadd.f32 %v4188_v22, %v535_v34  ;;  %vm557_vm10 = vcmp.eq.f32.partialorder %v556_v25, 8.507059e+37 }
 0x12f   :  { %v551_v8 = vadd.f32 %v4190_v2, %v550_v3  ;;  %4191 = vpow2.f32 %v4045_v54 }
 0x130   :  { %v540_v5 = vsel %vm539_vm4, %v4188_v22, %v536_v58 }
 0x131   :  { %v545_v7 = vsel %vm542_vm6, %v544_v0, %v540_v5  ;;  %v555_v12 = vsel %vm554_vm9, %v4190_v2, %v551_v8 }
 0x132   :  { %v560_v34 = vsel %vm557_vm10, %v559_v30, %v555_v12  ;;  %vm679_vm10 = vcmask 654336  }
 0x133   :  { %v632_v2 = vmul.f32 %v626_v18, %v560_v34 }
 0x134   :  { %v628_v37 = vpop.permute.xlu1 %627 }
 0x135   :  { %v629_v12 = vsel %vm202_vm1, %v626_v18, %v628_v37  ;;  %v4046_v18 = vmul.f32 -1.442695, %v5551_v50  ;;  %v5589_v50 = vld [vmem:[%s8247_s8 + $0x78] sm:$0xff] }
 0x136   :  { %684 = vmatpush.msra.mxu1 %v5589_v50 }
 0x18f   :  { %v637_v40 = vpop.permute.xlu0 %636 }
 0x197   :  { %v639_v1 = vpop.permute.xlu0 %638 }
 0x198   :  { %v641_v6 = vsel %vm640_vm5, %v637_v40, %v639_v1  ;;  %v645_v22 = vmul.f32 %v639_v1, %v560_v34  ;;  %v4192_v40 = vpop.eup %4191 }
 0x199   :  { %v644_v14 = vmul.f32 %v641_v6, %v545_v7  ;;  %v565_v58 = vadd.f32 1.0, %v4192_v40 }
 0x19b   :  { %648 = vrot.lane.b32.xlu2 %v644_v14, %s4771_s2  ;;  %4193 = vrcp.f32 %v565_v58  ;;  %v577_v6 = vand.u32 2147483648, %v565_v58  ;;  %vm571_vm12 = vweird.f32 %v565_v58  ;;  %v575_v7 = vand.u32 2147483647, %v565_v58 }
 0x19d   :  { %v578_v9 = vor.u32 1.1754944e-38, %v577_v6  ;;  %vm576_vm14 = vcmp.eq.f32.partialorder %v575_v7, 8.507059e+37 }
 0x1a1   :  { %v4194_v62 = vpop.eup %4193 }
 0x1a2   :  { %v567_v13 = vmul.f32 %v4194_v62, %v565_v58  ;;  %vm572_vm11 = vweird.f32 %v4194_v62 }
 0x1a3   :  { %650 = vrot.lane.b32.xlu2 %v645_v22, %s4771_s2  ;;  %vm573_vm13 = vmor %vm571_vm12, %vm572_vm11  ;;  %vm168_vm11 = vcmask 257024  }
 0x1a4   :  { %v568_v3 = vsub.f32 1.0, %v567_v13 }
 0x1a6   :  { %v569_v5 = vmul.f32 %v4194_v62, %v568_v3  ;;  %v505_v3 = vpop.f32.mrf.mxu0 }
 0x1a8   :  { %v570_v0 = vadd.f32 %v4194_v62, %v569_v5 }
 0x1aa   :  { %v574_v14 = vsel %vm573_vm13, %v4194_v62, %v570_v0  ;;  %v382_v62 = vpop.f32.mrf.mxu3  ;;  %v5583_v0 = vperm.slane %v5538_v16, 4  ;;  %v5594_v16 = vld [vmem:[%s8247_s8 + $0x70] sm:$0xff] }
 0x1ab   :  { %v579_v25 = vsel %vm576_vm14, %v578_v9, %v574_v14  ;;  %v403_v13 = vadd.f32 %v5556_v60, %v382_v62  ;;  %v5600_v60 = vld [vmem:[%s8247_s8 + $0x68] sm:$0xff]  ;;  %685 = vmatpush.msra.mxu1 %v5594_v16 }
 0x1ac   :  { %v633_v30 = vmul.f32 %v629_v12, %v579_v25  ;;  %8459 = vst [vmem:[#allocation55_spill] sm:$0xff] %v5583_v0  ;;  %v5606_v12 = vld [vmem:[%s8247_s8 + $0x88] sm:$0xff] }
 0x1ad   :  { %v506_v5 = vadd.f32 %v505_v3, %v403_v13  ;;  %718 = vmatpush.msrb.mxu2 %v5606_v12  ;;  %686 = vmatpush.msra.mxu1 %v5600_v60  ;;  %v5631_v13 = vld [vmem:[%s8247_s8 + $0x50] sm:$0xff] }
 0x1f5   :  { %v649_v1 = vpop.permute.xlu2 %648 }
 0x1f6   :  { %v5570_v8 = vadd.f32 %v649_v1, %v632_v2  ;;  %v523_v2 = vadd.f32 %v5583_v0, %v506_v5 }
 0x1f8   :  { %8457 = vst [vmem:[#allocation53_spill] sm:$0xff] %v5570_v8  ;;  %4195 = vtanh.f32 %v5570_v8  ;;  %v4047_v7 = vmul.f32 -1.442695, %v523_v2 }
 0x1fd   :  { %v651_v22 = vpop.permute.xlu2 %650 }
 0x1fe   :  { %v4196_v54 = vpop.eup %4195  ;;  %v652_v34 = vsel %vm202_vm1, %v649_v1, %v651_v22 }
 0x1ff   :  { %v5575_v40 = vadd.f32 %v652_v34, %v633_v30  ;;  %661 = vrot.lane.b32.xlu0 %v4196_v54, %s4773_s29  ;;  %v5611_v30 = vld [vmem:[%s8247_s8 + $0x80] sm:$0xff]  ;;  %v5623_v34 = vld [vmem:[%s8247_s8 + $0x58] sm:$0xff] }
 0x200   :  { %v5616_v54 = vld [vmem:[%s8247_s8 + $0x60] sm:$0xff]  ;;  %719 = vmatpush.msrb.mxu2 %v5611_v30 }
 0x201   :  { %8458 = vst [vmem:[#allocation54_spill] sm:$0xff] %v5575_v40  ;;  %4197 = vtanh.f32 %v5575_v40  ;;  %687 = vmatpush.msra.mxu1 %v5616_v54 }
 0x202   :  { %4199 = vpow2.f32 %v4046_v18  ;;  %814 = vmatpush.msra.mxu2 %v4895_v10  ;;  %v5638_v18 = vld [vmem:[%s8247_s8 + $0x48] sm:$0xff]  ;;  %v5644_v10 = vld [vmem:[%s8247_s8 + $0x40] sm:$0xff] }
 0x203   :  { %4201 = vpow2.f32 %v4047_v7  ;;  %688 = vmatpush.msra.mxu1 %v5623_v34  ;;  %v5650_v7 = vld [vmem:[%s8247_s8 + $0x38] sm:$0xff] }
 0x204   :  { %815 = vmatpush.msra.mxu2 %v4920_v15 }
 0x205   :  { %689 = vmatpush.msra.mxu1 %v5631_v13 }
 0x207   :  { %v4198_v58 = vpop.eup %4197  ;;  %690 = vmatpush.msra.mxu1 %v5638_v18 }
 0x208   :  { %663 = vrot.lane.b32.xlu1 %v4198_v58, %s4773_s29  ;;  %v4200_v6 = vpop.eup %4199 }
 0x209   :  { %v589_v1 = vadd.f32 1.0, %v4200_v6  ;;  %v4202_v37 = vpop.eup %4201  ;;  %691 = vmatpush.msra.mxu1 %v5644_v10 }
 0x20a   :  { %v590_v9 = vadd.f32 1.0, %v4202_v37 }
 0x20b   :  { %4203 = vrcp.f32 %v589_v1  ;;  %v602_v2 = vand.u32 2147483648, %v589_v1  ;;  %vm596_vm2 = vweird.f32 %v589_v1  ;;  %v600_v15 = vand.u32 2147483647, %v589_v1  ;;  %692 = vmatpush.msra.mxu1 %v5650_v7 }
 0x20c   :  { %4205 = vrcp.f32 %v590_v9  ;;  %vm611_vm7 = vweird.f32 %v590_v9 }
 0x20d   :  { %vm601_vm4 = vcmp.eq.f32.partialorder %v600_v15, 8.507059e+37 }
 0x211   :  { %v4204_v14 = vpop.eup %4203 }
 0x212   :  { %v592_v25 = vmul.f32 %v4204_v14, %v589_v1  ;;  %v4206_v58 = vpop.eup %4205  ;;  %vm597_vm15 = vweird.f32 %v4204_v14 }
 0x213   :  { %v607_v3 = vmul.f32 %v4206_v58, %v590_v9  ;;  %vm598_vm3 = vmor %vm596_vm2, %vm597_vm15  ;;  %vm612_vm6 = vweird.f32 %v4206_v58 }
 0x214   :  { %v593_v22 = vsub.f32 1.0, %v592_v25  ;;  %v5656_v25 = vld [vmem:[%s8247_s8 + $0x30] sm:$0xff]  ;;  %vm613_vm8 = vmor %vm611_vm7, %vm612_vm6 }
 0x215   :  { %v608_v6 = vsub.f32 1.0, %v607_v3  ;;  %693 = vmatpush.msra.mxu1 %v5656_v25 }
 0x216   :  { %v594_v62 = vmul.f32 %v4204_v14, %v593_v22  ;;  %v603_v22 = vor.u32 1.1754944e-38, %v602_v2 }
 0x217   :  { %v609_v1 = vmul.f32 %v4206_v58, %v608_v6 }
 0x218   :  { %v595_v5 = vadd.f32 %v4204_v14, %v594_v62 }
 0x219   :  { %v610_v40 = vadd.f32 %v4206_v58, %v609_v1  ;;  %v8474_v1 = vld [vmem:[#allocation28_spill] sm:$0xff] }
 0x21a   :  { %v599_v37 = vsel %vm598_vm3, %v4204_v14, %v595_v5  ;;  %v617_v14 = vand.u32 2147483648, %v590_v9  ;;  %v615_v5 = vand.u32 2147483647, %v590_v9  ;;  %v5671_v9 = vld [vmem:[%s8247_s8 + $0x20] sm:$0xff] }
 0x21b   :  { %v604_v62 = vsel %vm601_vm4, %v603_v22, %v599_v37  ;;  %v614_v8 = vsel %vm613_vm8, %v4206_v58, %v610_v40  ;;  %v5690_v40 = vld [vmem:[%s8247_s8 + $0x8] sm:$0xff]  ;;  %v5696_v58 = vld [vmem:[%s8247_s8] sm:$0xff] }
 0x21c   :  { %v618_v2 = vor.u32 1.1754944e-38, %v617_v14  ;;  %vm616_vm9 = vcmp.eq.f32.partialorder %v615_v5, 8.507059e+37  ;;  %v8477_v14 = vld [vmem:[#allocation35_spill] sm:$0xff]  ;;  %v8478_v5 = vld [vmem:[#allocation34_spill] sm:$0xff] }
 0x21e   :  { %v619_v15 = vsel %vm616_vm9, %v618_v2, %v614_v8  ;;  %v5677_v8 = vld [vmem:[%s8247_s8 + $0x18] sm:$0xff]  ;;  %v8479_v2 = vld [vmem:[#allocation37_spill] sm:$0xff] }
 0x271   :  { %v662_v3 = vpop.permute.xlu0 %661 }
 0x272   :  { %v668_v0 = vmul.f32 %v662_v3, %v604_v62  ;;  %v8475_v62 = vld [vmem:[#allocation32_spill] sm:$0xff] }
 0x274   :  { %675 = vrot.lane.b32.xlu0 %v668_v0, %s4774_s13  ;;  %v5666_v0 = vld [vmem:[%s8247_s8 + $0x28] sm:$0xff] }
 0x275   :  { %694 = vmatpush.msra.mxu1 %v5666_v0 }
 0x277   :  { %695 = vmatpush.msra.mxu1 %v5671_v9 }
 0x279   :  { %696 = vmatpush.msra.mxu1 %v5677_v8 }
 0x27a   :  { %v664_v61 = vpop.permute.xlu1 %663 }
 0x27b   :  { %v665_v6 = vsel %vm173_vm0, %v662_v3, %v664_v61  ;;  %v5683_v61 = vld [vmem:[%s8247_s8 + $0x10] sm:$0xff]  ;;  %v8476_v3 = vld [vmem:[#allocation31_spill] sm:$0xff] }
 0x27c   :  { %v669_v37 = vmul.f32 %v665_v6, %v619_v15  ;;  %697 = vmatpush.msra.mxu1 %v5683_v61  ;;  %v8480_v15 = vld [vmem:[#allocation48_spill] sm:$0xff]  ;;  %v8481_v6 = vld [vmem:[#allocation38_spill] sm:$0xff] }
 0x27e   :  { %677 = vrot.lane.b32.xlu2 %v669_v37, %s4774_s13  ;;  %698 = vmatpush.msra.mxu1 %v5690_v40  ;;  %v8482_v37 = vld [vmem:[#allocation40_spill] sm:$0xff] }
 0x280   :  { %699 = vmatpush.msra.mxu1 %v5696_v58 }
 0x282   :  { %894 = vmatpush.msrb.mxu1 %v4987_v26 }
 0x284   :  { %895 = vmatpush.msrb.mxu1 %v5014_v31 }
 0x2d8   :  { %v5701_v22 = vpop.permute.xlu2 %677 }
 0x2d9   :  { %4048 = vmatmul.msk.f32.vlgmr.msrb.gmra.mxu2 %vm202_vm1, %v5701_v22 }
 0x2da   :  { %854 = vmatpush.msrb.mxu2 %v4932_v17  ;;  %v8460_v17 = vld [vmem:[#allocation9_spill] sm:$0xff] }
 0x2dc   :  { %855 = vmatpush.msrb.mxu2 %v4951_v20  ;;  %v8461_v20 = vld [vmem:[#allocation8_spill] sm:$0xff] }
 0x2e1   :  { %4053 = vmatmul.msk.f32.vlgmr.msra.gmra.mxu2 %vm202_vm1, %v5701_v22 }
 0x2e2   :  { %860 = vmatpush.msra.mxu2 %v4956_v21  ;;  %v8462_v21 = vld [vmem:[#allocation11_spill] sm:$0xff] }
 0x2e4   :  { %861 = vmatpush.msra.mxu2 %v4968_v23  ;;  %v8463_v23 = vld [vmem:[#allocation10_spill] sm:$0xff] }
 0x2e6   :  { %862 = vmatpush.msra.mxu2 %v5001_v29  ;;  %v676_v26 = vpop.permute.xlu0 %675  ;;  %v8464_v29 = vld [vmem:[#allocation13_spill] sm:$0xff] }
 0x2e7   :  { %v5714_v31 = vsel %vm679_vm10, %v676_v26, %v5701_v22  ;;  %v5798_v26 = vld [vmem:[%s8245_s6 + $0x190] sm:$0xff] }
 0x2e8   :  { %863 = vmatpush.msra.mxu2 %v5026_v33  ;;  %700 = vmatmul.f32.vlgmr.msra.gmra.mxu1 %v5714_v31  ;;  %v8465_v33 = vld [vmem:[#allocation12_spill] sm:$0xff] }
 0x2e9   :  { %796 = vmatmul.f32.vlgmr.msra.gmra.mxu3 %v5714_v31  ;;  %900 = vmatpush.msra.mxu1 %v5058_v38  ;;  %v8467_v38 = vld [vmem:[#allocation18_spill] sm:$0xff] }
 0x2ea   :  { %4054 = vmatmul.msk.f32.vlgmr.msrb.gmra.mxu2 %vm202_vm1, %v5701_v22  ;;  %1037 = vmatpush.msra.mxu3 %v5469_v11  ;;  %v8473_v11 = vld [vmem:[#allocation29_spill] sm:$0xff] }
 0x2eb   :  { %864 = vmatpush.msra.mxu2 %v5045_v36  ;;  %901 = vmatpush.msra.mxu1 %v5093_v45  ;;  %v8466_v36 = vld [vmem:[#allocation15_spill] sm:$0xff]  ;;  %v8469_v45 = vld [vmem:[#allocation21_spill] sm:$0xff] }
 0x2ec   :  { %1038 = vmatpush.msra.mxu3 %v5475_v57  ;;  %v8472_v57 = vld [vmem:[#allocation26_spill] sm:$0xff] }
 0x2ed   :  { %865 = vmatpush.msra.mxu2 %v5086_v44  ;;  %902 = vmatpush.msra.mxu1 %v5116_v49  ;;  %v8468_v44 = vld [vmem:[#allocation16_spill] sm:$0xff]  ;;  %v8471_v49 = vld [vmem:[#allocation25_spill] sm:$0xff] }
 0x2ef   :  { %866 = vmatpush.msra.mxu2 %v5111_v48  ;;  %903 = vmatpush.msra.mxu1 %v8460_v17  ;;  %v8470_v48 = vld [vmem:[#allocation22_spill] sm:$0xff] }
 0x2f0   :  { %4055 = vmatmul.msk.f32.vlgmr.msrb.gmra.mxu1 %vm202_vm1, %v5701_v22 }
 0x2f1   :  { %867 = vmatpush.msra.mxu2 %v8461_v20  ;;  %904 = vmatpush.msra.mxu1 %v8462_v21 }
 0x2f3   :  { %868 = vmatpush.msra.mxu2 %v8463_v23  ;;  %905 = vmatpush.msra.mxu1 %v8464_v29  ;;  %v8299_v23 = vmov 0.0  }
 0x2f4   :  { %169 = vst.msk [vmem:[#allocation4] sm:$0xf] %vm168_vm11, %v8299_v23 }
 0x2f5   :  { %869 = vmatpush.msra.mxu2 %v8465_v33  ;;  %906 = vmatpush.msra.mxu1 %v8466_v36 }
 0x2f7   :  { %870 = vmatpush.msra.mxu2 %v8467_v38  ;;  %907 = vmatpush.msra.mxu1 %v8468_v44 }
 0x2f9   :  { %871 = vmatpush.msra.mxu2 %v8469_v45  ;;  %908 = vmatpush.msra.mxu1 %v8470_v48 }
 0x2fb   :  { %872 = vmatpush.msra.mxu2 %v8471_v49  ;;  %909 = vmatpush.msra.mxu1 %v8472_v57  ;;  %v754_v57 = vstv %s753_s20  ;;  %s1301_s20 = scalar_select %p1298_p1, 1, 0 }
 0x2fc   :  { %vm755_vm14 = vcmp.eq.s32.totalorder %v754_v57, 1  ;;  %v5898_v57 = vld [vmem:[%s8245_s6 + $0x1e8] sm:$0xff] }
 0x2fd   :  { %873 = vmatpush.msra.mxu2 %v8473_v11  ;;  %910 = vmatpush.msra.mxu1 %v8474_v1  ;;  %v4051_v1 = vld [vmem:[%s8240_s1 + $0x4] sm:$0xf] }
 0x2ff   :  { %874 = vmatpush.msra.mxu2 %v8475_v62  ;;  %911 = vmatpush.msra.mxu1 %v8476_v3 }
 0x301   :  { %875 = vmatpush.msra.mxu2 %v8477_v14  ;;  %912 = vmatpush.msra.mxu1 %v8478_v5  ;;  %v8483_v14 = vld [vmem:[#allocation19_spill] sm:$0xff] }
 0x302   :  { %876 = vmatmul.f32.vlgmr.msra.gmra.mxu2 %v5714_v31 }
 0x303   :  { %913 = vmatpush.msra.mxu1 %v8479_v2  ;;  %1017 = vmatpush.msrb.mxu2 %v5395_v63  ;;  %v5780_v63 = vld [vmem:[%s8245_s6 + $0x208] sm:$0xff] }
 0x305   :  { %914 = vmatpush.msra.mxu1 %v5376_v53  ;;  %1018 = vmatpush.msrb.mxu2 %v5455_v52  ;;  %v5768_v52 = vld [vmem:[%s8245_s6 + $0x258] sm:$0xff] }
 0x307   :  { %1057 = vmatpush.msra.mxu2 %v5415_v56  ;;  %915 = vmatpush.msra.mxu1 %v5400_v41  ;;  %v5774_v56 = vld [vmem:[%s8245_s6 + $0x230] sm:$0xff] }
 0x308   :  { %916 = vmatmul.f32.vlgmr.msra.gmra.mxu1 %v5714_v31 }
 0x309   :  { %1058 = vmatpush.msra.mxu2 %v8480_v15  ;;  %974 = vmatpush.msrb.mxu1 %v8481_v6  ;;  %v8484_v15 = vld [vmem:[#allocation23_spill] sm:$0xff]  ;;  %v8485_v6 = vld [vmem:[#allocation14_spill] sm:$0xff] }
 0x30b   :  { %975 = vmatpush.msrb.mxu1 %v8482_v37  ;;  %v8486_v37 = vld [vmem:[#allocation17_spill] sm:$0xff] }
 0x30d   :  { %1077 = vmatpush.msra.mxu1 %v5480_v27  ;;  %v5786_v27 = vld [vmem:[%s8245_s6 + $0x1e0] sm:$0xff] }
 0x30f   :  { %1078 = vmatpush.msra.mxu1 %v5485_v42  ;;  %v5792_v42 = vld [vmem:[%s8245_s6 + $0x1b8] sm:$0xff] }
 0x310   :  { %4057 = vmatmul.msk.f32.vlgmr.msrb.gmra.mxu1 %vm202_vm1, %v5701_v22 }
 0x311   :  { %1328 = vmatpush.msrb.mxu1 %v5768_v52 }
 0x313   :  { %1329 = vmatpush.msrb.mxu1 %v5774_v56 }
 0x315   :  { %1330 = vmatpush.msrb.mxu1 %v5780_v63 }
 0x317   :  { %1331 = vmatpush.msrb.mxu1 %v5786_v27 }
 0x319   :  { %1332 = vmatpush.msrb.mxu1 %v5792_v42 }
 0x31b   :  { %1333 = vmatpush.msrb.mxu1 %v5798_v26 }
 0x31d   :  { %1334 = vmatpush.msrb.mxu1 %v4974_v24  ;;  %v5814_v24 = vld [vmem:[%s8248_s9] ss:$0 sm:$0xff] }
 0x31f   :  { %1335 = vmatpush.msrb.mxu1 %v4995_v28 }
 0x321   :  { %1336 = vmatpush.msrb.mxu1 %v5021_v32 }
 0x323   :  { %1337 = vmatpush.msrb.mxu1 %v5040_v35 }
 0x325   :  { %1338 = vmatpush.msrb.mxu1 %v5063_v39 }
 0x327   :  { %1339 = vmatpush.msrb.mxu1 %v5081_v43 }
 0x329   :  { %1340 = vmatpush.msrb.mxu1 %v5106_v47  ;;  %v166_v47 = vlaneseq }
 0x32b   :  { %1341 = vmatpush.msrb.mxu1 %v5130_v51  ;;  %v5819_v51 = vand.u32 127, %v166_v47  ;;  %v8492_v47 = vld [vmem:[#allocation36_spill] sm:$0xff] }
 0x32d   :  { %1342 = vmatpush.msrb.mxu1 %v5154_v55 }
 0x32f   :  { %1343 = vmatpush.msrb.mxu1 %v5178_v59 }
 0x35c   :  { %v721_v35 = vpop.f32.mrf.mxu2 }
 0x365   :  { %v701_v28 = vpop.f32.mrf.mxu1 }
 0x366   :  { %v702_v32 = vadd.f32 %v5814_v24, %v701_v28  ;;  %v8487_v28 = vld [vmem:[#allocation20_spill] sm:$0xff] }
 0x368   :  { %v722_v39 = vadd.f32 %v721_v35, %v702_v32  ;;  %v8488_v32 = vld [vmem:[#allocation24_spill] sm:$0xff]  ;;  %v8489_v35 = vld [vmem:[#allocation27_spill] sm:$0xff] }
 0x36a   :  { %725 = vst.msk [vmem:[#allocation4 + $0x4] sm:$0xf] %vm168_vm11, %v722_v39  ;;  %v726_v43 = vsel %vm168_vm11, %v722_v39, -inf }
 0x36b   :  { %727 = vmax.xlane.f32.xlu1 %v726_v43  ;;  %v8491_v43 = vld [vmem:[#allocation33_spill] sm:$0xff] }
 0x3de   :  { %v728_v55 = vpop.xlane.xlu1 %727 }
 0x3df   :  { %vm729_vm12 = vcmp.eq.f32.partialorder %v722_v39, %v728_v55  ;;  %v8490_v39 = vld [vmem:[#allocation30_spill] sm:$0xff]  ;;  %v8493_v55 = vld [vmem:[#allocation39_spill] sm:$0xff] }
 0x3e0   :  { %v730_v59 = vsel %vm729_vm12, %v5819_v51, 32 }
 0x3e1   :  { %v731_v17 = vsel %vm168_vm11, %v730_v59, 2147483647  ;;  %v8494_v59 = vld [vmem:[#allocation41_spill] sm:$0xff] }
 0x3e2   :  { %v733_v20 = vshra.s32 %v731_v17, 16  ;;  %v732_v29 = vand.u32 65535, %v731_v17  ;;  %v8495_v17 = vld [vmem:[#allocation42_spill] sm:$0xff] }
 0x3e4   :  { %v735_v21 = vcvt.s32.f32 %v733_v20  ;;  %v734_v36 = vcvt.s32.f32 %v732_v29  ;;  %v8496_v20 = vld [vmem:[#allocation43_spill] sm:$0xff]  ;;  %v8498_v29 = vld [vmem:[#allocation45_spill] sm:$0xff] }
 0x3e6   :  { %736 = vmin.xlane.f32.xlu2 %v735_v21 }
 0x459   :  { %v737_v33 = vpop.xlane.xlu2 %736 }
 0x45a   :  { %vm738_vm13 = vcmp.eq.f32.partialorder %v735_v21, %v737_v33  ;;  %v743_v44 = vcvt.f32.s32 %v737_v33  ;;  %v8497_v21 = vld [vmem:[#allocation44_spill] sm:$0xff]  ;;  %v8500_v33 = vld [vmem:[#allocation47_spill] sm:$0xff] }
 0x45b   :  { %v739_v38 = vsel %vm738_vm13, %v734_v36, inf  ;;  %v5856_v36 = vld [vmem:[%s8243_s4 + $0x18] sm:$0xff] }
 0x45c   :  { %740 = vmin.xlane.f32.xlu0 %v739_v38  ;;  %v744_v48 = vshll.u32 %v743_v44, 16  ;;  %v5862_v38 = vld [vmem:[%s8243_s4 + $0x10] sm:$0xff]  ;;  %v5868_v44 = vld [vmem:[%s8243_s4 + $0x8] sm:$0xff] }
 0x4cf   :  { %v741_v45 = vpop.xlane.xlu0 %740 }
 0x4d0   :  { %v742_v49 = vcvt.f32.s32 %v741_v45  ;;  %v5880_v45 = vld [vmem:[%s8245_s6 + $0x260] sm:$0xff] }
 0x4d2   :  { %v745_v11 = vadd.s32 %v744_v48, %v742_v49  ;;  %v5886_v48 = vld [vmem:[%s8245_s6 + $0x238] sm:$0xff]  ;;  %v5892_v49 = vld [vmem:[%s8245_s6 + $0x210] sm:$0xff] }
 0x4d4   :  { %vm746_vm15 = vcmp.eq.s32.totalorder %v5819_v51, %v745_v11  ;;  %v5904_v11 = vld [vmem:[%s8245_s6 + $0x1c0] sm:$0xff] }
 0x4d5   :  { %v4049_v62 = vsel %vm746_vm15, 1.0, %v8299_v23 }
 0x4d6   :  { %v756_v3 = vsel %vm755_vm14, %v4051_v1, %v4049_v62  ;;  %v5910_v1 = vld [vmem:[%s8245_s6 + $0x198] sm:$0xff]  ;;  %v5916_v62 = vld [vmem:[%s8245_s6 + $0x170] sm:$0xff] }
 0x4d7   :  { %4052 = vmatmul.msk.f32.vlgmr.msrb.gmra.mxu0 %vm173_vm0, %v756_v3  ;;  %v5922_v3 = vld [vmem:[%s8245_s6 + $0x148] sm:$0xff] }
 0x4d8   :  { %934 = vmatpush.msrb.mxu0 %v8483_v14  ;;  %v5928_v14 = vld [vmem:[%s8245_s6 + $0x120] sm:$0xff] }
 0x4da   :  { %935 = vmatpush.msrb.mxu0 %v8484_v15  ;;  %v5934_v15 = vld [vmem:[%s8245_s6 + $0xf8] sm:$0xff] }
 0x4df   :  { %836 = vmatmul.f32.vlgmr.msra.gmra.mxu0 %v5714_v31 }
 0x4e0   :  { %940 = vmatpush.msra.mxu0 %v8485_v6  ;;  %v5940_v6 = vld [vmem:[%s8245_s6 + $0xd0] sm:$0xff] }
 0x4e2   :  { %941 = vmatpush.msra.mxu0 %v8486_v37  ;;  %v5946_v37 = vld [vmem:[%s8245_s6 + $0xa8] sm:$0xff] }
 0x4e4   :  { %942 = vmatpush.msra.mxu0 %v8487_v28  ;;  %v5952_v28 = vld [vmem:[%s8245_s6 + $0x80] sm:$0xff] }
 0x4e6   :  { %943 = vmatpush.msra.mxu0 %v8488_v32  ;;  %v5958_v32 = vld [vmem:[%s8245_s6 + $0x58] sm:$0xff] }
 0x4e7   :  { %4056 = vmatmul.msk.f32.vlgmr.msrb.gmra.mxu0 %vm202_vm1, %v5701_v22  ;;  %v8499_v22 = vld [vmem:[#allocation46_spill] sm:$0xff] }
 0x4e8   :  { %944 = vmatpush.msra.mxu0 %v8489_v35  ;;  %v5964_v35 = vld [vmem:[%s8245_s6 + $0x30] sm:$0xff] }
 0x4ea   :  { %945 = vmatpush.msra.mxu0 %v8490_v39  ;;  %v5970_v39 = vld [vmem:[%s8245_s6 + $0x8] sm:$0xff] }
 0x4ec   :  { %946 = vmatpush.msra.mxu0 %v8491_v43 }
 0x4ee   :  { %947 = vmatpush.msra.mxu0 %v8492_v47  ;;  %v5980_v47 = vld [vmem:[%s8245_s6 + $0x270] sm:$0xff] }
 0x4f0   :  { %948 = vmatpush.msra.mxu0 %v8493_v55  ;;  %v5988_v55 = vld [vmem:[%s8245_s6 + $0x248] sm:$0xff] }
 0x4f2   :  { %949 = vmatpush.msra.mxu0 %v8494_v59 }
 0x4f4   :  { %950 = vmatpush.msra.mxu0 %v8495_v17 }
 0x4f6   :  { %951 = vmatpush.msra.mxu0 %v8496_v20 }
 0x4f8   :  { %952 = vmatpush.msra.mxu0 %v8497_v21 }
 0x4fa   :  { %953 = vmatpush.msra.mxu0 %v8498_v29 }
 0x4fc   :  { %954 = vmatpush.msra.mxu0 %v8499_v22 }
 0x4fe   :  { %955 = vmatpush.msra.mxu0 %v8500_v33 }
 0x4ff   :  { %956 = vmatmul.f32.vlgmr.msra.gmra.mxu0 %v5714_v31  ;;  %v5874_v31 = vld [vmem:[%s8243_s4] sm:$0xff] }
 0x500   :  { %1320 = vmatpush.msrb.mxu0 %v5856_v36 }
 0x502   :  { %1321 = vmatpush.msrb.mxu0 %v5862_v38 }
 0x504   :  { %1322 = vmatpush.msrb.mxu0 %v5868_v44 }
 0x506   :  { %1323 = vmatpush.msrb.mxu0 %v5874_v31 }
 0x508   :  { %1368 = vmatpush.msra.mxu0 %v5880_v45 }
 0x50a   :  { %1369 = vmatpush.msra.mxu0 %v5886_v48 }
 0x50c   :  { %1370 = vmatpush.msra.mxu0 %v5892_v49 }
 0x50e   :  { %1371 = vmatpush.msra.mxu0 %v5898_v57 }
 0x510   :  { %1372 = vmatpush.msra.mxu0 %v5904_v11 }
 0x512   :  { %1373 = vmatpush.msra.mxu0 %v5910_v1 }
 0x514   :  { %1374 = vmatpush.msra.mxu0 %v5916_v62 }
 0x516   :  { %1375 = vmatpush.msra.mxu0 %v5922_v3 }
 0x518   :  { %1376 = vmatpush.msra.mxu0 %v5928_v14 }
 0x51a   :  { %1377 = vmatpush.msra.mxu0 %v5934_v15 }
 0x51c   :  { %1378 = vmatpush.msra.mxu0 %v5940_v6 }
 0x51e   :  { %1379 = vmatpush.msra.mxu0 %v5946_v37 }
 0x520   :  { %1380 = vmatpush.msra.mxu0 %v5952_v28 }
 0x522   :  { %1381 = vmatpush.msra.mxu0 %v5958_v32 }
 0x524   :  { %1382 = vmatpush.msra.mxu0 %v5964_v35 }
 0x526   :  { %1383 = vmatpush.msra.mxu0 %v5970_v39 }
 0x554   :  { %v777_v43 = vpop.f32.mrf.mxu0 }
 0x555   :  { %4058 = vmatmul.msk.f32.vlgmr.msrb.gmra.mxu3 %vm202_vm1, %v777_v43  ;;  %4059 = vmatmul.msk.f32.vlgmr.msrb.gmra.mxu2 %vm202_vm1, %v777_v43 }
 0x556   :  { %4062 = vmatmul.msk.f32.vlgmr.msra.gmra.mxu1 %vm202_vm1, %v777_v43  ;;  %1232 = vmatpush.msrb.mxu3 %v5589_v50  ;;  %v5996_v50 = vld [vmem:[%s8245_s6 + $0x220] sm:$0xff] }
 0x557   :  { %1448 = vmatpush.msra.mxu1 %v5980_v47  ;;  %1266 = vmatpush.msrb.mxu2 %v5606_v12  ;;  %v6019_v12 = vld [vmem:[%s8245_s6 + $0x1d0] sm:$0xff] }
 0x558   :  { %1233 = vmatpush.msrb.mxu3 %v5594_v16  ;;  %v6006_v16 = vld [vmem:[%s8245_s6 + $0x1f8] sm:$0xff] }
 0x559   :  { %1449 = vmatpush.msra.mxu1 %v5988_v55  ;;  %1267 = vmatpush.msrb.mxu2 %v5611_v30  ;;  %v6025_v30 = vld [vmem:[%s8245_s6 + $0x280] sm:$0xff] }
 0x55a   :  { %1234 = vmatpush.msrb.mxu3 %v5600_v60  ;;  %v6012_v60 = vld [vmem:[%s8245_s6 + $0x2a8] sm:$0xff] }
 0x55b   :  { %1450 = vmatpush.msra.mxu1 %v5996_v50 }
 0x55c   :  { %1235 = vmatpush.msrb.mxu3 %v5616_v54  ;;  %v6032_v54 = vld [vmem:[%s8245_s6 + $0x1a8] sm:$0xff] }
 0x55d   :  { %4060 = vmatmul.msk.f32.vlgmr.msra.gmra.mxu3 %vm202_vm1, %v777_v43  ;;  %4061 = vmatmul.msk.f32.vlgmr.msra.gmra.mxu2 %vm202_vm1, %v777_v43 }
 0x55e   :  { %1236 = vmatpush.msrb.mxu3 %v5623_v34  ;;  %1451 = vmatpush.msra.mxu1 %v6006_v16  ;;  %v6039_v34 = vld [vmem:[%s8245_s6 + $0x180] sm:$0xff] }
 0x55f   :  { %1362 = vmatpush.msra.mxu2 %v6012_v60 }
 0x560   :  { %1237 = vmatpush.msrb.mxu3 %v5631_v13  ;;  %1452 = vmatpush.msra.mxu1 %v6019_v12  ;;  %v6046_v13 = vld [vmem:[%s8245_s6 + $0x158] sm:$0xff] }
 0x561   :  { %1363 = vmatpush.msra.mxu2 %v6025_v30 }
 0x562   :  { %1238 = vmatpush.msrb.mxu3 %v5638_v18  ;;  %1453 = vmatpush.msra.mxu1 %v6032_v54  ;;  %v6053_v18 = vld [vmem:[%s8245_s6 + $0x130] sm:$0xff] }
 0x564   :  { %1239 = vmatpush.msrb.mxu3 %v5644_v10  ;;  %1454 = vmatpush.msra.mxu1 %v6039_v34  ;;  %v6060_v10 = vld [vmem:[%s8245_s6 + $0x108] sm:$0xff] }
 0x566   :  { %1240 = vmatpush.msrb.mxu3 %v5650_v7  ;;  %1455 = vmatpush.msra.mxu1 %v6046_v13  ;;  %v6067_v7 = vld [vmem:[%s8245_s6 + $0xe0] sm:$0xff] }
 0x567   :  { %8501 = vst [vmem:[#allocation9_spill] sm:$0xff] %v6067_v7 }
 0x568   :  { %1241 = vmatpush.msrb.mxu3 %v5656_v25  ;;  %1456 = vmatpush.msra.mxu1 %v6053_v18  ;;  %v6074_v25 = vld [vmem:[%s8245_s6 + $0xb8] sm:$0xff] }
 0x569   :  { %8502 = vst [vmem:[#allocation8_spill] sm:$0xff] %v6074_v25 }
 0x56a   :  { %1242 = vmatpush.msrb.mxu3 %v5666_v0  ;;  %1457 = vmatpush.msra.mxu1 %v6060_v10  ;;  %v6086_v0 = vld [vmem:[%s8245_s6 + $0x2b8] sm:$0xff] }
 0x56b   :  { %8503 = vst [vmem:[#allocation11_spill] sm:$0xff] %v6086_v0 }
 0x56c   :  { %1243 = vmatpush.msrb.mxu3 %v5671_v9  ;;  %1458 = vmatpush.msra.mxu1 %v6067_v7  ;;  %v6093_v9 = vld [vmem:[%s8245_s6 + $0x290] sm:$0xff] }
 0x56d   :  { %8504 = vst [vmem:[#allocation10_spill] sm:$0xff] %v6093_v9 }
 0x56e   :  { %1244 = vmatpush.msrb.mxu3 %v5677_v8  ;;  %1459 = vmatpush.msra.mxu1 %v6074_v25  ;;  %v817_v8 = vpop.f32.mrf.mxu2 }
 0x570   :  { %1245 = vmatpush.msrb.mxu3 %v5683_v61  ;;  %1460 = vmatpush.msra.mxu1 %v8478_v5  ;;  %v897_v5 = vpop.f32.mrf.mxu1 }
 0x572   :  { %1246 = vmatpush.msrb.mxu3 %v5690_v40  ;;  %1461 = vmatpush.msra.mxu1 %v8479_v2  ;;  %v797_v40 = vpop.f32.mrf.mxu3 }
 0x574   :  { %1247 = vmatpush.msrb.mxu3 %v5696_v58  ;;  %1462 = vmatpush.msra.mxu1 %v5376_v53  ;;  %v837_v58 = vpop.f32.mrf.mxu0 }
 0x576   :  { %1442 = vmatpush.msra.mxu3 %v6086_v0  ;;  %1463 = vmatpush.msra.mxu1 %v5400_v41  ;;  %v857_v61 = vpop.f32.mrf.mxu2 }
 0x578   :  { %1443 = vmatpush.msra.mxu3 %v6093_v9  ;;  %v917_v20 = vpop.f32.mrf.mxu1 }
 0x57c   :  { %v937_v17 = vpop.f32.mrf.mxu0 }
 0x57d   :  { %v938_v29 = vadd.f32 %v937_v17, %v917_v20 }
 0x57e   :  { %v877_v53 = vpop.f32.mrf.mxu2 }
 0x57f   :  { %v898_v21 = vadd.f32 %v897_v5, %v877_v53  ;;  %v858_v53 = vadd.f32 %v857_v61, %v837_v58  ;;  %v818_v5 = vadd.f32 %v817_v8, %v797_v40 }
 0x5d8   :  { %v1000_v2 = vpop.f32.mrf.mxu3  ;;  %v1020_v59 = vpop.f32.mrf.mxu2 }
 0x5d9   :  { %v1021_v17 = vadd.f32 %v1020_v59, %v858_v53  ;;  %v1001_v20 = vadd.f32 %v1000_v2, %v818_v5 }
 0x5e0   :  { %v1040_v41 = vpop.f32.mrf.mxu3  ;;  %v1060_v22 = vpop.f32.mrf.mxu2 }
 0x5e1   :  { %v1041_v33 = vadd.f32 %v1040_v41, %v898_v21  ;;  %v1061_v43 = vadd.f32 %v1060_v22, %v938_v29  ;;  %v1084_v21 = vadd.f32 %v1021_v17, %v5563_v4  ;;  %v8505_v29 = vld [vmem:[#allocation51_spill] sm:$0xff] }
 0x5e2   :  { %v1083_v41 = vadd.f32 %v1001_v20, %v8505_v29 }
 0x5e3   :  { %v1085_v23 = vadd.f32 %v1041_v33, %v5541_v19  ;;  %v6098_v9 = vadd.f32 %v1061_v43, %v5547_v46  ;;  %v4064_v22 = vmul.f32 -1.442695, %v1084_v21 }
 0x5e4   :  { %v4063_v33 = vmul.f32 -1.442695, %v1083_v41 }
 0x5e5   :  { %4207 = vtanh.f32 %v1085_v23 }
 0x5e6   :  { %4209 = vtanh.f32 %v6098_v9 }
 0x5e7   :  { %4211 = vpow2.f32 %v4064_v22 }
 0x5e8   :  { %4213 = vpow2.f32 %v4063_v33 }
 0x5eb   :  { %v4208_v0 = vpop.eup %4207 }
 0x5ec   :  { %v4210_v25 = vpop.eup %4209  ;;  %1189 = vrot.lane.b32.xlu2 %v4208_v0, %s4772_s7 }
 0x5ed   :  { %1191 = vrot.lane.b32.xlu1 %v4210_v25, %s4772_s7  ;;  %v4212_v43 = vpop.eup %4211 }
 0x5ee   :  { %v4214_v46 = vpop.eup %4213  ;;  %v1095_v19 = vadd.f32 1.0, %v4212_v43 }
 0x5ef   :  { %v1094_v7 = vadd.f32 1.0, %v4214_v46 }
 0x5f0   :  { %4215 = vrcp.f32 %v1095_v19  ;;  %v1122_v17 = vand.u32 2147483648, %v1095_v19  ;;  %vm1116_vm4 = vweird.f32 %v1095_v19  ;;  %v1120_v21 = vand.u32 2147483647, %v1095_v19 }
 0x5f1   :  { %4217 = vrcp.f32 %v1094_v7  ;;  %v1107_v20 = vand.u32 2147483648, %v1094_v7  ;;  %vm1101_vm6 = vweird.f32 %v1094_v7  ;;  %v1105_v46 = vand.u32 2147483647, %v1094_v7 }
 0x5f2   :  { %v1123_v33 = vor.u32 1.1754944e-38, %v1122_v17  ;;  %vm1121_vm9 = vcmp.eq.f32.partialorder %v1120_v21, 8.507059e+37 }
 0x5f3   :  { %v1108_v43 = vor.u32 1.1754944e-38, %v1107_v20  ;;  %vm1106_vm12 = vcmp.eq.f32.partialorder %v1105_v46, 8.507059e+37 }
 0x5f6   :  { %v4216_v0 = vpop.eup %4215 }
 0x5f7   :  { %v4218_v25 = vpop.eup %4217  ;;  %v1112_v61 = vmul.f32 %v4216_v0, %v1095_v19  ;;  %vm1117_vm2 = vweird.f32 %v4216_v0  ;;  %v4065_v19 = vmul.f32 -1.442695, %v1085_v23 }
 0x5f8   :  { %v1097_v8 = vmul.f32 %v4218_v25, %v1094_v7  ;;  %vm1102_vm3 = vweird.f32 %v4218_v25  ;;  %vm1118_vm7 = vmor %vm1116_vm4, %vm1117_vm2 }
 0x5f9   :  { %v1113_v40 = vsub.f32 1.0, %v1112_v61  ;;  %vm1103_vm8 = vmor %vm1101_vm6, %vm1102_vm3  ;;  %4219 = vpow2.f32 %v4065_v19 }
 0x5fa   :  { %v1098_v58 = vsub.f32 1.0, %v1097_v8 }
 0x5fb   :  { %v1114_v2 = vmul.f32 %v4216_v0, %v1113_v40 }
 0x5fc   :  { %v1099_v59 = vmul.f32 %v4218_v25, %v1098_v58 }
 0x5fd   :  { %v1115_v53 = vadd.f32 %v4216_v0, %v1114_v2 }
 0x5fe   :  { %v1100_v5 = vadd.f32 %v4218_v25, %v1099_v59 }
 0x5ff   :  { %v1119_v41 = vsel %vm1118_vm7, %v4216_v0, %v1115_v53  ;;  %v4220_v7 = vpop.eup %4219 }
 0x600   :  { %v1104_v22 = vsel %vm1103_vm8, %v4218_v25, %v1100_v5  ;;  %v1124_v40 = vsel %vm1121_vm9, %v1123_v33, %v1119_v41  ;;  %v1129_v0 = vadd.f32 1.0, %v4220_v7 }
 0x601   :  { %v1109_v58 = vsel %vm1106_vm12, %v1108_v43, %v1104_v22 }
 0x602   :  { %4221 = vrcp.f32 %v1129_v0  ;;  %v1141_v21 = vand.u32 2147483648, %v1129_v0  ;;  %vm1135_vm14 = vweird.f32 %v1129_v0  ;;  %v1139_v46 = vand.u32 2147483647, %v1129_v0 }
 0x604   :  { %v1142_v22 = vor.u32 1.1754944e-38, %v1141_v21  ;;  %vm1140_vm2 = vcmp.eq.f32.partialorder %v1139_v46, 8.507059e+37  ;;  %v4066_v46 = vmul.f32 -1.442695, %v6098_v9 }
 0x608   :  { %v4222_v25 = vpop.eup %4221 }
 0x609   :  { %v1131_v53 = vmul.f32 %v4222_v25, %v1129_v0  ;;  %vm1136_vm13 = vweird.f32 %v4222_v25 }
 0x60a   :  { %vm1137_vm15 = vmor %vm1135_vm14, %vm1136_vm13 }
 0x60b   :  { %v1132_v5 = vsub.f32 1.0, %v1131_v53 }
 0x60d   :  { %v1133_v17 = vmul.f32 %v4222_v25, %v1132_v5 }
 0x60f   :  { %v1134_v20 = vadd.f32 %v4222_v25, %v1133_v17 }
 0x611   :  { %v1138_v41 = vsel %vm1137_vm15, %v4222_v25, %v1134_v20  ;;  %v957_v25 = vpop.f32.mrf.mxu0  ;;  %v8508_v20 = vld [vmem:[#allocation55_spill] sm:$0xff] }
 0x612   :  { %v1143_v33 = vsel %vm1140_vm2, %v1142_v22, %v1138_v41 }
 0x646   :  { %v1190_v61 = vpop.permute.xlu2 %1189 }
 0x65f   :  { %v1192_v8 = vpop.permute.xlu1 %1191 }
 0x660   :  { %v1193_v2 = vsel %vm640_vm5, %v1190_v61, %v1192_v8  ;;  %v1197_v59 = vmul.f32 %v1192_v8, %v1124_v40  ;;  %v8507_v61 = vld [vmem:[#allocation54_spill] sm:$0xff] }
 0x661   :  { %v1196_v29 = vmul.f32 %v1193_v2, %v1109_v58  ;;  %v1186_v8 = vmul.f32 %v1143_v33, %v8507_v61 }
 0x662   :  { %1202 = vrot.lane.b32.xlu2 %v1197_v59, %s4771_s2 }
 0x663   :  { %1200 = vrot.lane.b32.xlu0 %v1196_v29, %s4771_s2  ;;  %v8506_v29 = vld [vmem:[#allocation53_spill] sm:$0xff] }
 0x664   :  { %v1185_v23 = vmul.f32 %v1124_v40, %v8506_v29  ;;  %v977_v40 = vpop.f32.mrf.mxu1 }
 0x665   :  { %v978_v5 = vadd.f32 %v977_v40, %v957_v25 }
 0x66c   :  { %v1080_v53 = vpop.f32.mrf.mxu1 }
 0x66d   :  { %v1081_v17 = vadd.f32 %v1080_v53, %v978_v5 }
 0x66f   :  { %v1087_v21 = vadd.f32 %v1081_v17, %v8508_v20 }
 0x671   :  { %v4067_v41 = vmul.f32 -1.442695, %v1087_v21 }
 0x6bc   :  { %v1203_v43 = vpop.permute.xlu2 %1202 }
 0x6d5   :  { %v1201_v58 = vpop.permute.xlu0 %1200 }
 0x6d6   :  { %v1204_v2 = vsel %vm202_vm1, %v1201_v58, %v1203_v43  ;;  %v6111_v59 = vadd.f32 %v1201_v58, %v1185_v23 }
 0x6d7   :  { %v6113_v19 = vadd.f32 %v1204_v2, %v1186_v8 }
 0x6d8   :  { %4223 = vtanh.f32 %v6111_v59 }
 0x6d9   :  { %4225 = vtanh.f32 %v6113_v19 }
 0x6da   :  { %4227 = vpow2.f32 %v4066_v46 }
 0x6db   :  { %4229 = vpow2.f32 %v4067_v41 }
 0x6de   :  { %v4224_v7 = vpop.eup %4223 }
 0x6df   :  { %v4226_v0 = vpop.eup %4225  ;;  %1213 = vrot.lane.b32.xlu1 %v4224_v7, %s4773_s29 }
 0x6e0   :  { %1215 = vrot.lane.b32.xlu0 %v4226_v0, %s4773_s29  ;;  %v4228_v22 = vpop.eup %4227 }
 0x6e1   :  { %v4230_v33 = vpop.eup %4229  ;;  %v1153_v29 = vadd.f32 1.0, %v4228_v22 }
 0x6e2   :  { %v1154_v23 = vadd.f32 1.0, %v4230_v33 }
 0x6e3   :  { %4231 = vrcp.f32 %v1153_v29  ;;  %v1166_v9 = vand.u32 2147483648, %v1153_v29  ;;  %vm1160_vm4 = vweird.f32 %v1153_v29  ;;  %v1164_v53 = vand.u32 2147483647, %v1153_v29 }
 0x6e4   :  { %4233 = vrcp.f32 %v1154_v23  ;;  %v1181_v17 = vand.u32 2147483648, %v1154_v23  ;;  %vm1175_vm8 = vweird.f32 %v1154_v23  ;;  %v1179_v46 = vand.u32 2147483647, %v1154_v23 }
 0x6e5   :  { %v1167_v41 = vor.u32 1.1754944e-38, %v1166_v9  ;;  %vm1165_vm12 = vcmp.eq.f32.partialorder %v1164_v53, 8.507059e+37  ;;  %v6139_v9 = vld [vmem:[%s8245_s6 + $0x2c0] sm:$0xff]  ;;  %v6145_v53 = vld [vmem:[%s8244_s5 + $0x48] sm:$0xff] }
 0x6e6   :  { %vm1180_vm13 = vcmp.eq.f32.partialorder %v1179_v46, 8.507059e+37  ;;  %v6170_v46 = vld [vmem:[%s8245_s6 + $0x268] sm:$0xff] }
 0x6e9   :  { %v4232_v43 = vpop.eup %4231 }
 0x6ea   :  { %v4234_v61 = vpop.eup %4233  ;;  %v1156_v8 = vmul.f32 %v4232_v43, %v1153_v29  ;;  %vm1161_vm3 = vweird.f32 %v4232_v43 }
 0x6eb   :  { %v1171_v58 = vmul.f32 %v4234_v61, %v1154_v23  ;;  %vm1176_vm6 = vweird.f32 %v4234_v61  ;;  %vm1162_vm7 = vmor %vm1160_vm4, %vm1161_vm3 }
 0x6ec   :  { %v1157_v2 = vsub.f32 1.0, %v1156_v8  ;;  %vm1177_vm9 = vmor %vm1175_vm8, %vm1176_vm6 }
 0x6ed   :  { %v1172_v7 = vsub.f32 1.0, %v1171_v58  ;;  %v1182_v58 = vor.u32 1.1754944e-38, %v1181_v17  ;;  %v6157_v17 = vld [vmem:[%s8245_s6 + $0x298] sm:$0xff] }
 0x6ee   :  { %v1158_v0 = vmul.f32 %v4232_v43, %v1157_v2 }
 0x6ef   :  { %v1173_v40 = vmul.f32 %v4234_v61, %v1172_v7 }
 0x6f0   :  { %v1159_v25 = vadd.f32 %v4232_v43, %v1158_v0 }
 0x6f1   :  { %v1174_v5 = vadd.f32 %v4234_v61, %v1173_v40 }
 0x6f2   :  { %v1163_v21 = vsel %vm1162_vm7, %v4232_v43, %v1159_v25  ;;  %v6133_v25 = vld [vmem:[%s8245_s6 + $0x2b0] sm:$0xff] }
 0x6f3   :  { %v1178_v22 = vsel %vm1177_vm9, %v4234_v61, %v1174_v5  ;;  %v1168_v33 = vsel %vm1165_vm12, %v1167_v41, %v1163_v21  ;;  %v6151_v5 = vld [vmem:[%s8245_s6 + $0x288] sm:$0xff]  ;;  %v6163_v21 = vld [vmem:[%s8244_s5 + $0x20] sm:$0xff] }
 0x6f4   :  { %v1183_v0 = vsel %vm1180_vm13, %v1182_v58, %v1178_v22  ;;  %v6178_v41 = vld [vmem:[%s8245_s6 + $0x2c8] sm:$0xff]  ;;  %v6184_v22 = vld [vmem:[%s8245_s6 + $0x240] sm:$0xff] }
 0x6f5   :  { %v6212_v58 = vld [vmem:[%s8245_s6 + $0x1c8] sm:$0xff] }
 0x6f6   :  { %8509 = vst [vmem:[#allocation13_spill] sm:$0xff] %v6212_v58 }
 0x751   :  { %v1214_v8 = vpop.permute.xlu1 %1213 }
 0x752   :  { %v1220_v2 = vmul.f32 %v1214_v8, %v1168_v33  ;;  %v1216_v7 = vpop.permute.xlu0 %1215  ;;  %v6191_v33 = vld [vmem:[%s8245_s6 + $0x2a0] sm:$0xff] }
 0x753   :  { %v1217_v29 = vsel %vm173_vm0, %v1214_v8, %v1216_v7  ;;  %v6197_v8 = vld [vmem:[%s8245_s6 + $0x218] sm:$0xff]  ;;  %v6246_v7 = vld [vmem:[%s8245_s6 + $0x150] sm:$0xff] }
 0x754   :  { %v1221_v40 = vmul.f32 %v1217_v29, %v1183_v0  ;;  %1224 = vrot.lane.b32.xlu2 %v1220_v2, %s4774_s13  ;;  %v6232_v2 = vld [vmem:[%s8244_s5] sm:$0xff]  ;;  %8514 = vst [vmem:[#allocation21_spill] sm:$0xff] %v6246_v7  ;;  %v6258_v0 = vld [vmem:[%s8245_s6 + $0x128] sm:$0xff] }
 0x755   :  { %8512 = vst [vmem:[#allocation18_spill] sm:$0xff] %v6232_v2  ;;  %v6271_v29 = vld [vmem:[%s8245_s6 + $0x140] sm:$0xff] }
 0x756   :  { %1226 = vrot.lane.b32.xlu1 %v1221_v40, %s4774_s13  ;;  %8516 = vst [vmem:[#allocation25_spill] sm:$0xff] %v6258_v0  ;;  %v6277_v40 = vld [vmem:[%s8245_s6 + $0x100] sm:$0xff] }
 0x757   :  { %8518 = vst [vmem:[#allocation29_spill] sm:$0xff] %v6271_v29 }
 0x758   :  { %8519 = vst [vmem:[#allocation28_spill] sm:$0xff] %v6277_v40 }
 0x7ae   :  { %v1225_v43 = vpop.permute.xlu2 %1224 }
 0x7c8   :  { %v1227_v23 = vpop.permute.xlu1 %1226 }
 0x7c9   :  { %4068 = vmatmul.msk.f32.vlgmr.msrb.gmra.mxu2 %vm202_vm1, %v1227_v23  ;;  %v6126_v61 = vsel %vm679_vm10, %v1225_v43, %v1227_v23  ;;  %v6283_v43 = vld [vmem:[%s8244_s5 + $0x10] sm:$0xff] }
 0x7ca   :  { %1248 = vmatmul.f32.vlgmr.msrb.gmra.mxu3 %v6126_v61  ;;  %1344 = vmatmul.f32.vlgmr.msrb.gmra.mxu1 %v6126_v61  ;;  %8520 = vst [vmem:[#allocation32_spill] sm:$0xff] %v6283_v43 }
 0x7cb   :  { %1402 = vmatpush.msrb.mxu2 %v6133_v25  ;;  %1482 = vmatpush.msrb.mxu3 %v6139_v9 }
 0x7cc   :  { %1625 = vmatpush.msrb.mxu1 %v6145_v53 }
 0x7cd   :  { %1403 = vmatpush.msrb.mxu2 %v6151_v5  ;;  %1483 = vmatpush.msrb.mxu3 %v6157_v17 }
 0x7ce   :  { %1626 = vmatpush.msrb.mxu1 %v6163_v21 }
 0x7d1   :  { %4073 = vmatmul.msk.f32.vlgmr.msra.gmra.mxu2 %vm202_vm1, %v1227_v23 }
 0x7d2   :  { %1408 = vmatpush.msra.mxu2 %v6170_v46  ;;  %4075 = vmatmul.msk.f32.vlgmr.msra.gmra.mxu3 %vm202_vm1, %v1227_v23 }
 0x7d3   :  { %1464 = vmatmul.f32.vlgmr.msra.gmra.mxu1 %v6126_v61  ;;  %1522 = vmatpush.msra.mxu3 %v6178_v41 }
 0x7d4   :  { %1409 = vmatpush.msra.mxu2 %v6184_v22  ;;  %1876 = vmatpush.msra.mxu1 %v5768_v52  ;;  %v6204_v52 = vld [vmem:[%s8245_s6 + $0x1f0] sm:$0xff] }
 0x7d5   :  { %1523 = vmatpush.msra.mxu3 %v6191_v33 }
 0x7d6   :  { %1410 = vmatpush.msra.mxu2 %v6197_v8  ;;  %1877 = vmatpush.msra.mxu1 %v5774_v56  ;;  %v6219_v56 = vld [vmem:[%s8244_s5 + $0x28] sm:$0xff] }
 0x7d7   :  { %8510 = vst [vmem:[#allocation12_spill] sm:$0xff] %v6219_v56 }
 0x7d8   :  { %1411 = vmatpush.msra.mxu2 %v6204_v52  ;;  %1878 = vmatpush.msra.mxu1 %v5780_v63  ;;  %v6226_v63 = vld [vmem:[%s8245_s6 + $0x1a0] sm:$0xff] }
 0x7d9   :  { %4074 = vmatmul.msk.f32.vlgmr.msrb.gmra.mxu2 %vm202_vm1, %v1227_v23  ;;  %8511 = vst [vmem:[#allocation15_spill] sm:$0xff] %v6226_v63 }
 0x7da   :  { %1412 = vmatpush.msra.mxu2 %v6212_v58  ;;  %4076 = vmatmul.msk.f32.vlgmr.msrb.gmra.mxu3 %vm202_vm1, %v1227_v23 }
 0x7db   :  { %1545 = vmatpush.msrb.mxu3 %v6219_v56  ;;  %1879 = vmatpush.msra.mxu1 %v5786_v27  ;;  %v6239_v27 = vld [vmem:[%s8245_s6 + $0x178] sm:$0xff] }
 0x7dc   :  { %1413 = vmatpush.msra.mxu2 %v6226_v63  ;;  %8513 = vst [vmem:[#allocation16_spill] sm:$0xff] %v6239_v27 }
 0x7dd   :  { %1546 = vmatpush.msrb.mxu3 %v6232_v2  ;;  %1880 = vmatpush.msra.mxu1 %v5792_v42  ;;  %v6252_v42 = vld [vmem:[%s8245_s6 + $0x168] sm:$0xff] }
 0x7de   :  { %1414 = vmatpush.msra.mxu2 %v6239_v27  ;;  %8515 = vst [vmem:[#allocation22_spill] sm:$0xff] %v6252_v42 }
 0x7df   :  { %1881 = vmatpush.msra.mxu1 %v5798_v26  ;;  %v6265_v26 = vld [vmem:[%s8244_s5 + $0x38] sm:$0xff] }
 0x7e0   :  { %1415 = vmatpush.msra.mxu2 %v6246_v7  ;;  %8517 = vst [vmem:[#allocation26_spill] sm:$0xff] %v6265_v26 }
 0x7e1   :  { %1882 = vmatpush.msra.mxu1 %v6252_v42 }
 0x7e2   :  { %1416 = vmatpush.msra.mxu2 %v6258_v0  ;;  %4077 = vmatmul.msk.f32.vlgmr.msra.gmra.mxu3 %vm202_vm1, %v1227_v23  ;;  %v6289_v23 = vld [vmem:[%s8245_s6 + $0x118] sm:$0xff] }
 0x7e3   :  { %1585 = vmatpush.msra.mxu3 %v6265_v26  ;;  %1883 = vmatpush.msra.mxu1 %v6271_v29  ;;  %8521 = vst [vmem:[#allocation31_spill] sm:$0xff] %v6289_v23  ;;  %v6295_v29 = vld [vmem:[%s8245_s6 + $0xd8] sm:$0xff] }
 0x7e4   :  { %1417 = vmatpush.msra.mxu2 %v6277_v40  ;;  %8522 = vst [vmem:[#allocation35_spill] sm:$0xff] %v6295_v29  ;;  %v6301_v40 = vld [vmem:[%s8245_s6 + $0xf0] sm:$0xff] }
 0x7e5   :  { %1586 = vmatpush.msra.mxu3 %v6283_v43  ;;  %1884 = vmatpush.msra.mxu1 %v6289_v23  ;;  %8523 = vst [vmem:[#allocation34_spill] sm:$0xff] %v6301_v40  ;;  %v6307_v43 = vld [vmem:[%s8245_s6 + $0xb0] sm:$0xff]  ;;  %v6313_v23 = vld [vmem:[%s8245_s6 + $0xc8] sm:$0xff] }
 0x7e6   :  { %1418 = vmatpush.msra.mxu2 %v6295_v29  ;;  %8524 = vst [vmem:[#allocation37_spill] sm:$0xff] %v6307_v43  ;;  %v6319_v29 = vld [vmem:[%s8245_s6 + $0x88] sm:$0xff] }
 0x7e7   :  { %1885 = vmatpush.msra.mxu1 %v6301_v40  ;;  %8525 = vst [vmem:[#allocation48_spill] sm:$0xff] %v6313_v23  ;;  %v6325_v40 = vld [vmem:[%s8245_s6 + $0xa0] sm:$0xff] }
 0x7e8   :  { %1419 = vmatpush.msra.mxu2 %v6307_v43  ;;  %8526 = vst [vmem:[#allocation38_spill] sm:$0xff] %v6319_v29  ;;  %v6331_v43 = vld [vmem:[%s8245_s6 + $0x60] sm:$0xff] }
 0x7e9   :  { %1886 = vmatpush.msra.mxu1 %v6313_v23  ;;  %8527 = vst [vmem:[#allocation40_spill] sm:$0xff] %v6325_v40  ;;  %v6337_v23 = vld [vmem:[%s8245_s6 + $0x78] sm:$0xff] }
 0x7ea   :  { %1420 = vmatpush.msra.mxu2 %v6319_v29  ;;  %8528 = vst [vmem:[#allocation19_spill] sm:$0xff] %v6331_v43  ;;  %v6343_v29 = vld [vmem:[%s8245_s6 + $0x38] sm:$0xff] }
 0x7eb   :  { %1887 = vmatpush.msra.mxu1 %v6325_v40  ;;  %8529 = vst [vmem:[#allocation23_spill] sm:$0xff] %v6337_v23  ;;  %v6349_v40 = vld [vmem:[%s8245_s6 + $0x50] sm:$0xff] }
 0x7ec   :  { %1421 = vmatpush.msra.mxu2 %v6331_v43  ;;  %8530 = vst [vmem:[#allocation14_spill] sm:$0xff] %v6343_v29  ;;  %v6355_v43 = vld [vmem:[%s8245_s6 + $0x10] sm:$0xff] }
 0x7ed   :  { %1888 = vmatpush.msra.mxu1 %v6337_v23  ;;  %8531 = vst [vmem:[#allocation17_spill] sm:$0xff] %v6349_v40  ;;  %v6380_v23 = vld [vmem:[%s8244_s5 + $0x8] sm:$0xff] }
 0x7ee   :  { %1422 = vmatpush.msra.mxu2 %v6343_v29  ;;  %8532 = vst [vmem:[#allocation20_spill] sm:$0xff] %v6355_v43  ;;  %v6362_v29 = vld [vmem:[%s8245_s6 + $0x28] sm:$0xff] }
 0x7ef   :  { %1889 = vmatpush.msra.mxu1 %v6349_v40  ;;  %8533 = vst [vmem:[#allocation24_spill] sm:$0xff] %v6362_v29  ;;  %v6368_v40 = vld [vmem:[%s8244_s5 + $0x30] sm:$0xff] }
 0x7f0   :  { %1423 = vmatpush.msra.mxu2 %v6355_v43  ;;  %8534 = vst [vmem:[#allocation27_spill] sm:$0xff] %v6368_v40  ;;  %v6374_v43 = vld [vmem:[%s8245_s6] sm:$0xff] }
 0x7f1   :  { %1424 = vmatmul.f32.vlgmr.msra.gmra.mxu2 %v6126_v61  ;;  %1890 = vmatpush.msra.mxu1 %v6362_v29  ;;  %8535 = vst [vmem:[#allocation30_spill] sm:$0xff] %v6374_v43  ;;  %v6386_v29 = vld [vmem:[%s8244_s5 + $0x40] sm:$0xff] }
 0x7f2   :  { %1565 = vmatpush.msrb.mxu2 %v6368_v40  ;;  %8536 = vst [vmem:[#allocation33_spill] sm:$0xff] %v6380_v23  ;;  %v6392_v40 = vld [vmem:[%s8244_s5 + $0x18] sm:$0xff] }
 0x7f3   :  { %1891 = vmatpush.msra.mxu1 %v6374_v43  ;;  %8537 = vst [vmem:[#allocation36_spill] sm:$0xff] %v6386_v29 }
 0x7f4   :  { %1566 = vmatpush.msrb.mxu2 %v6380_v23  ;;  %8538 = vst [vmem:[#allocation39_spill] sm:$0xff] %v6392_v40 }
 0x7f6   :  { %1605 = vmatpush.msra.mxu2 %v6386_v29 }
 0x7f8   :  { %1606 = vmatpush.msra.mxu2 %v6392_v40 }
 0x84c   :  { %v1269_v0 = vpop.f32.mrf.mxu2 }
 0x84d   :  { %v1249_v43 = vpop.f32.mrf.mxu3 }
 0x84e   :  { %v1250_v26 = vadd.f32 %v5814_v24, %v1249_v43 }
 0x850   :  { %v1270_v42 = vadd.f32 %v1269_v0, %v1250_v26 }
 0x852   :  { %1273 = vst.msk [vmem:[#allocation4 + $0x8] sm:$0xf] %vm168_vm11, %v1270_v42  ;;  %v1274_v23 = vsel %vm168_vm11, %v1270_v42, -inf }
 0x853   :  { %1275 = vmax.xlane.f32.xlu0 %v1274_v23 }
 0x8c6   :  { %v1276_v7 = vpop.xlane.xlu0 %1275 }
 0x8c7   :  { %vm1277_vm14 = vcmp.eq.f32.partialorder %v1270_v42, %v1276_v7  ;;  %v1302_v42 = vstv %s1301_s20 }
 0x8c8   :  { %v1278_v29 = vsel %vm1277_vm14, %v5819_v51, 32  ;;  %vm1303_vm2 = vcmp.eq.s32.totalorder %v1302_v42, 1  ;;  %v6458_v42 = vld [vmem:[%s8245_s6 + $0x138] sm:$0xff] }
 0x8c9   :  { %v1279_v27 = vsel %vm168_vm11, %v1278_v29, 2147483647  ;;  %v6415_v29 = vld [vmem:[%s8245_s6 + $0x250] sm:$0xff] }
 0x8ca   :  { %v1281_v2 = vshra.s32 %v1279_v27, 16  ;;  %v1280_v40 = vand.u32 65535, %v1279_v27  ;;  %v8539_v27 = vmov 0.0  }
 0x8cc   :  { %v1283_v63 = vcvt.s32.f32 %v1281_v2  ;;  %v1282_v58 = vcvt.s32.f32 %v1280_v40  ;;  %v4071_v2 = vld [vmem:[%s8240_s1 + $0x8] sm:$0xf] }
 0x8cd   :  { %v6421_v40 = vld [vmem:[%s8245_s6 + $0x228] sm:$0xff] }
 0x8ce   :  { %1284 = vmin.xlane.f32.xlu2 %v1283_v63 }
 0x941   :  { %v1285_v56 = vpop.xlane.xlu2 %1284 }
 0x942   :  { %vm1286_vm15 = vcmp.eq.f32.partialorder %v1283_v63, %v1285_v56  ;;  %v1291_v0 = vcvt.f32.s32 %v1285_v56  ;;  %v6409_v56 = vld [vmem:[%s8245_s6 + $0x278] sm:$0xff] }
 0x943   :  { %v1287_v24 = vsel %vm1286_vm15, %v1282_v58, inf }
 0x944   :  { %1288 = vmin.xlane.f32.xlu1 %v1287_v24  ;;  %v1292_v43 = vshll.u32 %v1291_v0, 16  ;;  %v6427_v24 = vld [vmem:[%s8245_s6 + $0x200] sm:$0xff]  ;;  %v6434_v0 = vld [vmem:[%s8245_s6 + $0x1d8] sm:$0xff] }
 0x9b7   :  { %v1289_v26 = vpop.xlane.xlu1 %1288 }
 0x9b8   :  { %v1290_v7 = vcvt.f32.s32 %v1289_v26  ;;  %v6440_v26 = vld [vmem:[%s8245_s6 + $0x1b0] sm:$0xff] }
 0x9ba   :  { %v1293_v23 = vadd.s32 %v1292_v43, %v1290_v7  ;;  %v6446_v43 = vld [vmem:[%s8245_s6 + $0x188] sm:$0xff]  ;;  %v6452_v7 = vld [vmem:[%s8245_s6 + $0x160] sm:$0xff] }
 0x9bc   :  { %vm1294_vm3 = vcmp.eq.s32.totalorder %v5819_v51, %v1293_v23  ;;  %v6464_v23 = vld [vmem:[%s8245_s6 + $0x110] sm:$0xff] }
 0x9bd   :  { %v4069_v63 = vsel %vm1294_vm3, 1.0, %v8539_v27  ;;  %8540 = vst [vmem:[#allocation41_spill] sm:$0xff] %v6464_v23 }
 0x9be   :  { %v1304_v58 = vsel %vm1303_vm2, %v4071_v2, %v4069_v63  ;;  %v6470_v2 = vld [vmem:[%s8245_s6 + $0xe8] sm:$0xff]  ;;  %v6476_v63 = vld [vmem:[%s8245_s6 + $0xc0] sm:$0xff] }
 0x9bf   :  { %4072 = vmatmul.msk.f32.vlgmr.msrb.gmra.mxu0 %vm173_vm0, %v1304_v58  ;;  %8541 = vst [vmem:[#allocation42_spill] sm:$0xff] %v6470_v2  ;;  %v6482_v58 = vld [vmem:[%s8245_s6 + $0x98] sm:$0xff] }
 0x9c0   :  { %1488 = vmatpush.msrb.mxu0 %v6409_v56  ;;  %8542 = vst [vmem:[#allocation43_spill] sm:$0xff] %v6476_v63 }
 0x9c2   :  { %1489 = vmatpush.msrb.mxu0 %v6415_v29 }
 0x9c4   :  { %1490 = vmatpush.msrb.mxu0 %v6421_v40 }
 0x9c6   :  { %1491 = vmatpush.msrb.mxu0 %v6427_v24 }
 0x9c7   :  { %1384 = vmatmul.f32.vlgmr.msra.gmra.mxu0 %v6126_v61 }
 0x9c8   :  { %1492 = vmatpush.msrb.mxu0 %v6434_v0 }
 0x9ca   :  { %1493 = vmatpush.msrb.mxu0 %v6440_v26 }
 0x9cc   :  { %1494 = vmatpush.msrb.mxu0 %v6446_v43 }
 0x9ce   :  { %1495 = vmatpush.msrb.mxu0 %v6452_v7 }
 0x9d0   :  { %1496 = vmatpush.msrb.mxu0 %v6458_v42 }
 0x9d2   :  { %1497 = vmatpush.msrb.mxu0 %v6464_v23  ;;  %v6488_v23 = vld [vmem:[%s8245_s6 + $0x70] sm:$0xff] }
 0x9d4   :  { %1498 = vmatpush.msrb.mxu0 %v6470_v2  ;;  %v6494_v2 = vld [vmem:[%s8245_s6 + $0x48] sm:$0xff] }
 0x9d6   :  { %1499 = vmatpush.msrb.mxu0 %v6476_v63  ;;  %v6500_v63 = vld [vmem:[%s8245_s6 + $0x20] sm:$0xff] }
 0x9d8   :  { %1500 = vmatpush.msrb.mxu0 %v6482_v58 }
 0x9da   :  { %1501 = vmatpush.msrb.mxu0 %v6488_v23 }
 0x9dc   :  { %1502 = vmatpush.msrb.mxu0 %v6494_v2 }
 0x9de   :  { %1503 = vmatpush.msrb.mxu0 %v6500_v63 }
 0x9df   :  { %1504 = vmatmul.f32.vlgmr.msrb.gmra.mxu0 %v6126_v61 }
 0x9e0   :  { %1868 = vmatpush.msra.mxu0 %v5856_v36 }
 0x9e2   :  { %1869 = vmatpush.msra.mxu0 %v5862_v38  ;;  %v6530_v38 = vld [vmem:[%s8247_s8 + $0x78] sm:$0xff] }
 0x9e4   :  { %1870 = vmatpush.msra.mxu0 %v5868_v44  ;;  %v6537_v44 = vld [vmem:[%s8247_s8 + $0x88] sm:$0xff] }
 0x9e6   :  { %1871 = vmatpush.msra.mxu0 %v5874_v31  ;;  %v6543_v31 = vld [vmem:[%s8247_s8 + $0x70] sm:$0xff] }
 0x9e8   :  { %1916 = vmatpush.msrb.mxu0 %v5880_v45  ;;  %v6550_v45 = vld [vmem:[%s8247_s8 + $0x80] sm:$0xff] }
 0x9ea   :  { %1917 = vmatpush.msrb.mxu0 %v5886_v48  ;;  %v6556_v48 = vld [vmem:[%s8247_s8 + $0x68] sm:$0xff] }
 0x9ec   :  { %1918 = vmatpush.msrb.mxu0 %v5892_v49  ;;  %v6563_v49 = vld [vmem:[%s8247_s8 + $0x60] sm:$0xff] }
 0x9ee   :  { %1919 = vmatpush.msrb.mxu0 %v5898_v57  ;;  %v6571_v57 = vld [vmem:[%s8247_s8 + $0x58] sm:$0xff] }
 0x9f0   :  { %1920 = vmatpush.msrb.mxu0 %v5904_v11  ;;  %v6579_v11 = vld [vmem:[%s8247_s8 + $0x50] sm:$0xff] }
 0x9f2   :  { %1921 = vmatpush.msrb.mxu0 %v5910_v1  ;;  %v6587_v1 = vld [vmem:[%s8247_s8 + $0x48] sm:$0xff] }
 0x9f3   :  { %8543 = vst [vmem:[#allocation44_spill] sm:$0xff] %v6587_v1 }
 0x9f4   :  { %1922 = vmatpush.msrb.mxu0 %v5916_v62  ;;  %v6594_v62 = vld [vmem:[%s8247_s8 + $0x40] sm:$0xff] }
 0x9f5   :  { %8544 = vst [vmem:[#allocation45_spill] sm:$0xff] %v6594_v62 }
 0x9f6   :  { %1923 = vmatpush.msrb.mxu0 %v5922_v3  ;;  %v6601_v3 = vld [vmem:[%s8247_s8 + $0x38] sm:$0xff] }
 0x9f7   :  { %8545 = vst [vmem:[#allocation46_spill] sm:$0xff] %v6601_v3 }
 0x9f8   :  { %1924 = vmatpush.msrb.mxu0 %v5928_v14  ;;  %v6608_v14 = vld [vmem:[%s8247_s8 + $0x30] sm:$0xff] }
 0x9f9   :  { %8546 = vst [vmem:[#allocation47_spill] sm:$0xff] %v6608_v14 }
 0x9fa   :  { %1925 = vmatpush.msrb.mxu0 %v5934_v15  ;;  %v6615_v15 = vld [vmem:[%s8247_s8 + $0x28] sm:$0xff] }
 0x9fb   :  { %8547 = vst [vmem:[#allocation53_spill] sm:$0xff] %v6615_v15 }
 0x9fc   :  { %1926 = vmatpush.msrb.mxu0 %v5940_v6  ;;  %v6622_v6 = vld [vmem:[%s8247_s8 + $0x20] sm:$0xff] }
 0x9fd   :  { %8548 = vst [vmem:[#allocation54_spill] sm:$0xff] %v6622_v6 }
 0x9fe   :  { %1927 = vmatpush.msrb.mxu0 %v5946_v37  ;;  %v8549_v37 = vld [vmem:[#allocation9_spill] sm:$0xff] }
 0xa00   :  { %1928 = vmatpush.msrb.mxu0 %v5952_v28  ;;  %v6629_v28 = vld [vmem:[%s8247_s8 + $0x18] sm:$0xff] }
 0xa01   :  { %8550 = vst [vmem:[#allocation55_spill] sm:$0xff] %v6629_v28 }
 0xa02   :  { %1929 = vmatpush.msrb.mxu0 %v5958_v32  ;;  %v8551_v32 = vld [vmem:[#allocation8_spill] sm:$0xff] }
 0xa04   :  { %1930 = vmatpush.msrb.mxu0 %v5964_v35  ;;  %v6636_v35 = vld [vmem:[%s8247_s8 + $0x10] sm:$0xff] }
 0xa05   :  { %8552 = vst [vmem:[#allocation9_spill] sm:$0xff] %v6636_v35 }
 0xa06   :  { %1931 = vmatpush.msrb.mxu0 %v5970_v39  ;;  %v6642_v39 = vld [vmem:[%s8245_s6 + $0x90] sm:$0xff] }
 0xa07   :  { %8553 = vst [vmem:[#allocation8_spill] sm:$0xff] %v6642_v39 }
 0xa3c   :  { %v1325_v36 = vpop.f32.mrf.mxu0 }
 0xa3d   :  { %4078 = vmatmul.msk.f32.vlgmr.msrb.gmra.mxu3 %vm202_vm1, %v1325_v36  ;;  %4079 = vmatmul.msk.f32.vlgmr.msrb.gmra.mxu2 %vm202_vm1, %v1325_v36 }
 0xa3e   :  { %4082 = vmatmul.msk.f32.vlgmr.msrb.gmra.mxu1 %vm202_vm1, %v1325_v36  ;;  %1780 = vmatpush.msrb.mxu3 %v6530_v38 }
 0xa3f   :  { %1996 = vmatpush.msrb.mxu1 %v5980_v47  ;;  %1814 = vmatpush.msrb.mxu2 %v6537_v44  ;;  %v6648_v47 = vld [vmem:[%s8247_s8 + $0x8] sm:$0xff] }
 0xa40   :  { %1781 = vmatpush.msrb.mxu3 %v6543_v31  ;;  %8554 = vst [vmem:[#allocation56_spill] sm:$0xff] %v6648_v47 }
 0xa41   :  { %1997 = vmatpush.msrb.mxu1 %v5988_v55  ;;  %1815 = vmatpush.msrb.mxu2 %v6550_v45  ;;  %v6654_v55 = vld [vmem:[%s8245_s6 + $0x68] sm:$0xff] }
 0xa42   :  { %1782 = vmatpush.msrb.mxu3 %v6556_v48  ;;  %8555 = vst [vmem:[#allocation57_spill] sm:$0xff] %v6654_v55 }
 0xa43   :  { %1998 = vmatpush.msrb.mxu1 %v5996_v50  ;;  %v6660_v50 = vld [vmem:[%s8247_s8] sm:$0xff] }
 0xa44   :  { %1783 = vmatpush.msrb.mxu3 %v6563_v49  ;;  %8556 = vst [vmem:[#allocation58_spill] sm:$0xff] %v6660_v50 }
 0xa45   :  { %4080 = vmatmul.msk.f32.vlgmr.msra.gmra.mxu3 %vm202_vm1, %v1325_v36  ;;  %4081 = vmatmul.msk.f32.vlgmr.msra.gmra.mxu2 %vm202_vm1, %v1325_v36  ;;  %v1345_v36 = vpop.f32.mrf.mxu1 }
 0xa46   :  { %1784 = vmatpush.msrb.mxu3 %v6571_v57  ;;  %1999 = vmatpush.msrb.mxu1 %v6006_v16  ;;  %v6666_v16 = vld [vmem:[%s8245_s6 + $0x40] sm:$0xff] }
 0xa47   :  { %1910 = vmatpush.msra.mxu2 %v6012_v60  ;;  %8557 = vst [vmem:[#allocation59_spill] sm:$0xff] %v6666_v16  ;;  %v8558_v60 = vld [vmem:[#allocation11_spill] sm:$0xff] }
 0xa48   :  { %1785 = vmatpush.msrb.mxu3 %v6579_v11  ;;  %2000 = vmatpush.msrb.mxu1 %v6019_v12  ;;  %v6673_v12 = vld [vmem:[%s8245_s6 + $0x18] sm:$0xff] }
 0xa49   :  { %1911 = vmatpush.msra.mxu2 %v6025_v30  ;;  %8559 = vst [vmem:[#allocation11_spill] sm:$0xff] %v6673_v12  ;;  %v8560_v30 = vld [vmem:[#allocation10_spill] sm:$0xff] }
 0xa4a   :  { %1786 = vmatpush.msrb.mxu3 %v6587_v1  ;;  %2001 = vmatpush.msrb.mxu1 %v6032_v54  ;;  %v1445_v54 = vpop.f32.mrf.mxu3 }
 0xa4c   :  { %1787 = vmatpush.msrb.mxu3 %v6594_v62  ;;  %2002 = vmatpush.msrb.mxu1 %v6039_v34  ;;  %v1365_v34 = vpop.f32.mrf.mxu2 }
 0xa4e   :  { %1788 = vmatpush.msrb.mxu3 %v6601_v3  ;;  %2003 = vmatpush.msrb.mxu1 %v6046_v13 }
 0xa50   :  { %1789 = vmatpush.msrb.mxu3 %v6608_v14  ;;  %2004 = vmatpush.msrb.mxu1 %v6053_v18 }
 0xa52   :  { %1790 = vmatpush.msrb.mxu3 %v6615_v15  ;;  %2005 = vmatpush.msrb.mxu1 %v6060_v10  ;;  %v1485_v13 = vpop.f32.mrf.mxu3 }
 0xa54   :  { %1791 = vmatpush.msrb.mxu3 %v6622_v6  ;;  %2006 = vmatpush.msrb.mxu1 %v8549_v37  ;;  %v1405_v18 = vpop.f32.mrf.mxu2 }
 0xa56   :  { %1792 = vmatpush.msrb.mxu3 %v6629_v28  ;;  %2007 = vmatpush.msrb.mxu1 %v8551_v32 }
 0xa58   :  { %1793 = vmatpush.msrb.mxu3 %v6636_v35  ;;  %2008 = vmatpush.msrb.mxu1 %v6642_v39 }
 0xa5a   :  { %1794 = vmatpush.msrb.mxu3 %v6648_v47  ;;  %2009 = vmatpush.msrb.mxu1 %v6654_v55  ;;  %v6677_v10 = vpop.f32.mrf.mxu3 }
 0xa5c   :  { %1795 = vmatpush.msrb.mxu3 %v6660_v50  ;;  %2010 = vmatpush.msrb.mxu1 %v6666_v16  ;;  %v1425_v61 = vpop.f32.mrf.mxu2 }
 0xa5d   :  { %v1446_v50 = vadd.f32 %v1445_v54, %v1425_v61 }
 0xa5e   :  { %1990 = vmatpush.msra.mxu3 %v8558_v60  ;;  %2011 = vmatpush.msrb.mxu1 %v6673_v12  ;;  %v1465_v60 = vpop.f32.mrf.mxu1  ;;  %v8561_v12 = vld [vmem:[#allocation49_spill] sm:$0xff] }
 0xa5f   :  { %v1486_v16 = vadd.f32 %v1485_v13, %v1465_v60  ;;  %v1385_v13 = vpop.f32.mrf.mxu0  ;;  %v8563_v60 = vld [vmem:[#allocation51_spill] sm:$0xff] }
 0xa60   :  { %1991 = vmatpush.msra.mxu3 %v8560_v30  ;;  %v8562_v30 = vld [vmem:[#allocation50_spill] sm:$0xff]  ;;  %v1406_v54 = vadd.f32 %v1405_v18, %v1385_v13 }
 0xac0   :  { %v1548_v37 = vpop.f32.mrf.mxu3  ;;  %v1568_v32 = vpop.f32.mrf.mxu2 }
 0xac1   :  { %v1569_v61 = vadd.f32 %v1568_v32, %v1406_v54 }
 0xac8   :  { %v1588_v55 = vpop.f32.mrf.mxu3  ;;  %v1608_v47 = vpop.f32.mrf.mxu2 }
 0xac9   :  { %v1589_v39 = vadd.f32 %v1588_v55, %v1446_v50  ;;  %v1609_v35 = vadd.f32 %v1608_v47, %v1486_v16  ;;  %v1632_v55 = vadd.f32 %v1569_v61, %v5563_v4 }
 0xacb   :  { %v1633_v28 = vadd.f32 %v1589_v39, %v8561_v12  ;;  %v6681_v6 = vadd.f32 %v1609_v35, %v8562_v30  ;;  %v4084_v47 = vmul.f32 -1.442695, %v1632_v55  ;;  %v1366_v35 = vadd.f32 %v1365_v34, %v1345_v36 }
 0xacd   :  { %4235 = vtanh.f32 %v1633_v28  ;;  %v1549_v16 = vadd.f32 %v1548_v37, %v1366_v35 }
 0xace   :  { %4237 = vtanh.f32 %v6681_v6 }
 0xacf   :  { %4239 = vpow2.f32 %v4084_v47  ;;  %v1631_v30 = vadd.f32 %v1549_v16, %v8563_v60 }
 0xad1   :  { %v4083_v3 = vmul.f32 -1.442695, %v1631_v30 }
 0xad3   :  { %v4236_v15 = vpop.eup %4235 }
 0xad4   :  { %v4238_v14 = vpop.eup %4237  ;;  %1737 = vrot.lane.b32.xlu0 %v4236_v15, %s4772_s7 }
 0xad5   :  { %1739 = vrot.lane.b32.xlu2 %v4238_v14, %s4772_s7  ;;  %v4240_v39 = vpop.eup %4239 }
 0xad6   :  { %v1643_v50 = vadd.f32 1.0, %v4240_v39 }
 0xad8   :  { %4241 = vrcp.f32 %v1643_v50  ;;  %v1670_v13 = vand.u32 2147483648, %v1643_v50  ;;  %vm1664_vm6 = vweird.f32 %v1643_v50  ;;  %v1668_v54 = vand.u32 2147483647, %v1643_v50 }
 0xad9   :  { %4243 = vpow2.f32 %v4083_v3 }
 0xada   :  { %v1671_v36 = vor.u32 1.1754944e-38, %v1670_v13  ;;  %vm1669_vm8 = vcmp.eq.f32.partialorder %v1668_v54, 8.507059e+37  ;;  %v4085_v13 = vmul.f32 -1.442695, %v1633_v28 }
 0xade   :  { %v4242_v12 = vpop.eup %4241 }
 0xadf   :  { %v1660_v62 = vmul.f32 %v4242_v12, %v1643_v50  ;;  %v4244_v14 = vpop.eup %4243  ;;  %vm1665_vm4 = vweird.f32 %v4242_v12 }
 0xae0   :  { %v1642_v18 = vadd.f32 1.0, %v4244_v14  ;;  %vm1666_vm7 = vmor %vm1664_vm6, %vm1665_vm4 }
 0xae1   :  { %v1661_v15 = vsub.f32 1.0, %v1660_v62 }
 0xae2   :  { %4245 = vrcp.f32 %v1642_v18  ;;  %vm1649_vm12 = vweird.f32 %v1642_v18  ;;  %v1653_v35 = vand.u32 2147483647, %v1642_v18 }
 0xae3   :  { %v1662_v1 = vmul.f32 %v4242_v12, %v1661_v15  ;;  %4247 = vpow2.f32 %v4085_v13 }
 0xae4   :  { %vm1654_vm14 = vcmp.eq.f32.partialorder %v1653_v35, 8.507059e+37 }
 0xae5   :  { %v1663_v32 = vadd.f32 %v4242_v12, %v1662_v1  ;;  %v1655_v1 = vand.u32 2147483648, %v1642_v18 }
 0xae7   :  { %v1667_v34 = vsel %vm1666_vm7, %v4242_v12, %v1663_v32  ;;  %v1656_v16 = vor.u32 1.1754944e-38, %v1655_v1 }
 0xae8   :  { %v1672_v61 = vsel %vm1669_vm8, %v1671_v36, %v1667_v34  ;;  %v4246_v30 = vpop.eup %4245 }
 0xae9   :  { %v1645_v62 = vmul.f32 %v4246_v30, %v1642_v18  ;;  %vm1650_vm9 = vweird.f32 %v4246_v30  ;;  %v4248_v54 = vpop.eup %4247  ;;  %v1733_v28 = vmul.f32 %v1672_v61, %v6111_v59  ;;  %v4086_v59 = vmul.f32 -1.442695, %v6681_v6 }
 0xaea   :  { %vm1651_vm13 = vmor %vm1649_vm12, %vm1650_vm9  ;;  %v1677_v34 = vadd.f32 1.0, %v4248_v54 }
 0xaeb   :  { %v1646_v3 = vsub.f32 1.0, %v1645_v62 }
 0xaec   :  { %4249 = vrcp.f32 %v1677_v34  ;;  %vm1683_vm2 = vweird.f32 %v1677_v34 }
 0xaed   :  { %v1647_v47 = vmul.f32 %v4246_v30, %v1646_v3 }
 0xaef   :  { %v1648_v39 = vadd.f32 %v4246_v30, %v1647_v47  ;;  %v1687_v47 = vand.u32 2147483647, %v1677_v34 }
 0xaf1   :  { %v1652_v50 = vsel %vm1651_vm13, %v4246_v30, %v1648_v39  ;;  %v1689_v30 = vand.u32 2147483648, %v1677_v34  ;;  %vm1688_vm4 = vcmp.eq.f32.partialorder %v1687_v47, 8.507059e+37 }
 0xaf2   :  { %v1657_v15 = vsel %vm1654_vm14, %v1656_v16, %v1652_v50  ;;  %v4250_v36 = vpop.eup %4249 }
 0xaf3   :  { %vm1684_vm15 = vweird.f32 %v4250_v36 }
 0xaf4   :  { %vm1685_vm3 = vmor %vm1683_vm2, %vm1684_vm15 }
 0xb2f   :  { %v1740_v37 = vpop.permute.xlu2 %1739 }
 0xb30   :  { %v1745_v55 = vmul.f32 %v1740_v37, %v1672_v61  ;;  %v1505_v61 = vpop.f32.mrf.mxu0 }
 0xb32   :  { %1750 = vrot.lane.b32.xlu0 %v1745_v55, %s4771_s2  ;;  %v1679_v55 = vmul.f32 %v4250_v36, %v1677_v34  ;;  %v1628_v34 = vpop.f32.mrf.mxu1 }
 0xb34   :  { %v1680_v62 = vsub.f32 1.0, %v1679_v55 }
 0xb36   :  { %v1681_v18 = vmul.f32 %v4250_v36, %v1680_v62 }
 0xb38   :  { %v1682_v3 = vadd.f32 %v4250_v36, %v1681_v18 }
 0xb3a   :  { %v1686_v39 = vsel %vm1685_vm3, %v4250_v36, %v1682_v3  ;;  %v1526_v36 = vadd.f32 %v6677_v10, %v1505_v61 }
 0xb3c   :  { %v1629_v55 = vadd.f32 %v1628_v34, %v1526_v36 }
 0xb3e   :  { %v1635_v62 = vadd.f32 %v1629_v55, %v8508_v20 }
 0xb40   :  { %v4087_v3 = vmul.f32 -1.442695, %v1635_v62 }
 0xb46   :  { %v1738_v12 = vpop.permute.xlu0 %1737 }
 0xb47   :  { %v1741_v14 = vsel %vm640_vm5, %v1738_v12, %v1740_v37  ;;  %v1690_v37 = vor.u32 1.1754944e-38, %v1689_v30 }
 0xb48   :  { %v1744_v32 = vmul.f32 %v1741_v14, %v1657_v15 }
 0xb49   :  { %v1691_v1 = vsel %vm1688_vm4, %v1690_v37, %v1686_v39 }
 0xb4a   :  { %1748 = vrot.lane.b32.xlu1 %v1744_v32, %s4771_s2  ;;  %v1734_v50 = vmul.f32 %v1691_v1, %v6113_v19 }
 0xba4   :  { %v1751_v35 = vpop.permute.xlu0 %1750 }
 0xbbc   :  { %v1749_v16 = vpop.permute.xlu1 %1748 }
 0xbbd   :  { %v1752_v12 = vsel %vm202_vm1, %v1749_v16, %v1751_v35  ;;  %v6694_v15 = vadd.f32 %v1749_v16, %v1733_v28 }
 0xbbe   :  { %v6696_v14 = vadd.f32 %v1752_v12, %v1734_v50 }
 0xbbf   :  { %4251 = vtanh.f32 %v6694_v15 }
 0xbc0   :  { %4253 = vtanh.f32 %v6696_v14 }
 0xbc1   :  { %4255 = vpow2.f32 %v4086_v59 }
 0xbc5   :  { %v4252_v32 = vpop.eup %4251 }
 0xbc6   :  { %v4254_v13 = vpop.eup %4253  ;;  %1761 = vrot.lane.b32.xlu2 %v4252_v32, %s4773_s29 }
 0xbc7   :  { %1763 = vrot.lane.b32.xlu0 %v4254_v13, %s4773_s29  ;;  %v4256_v19 = vpop.eup %4255 }
 0xbc8   :  { %v1701_v54 = vadd.f32 1.0, %v4256_v19 }
 0xbca   :  { %4257 = vrcp.f32 %v1701_v54  ;;  %v1714_v28 = vand.u32 2147483648, %v1701_v54  ;;  %vm1708_vm7 = vweird.f32 %v1701_v54  ;;  %v1712_v35 = vand.u32 2147483647, %v1701_v54 }
 0xbcb   :  { %4259 = vpow2.f32 %v4087_v3 }
 0xbcc   :  { %v1715_v10 = vor.u32 1.1754944e-38, %v1714_v28  ;;  %vm1713_vm9 = vcmp.eq.f32.partialorder %v1712_v35, 8.507059e+37  ;;  %v8571_v28 = vld [vmem:[#allocation25_spill] sm:$0xff]  ;;  %v8572_v35 = vld [vmem:[#allocation26_spill] sm:$0xff] }
 0xbd0   :  { %v4258_v18 = vpop.eup %4257 }
 0xbd1   :  { %v1704_v30 = vmul.f32 %v4258_v18, %v1701_v54  ;;  %v4260_v37 = vpop.eup %4259  ;;  %vm1709_vm6 = vweird.f32 %v4258_v18 }
 0xbd2   :  { %v1702_v6 = vadd.f32 1.0, %v4260_v37  ;;  %vm1710_vm8 = vmor %vm1708_vm7, %vm1709_vm6 }
 0xbd3   :  { %v1705_v47 = vsub.f32 1.0, %v1704_v30 }
 0xbd4   :  { %4261 = vrcp.f32 %v1702_v6  ;;  %v1729_v36 = vand.u32 2147483648, %v1702_v6  ;;  %vm1723_vm13 = vweird.f32 %v1702_v6  ;;  %v1727_v55 = vand.u32 2147483647, %v1702_v6 }
 0xbd5   :  { %v1706_v39 = vmul.f32 %v4258_v18, %v1705_v47 }
 0xbd6   :  { %v1730_v62 = vor.u32 1.1754944e-38, %v1729_v36  ;;  %vm1728_vm15 = vcmp.eq.f32.partialorder %v1727_v55, 8.507059e+37  ;;  %v8583_v36 = vld [vmem:[#allocation19_spill] sm:$0xff] }
 0xbd7   :  { %v1707_v1 = vadd.f32 %v4258_v18, %v1706_v39  ;;  %v8584_v55 = vld [vmem:[#allocation23_spill] sm:$0xff] }
 0xbd9   :  { %v1711_v50 = vsel %vm1710_vm8, %v4258_v18, %v1707_v1 }
 0xbda   :  { %v1716_v16 = vsel %vm1713_vm9, %v1715_v10, %v1711_v50  ;;  %v4262_v13 = vpop.eup %4261  ;;  %v8573_v50 = vld [vmem:[#allocation29_spill] sm:$0xff]  ;;  %v8574_v10 = vld [vmem:[#allocation28_spill] sm:$0xff] }
 0xbdb   :  { %v1719_v59 = vmul.f32 %v4262_v13, %v1702_v6  ;;  %vm1724_vm12 = vweird.f32 %v4262_v13  ;;  %v8570_v6 = vld [vmem:[#allocation22_spill] sm:$0xff] }
 0xbdc   :  { %vm1725_vm14 = vmor %vm1723_vm13, %vm1724_vm12 }
 0xbdd   :  { %v1720_v19 = vsub.f32 1.0, %v1719_v59  ;;  %v8579_v59 = vld [vmem:[#allocation37_spill] sm:$0xff] }
 0xbdf   :  { %v1721_v61 = vmul.f32 %v4262_v13, %v1720_v19  ;;  %v8580_v19 = vld [vmem:[#allocation48_spill] sm:$0xff] }
 0xbe1   :  { %v1722_v34 = vadd.f32 %v4262_v13, %v1721_v61  ;;  %v8581_v61 = vld [vmem:[#allocation38_spill] sm:$0xff] }
 0xbe3   :  { %v1726_v54 = vsel %vm1725_vm14, %v4262_v13, %v1722_v34  ;;  %v8578_v13 = vld [vmem:[#allocation34_spill] sm:$0xff]  ;;  %v8582_v34 = vld [vmem:[#allocation40_spill] sm:$0xff] }
 0xbe4   :  { %v1731_v3 = vsel %vm1728_vm15, %v1730_v62, %v1726_v54  ;;  %v8585_v54 = vld [vmem:[#allocation14_spill] sm:$0xff]  ;;  %v8586_v62 = vld [vmem:[#allocation17_spill] sm:$0xff] }
 0xc20   :  { %v1762_v12 = vpop.permute.xlu2 %1761 }
 0xc21   :  { %v1768_v32 = vmul.f32 %v1762_v12, %v1716_v16  ;;  %v8575_v16 = vld [vmem:[#allocation32_spill] sm:$0xff] }
 0xc23   :  { %1772 = vrot.lane.b32.xlu1 %v1768_v32, %s4774_s13  ;;  %v8577_v32 = vld [vmem:[#allocation35_spill] sm:$0xff] }
 0xc39   :  { %v1764_v18 = vpop.permute.xlu0 %1763 }
 0xc3a   :  { %v1765_v30 = vsel %vm173_vm0, %v1762_v12, %v1764_v18  ;;  %v8576_v12 = vld [vmem:[#allocation31_spill] sm:$0xff]  ;;  %v8587_v18 = vld [vmem:[#allocation20_spill] sm:$0xff] }
 0xc3b   :  { %v1769_v47 = vmul.f32 %v1765_v30, %v1731_v3  ;;  %v8588_v3 = vld [vmem:[#allocation24_spill] sm:$0xff]  ;;  %v8589_v30 = vld [vmem:[#allocation27_spill] sm:$0xff] }
 0xc3d   :  { %1774 = vrot.lane.b32.xlu2 %v1769_v47, %s4774_s13  ;;  %v8590_v47 = vld [vmem:[#allocation30_spill] sm:$0xff] }
 0xc95   :  { %v1773_v39 = vpop.permute.xlu1 %1772 }
 0xc97   :  { %v1775_v37 = vpop.permute.xlu2 %1774 }
 0xc98   :  { %4088 = vmatmul.msk.f32.vlgmr.msrb.gmra.mxu2 %vm202_vm1, %v1775_v37  ;;  %v6710_v1 = vsel %vm679_vm10, %v1773_v39, %v1775_v37  ;;  %v8591_v39 = vld [vmem:[#allocation33_spill] sm:$0xff] }
 0xc99   :  { %1796 = vmatmul.f32.vlgmr.msrb.gmra.mxu3 %v6710_v1  ;;  %1892 = vmatmul.f32.vlgmr.msra.gmra.mxu1 %v6710_v1 }
 0xc9a   :  { %1950 = vmatpush.msrb.mxu2 %v6133_v25  ;;  %2030 = vmatpush.msrb.mxu3 %v6139_v9  ;;  %v6729_v25 = vld [vmem:[%s8245_s6 + $0x258] sm:$0xff]  ;;  %v6737_v9 = vld [vmem:[%s8245_s6 + $0x230] sm:$0xff] }
 0xc9b   :  { %2173 = vmatpush.msra.mxu1 %v6145_v53  ;;  %v6744_v53 = vld [vmem:[%s8245_s6 + $0x208] sm:$0xff] }
 0xc9c   :  { %1951 = vmatpush.msrb.mxu2 %v6151_v5  ;;  %2031 = vmatpush.msrb.mxu3 %v6157_v17  ;;  %v8564_v5 = vld [vmem:[#allocation13_spill] sm:$0xff]  ;;  %v8565_v17 = vld [vmem:[#allocation12_spill] sm:$0xff] }
 0xc9d   :  { %2174 = vmatpush.msra.mxu1 %v6163_v21  ;;  %v6754_v21 = vld [vmem:[%s8245_s6 + $0x1e0] sm:$0xff] }
 0xca0   :  { %4093 = vmatmul.msk.f32.vlgmr.msra.gmra.mxu2 %vm202_vm1, %v1775_v37 }
 0xca1   :  { %1956 = vmatpush.msra.mxu2 %v6170_v46  ;;  %4095 = vmatmul.msk.f32.vlgmr.msra.gmra.mxu3 %vm202_vm1, %v1775_v37  ;;  %v8566_v46 = vld [vmem:[#allocation15_spill] sm:$0xff] }
 0xca2   :  { %2012 = vmatmul.f32.vlgmr.msrb.gmra.mxu1 %v6710_v1  ;;  %2070 = vmatpush.msra.mxu3 %v6178_v41  ;;  %v8567_v41 = vld [vmem:[#allocation18_spill] sm:$0xff] }
 0xca3   :  { %1957 = vmatpush.msra.mxu2 %v6184_v22  ;;  %2424 = vmatpush.msrb.mxu1 %v6729_v25  ;;  %v6762_v22 = vld [vmem:[%s8245_s6 + $0x1b8] sm:$0xff] }
 0xca4   :  { %2071 = vmatpush.msra.mxu3 %v6191_v33  ;;  %v8568_v33 = vld [vmem:[#allocation16_spill] sm:$0xff] }
 0xca5   :  { %1958 = vmatpush.msra.mxu2 %v6197_v8  ;;  %2425 = vmatpush.msrb.mxu1 %v6737_v9  ;;  %v6769_v8 = vld [vmem:[%s8245_s6 + $0x190] sm:$0xff] }
 0xca7   :  { %1959 = vmatpush.msra.mxu2 %v6204_v52  ;;  %2426 = vmatpush.msrb.mxu1 %v6744_v53  ;;  %v8569_v52 = vld [vmem:[#allocation21_spill] sm:$0xff] }
 0xca8   :  { %4094 = vmatmul.msk.f32.vlgmr.msrb.gmra.mxu2 %vm202_vm1, %v1775_v37 }
 0xca9   :  { %1960 = vmatpush.msra.mxu2 %v8564_v5  ;;  %4096 = vmatmul.msk.f32.vlgmr.msrb.gmra.mxu3 %vm202_vm1, %v1775_v37  ;;  %v8593_v5 = vld [vmem:[#allocation39_spill] sm:$0xff] }
 0xcaa   :  { %2093 = vmatpush.msrb.mxu3 %v8565_v17  ;;  %2427 = vmatpush.msrb.mxu1 %v6754_v21 }
 0xcab   :  { %1961 = vmatpush.msra.mxu2 %v8566_v46 }
 0xcac   :  { %2094 = vmatpush.msrb.mxu3 %v8567_v41  ;;  %2428 = vmatpush.msrb.mxu1 %v6762_v22  ;;  %v6802_v41 = vld [vmem:[%s8248_s9] ss:$0 sm:$0xff] }
 0xcad   :  { %1962 = vmatpush.msra.mxu2 %v8568_v33 }
 0xcae   :  { %2429 = vmatpush.msrb.mxu1 %v6769_v8 }
 0xcaf   :  { %1963 = vmatpush.msra.mxu2 %v8569_v52 }
 0xcb0   :  { %2430 = vmatpush.msrb.mxu1 %v8570_v6 }
 0xcb1   :  { %1964 = vmatpush.msra.mxu2 %v8571_v28  ;;  %4097 = vmatmul.msk.f32.vlgmr.msra.gmra.mxu3 %vm202_vm1, %v1775_v37  ;;  %v8592_v37 = vld [vmem:[#allocation36_spill] sm:$0xff] }
 0xcb2   :  { %2133 = vmatpush.msra.mxu3 %v8572_v35  ;;  %2431 = vmatpush.msrb.mxu1 %v8573_v50 }
 0xcb3   :  { %1965 = vmatpush.msra.mxu2 %v8574_v10 }
 0xcb4   :  { %2134 = vmatpush.msra.mxu3 %v8575_v16  ;;  %2432 = vmatpush.msrb.mxu1 %v8576_v12 }
 0xcb5   :  { %1966 = vmatpush.msra.mxu2 %v8577_v32 }
 0xcb6   :  { %2433 = vmatpush.msrb.mxu1 %v8578_v13 }
 0xcb7   :  { %1967 = vmatpush.msra.mxu2 %v8579_v59 }
 0xcb8   :  { %2434 = vmatpush.msrb.mxu1 %v8580_v19 }
 0xcb9   :  { %1968 = vmatpush.msra.mxu2 %v8581_v61 }
 0xcba   :  { %2435 = vmatpush.msrb.mxu1 %v8582_v34 }
 0xcbb   :  { %1969 = vmatpush.msra.mxu2 %v8583_v36 }
 0xcbc   :  { %2436 = vmatpush.msrb.mxu1 %v8584_v55 }
 0xcbd   :  { %1970 = vmatpush.msra.mxu2 %v8585_v54 }
 0xcbe   :  { %2437 = vmatpush.msrb.mxu1 %v8586_v62 }
 0xcbf   :  { %1971 = vmatpush.msra.mxu2 %v8587_v18  ;;  %v1850_v18 = vstv %s1849_s15  ;;  %s2397_s15 = scalar_select %p2394_p3, 1, 0 }
 0xcc0   :  { %1972 = vmatmul.f32.vlgmr.msra.gmra.mxu2 %v6710_v1  ;;  %2438 = vmatpush.msrb.mxu1 %v8588_v3  ;;  %vm1851_vm4 = vcmp.eq.s32.totalorder %v1850_v18, 1  ;;  %v7056_v18 = vld [vmem:[%s8245_s6 + $0xb8] sm:$0xff] }
 0xcc1   :  { %2113 = vmatpush.msrb.mxu2 %v8589_v30  ;;  %v4091_v30 = vld [vmem:[%s8240_s1 + $0xc] sm:$0xf]  ;;  %8609 = vst [vmem:[#allocation16_spill] sm:$0xff] %v7056_v18 }
 0xcc2   :  { %2439 = vmatpush.msrb.mxu1 %v8590_v47 }
 0xcc3   :  { %2114 = vmatpush.msrb.mxu2 %v8591_v39 }
 0xcc5   :  { %2153 = vmatpush.msra.mxu2 %v8592_v37  ;;  %v8594_v37 = vld [vmem:[#allocation41_spill] sm:$0xff] }
 0xcc7   :  { %2154 = vmatpush.msra.mxu2 %v8593_v5  ;;  %v6910_v5 = vld [vmem:[%s8245_s6 + $0x120] sm:$0xff] }
 0xd16   :  { %v1893_v28 = vpop.f32.mrf.mxu1 }
 0xd1b   :  { %v1817_v17 = vpop.f32.mrf.mxu2 }
 0xd1c   :  { %v1797_v46 = vpop.f32.mrf.mxu3 }
 0xd1d   :  { %v1798_v33 = vadd.f32 %v6802_v41, %v1797_v46  ;;  %v6922_v46 = vld [vmem:[%s8245_s6 + $0xd0] sm:$0xff] }
 0xd1f   :  { %v1818_v52 = vadd.f32 %v1817_v17, %v1798_v33  ;;  %v6916_v17 = vld [vmem:[%s8245_s6 + $0xf8] sm:$0xff]  ;;  %v6928_v33 = vld [vmem:[%s8245_s6 + $0xa8] sm:$0xff] }
 0xd21   :  { %1821 = vst.msk [vmem:[#allocation4 + $0xc] sm:$0xf] %vm168_vm11, %v1818_v52  ;;  %v1822_v6 = vsel %vm168_vm11, %v1818_v52, -inf }
 0xd22   :  { %1823 = vmax.xlane.f32.xlu0 %v1822_v6  ;;  %v6940_v6 = vld [vmem:[%s8245_s6 + $0x58] sm:$0xff] }
 0xd23   :  { %v1913_v35 = vpop.f32.mrf.mxu2 }
 0xd24   :  { %v6807_v50 = vadd.f32 %v1913_v35, %v1893_v28  ;;  %v6946_v28 = vld [vmem:[%s8245_s6 + $0x30] sm:$0xff]  ;;  %v6952_v35 = vld [vmem:[%s8245_s6 + $0x8] sm:$0xff] }
 0xd95   :  { %v1824_v10 = vpop.xlane.xlu0 %1823 }
 0xd96   :  { %vm1825_vm2 = vcmp.eq.f32.partialorder %v1818_v52, %v1824_v10  ;;  %v6934_v52 = vld [vmem:[%s8245_s6 + $0x80] sm:$0xff] }
 0xd97   :  { %v1826_v16 = vsel %vm1825_vm2, %v5819_v51, 32 }
 0xd98   :  { %v1827_v12 = vsel %vm168_vm11, %v1826_v16, 2147483647  ;;  %v6962_v16 = vld [vmem:[%s8245_s6 + $0x270] sm:$0xff] }
 0xd99   :  { %v1829_v32 = vshra.s32 %v1827_v12, 16  ;;  %v1828_v59 = vand.u32 65535, %v1827_v12  ;;  %v6970_v12 = vld [vmem:[%s8245_s6 + $0x248] sm:$0xff] }
 0xd9b   :  { %v1831_v13 = vcvt.s32.f32 %v1829_v32  ;;  %v1830_v61 = vcvt.s32.f32 %v1828_v59  ;;  %v7021_v32 = vld [vmem:[%s8245_s6 + $0x180] sm:$0xff]  ;;  %v7028_v59 = vld [vmem:[%s8245_s6 + $0x158] sm:$0xff] }
 0xd9c   :  { %8599 = vst [vmem:[#allocation10_spill] sm:$0xff] %v7021_v32 }
 0xd9d   :  { %1832 = vmin.xlane.f32.xlu1 %v1831_v13  ;;  %8601 = vst [vmem:[#allocation13_spill] sm:$0xff] %v7028_v59 }
 0xe10   :  { %v1833_v19 = vpop.xlane.xlu1 %1832 }
 0xe11   :  { %vm1834_vm3 = vcmp.eq.f32.partialorder %v1831_v13, %v1833_v19  ;;  %v1839_v36 = vcvt.f32.s32 %v1833_v19  ;;  %v8600_v13 = vld [vmem:[#allocation46_spill] sm:$0xff]  ;;  %v8602_v19 = vld [vmem:[#allocation47_spill] sm:$0xff] }
 0xe12   :  { %v1835_v34 = vsel %vm1834_vm3, %v1830_v61, inf  ;;  %v7035_v61 = vld [vmem:[%s8245_s6 + $0x130] sm:$0xff] }
 0xe13   :  { %1836 = vmin.xlane.f32.xlu2 %v1835_v34  ;;  %v1840_v54 = vshll.u32 %v1839_v36, 16  ;;  %8603 = vst [vmem:[#allocation12_spill] sm:$0xff] %v7035_v61  ;;  %v8604_v34 = vld [vmem:[#allocation53_spill] sm:$0xff]  ;;  %v7042_v36 = vld [vmem:[%s8245_s6 + $0x108] sm:$0xff] }
 0xe14   :  { %8605 = vst [vmem:[#allocation15_spill] sm:$0xff] %v7042_v36 }
 0xe86   :  { %v1837_v55 = vpop.xlane.xlu2 %1836 }
 0xe87   :  { %v1838_v62 = vcvt.f32.s32 %v1837_v55  ;;  %v8606_v55 = vld [vmem:[#allocation54_spill] sm:$0xff] }
 0xe89   :  { %v1841_v3 = vadd.s32 %v1840_v54, %v1838_v62  ;;  %v7049_v54 = vld [vmem:[%s8245_s6 + $0xe0] sm:$0xff] }
 0xe8a   :  { %8607 = vst [vmem:[#allocation18_spill] sm:$0xff] %v7049_v54  ;;  %v8608_v62 = vld [vmem:[#allocation55_spill] sm:$0xff] }
 0xe8b   :  { %vm1842_vm6 = vcmp.eq.s32.totalorder %v5819_v51, %v1841_v3  ;;  %v8610_v3 = vld [vmem:[#allocation9_spill] sm:$0xff] }
 0xe8c   :  { %v4089_v47 = vsel %vm1842_vm6, 1.0, %v8539_v27 }
 0xe8d   :  { %v1852_v39 = vsel %vm1851_vm4, %v4091_v30, %v4089_v47  ;;  %v8611_v30 = vld [vmem:[#allocation8_spill] sm:$0xff] }
 0xe8e   :  { %4092 = vmatmul.msk.f32.vlgmr.msra.gmra.mxu0 %vm173_vm0, %v1852_v39  ;;  %v8612_v47 = vld [vmem:[#allocation56_spill] sm:$0xff]  ;;  %v8613_v39 = vld [vmem:[#allocation57_spill] sm:$0xff] }
 0xe8f   :  { %2036 = vmatpush.msra.mxu0 %v6409_v56  ;;  %v8595_v56 = vld [vmem:[#allocation42_spill] sm:$0xff] }
 0xe91   :  { %2037 = vmatpush.msra.mxu0 %v6415_v29  ;;  %v8596_v29 = vld [vmem:[#allocation43_spill] sm:$0xff] }
 0xe93   :  { %2038 = vmatpush.msra.mxu0 %v6421_v40  ;;  %v6838_v40 = vld [vmem:[%s8243_s4 + $0x18] sm:$0xff] }
 0xe95   :  { %2039 = vmatpush.msra.mxu0 %v6427_v24  ;;  %v6844_v24 = vld [vmem:[%s8243_s4 + $0x10] sm:$0xff] }
 0xe96   :  { %1932 = vmatmul.f32.vlgmr.msrb.gmra.mxu0 %v6710_v1 }
 0xe97   :  { %2040 = vmatpush.msra.mxu0 %v6434_v0  ;;  %v6850_v0 = vld [vmem:[%s8243_s4 + $0x8] sm:$0xff] }
 0xe99   :  { %2041 = vmatpush.msra.mxu0 %v6440_v26  ;;  %v6856_v26 = vld [vmem:[%s8243_s4] sm:$0xff] }
 0xe9b   :  { %2042 = vmatpush.msra.mxu0 %v6446_v43  ;;  %v6862_v43 = vld [vmem:[%s8245_s6 + $0x260] sm:$0xff] }
 0xe9d   :  { %2043 = vmatpush.msra.mxu0 %v6452_v7  ;;  %v6868_v7 = vld [vmem:[%s8245_s6 + $0x238] sm:$0xff] }
 0xe9f   :  { %2044 = vmatpush.msra.mxu0 %v6458_v42  ;;  %v6874_v42 = vld [vmem:[%s8245_s6 + $0x210] sm:$0xff] }
 0xea1   :  { %2045 = vmatpush.msra.mxu0 %v8594_v37  ;;  %v8614_v37 = vld [vmem:[#allocation58_spill] sm:$0xff] }
 0xea3   :  { %2046 = vmatpush.msra.mxu0 %v8595_v56  ;;  %v8615_v56 = vld [vmem:[#allocation59_spill] sm:$0xff] }
 0xea5   :  { %2047 = vmatpush.msra.mxu0 %v8596_v29  ;;  %v7068_v29 = vld [vmem:[%s8245_s6 + $0x2b8] sm:$0xff] }
 0xea6   :  { %8616 = vst [vmem:[#allocation21_spill] sm:$0xff] %v7068_v29 }
 0xea7   :  { %2048 = vmatpush.msra.mxu0 %v6482_v58  ;;  %v6898_v58 = vld [vmem:[%s8245_s6 + $0x170] sm:$0xff] }
 0xea9   :  { %2049 = vmatpush.msra.mxu0 %v6488_v23  ;;  %v6880_v23 = vld [vmem:[%s8245_s6 + $0x1e8] sm:$0xff] }
 0xeab   :  { %2050 = vmatpush.msra.mxu0 %v6494_v2  ;;  %v6886_v2 = vld [vmem:[%s8245_s6 + $0x1c0] sm:$0xff] }
 0xead   :  { %2051 = vmatpush.msra.mxu0 %v6500_v63  ;;  %v6892_v63 = vld [vmem:[%s8245_s6 + $0x198] sm:$0xff] }
 0xeae   :  { %2052 = vmatmul.f32.vlgmr.msra.gmra.mxu0 %v6710_v1  ;;  %v6904_v1 = vld [vmem:[%s8245_s6 + $0x148] sm:$0xff] }
 0xeaf   :  { %2416 = vmatpush.msrb.mxu0 %v6838_v40 }
 0xeb1   :  { %2417 = vmatpush.msrb.mxu0 %v6844_v24 }
 0xeb3   :  { %2418 = vmatpush.msrb.mxu0 %v6850_v0 }
 0xeb5   :  { %2419 = vmatpush.msrb.mxu0 %v6856_v26 }
 0xeb7   :  { %2464 = vmatpush.msra.mxu0 %v6862_v43 }
 0xeb9   :  { %2465 = vmatpush.msra.mxu0 %v6868_v7 }
 0xebb   :  { %2466 = vmatpush.msra.mxu0 %v6874_v42 }
 0xebd   :  { %2467 = vmatpush.msra.mxu0 %v6880_v23 }
 0xebf   :  { %2468 = vmatpush.msra.mxu0 %v6886_v2 }
 0xec1   :  { %2469 = vmatpush.msra.mxu0 %v6892_v63 }
 0xec3   :  { %2470 = vmatpush.msra.mxu0 %v6898_v58 }
 0xec5   :  { %2471 = vmatpush.msra.mxu0 %v6904_v1 }
 0xec7   :  { %2472 = vmatpush.msra.mxu0 %v6910_v5 }
 0xec9   :  { %2473 = vmatpush.msra.mxu0 %v6916_v17 }
 0xecb   :  { %2474 = vmatpush.msra.mxu0 %v6922_v46 }
 0xecd   :  { %2475 = vmatpush.msra.mxu0 %v6928_v33 }
 0xecf   :  { %2476 = vmatpush.msra.mxu0 %v6934_v52 }
 0xed1   :  { %2477 = vmatpush.msra.mxu0 %v6940_v6 }
 0xed3   :  { %2478 = vmatpush.msra.mxu0 %v6946_v28 }
 0xed5   :  { %2479 = vmatpush.msra.mxu0 %v6952_v35 }
 0xf0b   :  { %v1873_v10 = vpop.f32.mrf.mxu0 }
 0xf0c   :  { %4098 = vmatmul.msk.f32.vlgmr.msrb.gmra.mxu3 %vm202_vm1, %v1873_v10  ;;  %4099 = vmatmul.msk.f32.vlgmr.msrb.gmra.mxu2 %vm202_vm1, %v1873_v10 }
 0xf0d   :  { %4102 = vmatmul.msk.f32.vlgmr.msra.gmra.mxu1 %vm202_vm1, %v1873_v10  ;;  %2328 = vmatpush.msrb.mxu3 %v6530_v38  ;;  %v6978_v38 = vld [vmem:[%s8245_s6 + $0x220] sm:$0xff] }
 0xf0e   :  { %2544 = vmatpush.msra.mxu1 %v6962_v16  ;;  %2362 = vmatpush.msrb.mxu2 %v6537_v44  ;;  %v6988_v44 = vld [vmem:[%s8245_s6 + $0x1f8] sm:$0xff] }
 0xf0f   :  { %2329 = vmatpush.msrb.mxu3 %v6543_v31  ;;  %v6994_v31 = vld [vmem:[%s8245_s6 + $0x2a8] sm:$0xff] }
 0xf10   :  { %2545 = vmatpush.msra.mxu1 %v6970_v12  ;;  %2363 = vmatpush.msrb.mxu2 %v6550_v45  ;;  %v7001_v45 = vld [vmem:[%s8245_s6 + $0x1d0] sm:$0xff] }
 0xf11   :  { %2330 = vmatpush.msrb.mxu3 %v6556_v48  ;;  %v7007_v48 = vld [vmem:[%s8245_s6 + $0x280] sm:$0xff] }
 0xf12   :  { %2546 = vmatpush.msra.mxu1 %v6978_v38 }
 0xf13   :  { %2331 = vmatpush.msrb.mxu3 %v6563_v49  ;;  %v8597_v49 = vld [vmem:[#allocation44_spill] sm:$0xff] }
 0xf14   :  { %4100 = vmatmul.msk.f32.vlgmr.msra.gmra.mxu3 %vm202_vm1, %v1873_v10  ;;  %4101 = vmatmul.msk.f32.vlgmr.msra.gmra.mxu2 %vm202_vm1, %v1873_v10  ;;  %v8617_v10 = vld [vmem:[#allocation11_spill] sm:$0xff] }
 0xf15   :  { %2332 = vmatpush.msrb.mxu3 %v6571_v57  ;;  %2547 = vmatpush.msra.mxu1 %v6988_v44  ;;  %v7014_v57 = vld [vmem:[%s8245_s6 + $0x1a8] sm:$0xff] }
 0xf16   :  { %2458 = vmatpush.msra.mxu2 %v6994_v31 }
 0xf17   :  { %2333 = vmatpush.msrb.mxu3 %v6579_v11  ;;  %2548 = vmatpush.msra.mxu1 %v7001_v45  ;;  %v8598_v11 = vld [vmem:[#allocation45_spill] sm:$0xff] }
 0xf18   :  { %2459 = vmatpush.msra.mxu2 %v7007_v48 }
 0xf19   :  { %2334 = vmatpush.msrb.mxu3 %v8597_v49  ;;  %2549 = vmatpush.msra.mxu1 %v7014_v57  ;;  %v7075_v49 = vld [vmem:[%s8245_s6 + $0x290] sm:$0xff] }
 0xf1a   :  { %8618 = vst [vmem:[#allocation22_spill] sm:$0xff] %v7075_v49 }
 0xf1b   :  { %2335 = vmatpush.msrb.mxu3 %v8598_v11  ;;  %2550 = vmatpush.msra.mxu1 %v7021_v32  ;;  %v1993_v11 = vpop.f32.mrf.mxu3 }
 0xf1d   :  { %2336 = vmatpush.msrb.mxu3 %v8600_v13  ;;  %2551 = vmatpush.msra.mxu1 %v7028_v59 }
 0xf1f   :  { %2337 = vmatpush.msrb.mxu3 %v8602_v19  ;;  %2552 = vmatpush.msra.mxu1 %v7035_v61  ;;  %v1953_v19 = vpop.f32.mrf.mxu2 }
 0xf21   :  { %2338 = vmatpush.msrb.mxu3 %v8604_v34  ;;  %2553 = vmatpush.msra.mxu1 %v7042_v36 }
 0xf23   :  { %2339 = vmatpush.msrb.mxu3 %v8606_v55  ;;  %2554 = vmatpush.msra.mxu1 %v7049_v54  ;;  %v2033_v13 = vpop.f32.mrf.mxu3  ;;  %v8619_v54 = vld [vmem:[#allocation49_spill] sm:$0xff] }
 0xf25   :  { %2340 = vmatpush.msrb.mxu3 %v8608_v62  ;;  %2555 = vmatpush.msra.mxu1 %v7056_v18 }
 0xf27   :  { %2341 = vmatpush.msrb.mxu3 %v8610_v3  ;;  %2556 = vmatpush.msra.mxu1 %v8611_v30  ;;  %v1973_v55 = vpop.f32.mrf.mxu2 }
 0xf29   :  { %2342 = vmatpush.msrb.mxu3 %v8612_v47  ;;  %2557 = vmatpush.msra.mxu1 %v8613_v39  ;;  %v2013_v47 = vpop.f32.mrf.mxu1 }
 0xf2a   :  { %v2034_v39 = vadd.f32 %v2033_v13, %v2013_v47 }
 0xf2b   :  { %2343 = vmatpush.msrb.mxu3 %v8614_v37  ;;  %2558 = vmatpush.msra.mxu1 %v8615_v56  ;;  %v7078_v34 = vpop.f32.mrf.mxu3  ;;  %v1994_v37 = vadd.f32 %v1993_v11, %v1973_v55 }
 0xf2d   :  { %2538 = vmatpush.msra.mxu3 %v7068_v29  ;;  %2559 = vmatpush.msra.mxu1 %v8617_v10 }
 0xf2f   :  { %2539 = vmatpush.msra.mxu3 %v7075_v49  ;;  %v8620_v49 = vld [vmem:[#allocation50_spill] sm:$0xff] }
 0xf8f   :  { %v2096_v62 = vpop.f32.mrf.mxu3  ;;  %v2116_v3 = vpop.f32.mrf.mxu2 }
 0xf90   :  { %v2097_v30 = vadd.f32 %v2096_v62, %v6807_v50  ;;  %v1933_v50 = vpop.f32.mrf.mxu0 }
 0xf91   :  { %v1954_v11 = vadd.f32 %v1953_v19, %v1933_v50 }
 0xf92   :  { %v2179_v62 = vadd.f32 %v2097_v30, %v8563_v60 }
 0xf93   :  { %v2117_v13 = vadd.f32 %v2116_v3, %v1954_v11 }
 0xf94   :  { %v4103_v47 = vmul.f32 -1.442695, %v2179_v62 }
 0xf95   :  { %v2180_v55 = vadd.f32 %v2117_v13, %v5563_v4 }
 0xf97   :  { %v2136_v56 = vpop.f32.mrf.mxu3  ;;  %v2156_v10 = vpop.f32.mrf.mxu2 }
 0xf98   :  { %v2137_v29 = vadd.f32 %v2136_v56, %v1994_v37  ;;  %v2157_v18 = vadd.f32 %v2156_v10, %v2034_v39 }
 0xf9a   :  { %v2181_v36 = vadd.f32 %v2137_v29, %v8619_v54  ;;  %v7083_v61 = vadd.f32 %v2157_v18, %v8620_v49  ;;  %v4104_v29 = vmul.f32 -1.442695, %v2180_v55 }
 0xf9c   :  { %4263 = vtanh.f32 %v2181_v36 }
 0xf9d   :  { %4265 = vtanh.f32 %v7083_v61 }
 0xf9e   :  { %4267 = vpow2.f32 %v4104_v29 }
 0xf9f   :  { %4269 = vpow2.f32 %v4103_v47 }
 0xfa2   :  { %v4264_v59 = vpop.eup %4263 }
 0xfa3   :  { %v4266_v32 = vpop.eup %4265  ;;  %2285 = vrot.lane.b32.xlu0 %v4264_v59, %s4772_s7 }
 0xfa4   :  { %2287 = vrot.lane.b32.xlu1 %v4266_v32, %s4772_s7  ;;  %v4268_v18 = vpop.eup %4267 }
 0xfa5   :  { %v4270_v39 = vpop.eup %4269  ;;  %v2191_v37 = vadd.f32 1.0, %v4268_v18 }
 0xfa6   :  { %v2190_v56 = vadd.f32 1.0, %v4270_v39 }
 0xfa7   :  { %4271 = vrcp.f32 %v2191_v37  ;;  %v2218_v30 = vand.u32 2147483648, %v2191_v37  ;;  %vm2212_vm9 = vweird.f32 %v2191_v37  ;;  %v2216_v62 = vand.u32 2147483647, %v2191_v37 }
 0xfa8   :  { %4273 = vrcp.f32 %v2190_v56  ;;  %v2203_v29 = vand.u32 2147483648, %v2190_v56  ;;  %vm2197_vm13 = vweird.f32 %v2190_v56  ;;  %v2201_v47 = vand.u32 2147483647, %v2190_v56 }
 0xfa9   :  { %v2219_v39 = vor.u32 1.1754944e-38, %v2218_v30  ;;  %vm2217_vm15 = vcmp.eq.f32.partialorder %v2216_v62, 8.507059e+37 }
 0xfaa   :  { %vm2202_vm2 = vcmp.eq.f32.partialorder %v2201_v47, 8.507059e+37 }
 0xfad   :  { %v4272_v59 = vpop.eup %4271 }
 0xfae   :  { %v4274_v10 = vpop.eup %4273  ;;  %v2208_v32 = vmul.f32 %v4272_v59, %v2191_v37  ;;  %vm2213_vm7 = vweird.f32 %v4272_v59  ;;  %v4105_v37 = vmul.f32 -1.442695, %v2181_v36 }
 0xfaf   :  { %v2193_v49 = vmul.f32 %v4274_v10, %v2190_v56  ;;  %vm2198_vm8 = vweird.f32 %v4274_v10  ;;  %vm2214_vm12 = vmor %vm2212_vm9, %vm2213_vm7 }
 0xfb0   :  { %v2209_v19 = vsub.f32 1.0, %v2208_v32  ;;  %vm2199_vm14 = vmor %vm2197_vm13, %vm2198_vm8  ;;  %4275 = vpow2.f32 %v4105_v37 }
 0xfb1   :  { %v2194_v3 = vsub.f32 1.0, %v2193_v49  ;;  %v2204_v49 = vor.u32 1.1754944e-38, %v2203_v29 }
 0xfb2   :  { %v2210_v50 = vmul.f32 %v4272_v59, %v2209_v19 }
 0xfb3   :  { %v2195_v11 = vmul.f32 %v4274_v10, %v2194_v3 }
 0xfb4   :  { %v2211_v13 = vadd.f32 %v4272_v59, %v2210_v50 }
 0xfb5   :  { %v2196_v55 = vadd.f32 %v4274_v10, %v2195_v11 }
 0xfb6   :  { %v2215_v18 = vsel %vm2214_vm12, %v4272_v59, %v2211_v13  ;;  %v4276_v56 = vpop.eup %4275 }
 0xfb7   :  { %v2200_v60 = vsel %vm2199_vm14, %v4274_v10, %v2196_v55  ;;  %v2220_v3 = vsel %vm2217_vm15, %v2219_v39, %v2215_v18  ;;  %v2225_v59 = vadd.f32 1.0, %v4276_v56  ;;  %v2053_v56 = vpop.f32.mrf.mxu0 }
 0xfb8   :  { %v2205_v4 = vsel %vm2202_vm2, %v2204_v49, %v2200_v60  ;;  %v2281_v13 = vmul.f32 %v2220_v3, %v6694_v15 }
 0xfb9   :  { %4277 = vrcp.f32 %v2225_v59  ;;  %v2237_v36 = vand.u32 2147483648, %v2225_v59  ;;  %vm2231_vm4 = vweird.f32 %v2225_v59  ;;  %v2235_v47 = vand.u32 2147483647, %v2225_v59 }
 0xfbb   :  { %v2238_v39 = vor.u32 1.1754944e-38, %v2237_v36  ;;  %vm2236_vm7 = vcmp.eq.f32.partialorder %v2235_v47, 8.507059e+37 }
 0xfbf   :  { %v4278_v10 = vpop.eup %4277 }
 0xfc0   :  { %v2227_v62 = vmul.f32 %v4278_v10, %v2225_v59  ;;  %vm2232_vm3 = vweird.f32 %v4278_v10 }
 0xfc1   :  { %vm2233_vm6 = vmor %vm2231_vm4, %vm2232_vm3 }
 0xfc2   :  { %v2228_v60 = vsub.f32 1.0, %v2227_v62 }
 0xfc4   :  { %v2229_v29 = vmul.f32 %v4278_v10, %v2228_v60 }
0x1015   :  { %v2286_v32 = vpop.permute.xlu0 %2285 }
0x1016   :  { %v2288_v19 = vpop.permute.xlu1 %2287 }
0x1017   :  { %v2293_v50 = vmul.f32 %v2288_v19, %v2220_v3  ;;  %v2289_v11 = vsel %vm640_vm5, %v2286_v32, %v2288_v19 }
0x1018   :  { %v2292_v54 = vmul.f32 %v2289_v11, %v2205_v4  ;;  %v4106_v11 = vmul.f32 -1.442695, %v7083_v61 }
0x1019   :  { %2298 = vrot.lane.b32.xlu0 %v2293_v50, %s4771_s2 }
0x101a   :  { %2296 = vrot.lane.b32.xlu2 %v2292_v54, %s4771_s2  ;;  %v2230_v54 = vadd.f32 %v4278_v10, %v2229_v29 }
0x101c   :  { %v2234_v18 = vsel %vm2233_vm6, %v4278_v10, %v2230_v54  ;;  %v2176_v10 = vpop.f32.mrf.mxu1 }
0x101d   :  { %v2239_v15 = vsel %vm2236_vm7, %v2238_v39, %v2234_v18 }
0x101e   :  { %v2282_v32 = vmul.f32 %v2239_v15, %v6696_v14 }
0x1074   :  { %v2297_v30 = vpop.permute.xlu2 %2296 }
0x1075   :  { %v7094_v55 = vadd.f32 %v2297_v30, %v2281_v13  ;;  %v2074_v13 = vadd.f32 %v7078_v34, %v2053_v56 }
0x1077   :  { %4279 = vtanh.f32 %v7094_v55  ;;  %v2177_v14 = vadd.f32 %v2176_v10, %v2074_v13 }
0x107d   :  { %v4280_v4 = vpop.eup %4279 }
0x107e   :  { %2309 = vrot.lane.b32.xlu1 %v4280_v4, %s4773_s29 }
0x108b   :  { %v2299_v49 = vpop.permute.xlu0 %2298 }
0x108c   :  { %v2300_v19 = vsel %vm202_vm1, %v2297_v30, %v2299_v49  ;;  %v2183_v30 = vadd.f32 %v2177_v14, %v8508_v20 }
0x108d   :  { %v7100_v3 = vadd.f32 %v2300_v19, %v2282_v32 }
0x108e   :  { %v4107_v60 = vmul.f32 -1.442695, %v2183_v30 }
0x108f   :  { %4281 = vtanh.f32 %v7100_v3 }
0x1090   :  { %4283 = vpow2.f32 %v4106_v11 }
0x1095   :  { %v4282_v50 = vpop.eup %4281 }
0x1096   :  { %2311 = vrot.lane.b32.xlu0 %v4282_v50, %s4773_s29  ;;  %v4284_v37 = vpop.eup %4283 }
0x1097   :  { %v2249_v59 = vadd.f32 1.0, %v4284_v37 }
0x1099   :  { %4285 = vrcp.f32 %v2249_v59  ;;  %v2262_v18 = vand.u32 2147483648, %v2249_v59  ;;  %vm2256_vm9 = vweird.f32 %v2249_v59  ;;  %v2260_v39 = vand.u32 2147483647, %v2249_v59 }
0x109a   :  { %4287 = vpow2.f32 %v4107_v60 }
0x109b   :  { %v2263_v15 = vor.u32 1.1754944e-38, %v2262_v18  ;;  %vm2261_vm13 = vcmp.eq.f32.partialorder %v2260_v39, 8.507059e+37  ;;  %v7125_v18 = vld [vmem:[%s8245_s6 + $0x2c0] sm:$0xff]  ;;  %v7131_v39 = vld [vmem:[%s8244_s5 + $0x48] sm:$0xff] }
0x109f   :  { %v4286_v62 = vpop.eup %4285 }
0x10a0   :  { %v2252_v4 = vmul.f32 %v4286_v62, %v2249_v59  ;;  %v4288_v36 = vpop.eup %4287  ;;  %vm2257_vm8 = vweird.f32 %v4286_v62 }
0x10a1   :  { %v2250_v47 = vadd.f32 1.0, %v4288_v36  ;;  %vm2258_vm12 = vmor %vm2256_vm9, %vm2257_vm8 }
0x10a2   :  { %v2253_v29 = vsub.f32 1.0, %v2252_v4 }
0x10a3   :  { %4289 = vrcp.f32 %v2250_v47  ;;  %v2277_v13 = vand.u32 2147483648, %v2250_v47  ;;  %vm2271_vm15 = vweird.f32 %v2250_v47  ;;  %v2275_v14 = vand.u32 2147483647, %v2250_v47 }
0x10a4   :  { %v2254_v54 = vmul.f32 %v4286_v62, %v2253_v29 }
0x10a5   :  { %v2278_v30 = vor.u32 1.1754944e-38, %v2277_v13  ;;  %vm2276_vm3 = vcmp.eq.f32.partialorder %v2275_v14, 8.507059e+37  ;;  %v7232_v13 = vld [vmem:[%s8245_s6 + $0x150] sm:$0xff]  ;;  %v7244_v14 = vld [vmem:[%s8245_s6 + $0x128] sm:$0xff] }
0x10a6   :  { %v2255_v61 = vadd.f32 %v4286_v62, %v2254_v54  ;;  %8623 = vst [vmem:[#allocation29_spill] sm:$0xff] %v7232_v13 }
0x10a7   :  { %8625 = vst [vmem:[#allocation32_spill] sm:$0xff] %v7244_v14 }
0x10a8   :  { %v2259_v34 = vsel %vm2258_vm12, %v4286_v62, %v2255_v61 }
0x10a9   :  { %v2264_v32 = vsel %vm2261_vm13, %v2263_v15, %v2259_v34  ;;  %v4290_v50 = vpop.eup %4289  ;;  %v7137_v34 = vld [vmem:[%s8245_s6 + $0x288] sm:$0xff]  ;;  %v7143_v15 = vld [vmem:[%s8245_s6 + $0x298] sm:$0xff] }
0x10aa   :  { %v2267_v11 = vmul.f32 %v4290_v50, %v2250_v47  ;;  %vm2272_vm14 = vweird.f32 %v4290_v50  ;;  %v7119_v47 = vld [vmem:[%s8245_s6 + $0x2b0] sm:$0xff] }
0x10ab   :  { %vm2273_vm2 = vmor %vm2271_vm15, %vm2272_vm14 }
0x10ac   :  { %v2268_v37 = vsub.f32 1.0, %v2267_v11  ;;  %v7177_v11 = vld [vmem:[%s8245_s6 + $0x2a0] sm:$0xff] }
0x10ae   :  { %v2269_v56 = vmul.f32 %v4290_v50, %v2268_v37  ;;  %v7183_v37 = vld [vmem:[%s8245_s6 + $0x218] sm:$0xff] }
0x10b0   :  { %v2270_v10 = vadd.f32 %v4290_v50, %v2269_v56  ;;  %v7198_v56 = vld [vmem:[%s8245_s6 + $0x1c8] sm:$0xff] }
0x10b2   :  { %v2274_v59 = vsel %vm2273_vm2, %v4290_v50, %v2270_v10  ;;  %v7170_v50 = vld [vmem:[%s8245_s6 + $0x240] sm:$0xff] }
0x10b3   :  { %v2279_v60 = vsel %vm2276_vm3, %v2278_v30, %v2274_v59  ;;  %v7218_v10 = vld [vmem:[%s8244_s5] sm:$0xff] }
0x10b4   :  { %8621 = vst [vmem:[#allocation25_spill] sm:$0xff] %v7218_v10  ;;  %v7257_v59 = vld [vmem:[%s8245_s6 + $0x140] sm:$0xff] }
0x10b5   :  { %8627 = vst [vmem:[#allocation35_spill] sm:$0xff] %v7257_v59  ;;  %v7263_v30 = vld [vmem:[%s8245_s6 + $0x100] sm:$0xff] }
0x10b6   :  { %8628 = vst [vmem:[#allocation34_spill] sm:$0xff] %v7263_v30 }
0x10f0   :  { %v2310_v49 = vpop.permute.xlu1 %2309 }
0x10f1   :  { %v2316_v19 = vmul.f32 %v2310_v49, %v2264_v32  ;;  %v7149_v32 = vld [vmem:[%s8244_s5 + $0x20] sm:$0xff] }
0x10f3   :  { %2320 = vrot.lane.b32.xlu2 %v2316_v19, %s4774_s13  ;;  %v7164_v19 = vld [vmem:[%s8245_s6 + $0x2c8] sm:$0xff] }
0x1108   :  { %v2312_v62 = vpop.permute.xlu0 %2311 }
0x1109   :  { %v2313_v4 = vsel %vm173_vm0, %v2310_v49, %v2312_v62  ;;  %v7156_v49 = vld [vmem:[%s8245_s6 + $0x268] sm:$0xff]  ;;  %v7269_v62 = vld [vmem:[%s8244_s5 + $0x10] sm:$0xff] }
0x110a   :  { %v2317_v29 = vmul.f32 %v2313_v4, %v2279_v60  ;;  %8629 = vst [vmem:[#allocation37_spill] sm:$0xff] %v7269_v62  ;;  %v7275_v60 = vld [vmem:[%s8245_s6 + $0x118] sm:$0xff] }
0x110b   :  { %8630 = vst [vmem:[#allocation48_spill] sm:$0xff] %v7275_v60  ;;  %v7281_v4 = vld [vmem:[%s8245_s6 + $0xd8] sm:$0xff] }
0x110c   :  { %2322 = vrot.lane.b32.xlu1 %v2317_v29, %s4774_s13  ;;  %8631 = vst [vmem:[#allocation38_spill] sm:$0xff] %v7281_v4  ;;  %v7287_v29 = vld [vmem:[%s8245_s6 + $0xf0] sm:$0xff] }
0x110d   :  { %8632 = vst [vmem:[#allocation40_spill] sm:$0xff] %v7287_v29 }
0x114d   :  { %v2321_v54 = vpop.permute.xlu2 %2320 }
0x117e   :  { %v2323_v36 = vpop.permute.xlu1 %2322 }
0x117f   :  { %4108 = vmatmul.msk.f32.vlgmr.msrb.gmra.mxu2 %vm202_vm1, %v2323_v36  ;;  %v7112_v61 = vsel %vm679_vm10, %v2321_v54, %v2323_v36  ;;  %v7293_v54 = vld [vmem:[%s8245_s6 + $0xb0] sm:$0xff] }
0x1180   :  { %2344 = vmatmul.f32.vlgmr.msrb.gmra.mxu3 %v7112_v61  ;;  %2440 = vmatmul.f32.vlgmr.msrb.gmra.mxu1 %v7112_v61  ;;  %8633 = vst [vmem:[#allocation19_spill] sm:$0xff] %v7293_v54 }
0x1181   :  { %2498 = vmatpush.msrb.mxu2 %v7119_v47  ;;  %2578 = vmatpush.msrb.mxu3 %v7125_v18 }
0x1182   :  { %2721 = vmatpush.msrb.mxu1 %v7131_v39 }
0x1183   :  { %2499 = vmatpush.msrb.mxu2 %v7137_v34  ;;  %2579 = vmatpush.msrb.mxu3 %v7143_v15 }
0x1184   :  { %2722 = vmatpush.msrb.mxu1 %v7149_v32 }
0x1187   :  { %4113 = vmatmul.msk.f32.vlgmr.msra.gmra.mxu2 %vm202_vm1, %v2323_v36 }
0x1188   :  { %2504 = vmatpush.msra.mxu2 %v7156_v49  ;;  %4115 = vmatmul.msk.f32.vlgmr.msra.gmra.mxu3 %vm202_vm1, %v2323_v36 }
0x1189   :  { %2560 = vmatmul.f32.vlgmr.msra.gmra.mxu1 %v7112_v61  ;;  %2618 = vmatpush.msra.mxu3 %v7164_v19 }
0x118a   :  { %2505 = vmatpush.msra.mxu2 %v7170_v50  ;;  %2972 = vmatpush.msra.mxu1 %v6729_v25  ;;  %v7190_v25 = vld [vmem:[%s8245_s6 + $0x1f0] sm:$0xff] }
0x118b   :  { %2619 = vmatpush.msra.mxu3 %v7177_v11 }
0x118c   :  { %2506 = vmatpush.msra.mxu2 %v7183_v37  ;;  %2973 = vmatpush.msra.mxu1 %v6737_v9  ;;  %v7205_v9 = vld [vmem:[%s8244_s5 + $0x28] sm:$0xff] }
0x118e   :  { %2507 = vmatpush.msra.mxu2 %v7190_v25  ;;  %2974 = vmatpush.msra.mxu1 %v6744_v53  ;;  %v7212_v53 = vld [vmem:[%s8245_s6 + $0x1a0] sm:$0xff] }
0x118f   :  { %4114 = vmatmul.msk.f32.vlgmr.msrb.gmra.mxu2 %vm202_vm1, %v2323_v36 }
0x1190   :  { %2508 = vmatpush.msra.mxu2 %v7198_v56  ;;  %4116 = vmatmul.msk.f32.vlgmr.msrb.gmra.mxu3 %vm202_vm1, %v2323_v36 }
0x1191   :  { %2641 = vmatpush.msrb.mxu3 %v7205_v9  ;;  %2975 = vmatpush.msra.mxu1 %v6754_v21  ;;  %v7225_v21 = vld [vmem:[%s8245_s6 + $0x178] sm:$0xff] }
0x1192   :  { %2509 = vmatpush.msra.mxu2 %v7212_v53  ;;  %8622 = vst [vmem:[#allocation26_spill] sm:$0xff] %v7225_v21 }
0x1193   :  { %2642 = vmatpush.msrb.mxu3 %v7218_v10  ;;  %2976 = vmatpush.msra.mxu1 %v6762_v22  ;;  %v7238_v22 = vld [vmem:[%s8245_s6 + $0x168] sm:$0xff] }
0x1194   :  { %2510 = vmatpush.msra.mxu2 %v7225_v21  ;;  %8624 = vst [vmem:[#allocation28_spill] sm:$0xff] %v7238_v22 }
0x1195   :  { %2977 = vmatpush.msra.mxu1 %v6769_v8  ;;  %v7251_v8 = vld [vmem:[%s8244_s5 + $0x38] sm:$0xff] }
0x1196   :  { %2511 = vmatpush.msra.mxu2 %v7232_v13  ;;  %8626 = vst [vmem:[#allocation31_spill] sm:$0xff] %v7251_v8 }
0x1197   :  { %2978 = vmatpush.msra.mxu1 %v7238_v22 }
0x1198   :  { %2512 = vmatpush.msra.mxu2 %v7244_v14  ;;  %4117 = vmatmul.msk.f32.vlgmr.msra.gmra.mxu3 %vm202_vm1, %v2323_v36  ;;  %v7299_v36 = vld [vmem:[%s8245_s6 + $0xc8] sm:$0xff] }
0x1199   :  { %2681 = vmatpush.msra.mxu3 %v7251_v8  ;;  %2979 = vmatpush.msra.mxu1 %v7257_v59  ;;  %8634 = vst [vmem:[#allocation23_spill] sm:$0xff] %v7299_v36 }
0x119a   :  { %2513 = vmatpush.msra.mxu2 %v7263_v30 }
0x119b   :  { %2682 = vmatpush.msra.mxu3 %v7269_v62  ;;  %2980 = vmatpush.msra.mxu1 %v7275_v60 }
0x119c   :  { %2514 = vmatpush.msra.mxu2 %v7281_v4  ;;  %v7305_v4 = vld [vmem:[%s8245_s6 + $0x88] sm:$0xff] }
0x119d   :  { %2981 = vmatpush.msra.mxu1 %v7287_v29  ;;  %8635 = vst [vmem:[#allocation14_spill] sm:$0xff] %v7305_v4  ;;  %v7311_v29 = vld [vmem:[%s8245_s6 + $0xa0] sm:$0xff] }
0x119e   :  { %2515 = vmatpush.msra.mxu2 %v7293_v54  ;;  %8636 = vst [vmem:[#allocation17_spill] sm:$0xff] %v7311_v29  ;;  %v7317_v54 = vld [vmem:[%s8245_s6 + $0x60] sm:$0xff] }
0x119f   :  { %2982 = vmatpush.msra.mxu1 %v7299_v36  ;;  %8637 = vst [vmem:[#allocation20_spill] sm:$0xff] %v7317_v54  ;;  %v7323_v36 = vld [vmem:[%s8245_s6 + $0x78] sm:$0xff] }
0x11a0   :  { %2516 = vmatpush.msra.mxu2 %v7305_v4  ;;  %8638 = vst [vmem:[#allocation24_spill] sm:$0xff] %v7323_v36  ;;  %v7329_v4 = vld [vmem:[%s8245_s6 + $0x38] sm:$0xff] }
0x11a1   :  { %2983 = vmatpush.msra.mxu1 %v7311_v29  ;;  %8639 = vst [vmem:[#allocation27_spill] sm:$0xff] %v7329_v4  ;;  %v7335_v29 = vld [vmem:[%s8245_s6 + $0x50] sm:$0xff] }
0x11a2   :  { %2517 = vmatpush.msra.mxu2 %v7317_v54  ;;  %8640 = vst [vmem:[#allocation30_spill] sm:$0xff] %v7335_v29  ;;  %v7341_v54 = vld [vmem:[%s8245_s6 + $0x10] sm:$0xff] }
0x11a3   :  { %2984 = vmatpush.msra.mxu1 %v7323_v36  ;;  %8641 = vst [vmem:[#allocation33_spill] sm:$0xff] %v7341_v54  ;;  %v7366_v36 = vld [vmem:[%s8244_s5 + $0x8] sm:$0xff] }
0x11a4   :  { %2518 = vmatpush.msra.mxu2 %v7329_v4  ;;  %v7348_v4 = vld [vmem:[%s8245_s6 + $0x28] sm:$0xff]  ;;  %8645 = vst [vmem:[#allocation42_spill] sm:$0xff] %v7366_v36 }
0x11a5   :  { %2985 = vmatpush.msra.mxu1 %v7335_v29  ;;  %8642 = vst [vmem:[#allocation36_spill] sm:$0xff] %v7348_v4  ;;  %v7354_v29 = vld [vmem:[%s8244_s5 + $0x30] sm:$0xff] }
0x11a6   :  { %2519 = vmatpush.msra.mxu2 %v7341_v54  ;;  %8643 = vst [vmem:[#allocation39_spill] sm:$0xff] %v7354_v29  ;;  %v7360_v54 = vld [vmem:[%s8245_s6] sm:$0xff] }
0x11a7   :  { %2520 = vmatmul.f32.vlgmr.msra.gmra.mxu2 %v7112_v61  ;;  %2986 = vmatpush.msra.mxu1 %v7348_v4  ;;  %8644 = vst [vmem:[#allocation41_spill] sm:$0xff] %v7360_v54  ;;  %v7372_v4 = vld [vmem:[%s8244_s5 + $0x40] sm:$0xff] }
0x11a8   :  { %2661 = vmatpush.msrb.mxu2 %v7354_v29  ;;  %8646 = vst [vmem:[#allocation43_spill] sm:$0xff] %v7372_v4  ;;  %v7378_v29 = vld [vmem:[%s8244_s5 + $0x18] sm:$0xff] }
0x11a9   :  { %2987 = vmatpush.msra.mxu1 %v7360_v54  ;;  %8647 = vst [vmem:[#allocation44_spill] sm:$0xff] %v7378_v29 }
0x11aa   :  { %2662 = vmatpush.msrb.mxu2 %v7366_v36 }
0x11ac   :  { %2701 = vmatpush.msra.mxu2 %v7372_v4 }
0x11ae   :  { %2702 = vmatpush.msra.mxu2 %v7378_v29 }
0x11fd   :  { %v2441_v59 = vpop.f32.mrf.mxu1 }
0x1202   :  { %v2365_v54 = vpop.f32.mrf.mxu2 }
0x1203   :  { %v2345_v60 = vpop.f32.mrf.mxu3 }
0x1204   :  { %v2346_v62 = vadd.f32 %v6802_v41, %v2345_v60 }
0x1206   :  { %v2366_v30 = vadd.f32 %v2365_v54, %v2346_v62 }
0x1208   :  { %2369 = vst.msk [vmem:[#allocation4 + $0x10] sm:$0xf] %vm168_vm11, %v2366_v30  ;;  %v2370_v36 = vsel %vm168_vm11, %v2366_v30, -inf }
0x1209   :  { %2371 = vmax.xlane.f32.xlu0 %v2370_v36 }
0x120a   :  { %v2461_v8 = vpop.f32.mrf.mxu2 }
0x120b   :  { %v7384_v4 = vadd.f32 %v2461_v8, %v2441_v59 }
0x127c   :  { %v2372_v14 = vpop.xlane.xlu0 %2371 }
0x127d   :  { %vm2373_vm4 = vcmp.eq.f32.partialorder %v2366_v30, %v2372_v14  ;;  %v2398_v30 = vstv %s2397_s15 }
0x127e   :  { %v2374_v22 = vsel %vm2373_vm4, %v5819_v51, 32  ;;  %vm2399_vm7 = vcmp.eq.s32.totalorder %v2398_v30, 1  ;;  %v7458_v30 = vld [vmem:[%s8245_s6 + $0xe8] sm:$0xff] }
0x127f   :  { %v2375_v29 = vsel %vm168_vm11, %v2374_v22, 2147483647  ;;  %8648 = vst [vmem:[#allocation45_spill] sm:$0xff] %v7458_v30 }
0x1280   :  { %v2377_v13 = vshra.s32 %v2375_v29, 16  ;;  %v2376_v41 = vand.u32 65535, %v2375_v29  ;;  %v7397_v29 = vld [vmem:[%s8245_s6 + $0x278] sm:$0xff] }
0x1282   :  { %v2379_v21 = vcvt.s32.f32 %v2377_v13  ;;  %v2378_v60 = vcvt.s32.f32 %v2376_v41  ;;  %v4111_v13 = vld [vmem:[%s8240_s1 + $0x10] sm:$0xf] }
0x1283   :  { %v7403_v41 = vld [vmem:[%s8245_s6 + $0x250] sm:$0xff] }
0x1284   :  { %2380 = vmin.xlane.f32.xlu2 %v2379_v21 }
0x12f7   :  { %v2381_v62 = vpop.xlane.xlu2 %2380 }
0x12f8   :  { %vm2382_vm6 = vcmp.eq.f32.partialorder %v2379_v21, %v2381_v62  ;;  %v2387_v36 = vcvt.f32.s32 %v2381_v62  ;;  %v7415_v62 = vld [vmem:[%s8245_s6 + $0x200] sm:$0xff] }
0x12f9   :  { %v2383_v54 = vsel %vm2382_vm6, %v2378_v60, inf  ;;  %v7422_v60 = vld [vmem:[%s8245_s6 + $0x1d8] sm:$0xff] }
0x12fa   :  { %2384 = vmin.xlane.f32.xlu1 %v2383_v54  ;;  %v2388_v59 = vshll.u32 %v2387_v36, 16  ;;  %v7428_v54 = vld [vmem:[%s8245_s6 + $0x1b0] sm:$0xff]  ;;  %v7434_v36 = vld [vmem:[%s8245_s6 + $0x188] sm:$0xff] }
0x136d   :  { %v2385_v8 = vpop.xlane.xlu1 %2384 }
0x136e   :  { %v2386_v14 = vcvt.f32.s32 %v2385_v8  ;;  %v7440_v8 = vld [vmem:[%s8245_s6 + $0x160] sm:$0xff] }
0x1370   :  { %v2389_v10 = vadd.s32 %v2388_v59, %v2386_v14  ;;  %v7446_v59 = vld [vmem:[%s8245_s6 + $0x138] sm:$0xff]  ;;  %v7452_v14 = vld [vmem:[%s8245_s6 + $0x110] sm:$0xff] }
0x1372   :  { %vm2390_vm8 = vcmp.eq.s32.totalorder %v5819_v51, %v2389_v10  ;;  %v7409_v10 = vld [vmem:[%s8245_s6 + $0x228] sm:$0xff] }
0x1373   :  { %v4109_v21 = vsel %vm2390_vm8, 1.0, %v8539_v27 }
0x1374   :  { %v2400_v22 = vsel %vm2399_vm7, %v4111_v13, %v4109_v21  ;;  %v7464_v13 = vld [vmem:[%s8245_s6 + $0xc0] sm:$0xff]  ;;  %v7470_v21 = vld [vmem:[%s8245_s6 + $0x98] sm:$0xff] }
0x1375   :  { %4112 = vmatmul.msk.f32.vlgmr.msrb.gmra.mxu0 %vm173_vm0, %v2400_v22  ;;  %8649 = vst [vmem:[#allocation46_spill] sm:$0xff] %v7464_v13  ;;  %v7476_v22 = vld [vmem:[%s8245_s6 + $0x70] sm:$0xff] }
0x1376   :  { %2584 = vmatpush.msrb.mxu0 %v7397_v29 }
0x1378   :  { %2585 = vmatpush.msrb.mxu0 %v7403_v41 }
0x137a   :  { %2586 = vmatpush.msrb.mxu0 %v7409_v10 }
0x137c   :  { %2587 = vmatpush.msrb.mxu0 %v7415_v62 }
0x137d   :  { %2480 = vmatmul.f32.vlgmr.msra.gmra.mxu0 %v7112_v61 }
0x137e   :  { %2588 = vmatpush.msrb.mxu0 %v7422_v60 }
0x1380   :  { %2589 = vmatpush.msrb.mxu0 %v7428_v54 }
0x1382   :  { %2590 = vmatpush.msrb.mxu0 %v7434_v36 }
0x1384   :  { %2591 = vmatpush.msrb.mxu0 %v7440_v8 }
0x1386   :  { %2592 = vmatpush.msrb.mxu0 %v7446_v59 }
0x1388   :  { %2593 = vmatpush.msrb.mxu0 %v7452_v14 }
0x138a   :  { %2594 = vmatpush.msrb.mxu0 %v7458_v30  ;;  %v7482_v30 = vld [vmem:[%s8245_s6 + $0x48] sm:$0xff] }
0x138c   :  { %2595 = vmatpush.msrb.mxu0 %v7464_v13  ;;  %v7488_v13 = vld [vmem:[%s8245_s6 + $0x20] sm:$0xff] }
0x138e   :  { %2596 = vmatpush.msrb.mxu0 %v7470_v21 }
0x1390   :  { %2597 = vmatpush.msrb.mxu0 %v7476_v22 }
0x1392   :  { %2598 = vmatpush.msrb.mxu0 %v7482_v30 }
0x1394   :  { %2599 = vmatpush.msrb.mxu0 %v7488_v13 }
0x1395   :  { %2600 = vmatmul.f32.vlgmr.msrb.gmra.mxu0 %v7112_v61  ;;  %v8671_v61 = vld [vmem:[#allocation21_spill] sm:$0xff] }
0x1396   :  { %2964 = vmatpush.msra.mxu0 %v6838_v40 }
0x1398   :  { %2965 = vmatpush.msra.mxu0 %v6844_v24  ;;  %v7518_v24 = vld [vmem:[%s8247_s8 + $0x78] sm:$0xff] }
0x139a   :  { %2966 = vmatpush.msra.mxu0 %v6850_v0  ;;  %v7525_v0 = vld [vmem:[%s8247_s8 + $0x88] sm:$0xff] }
0x139c   :  { %2967 = vmatpush.msra.mxu0 %v6856_v26  ;;  %v7531_v26 = vld [vmem:[%s8247_s8 + $0x70] sm:$0xff] }
0x139e   :  { %3012 = vmatpush.msrb.mxu0 %v6862_v43  ;;  %v7538_v43 = vld [vmem:[%s8247_s8 + $0x80] sm:$0xff] }
0x13a0   :  { %3013 = vmatpush.msrb.mxu0 %v6868_v7  ;;  %v7544_v7 = vld [vmem:[%s8247_s8 + $0x68] sm:$0xff] }
0x13a2   :  { %3014 = vmatpush.msrb.mxu0 %v6874_v42  ;;  %v7551_v42 = vld [vmem:[%s8247_s8 + $0x60] sm:$0xff] }
0x13a4   :  { %3015 = vmatpush.msrb.mxu0 %v6880_v23  ;;  %v7559_v23 = vld [vmem:[%s8247_s8 + $0x58] sm:$0xff] }
0x13a5   :  { %8650 = vst [vmem:[#allocation47_spill] sm:$0xff] %v7559_v23 }
0x13a6   :  { %3016 = vmatpush.msrb.mxu0 %v6886_v2  ;;  %v7567_v2 = vld [vmem:[%s8247_s8 + $0x50] sm:$0xff] }
0x13a7   :  { %8651 = vst [vmem:[#allocation53_spill] sm:$0xff] %v7567_v2 }
0x13a8   :  { %3017 = vmatpush.msrb.mxu0 %v6892_v63  ;;  %v7575_v63 = vld [vmem:[%s8247_s8 + $0x48] sm:$0xff] }
0x13a9   :  { %8652 = vst [vmem:[#allocation54_spill] sm:$0xff] %v7575_v63 }
0x13aa   :  { %3018 = vmatpush.msrb.mxu0 %v6898_v58  ;;  %v7582_v58 = vld [vmem:[%s8247_s8 + $0x40] sm:$0xff] }
0x13ab   :  { %8653 = vst [vmem:[#allocation55_spill] sm:$0xff] %v7582_v58 }
0x13ac   :  { %3019 = vmatpush.msrb.mxu0 %v6904_v1  ;;  %v8654_v1 = vld [vmem:[#allocation10_spill] sm:$0xff] }
0x13ae   :  { %3020 = vmatpush.msrb.mxu0 %v6910_v5  ;;  %v7589_v5 = vld [vmem:[%s8247_s8 + $0x38] sm:$0xff] }
0x13af   :  { %8655 = vst [vmem:[#allocation9_spill] sm:$0xff] %v7589_v5 }
0x13b0   :  { %3021 = vmatpush.msrb.mxu0 %v6916_v17  ;;  %v8656_v17 = vld [vmem:[#allocation13_spill] sm:$0xff] }
0x13b2   :  { %3022 = vmatpush.msrb.mxu0 %v6922_v46  ;;  %v7596_v46 = vld [vmem:[%s8247_s8 + $0x30] sm:$0xff] }
0x13b3   :  { %8657 = vst [vmem:[#allocation8_spill] sm:$0xff] %v7596_v46 }
0x13b4   :  { %3023 = vmatpush.msrb.mxu0 %v6928_v33  ;;  %v8658_v33 = vld [vmem:[#allocation12_spill] sm:$0xff] }
0x13b6   :  { %3024 = vmatpush.msrb.mxu0 %v6934_v52  ;;  %v7603_v52 = vld [vmem:[%s8247_s8 + $0x28] sm:$0xff] }
0x13b7   :  { %8659 = vst [vmem:[#allocation56_spill] sm:$0xff] %v7603_v52 }
0x13b8   :  { %3025 = vmatpush.msrb.mxu0 %v6940_v6  ;;  %v8660_v6 = vld [vmem:[#allocation15_spill] sm:$0xff] }
0x13ba   :  { %3026 = vmatpush.msrb.mxu0 %v6946_v28  ;;  %v7610_v28 = vld [vmem:[%s8247_s8 + $0x20] sm:$0xff] }
0x13bb   :  { %8661 = vst [vmem:[#allocation57_spill] sm:$0xff] %v7610_v28 }
0x13bc   :  { %3027 = vmatpush.msrb.mxu0 %v6952_v35  ;;  %v8662_v35 = vld [vmem:[#allocation18_spill] sm:$0xff] }
0x13f2   :  { %v2421_v40 = vpop.f32.mrf.mxu0 }
0x13f3   :  { %4118 = vmatmul.msk.f32.vlgmr.msrb.gmra.mxu3 %vm202_vm1, %v2421_v40  ;;  %4119 = vmatmul.msk.f32.vlgmr.msrb.gmra.mxu2 %vm202_vm1, %v2421_v40 }
0x13f4   :  { %4122 = vmatmul.msk.f32.vlgmr.msrb.gmra.mxu1 %vm202_vm1, %v2421_v40  ;;  %2876 = vmatpush.msrb.mxu3 %v7518_v24 }
0x13f5   :  { %3092 = vmatpush.msrb.mxu1 %v6962_v16  ;;  %2910 = vmatpush.msrb.mxu2 %v7525_v0  ;;  %v7617_v16 = vld [vmem:[%s8247_s8 + $0x18] sm:$0xff] }
0x13f6   :  { %2877 = vmatpush.msrb.mxu3 %v7531_v26  ;;  %8663 = vst [vmem:[#allocation58_spill] sm:$0xff] %v7617_v16 }
0x13f7   :  { %3093 = vmatpush.msrb.mxu1 %v6970_v12  ;;  %2911 = vmatpush.msrb.mxu2 %v7538_v43  ;;  %v8664_v12 = vld [vmem:[#allocation16_spill] sm:$0xff] }
0x13f8   :  { %2878 = vmatpush.msrb.mxu3 %v7544_v7 }
0x13f9   :  { %3094 = vmatpush.msrb.mxu1 %v6978_v38  ;;  %v7624_v38 = vld [vmem:[%s8247_s8 + $0x10] sm:$0xff] }
0x13fa   :  { %2879 = vmatpush.msrb.mxu3 %v7551_v42  ;;  %8665 = vst [vmem:[#allocation59_spill] sm:$0xff] %v7624_v38 }
0x13fb   :  { %4120 = vmatmul.msk.f32.vlgmr.msra.gmra.mxu3 %vm202_vm1, %v2421_v40  ;;  %4121 = vmatmul.msk.f32.vlgmr.msra.gmra.mxu2 %vm202_vm1, %v2421_v40  ;;  %v7661_v40 = vld [vmem:[%s8245_s6 + $0x18] sm:$0xff] }
0x13fc   :  { %2880 = vmatpush.msrb.mxu3 %v7559_v23  ;;  %3095 = vmatpush.msrb.mxu1 %v6988_v44  ;;  %v7630_v44 = vld [vmem:[%s8245_s6 + $0x90] sm:$0xff]  ;;  %8672 = vst [vmem:[#allocation18_spill] sm:$0xff] %v7661_v40 }
0x13fd   :  { %3006 = vmatpush.msra.mxu2 %v6994_v31  ;;  %8666 = vst [vmem:[#allocation11_spill] sm:$0xff] %v7630_v44  ;;  %v7636_v31 = vld [vmem:[%s8247_s8 + $0x8] sm:$0xff] }
0x13fe   :  { %2881 = vmatpush.msrb.mxu3 %v7567_v2  ;;  %3096 = vmatpush.msrb.mxu1 %v7001_v45  ;;  %8667 = vst [vmem:[#allocation10_spill] sm:$0xff] %v7636_v31  ;;  %v7642_v45 = vld [vmem:[%s8245_s6 + $0x68] sm:$0xff] }
0x13ff   :  { %3007 = vmatpush.msra.mxu2 %v7007_v48  ;;  %8668 = vst [vmem:[#allocation13_spill] sm:$0xff] %v7642_v45  ;;  %v7648_v48 = vld [vmem:[%s8247_s8] sm:$0xff] }
0x1400   :  { %2882 = vmatpush.msrb.mxu3 %v7575_v63  ;;  %3097 = vmatpush.msrb.mxu1 %v7014_v57  ;;  %8669 = vst [vmem:[#allocation12_spill] sm:$0xff] %v7648_v48  ;;  %v7654_v57 = vld [vmem:[%s8245_s6 + $0x40] sm:$0xff] }
0x1401   :  { %8670 = vst [vmem:[#allocation15_spill] sm:$0xff] %v7654_v57 }
0x1402   :  { %2883 = vmatpush.msrb.mxu3 %v7582_v58  ;;  %3098 = vmatpush.msrb.mxu1 %v8654_v1  ;;  %v8673_v1 = vld [vmem:[#allocation22_spill] sm:$0xff] }
0x1404   :  { %2884 = vmatpush.msrb.mxu3 %v7589_v5  ;;  %3099 = vmatpush.msrb.mxu1 %v8656_v17  ;;  %v2541_v17 = vpop.f32.mrf.mxu3 }
0x1406   :  { %2885 = vmatpush.msrb.mxu3 %v7596_v46  ;;  %3100 = vmatpush.msrb.mxu1 %v8658_v33 }
0x1408   :  { %2886 = vmatpush.msrb.mxu3 %v7603_v52  ;;  %3101 = vmatpush.msrb.mxu1 %v8660_v6  ;;  %v2501_v6 = vpop.f32.mrf.mxu2 }
0x140a   :  { %2887 = vmatpush.msrb.mxu3 %v7610_v28  ;;  %3102 = vmatpush.msrb.mxu1 %v8662_v35 }
0x140c   :  { %2888 = vmatpush.msrb.mxu3 %v7617_v16  ;;  %3103 = vmatpush.msrb.mxu1 %v8664_v12  ;;  %v2581_v33 = vpop.f32.mrf.mxu3 }
0x140e   :  { %2889 = vmatpush.msrb.mxu3 %v7624_v38  ;;  %3104 = vmatpush.msrb.mxu1 %v7630_v44 }
0x1410   :  { %2890 = vmatpush.msrb.mxu3 %v7636_v31  ;;  %3105 = vmatpush.msrb.mxu1 %v7642_v45  ;;  %v2521_v12 = vpop.f32.mrf.mxu2 }
0x1411   :  { %v2542_v44 = vadd.f32 %v2541_v17, %v2521_v12 }
0x1412   :  { %2891 = vmatpush.msrb.mxu3 %v7648_v48  ;;  %3106 = vmatpush.msrb.mxu1 %v7654_v57 }
0x1414   :  { %3086 = vmatpush.msra.mxu3 %v8671_v61  ;;  %3107 = vmatpush.msrb.mxu1 %v7661_v40  ;;  %v7665_v35 = vpop.f32.mrf.mxu3  ;;  %v2561_v61 = vpop.f32.mrf.mxu1  ;;  %v8674_v40 = vld [vmem:[#allocation49_spill] sm:$0xff] }
0x1415   :  { %v2582_v31 = vadd.f32 %v2581_v33, %v2561_v61  ;;  %v8676_v33 = vld [vmem:[#allocation52_spill] sm:$0xff] }
0x1416   :  { %3087 = vmatpush.msra.mxu3 %v8673_v1  ;;  %v8675_v1 = vld [vmem:[#allocation50_spill] sm:$0xff] }
0x1476   :  { %v2644_v48 = vpop.f32.mrf.mxu3  ;;  %v2664_v45 = vpop.f32.mrf.mxu2 }
0x1477   :  { %v2645_v57 = vadd.f32 %v2644_v48, %v7384_v4  ;;  %v2481_v4 = vpop.f32.mrf.mxu0 }
0x1478   :  { %v2502_v48 = vadd.f32 %v2501_v6, %v2481_v4 }
0x147a   :  { %v2665_v17 = vadd.f32 %v2664_v45, %v2502_v48 }
0x147e   :  { %v2684_v38 = vpop.f32.mrf.mxu3  ;;  %v2704_v16 = vpop.f32.mrf.mxu2 }
0x147f   :  { %v2685_v28 = vadd.f32 %v2684_v38, %v2542_v44  ;;  %v2705_v52 = vadd.f32 %v2704_v16, %v2582_v31  ;;  %v2728_v38 = vadd.f32 %v2665_v17, %v8676_v33 }
0x1481   :  { %v2729_v46 = vadd.f32 %v2685_v28, %v8674_v40  ;;  %v7670_v5 = vadd.f32 %v2705_v52, %v8675_v1  ;;  %v4124_v16 = vmul.f32 -1.442695, %v2728_v38  ;;  %v8677_v52 = vld [vmem:[#allocation51_spill] sm:$0xff] }
0x1482   :  { %v2727_v31 = vadd.f32 %v2645_v57, %v8677_v52 }
0x1483   :  { %4291 = vtanh.f32 %v2729_v46 }
0x1484   :  { %4293 = vtanh.f32 %v7670_v5  ;;  %v4123_v61 = vmul.f32 -1.442695, %v2727_v31 }
0x1485   :  { %4295 = vpow2.f32 %v4124_v16 }
0x1489   :  { %v4292_v58 = vpop.eup %4291 }
0x148a   :  { %v4294_v63 = vpop.eup %4293  ;;  %2833 = vrot.lane.b32.xlu0 %v4292_v58, %s4772_s7 }
0x148b   :  { %2835 = vrot.lane.b32.xlu2 %v4294_v63, %s4772_s7  ;;  %v4296_v28 = vpop.eup %4295 }
0x148c   :  { %v2739_v44 = vadd.f32 1.0, %v4296_v28 }
0x148e   :  { %4297 = vrcp.f32 %v2739_v44  ;;  %v2766_v45 = vand.u32 2147483648, %v2739_v44  ;;  %vm2760_vm12 = vweird.f32 %v2739_v44  ;;  %v2764_v6 = vand.u32 2147483647, %v2739_v44 }
0x148f   :  { %4299 = vpow2.f32 %v4123_v61 }
0x1490   :  { %v2767_v48 = vor.u32 1.1754944e-38, %v2766_v45  ;;  %vm2765_vm14 = vcmp.eq.f32.partialorder %v2764_v6, 8.507059e+37 }
0x1494   :  { %v4298_v12 = vpop.eup %4297 }
0x1495   :  { %v2756_v1 = vmul.f32 %v4298_v12, %v2739_v44  ;;  %v4300_v58 = vpop.eup %4299  ;;  %vm2761_vm9 = vweird.f32 %v4298_v12 }
0x1496   :  { %v2738_v63 = vadd.f32 1.0, %v4300_v58  ;;  %vm2762_vm13 = vmor %vm2760_vm12, %vm2761_vm9 }
0x1497   :  { %v2757_v40 = vsub.f32 1.0, %v2756_v1 }
0x1498   :  { %4301 = vrcp.f32 %v2738_v63  ;;  %vm2745_vm2 = vweird.f32 %v2738_v63  ;;  %v2749_v61 = vand.u32 2147483647, %v2738_v63 }
0x1499   :  { %v2758_v2 = vmul.f32 %v4298_v12, %v2757_v40 }
0x149a   :  { %vm2750_vm4 = vcmp.eq.f32.partialorder %v2749_v61, 8.507059e+37 }
0x149b   :  { %v2759_v23 = vadd.f32 %v4298_v12, %v2758_v2  ;;  %v2751_v2 = vand.u32 2147483648, %v2738_v63 }
0x149d   :  { %v2763_v4 = vsel %vm2762_vm13, %v4298_v12, %v2759_v23  ;;  %v2752_v58 = vor.u32 1.1754944e-38, %v2751_v2 }
0x149e   :  { %v2768_v57 = vsel %vm2765_vm14, %v2767_v48, %v2763_v4  ;;  %v4302_v16 = vpop.eup %4301  ;;  %v4125_v4 = vmul.f32 -1.442695, %v2729_v46 }
0x149f   :  { %v2741_v1 = vmul.f32 %v4302_v16, %v2738_v63  ;;  %vm2746_vm15 = vweird.f32 %v4302_v16  ;;  %v2829_v46 = vmul.f32 %v2768_v57, %v7094_v55  ;;  %v4126_v55 = vmul.f32 -1.442695, %v7670_v5 }
0x14a0   :  { %vm2747_vm3 = vmor %vm2745_vm2, %vm2746_vm15  ;;  %4303 = vpow2.f32 %v4125_v4 }
0x14a1   :  { %v2742_v28 = vsub.f32 1.0, %v2741_v1 }
0x14a3   :  { %v2743_v40 = vmul.f32 %v4302_v16, %v2742_v28 }
0x14a5   :  { %v2744_v31 = vadd.f32 %v4302_v16, %v2743_v40 }
0x14a6   :  { %v4304_v48 = vpop.eup %4303 }
0x14a7   :  { %v2748_v44 = vsel %vm2747_vm3, %v4302_v16, %v2744_v31 }
0x14a8   :  { %v2753_v12 = vsel %vm2750_vm4, %v2752_v58, %v2748_v44 }
0x14e5   :  { %v2836_v17 = vpop.permute.xlu2 %2835 }
0x14e6   :  { %v2841_v38 = vmul.f32 %v2836_v17, %v2768_v57  ;;  %v2601_v57 = vpop.f32.mrf.mxu0 }
0x14e8   :  { %2846 = vrot.lane.b32.xlu0 %v2841_v38, %s4771_s2  ;;  %v2773_v38 = vadd.f32 1.0, %v4304_v48 }
0x14ea   :  { %4305 = vrcp.f32 %v2773_v38  ;;  %v2785_v16 = vand.u32 2147483648, %v2773_v38  ;;  %vm2779_vm7 = vweird.f32 %v2773_v38  ;;  %v2783_v31 = vand.u32 2147483647, %v2773_v38 }
0x14ec   :  { %vm2784_vm9 = vcmp.eq.f32.partialorder %v2783_v31, 8.507059e+37 }
0x14f0   :  { %v4306_v1 = vpop.eup %4305 }
0x14f1   :  { %v2775_v28 = vmul.f32 %v4306_v1, %v2773_v38  ;;  %vm2780_vm6 = vweird.f32 %v4306_v1  ;;  %v2724_v38 = vpop.f32.mrf.mxu1 }
0x14f2   :  { %vm2781_vm8 = vmor %vm2779_vm7, %vm2780_vm6 }
0x14f3   :  { %v2776_v40 = vsub.f32 1.0, %v2775_v28 }
0x14f5   :  { %v2777_v63 = vmul.f32 %v4306_v1, %v2776_v40 }
0x14f7   :  { %v2778_v52 = vadd.f32 %v4306_v1, %v2777_v63 }
0x14f9   :  { %v2782_v2 = vsel %vm2781_vm8, %v4306_v1, %v2778_v52  ;;  %v2622_v1 = vadd.f32 %v7665_v35, %v2601_v57 }
0x14fb   :  { %v2725_v28 = vadd.f32 %v2724_v38, %v2622_v1 }
0x14fc   :  { %v2834_v23 = vpop.permute.xlu0 %2833 }
0x14fd   :  { %v2837_v45 = vsel %vm640_vm5, %v2834_v23, %v2836_v17  ;;  %v2786_v17 = vor.u32 1.1754944e-38, %v2785_v16  ;;  %v2731_v40 = vadd.f32 %v2725_v28, %v8508_v20 }
0x14fe   :  { %v2840_v6 = vmul.f32 %v2837_v45, %v2753_v12 }
0x14ff   :  { %v2787_v61 = vsel %vm2784_vm9, %v2786_v17, %v2782_v2  ;;  %v4127_v16 = vmul.f32 -1.442695, %v2731_v40 }
0x1500   :  { %2844 = vrot.lane.b32.xlu1 %v2840_v6, %s4771_s2  ;;  %v2830_v58 = vmul.f32 %v2787_v61, %v7100_v3 }
0x155a   :  { %v2847_v44 = vpop.permute.xlu0 %2846 }
0x1572   :  { %v2845_v23 = vpop.permute.xlu1 %2844 }
0x1573   :  { %v2848_v12 = vsel %vm202_vm1, %v2845_v23, %v2847_v44  ;;  %v7683_v45 = vadd.f32 %v2845_v23, %v2829_v46 }
0x1574   :  { %v7685_v6 = vadd.f32 %v2848_v12, %v2830_v58 }
0x1575   :  { %4307 = vtanh.f32 %v7683_v45 }
0x1576   :  { %4309 = vtanh.f32 %v7685_v6 }
0x1577   :  { %4311 = vpow2.f32 %v4126_v55 }
0x157b   :  { %v4308_v52 = vpop.eup %4307 }
0x157c   :  { %v4310_v4 = vpop.eup %4309  ;;  %2857 = vrot.lane.b32.xlu2 %v4308_v52, %s4773_s29 }
0x157d   :  { %2859 = vrot.lane.b32.xlu0 %v4310_v4, %s4773_s29  ;;  %v4312_v3 = vpop.eup %4311 }
0x157e   :  { %v2797_v48 = vadd.f32 1.0, %v4312_v3 }
0x1580   :  { %4313 = vrcp.f32 %v2797_v48  ;;  %v2810_v44 = vand.u32 2147483648, %v2797_v48  ;;  %vm2804_vm13 = vweird.f32 %v2797_v48  ;;  %v2808_v58 = vand.u32 2147483647, %v2797_v48 }
0x1581   :  { %4315 = vpow2.f32 %v4127_v16 }
0x1582   :  { %v2811_v35 = vor.u32 1.1754944e-38, %v2810_v44  ;;  %vm2809_vm15 = vcmp.eq.f32.partialorder %v2808_v58, 8.507059e+37  ;;  %v8688_v58 = vld [vmem:[#allocation38_spill] sm:$0xff] }
0x1586   :  { %v4314_v63 = vpop.eup %4313 }
0x1587   :  { %v2800_v31 = vmul.f32 %v4314_v63, %v2797_v48  ;;  %v4316_v61 = vpop.eup %4315  ;;  %vm2805_vm12 = vweird.f32 %v4314_v63 }
0x1588   :  { %v2798_v5 = vadd.f32 1.0, %v4316_v61  ;;  %vm2806_vm14 = vmor %vm2804_vm13, %vm2805_vm12 }
0x1589   :  { %v2801_v2 = vsub.f32 1.0, %v2800_v31 }
0x158a   :  { %4317 = vrcp.f32 %v2798_v5  ;;  %v2825_v28 = vand.u32 2147483648, %v2798_v5  ;;  %vm2819_vm3 = vweird.f32 %v2798_v5  ;;  %v2823_v40 = vand.u32 2147483647, %v2798_v5 }
0x158b   :  { %v2802_v17 = vmul.f32 %v4314_v63, %v2801_v2 }
0x158c   :  { %vm2824_vm6 = vcmp.eq.f32.partialorder %v2823_v40, 8.507059e+37  ;;  %v8700_v40 = vld [vmem:[#allocation39_spill] sm:$0xff] }
0x158d   :  { %v2803_v46 = vadd.f32 %v4314_v63, %v2802_v17 }
0x158f   :  { %v2807_v23 = vsel %vm2806_vm14, %v4314_v63, %v2803_v46  ;;  %v2826_v63 = vor.u32 1.1754944e-38, %v2825_v28  ;;  %v8699_v28 = vld [vmem:[#allocation36_spill] sm:$0xff] }
0x1590   :  { %v2812_v12 = vsel %vm2809_vm15, %v2811_v35, %v2807_v23  ;;  %v4318_v55 = vpop.eup %4317  ;;  %v8689_v23 = vld [vmem:[#allocation40_spill] sm:$0xff]  ;;  %v8690_v35 = vld [vmem:[#allocation19_spill] sm:$0xff] }
0x1591   :  { %v2815_v3 = vmul.f32 %v4318_v55, %v2798_v5  ;;  %vm2820_vm2 = vweird.f32 %v4318_v55  ;;  %v8687_v5 = vld [vmem:[#allocation48_spill] sm:$0xff] }
0x1592   :  { %vm2821_vm4 = vmor %vm2819_vm3, %vm2820_vm2 }
0x1593   :  { %v2816_v57 = vsub.f32 1.0, %v2815_v3  ;;  %v8695_v3 = vld [vmem:[#allocation24_spill] sm:$0xff] }
0x1595   :  { %v2817_v38 = vmul.f32 %v4318_v55, %v2816_v57  ;;  %v8696_v57 = vld [vmem:[#allocation27_spill] sm:$0xff] }
0x1597   :  { %v2818_v1 = vadd.f32 %v4318_v55, %v2817_v38  ;;  %v8697_v38 = vld [vmem:[#allocation30_spill] sm:$0xff] }
0x1599   :  { %v2822_v48 = vsel %vm2821_vm4, %v4318_v55, %v2818_v1  ;;  %v8694_v55 = vld [vmem:[#allocation20_spill] sm:$0xff]  ;;  %v8698_v1 = vld [vmem:[#allocation33_spill] sm:$0xff] }
0x159a   :  { %v2827_v31 = vsel %vm2824_vm6, %v2826_v63, %v2822_v48  ;;  %v8701_v48 = vld [vmem:[#allocation41_spill] sm:$0xff]  ;;  %v8702_v63 = vld [vmem:[#allocation42_spill] sm:$0xff] }
0x15d6   :  { %v2858_v52 = vpop.permute.xlu2 %2857 }
0x15d7   :  { %v2864_v4 = vmul.f32 %v2858_v52, %v2812_v12  ;;  %v8691_v12 = vld [vmem:[#allocation23_spill] sm:$0xff] }
0x15d9   :  { %2868 = vrot.lane.b32.xlu1 %v2864_v4, %s4774_s13  ;;  %v8693_v4 = vld [vmem:[#allocation17_spill] sm:$0xff] }
0x15ef   :  { %v2860_v16 = vpop.permute.xlu0 %2859 }
0x15f0   :  { %v2861_v2 = vsel %vm173_vm0, %v2858_v52, %v2860_v16  ;;  %v8692_v52 = vld [vmem:[#allocation14_spill] sm:$0xff]  ;;  %v8703_v16 = vld [vmem:[#allocation43_spill] sm:$0xff] }
0x15f1   :  { %v2865_v17 = vmul.f32 %v2861_v2, %v2827_v31  ;;  %v8704_v31 = vld [vmem:[#allocation44_spill] sm:$0xff] }
0x15f3   :  { %2870 = vrot.lane.b32.xlu2 %v2865_v17, %s4774_s13 }
0x164b   :  { %v2869_v61 = vpop.permute.xlu1 %2868 }
0x164d   :  { %v2871_v46 = vpop.permute.xlu2 %2870 }
0x164e   :  { %4128 = vmatmul.msk.f32.vlgmr.msrb.gmra.mxu2 %vm202_vm1, %v2871_v46  ;;  %v7699_v44 = vsel %vm679_vm10, %v2869_v61, %v2871_v46  ;;  %v7773_v61 = vld [vmem:[%s8248_s9] ss:$0 sm:$0xff] }
0x164f   :  { %2892 = vmatmul.f32.vlgmr.msrb.gmra.mxu3 %v7699_v44  ;;  %2988 = vmatmul.f32.vlgmr.msra.gmra.mxu1 %v7699_v44 }
0x1650   :  { %3046 = vmatpush.msrb.mxu2 %v7119_v47  ;;  %3126 = vmatpush.msrb.mxu3 %v7125_v18  ;;  %v4620_v47 = vld [vmem:[%s8245_s6 + $0x258] sm:$0xff]  ;;  %v4621_v18 = vld [vmem:[%s8245_s6 + $0x230] sm:$0xff] }
0x1651   :  { %3269 = vmatpush.msra.mxu1 %v7131_v39  ;;  %v4622_v39 = vld [vmem:[%s8245_s6 + $0x208] sm:$0xff] }
0x1652   :  { %3047 = vmatpush.msrb.mxu2 %v7137_v34  ;;  %3127 = vmatpush.msrb.mxu3 %v7143_v15  ;;  %v4623_v34 = vld [vmem:[%s8245_s6 + $0x1e0] sm:$0xff]  ;;  %v8678_v15 = vld [vmem:[#allocation25_spill] sm:$0xff] }
0x1653   :  { %3270 = vmatpush.msra.mxu1 %v7149_v32  ;;  %v4624_v32 = vld [vmem:[%s8245_s6 + $0x1b8] sm:$0xff] }
0x1656   :  { %4133 = vmatmul.msk.f32.vlgmr.msra.gmra.mxu2 %vm202_vm1, %v2871_v46 }
0x1657   :  { %3052 = vmatpush.msra.mxu2 %v7156_v49  ;;  %4135 = vmatmul.msk.f32.vlgmr.msra.gmra.mxu3 %vm202_vm1, %v2871_v46  ;;  %v8679_v49 = vld [vmem:[#allocation26_spill] sm:$0xff] }
0x1658   :  { %3108 = vmatmul.f32.vlgmr.msrb.gmra.mxu1 %v7699_v44  ;;  %3166 = vmatpush.msra.mxu3 %v7164_v19  ;;  %v4625_v19 = vld [vmem:[%s8245_s6 + $0x190] sm:$0xff] }
0x1659   :  { %3053 = vmatpush.msra.mxu2 %v7170_v50  ;;  %3520 = vmatpush.msrb.mxu1 %v4620_v47  ;;  %v8680_v50 = vld [vmem:[#allocation29_spill] sm:$0xff] }
0x165a   :  { %3167 = vmatpush.msra.mxu3 %v7177_v11  ;;  %v8681_v11 = vld [vmem:[#allocation28_spill] sm:$0xff] }
0x165b   :  { %3054 = vmatpush.msra.mxu2 %v7183_v37  ;;  %3521 = vmatpush.msrb.mxu1 %v4621_v18  ;;  %v8682_v37 = vld [vmem:[#allocation32_spill] sm:$0xff] }
0x165d   :  { %3055 = vmatpush.msra.mxu2 %v7190_v25  ;;  %3522 = vmatpush.msrb.mxu1 %v4622_v39  ;;  %v8683_v25 = vld [vmem:[#allocation31_spill] sm:$0xff] }
0x165e   :  { %4134 = vmatmul.msk.f32.vlgmr.msrb.gmra.mxu2 %vm202_vm1, %v2871_v46 }
0x165f   :  { %3056 = vmatpush.msra.mxu2 %v7198_v56  ;;  %4136 = vmatmul.msk.f32.vlgmr.msrb.gmra.mxu3 %vm202_vm1, %v2871_v46  ;;  %v8684_v56 = vld [vmem:[#allocation35_spill] sm:$0xff] }
0x1660   :  { %3189 = vmatpush.msrb.mxu3 %v7205_v9  ;;  %3523 = vmatpush.msrb.mxu1 %v4623_v34  ;;  %v8685_v9 = vld [vmem:[#allocation34_spill] sm:$0xff] }
0x1661   :  { %3057 = vmatpush.msra.mxu2 %v7212_v53  ;;  %v8686_v53 = vld [vmem:[#allocation37_spill] sm:$0xff] }
0x1662   :  { %3190 = vmatpush.msrb.mxu3 %v8678_v15  ;;  %3524 = vmatpush.msrb.mxu1 %v4624_v32 }
0x1663   :  { %3058 = vmatpush.msra.mxu2 %v8679_v49 }
0x1664   :  { %3525 = vmatpush.msrb.mxu1 %v4625_v19 }
0x1665   :  { %3059 = vmatpush.msra.mxu2 %v8680_v50 }
0x1666   :  { %3526 = vmatpush.msrb.mxu1 %v8681_v11 }
0x1667   :  { %3060 = vmatpush.msra.mxu2 %v8682_v37  ;;  %4137 = vmatmul.msk.f32.vlgmr.msra.gmra.mxu3 %vm202_vm1, %v2871_v46 }
0x1668   :  { %3229 = vmatpush.msra.mxu3 %v8683_v25  ;;  %3527 = vmatpush.msrb.mxu1 %v8684_v56 }
0x1669   :  { %3061 = vmatpush.msra.mxu2 %v8685_v9 }
0x166a   :  { %3230 = vmatpush.msra.mxu3 %v8686_v53  ;;  %3528 = vmatpush.msrb.mxu1 %v8687_v5 }
0x166b   :  { %3062 = vmatpush.msra.mxu2 %v8688_v58 }
0x166c   :  { %3529 = vmatpush.msrb.mxu1 %v8689_v23 }
0x166d   :  { %3063 = vmatpush.msra.mxu2 %v8690_v35  ;;  %v2946_v35 = vstv %s2945_s27 }
0x166e   :  { %3530 = vmatpush.msrb.mxu1 %v8691_v12  ;;  %vm2947_vm9 = vcmp.eq.s32.totalorder %v2946_v35, 1  ;;  %v8721_v35 = vld [vmem:[#allocation15_spill] sm:$0xff] }
0x166f   :  { %3064 = vmatpush.msra.mxu2 %v8692_v52  ;;  %v4131_v52 = vld [vmem:[%s8240_s1 + $0x14] sm:$0xf] }
0x1670   :  { %3531 = vmatpush.msrb.mxu1 %v8693_v4 }
0x1671   :  { %3065 = vmatpush.msra.mxu2 %v8694_v55 }
0x1672   :  { %3532 = vmatpush.msrb.mxu1 %v8695_v3  ;;  %v4640_v3 = vld [vmem:[%s8245_s6 + $0xf8] sm:$0xff] }
0x1673   :  { %3066 = vmatpush.msra.mxu2 %v8696_v57  ;;  %v4641_v57 = vld [vmem:[%s8245_s6 + $0xd0] sm:$0xff] }
0x1674   :  { %3533 = vmatpush.msrb.mxu1 %v8697_v38  ;;  %v4642_v38 = vld [vmem:[%s8245_s6 + $0xa8] sm:$0xff] }
0x1675   :  { %3067 = vmatpush.msra.mxu2 %v8698_v1  ;;  %v4643_v1 = vld [vmem:[%s8245_s6 + $0x80] sm:$0xff] }
0x1676   :  { %3068 = vmatmul.f32.vlgmr.msra.gmra.mxu2 %v7699_v44  ;;  %3534 = vmatpush.msrb.mxu1 %v8699_v28  ;;  %v4644_v28 = vld [vmem:[%s8245_s6 + $0x58] sm:$0xff] }
0x1677   :  { %3209 = vmatpush.msrb.mxu2 %v8700_v40  ;;  %v4645_v40 = vld [vmem:[%s8245_s6 + $0x30] sm:$0xff] }
0x1678   :  { %3535 = vmatpush.msrb.mxu1 %v8701_v48  ;;  %v4646_v48 = vld [vmem:[%s8245_s6 + $0x8] sm:$0xff] }
0x1679   :  { %3210 = vmatpush.msrb.mxu2 %v8702_v63 }
0x167b   :  { %3249 = vmatpush.msra.mxu2 %v8703_v16  ;;  %v4647_v16 = vld [vmem:[%s8245_s6 + $0x270] sm:$0xff] }
0x167d   :  { %3250 = vmatpush.msra.mxu2 %v8704_v31  ;;  %v4648_v31 = vld [vmem:[%s8245_s6 + $0x248] sm:$0xff] }
0x16cc   :  { %v2989_v39 = vpop.f32.mrf.mxu1 }
0x16d1   :  { %v2913_v2 = vpop.f32.mrf.mxu2 }
0x16d2   :  { %v2893_v17 = vpop.f32.mrf.mxu3 }
0x16d3   :  { %v2894_v46 = vadd.f32 %v7773_v61, %v2893_v17  ;;  %v8709_v17 = vld [vmem:[#allocation54_spill] sm:$0xff] }
0x16d5   :  { %v2914_v47 = vadd.f32 %v2913_v2, %v2894_v46  ;;  %v4653_v2 = vld [vmem:[%s8245_s6 + $0x280] sm:$0xff]  ;;  %v4654_v46 = vld [vmem:[%s8245_s6 + $0x1a8] sm:$0xff] }
0x16d7   :  { %2917 = vst.msk [vmem:[#allocation4 + $0x14] sm:$0xf] %vm168_vm11, %v2914_v47  ;;  %v2918_v18 = vsel %vm168_vm11, %v2914_v47, -inf }
0x16d8   :  { %2919 = vmax.xlane.f32.xlu0 %v2918_v18  ;;  %v4655_v18 = vld [vmem:[%s8245_s6 + $0x180] sm:$0xff] }
0x16d9   :  { %v3009_v34 = vpop.f32.mrf.mxu2 }
0x16da   :  { %v7778_v15 = vadd.f32 %v3009_v34, %v2989_v39  ;;  %v8711_v39 = vld [vmem:[#allocation9_spill] sm:$0xff]  ;;  %v4656_v34 = vld [vmem:[%s8245_s6 + $0x158] sm:$0xff] }
0x174b   :  { %v2920_v32 = vpop.xlane.xlu0 %2919 }
0x174c   :  { %vm2921_vm7 = vcmp.eq.f32.partialorder %v2914_v47, %v2920_v32  ;;  %v8710_v47 = vld [vmem:[#allocation55_spill] sm:$0xff]  ;;  %v8712_v32 = vld [vmem:[#allocation8_spill] sm:$0xff] }
0x174d   :  { %v2922_v49 = vsel %vm2921_vm7, %v5819_v51, 32 }
0x174e   :  { %v2923_v19 = vsel %vm168_vm11, %v2922_v49, 2147483647  ;;  %v4657_v49 = vld [vmem:[%s8245_s6 + $0x130] sm:$0xff] }
0x174f   :  { %v2925_v50 = vshra.s32 %v2923_v19, 16  ;;  %v2924_v37 = vand.u32 65535, %v2923_v19  ;;  %v8713_v19 = vld [vmem:[#allocation56_spill] sm:$0xff] }
0x1751   :  { %v2927_v11 = vcvt.s32.f32 %v2925_v50  ;;  %v2926_v56 = vcvt.s32.f32 %v2924_v37  ;;  %v4658_v50 = vld [vmem:[%s8245_s6 + $0x108] sm:$0xff]  ;;  %v4659_v37 = vld [vmem:[%s8245_s6 + $0xe0] sm:$0xff] }
0x1753   :  { %2928 = vmin.xlane.f32.xlu1 %v2927_v11 }
0x17c6   :  { %v2929_v25 = vpop.xlane.xlu1 %2928 }
0x17c7   :  { %vm2930_vm8 = vcmp.eq.f32.partialorder %v2927_v11, %v2929_v25  ;;  %v2935_v53 = vcvt.f32.s32 %v2929_v25  ;;  %v8714_v11 = vld [vmem:[#allocation57_spill] sm:$0xff]  ;;  %v8715_v25 = vld [vmem:[#allocation58_spill] sm:$0xff] }
0x17c8   :  { %v2931_v9 = vsel %vm2930_vm8, %v2926_v56, inf  ;;  %v4660_v56 = vld [vmem:[%s8245_s6 + $0xb8] sm:$0xff] }
0x17c9   :  { %2932 = vmin.xlane.f32.xlu2 %v2931_v9  ;;  %v2936_v58 = vshll.u32 %v2935_v53, 16  ;;  %v8716_v9 = vld [vmem:[#allocation59_spill] sm:$0xff] }
0x17ca   :  { %v8717_v53 = vld [vmem:[#allocation11_spill] sm:$0xff] }
0x183c   :  { %v2933_v5 = vpop.xlane.xlu2 %2932 }
0x183d   :  { %v2934_v23 = vcvt.f32.s32 %v2933_v5  ;;  %v8718_v5 = vld [vmem:[#allocation10_spill] sm:$0xff] }
0x183f   :  { %v2937_v12 = vadd.s32 %v2936_v58, %v2934_v23  ;;  %v8719_v58 = vld [vmem:[#allocation13_spill] sm:$0xff]  ;;  %v8720_v23 = vld [vmem:[#allocation12_spill] sm:$0xff] }
0x1841   :  { %vm2938_vm12 = vcmp.eq.s32.totalorder %v5819_v51, %v2937_v12  ;;  %v4661_v12 = vld [vmem:[%s8245_s6 + $0x2b8] sm:$0xff] }
0x1842   :  { %v4129_v4 = vsel %vm2938_vm12, 1.0, %v8539_v27 }
0x1843   :  { %v2948_v55 = vsel %vm2947_vm9, %v4131_v52, %v4129_v4  ;;  %v8722_v52 = vld [vmem:[#allocation18_spill] sm:$0xff]  ;;  %v4662_v4 = vld [vmem:[%s8245_s6 + $0x290] sm:$0xff] }
0x1844   :  { %4132 = vmatmul.msk.f32.vlgmr.msra.gmra.mxu0 %vm173_vm0, %v2948_v55  ;;  %v3089_v55 = vpop.f32.mrf.mxu3 }
0x1845   :  { %3132 = vmatpush.msra.mxu0 %v7397_v29  ;;  %v8705_v29 = vld [vmem:[#allocation45_spill] sm:$0xff] }
0x1847   :  { %3133 = vmatpush.msra.mxu0 %v7403_v41  ;;  %v8706_v41 = vld [vmem:[#allocation46_spill] sm:$0xff] }
0x1849   :  { %3134 = vmatpush.msra.mxu0 %v7409_v10  ;;  %v4627_v10 = vld [vmem:[%s8243_s4 + $0x18] sm:$0xff] }
0x184b   :  { %3135 = vmatpush.msra.mxu0 %v7415_v62  ;;  %v4628_v62 = vld [vmem:[%s8243_s4 + $0x10] sm:$0xff] }
0x184c   :  { %3028 = vmatmul.f32.vlgmr.msrb.gmra.mxu0 %v7699_v44 }
0x184d   :  { %3136 = vmatpush.msra.mxu0 %v7422_v60  ;;  %v4629_v60 = vld [vmem:[%s8243_s4 + $0x8] sm:$0xff] }
0x184f   :  { %3137 = vmatpush.msra.mxu0 %v7428_v54  ;;  %v4630_v54 = vld [vmem:[%s8243_s4] sm:$0xff] }
0x1851   :  { %3138 = vmatpush.msra.mxu0 %v7434_v36  ;;  %v4631_v36 = vld [vmem:[%s8245_s6 + $0x260] sm:$0xff] }
0x1853   :  { %3139 = vmatpush.msra.mxu0 %v7440_v8  ;;  %v4632_v8 = vld [vmem:[%s8245_s6 + $0x238] sm:$0xff] }
0x1855   :  { %3140 = vmatpush.msra.mxu0 %v7446_v59  ;;  %v4633_v59 = vld [vmem:[%s8245_s6 + $0x210] sm:$0xff] }
0x1857   :  { %3141 = vmatpush.msra.mxu0 %v7452_v14  ;;  %v4634_v14 = vld [vmem:[%s8245_s6 + $0x1e8] sm:$0xff] }
0x1859   :  { %3142 = vmatpush.msra.mxu0 %v8705_v29  ;;  %v3129_v29 = vpop.f32.mrf.mxu3 }
0x185b   :  { %3143 = vmatpush.msra.mxu0 %v8706_v41  ;;  %v3049_v41 = vpop.f32.mrf.mxu2 }
0x185d   :  { %3144 = vmatpush.msra.mxu0 %v7470_v21  ;;  %v4637_v21 = vld [vmem:[%s8245_s6 + $0x170] sm:$0xff] }
0x185f   :  { %3145 = vmatpush.msra.mxu0 %v7476_v22  ;;  %v4638_v22 = vld [vmem:[%s8245_s6 + $0x148] sm:$0xff] }
0x1861   :  { %3146 = vmatpush.msra.mxu0 %v7482_v30  ;;  %v4635_v30 = vld [vmem:[%s8245_s6 + $0x1c0] sm:$0xff] }
0x1863   :  { %3147 = vmatpush.msra.mxu0 %v7488_v13  ;;  %v4636_v13 = vld [vmem:[%s8245_s6 + $0x198] sm:$0xff] }
0x1864   :  { %3148 = vmatmul.f32.vlgmr.msra.gmra.mxu0 %v7699_v44  ;;  %v4639_v44 = vld [vmem:[%s8245_s6 + $0x120] sm:$0xff] }
0x1865   :  { %3512 = vmatpush.msrb.mxu0 %v4627_v10  ;;  %v7941_v10 = vpop.f32.mrf.mxu3 }
0x1867   :  { %3513 = vmatpush.msrb.mxu0 %v4628_v62  ;;  %v3069_v62 = vpop.f32.mrf.mxu2 }
0x1869   :  { %3514 = vmatpush.msrb.mxu0 %v4629_v60 }
0x186b   :  { %3515 = vmatpush.msrb.mxu0 %v4630_v54 }
0x186d   :  { %3560 = vmatpush.msra.mxu0 %v4631_v36 }
0x186f   :  { %3561 = vmatpush.msra.mxu0 %v4632_v8  ;;  %v3109_v8 = vpop.f32.mrf.mxu1 }
0x1871   :  { %3562 = vmatpush.msra.mxu0 %v4633_v59  ;;  %v3130_v59 = vadd.f32 %v3129_v29, %v3109_v8 }
0x1873   :  { %3563 = vmatpush.msra.mxu0 %v4634_v14  ;;  %v3090_v14 = vadd.f32 %v3089_v55, %v3069_v62 }
0x1875   :  { %3564 = vmatpush.msra.mxu0 %v4635_v30 }
0x1877   :  { %3565 = vmatpush.msra.mxu0 %v4636_v13 }
0x1879   :  { %3566 = vmatpush.msra.mxu0 %v4637_v21 }
0x187b   :  { %3567 = vmatpush.msra.mxu0 %v4638_v22 }
0x187d   :  { %3568 = vmatpush.msra.mxu0 %v4639_v44  ;;  %v8723_v44 = vld [vmem:[#allocation49_spill] sm:$0xff] }
0x187f   :  { %3569 = vmatpush.msra.mxu0 %v4640_v3 }
0x1881   :  { %3570 = vmatpush.msra.mxu0 %v4641_v57  ;;  %v8724_v57 = vld [vmem:[#allocation50_spill] sm:$0xff] }
0x1883   :  { %3571 = vmatpush.msra.mxu0 %v4642_v38 }
0x1885   :  { %3572 = vmatpush.msra.mxu0 %v4643_v1 }
0x1887   :  { %3573 = vmatpush.msra.mxu0 %v4644_v28 }
0x1889   :  { %3574 = vmatpush.msra.mxu0 %v4645_v40 }
0x188b   :  { %3575 = vmatpush.msra.mxu0 %v4646_v48 }
0x18c1   :  { %v2969_v63 = vpop.f32.mrf.mxu0 }
0x18c2   :  { %4138 = vmatmul.msk.f32.vlgmr.msrb.gmra.mxu3 %vm202_vm1, %v2969_v63  ;;  %4139 = vmatmul.msk.f32.vlgmr.msrb.gmra.mxu2 %vm202_vm1, %v2969_v63 }
0x18c3   :  { %4142 = vmatmul.msk.f32.vlgmr.msra.gmra.mxu1 %vm202_vm1, %v2969_v63  ;;  %3424 = vmatpush.msrb.mxu3 %v7518_v24  ;;  %v4649_v24 = vld [vmem:[%s8245_s6 + $0x220] sm:$0xff] }
0x18c4   :  { %3640 = vmatpush.msra.mxu1 %v4647_v16  ;;  %3458 = vmatpush.msrb.mxu2 %v7525_v0  ;;  %v8707_v0 = vld [vmem:[#allocation47_spill] sm:$0xff] }
0x18c5   :  { %3425 = vmatpush.msrb.mxu3 %v7531_v26  ;;  %v4650_v26 = vld [vmem:[%s8245_s6 + $0x1f8] sm:$0xff] }
0x18c6   :  { %3641 = vmatpush.msra.mxu1 %v4648_v31  ;;  %3459 = vmatpush.msrb.mxu2 %v7538_v43  ;;  %v4651_v43 = vld [vmem:[%s8245_s6 + $0x2a8] sm:$0xff] }
0x18c7   :  { %3426 = vmatpush.msrb.mxu3 %v7544_v7  ;;  %v8708_v7 = vld [vmem:[#allocation53_spill] sm:$0xff] }
0x18c8   :  { %3642 = vmatpush.msra.mxu1 %v4649_v24 }
0x18c9   :  { %3427 = vmatpush.msrb.mxu3 %v7551_v42  ;;  %v4652_v42 = vld [vmem:[%s8245_s6 + $0x1d0] sm:$0xff] }
0x18ca   :  { %4140 = vmatmul.msk.f32.vlgmr.msra.gmra.mxu3 %vm202_vm1, %v2969_v63  ;;  %4141 = vmatmul.msk.f32.vlgmr.msra.gmra.mxu2 %vm202_vm1, %v2969_v63 }
0x18cb   :  { %3428 = vmatpush.msrb.mxu3 %v8707_v0  ;;  %3643 = vmatpush.msra.mxu1 %v4650_v26  ;;  %v8725_v0 = vld [vmem:[#allocation51_spill] sm:$0xff] }
0x18cc   :  { %3554 = vmatpush.msra.mxu2 %v4651_v43 }
0x18cd   :  { %3429 = vmatpush.msrb.mxu3 %v8708_v7  ;;  %3644 = vmatpush.msra.mxu1 %v4652_v42 }
0x18ce   :  { %3555 = vmatpush.msra.mxu2 %v4653_v2 }
0x18cf   :  { %3430 = vmatpush.msrb.mxu3 %v8709_v17  ;;  %3645 = vmatpush.msra.mxu1 %v4654_v46 }
0x18d1   :  { %3431 = vmatpush.msrb.mxu3 %v8710_v47  ;;  %3646 = vmatpush.msra.mxu1 %v4655_v18 }
0x18d3   :  { %3432 = vmatpush.msrb.mxu3 %v8711_v39  ;;  %3647 = vmatpush.msra.mxu1 %v4656_v34 }
0x18d5   :  { %3433 = vmatpush.msrb.mxu3 %v8712_v32  ;;  %3648 = vmatpush.msra.mxu1 %v4657_v49 }
0x18d7   :  { %3434 = vmatpush.msrb.mxu3 %v8713_v19  ;;  %3649 = vmatpush.msra.mxu1 %v4658_v50 }
0x18d9   :  { %3435 = vmatpush.msrb.mxu3 %v8714_v11  ;;  %3650 = vmatpush.msra.mxu1 %v4659_v37 }
0x18db   :  { %3436 = vmatpush.msrb.mxu3 %v8715_v25  ;;  %3651 = vmatpush.msra.mxu1 %v4660_v56 }
0x18dd   :  { %3437 = vmatpush.msrb.mxu3 %v8716_v9  ;;  %3652 = vmatpush.msra.mxu1 %v8717_v53 }
0x18df   :  { %3438 = vmatpush.msrb.mxu3 %v8718_v5  ;;  %3653 = vmatpush.msra.mxu1 %v8719_v58 }
0x18e1   :  { %3439 = vmatpush.msrb.mxu3 %v8720_v23  ;;  %3654 = vmatpush.msra.mxu1 %v8721_v35 }
0x18e3   :  { %3634 = vmatpush.msra.mxu3 %v4661_v12  ;;  %3655 = vmatpush.msra.mxu1 %v8722_v52 }
0x18e5   :  { %3635 = vmatpush.msra.mxu3 %v4662_v4 }
0x1945   :  { %v3192_v60 = vpop.f32.mrf.mxu3  ;;  %v3212_v54 = vpop.f32.mrf.mxu2 }
0x1946   :  { %v3193_v36 = vadd.f32 %v3192_v60, %v7778_v15  ;;  %v3029_v15 = vpop.f32.mrf.mxu0 }
0x1947   :  { %v3050_v40 = vadd.f32 %v3049_v41, %v3029_v15 }
0x1948   :  { %v3275_v26 = vadd.f32 %v3193_v36, %v8725_v0 }
0x1949   :  { %v3213_v48 = vadd.f32 %v3212_v54, %v3050_v40 }
0x194a   :  { %v4143_v7 = vmul.f32 -1.442695, %v3275_v26 }
0x194b   :  { %v3276_v63 = vadd.f32 %v3213_v48, %v8676_v33 }
0x194d   :  { %v3232_v30 = vpop.f32.mrf.mxu3  ;;  %v3252_v13 = vpop.f32.mrf.mxu2  ;;  %v4144_v16 = vmul.f32 -1.442695, %v3276_v63 }
0x194e   :  { %v3233_v21 = vadd.f32 %v3232_v30, %v3090_v14  ;;  %v3253_v22 = vadd.f32 %v3252_v13, %v3130_v59 }
0x1950   :  { %v3277_v3 = vadd.f32 %v3233_v21, %v8723_v44  ;;  %v7946_v38 = vadd.f32 %v3253_v22, %v8724_v57 }
0x1952   :  { %4319 = vtanh.f32 %v3277_v3  ;;  %v4145_v29 = vmul.f32 -1.442695, %v3277_v3 }
0x1953   :  { %4321 = vtanh.f32 %v7946_v38 }
0x1954   :  { %4323 = vpow2.f32 %v4144_v16 }
0x1958   :  { %v4320_v1 = vpop.eup %4319 }
0x1959   :  { %v4322_v28 = vpop.eup %4321  ;;  %3381 = vrot.lane.b32.xlu0 %v4320_v1, %s4772_s7 }
0x195a   :  { %3383 = vrot.lane.b32.xlu2 %v4322_v28, %s4772_s7  ;;  %v4324_v31 = vpop.eup %4323 }
0x195b   :  { %v3287_v24 = vadd.f32 1.0, %v4324_v31 }
0x195d   :  { %4325 = vrcp.f32 %v3287_v24  ;;  %v3314_v39 = vand.u32 2147483648, %v3287_v24  ;;  %vm3308_vm14 = vweird.f32 %v3287_v24  ;;  %v3312_v34 = vand.u32 2147483647, %v3287_v24 }
0x195e   :  { %4327 = vpow2.f32 %v4143_v7 }
0x195f   :  { %v3315_v49 = vor.u32 1.1754944e-38, %v3314_v39  ;;  %vm3313_vm2 = vcmp.eq.f32.partialorder %v3312_v34, 8.507059e+37 }
0x1963   :  { %v4326_v43 = vpop.eup %4325 }
0x1964   :  { %v3304_v42 = vmul.f32 %v4326_v43, %v3287_v24  ;;  %v4328_v17 = vpop.eup %4327  ;;  %vm3309_vm13 = vweird.f32 %v4326_v43  ;;  %v3149_v24 = vpop.f32.mrf.mxu0 }
0x1965   :  { %v3286_v47 = vadd.f32 1.0, %v4328_v17  ;;  %vm3310_vm15 = vmor %vm3308_vm14, %vm3309_vm13  ;;  %v3170_v7 = vadd.f32 %v7941_v10, %v3149_v24  ;;  %v4680_v24 = vld [vmem:[%s8245_s6 + $0x150] sm:$0xff] }
0x1966   :  { %v3305_v2 = vsub.f32 1.0, %v3304_v42 }
0x1967   :  { %4329 = vrcp.f32 %v3286_v47  ;;  %v3299_v5 = vand.u32 2147483648, %v3286_v47  ;;  %vm3293_vm4 = vweird.f32 %v3286_v47  ;;  %v3297_v58 = vand.u32 2147483647, %v3286_v47 }
0x1968   :  { %v3306_v46 = vmul.f32 %v4326_v43, %v3305_v2  ;;  %4331 = vpow2.f32 %v4145_v29 }
0x1969   :  { %v3300_v35 = vor.u32 1.1754944e-38, %v3299_v5  ;;  %vm3298_vm7 = vcmp.eq.f32.partialorder %v3297_v58, 8.507059e+37 }
0x196a   :  { %v3307_v18 = vadd.f32 %v4326_v43, %v3306_v46 }
0x196c   :  { %v3311_v32 = vsel %vm3310_vm15, %v4326_v43, %v3307_v18  ;;  %v3272_v43 = vpop.f32.mrf.mxu1 }
0x196d   :  { %v3316_v50 = vsel %vm3313_vm2, %v3315_v49, %v3311_v32  ;;  %v4330_v37 = vpop.eup %4329  ;;  %v3273_v42 = vadd.f32 %v3272_v43, %v3170_v7  ;;  %v4682_v43 = vld [vmem:[%s8244_s5 + $0x38] sm:$0xff]  ;;  %v4683_v7 = vld [vmem:[%s8245_s6 + $0x100] sm:$0xff] }
0x196e   :  { %v3289_v25 = vmul.f32 %v4330_v37, %v3286_v47  ;;  %vm3294_vm3 = vweird.f32 %v4330_v37  ;;  %v4332_v41 = vpop.eup %4331  ;;  %v3377_v3 = vmul.f32 %v3316_v50, %v7683_v45  ;;  %v4146_v45 = vmul.f32 -1.442695, %v7946_v38 }
0x196f   :  { %vm3295_vm6 = vmor %vm3293_vm4, %vm3294_vm3  ;;  %v3321_v62 = vadd.f32 1.0, %v4332_v41  ;;  %v3279_v2 = vadd.f32 %v3273_v42, %v8508_v20  ;;  %v4684_v42 = vld [vmem:[%s8244_s5 + $0x10] sm:$0xff] }
0x1970   :  { %v3290_v56 = vsub.f32 1.0, %v3289_v25 }
0x1971   :  { %4333 = vrcp.f32 %v3321_v62  ;;  %v3333_v14 = vand.u32 2147483648, %v3321_v62  ;;  %vm3327_vm9 = vweird.f32 %v3321_v62  ;;  %v3331_v30 = vand.u32 2147483647, %v3321_v62 }
0x1972   :  { %v3291_v9 = vmul.f32 %v4330_v37, %v3290_v56  ;;  %v4147_v46 = vmul.f32 -1.442695, %v3279_v2  ;;  %v4685_v2 = vld [vmem:[%s8245_s6 + $0xd8] sm:$0xff] }
0x1973   :  { %v3334_v21 = vor.u32 1.1754944e-38, %v3333_v14  ;;  %vm3332_vm13 = vcmp.eq.f32.partialorder %v3331_v30, 8.507059e+37  ;;  %v4666_v14 = vld [vmem:[%s8245_s6 + $0x288] sm:$0xff]  ;;  %v4667_v30 = vld [vmem:[%s8245_s6 + $0x298] sm:$0xff] }
0x1974   :  { %v3292_v53 = vadd.f32 %v4330_v37, %v3291_v9 }
0x1976   :  { %v3296_v23 = vsel %vm3295_vm6, %v4330_v37, %v3292_v53 }
0x1977   :  { %v3301_v52 = vsel %vm3298_vm7, %v3300_v35, %v3296_v23  ;;  %v4334_v60 = vpop.eup %4333 }
0x1978   :  { %v3323_v54 = vmul.f32 %v4334_v60, %v3321_v62  ;;  %vm3328_vm8 = vweird.f32 %v4334_v60 }
0x1979   :  { %vm3329_vm12 = vmor %vm3327_vm9, %vm3328_vm8 }
0x197a   :  { %v3324_v36 = vsub.f32 1.0, %v3323_v54 }
0x197c   :  { %v3325_v8 = vmul.f32 %v4334_v60, %v3324_v36  ;;  %v4663_v36 = vld [vmem:[%s8245_s6 + $0x2b0] sm:$0xff] }
0x197e   :  { %v3326_v59 = vadd.f32 %v4334_v60, %v3325_v8  ;;  %v4664_v8 = vld [vmem:[%s8245_s6 + $0x2c0] sm:$0xff] }
0x1980   :  { %v3330_v13 = vsel %vm3329_vm12, %v4334_v60, %v3326_v59  ;;  %v4665_v59 = vld [vmem:[%s8244_s5 + $0x48] sm:$0xff] }
0x1981   :  { %v3335_v22 = vsel %vm3332_vm13, %v3334_v21, %v3330_v13  ;;  %v4668_v13 = vld [vmem:[%s8244_s5 + $0x20] sm:$0xff]  ;;  %v4669_v21 = vld [vmem:[%s8245_s6 + $0x268] sm:$0xff] }
0x1982   :  { %v3378_v28 = vmul.f32 %v3335_v22, %v7685_v6  ;;  %v4670_v22 = vld [vmem:[%s8245_s6 + $0x2c8] sm:$0xff] }
0x19b4   :  { %v3384_v19 = vpop.permute.xlu2 %3383 }
0x19b5   :  { %v3389_v11 = vmul.f32 %v3384_v19, %v3316_v50 }
0x19b7   :  { %3394 = vrot.lane.b32.xlu0 %v3389_v11, %s4771_s2 }
0x19cb   :  { %v3382_v12 = vpop.permute.xlu0 %3381 }
0x19cc   :  { %v3385_v4 = vsel %vm640_vm5, %v3382_v12, %v3384_v19 }
0x19cd   :  { %v3388_v55 = vmul.f32 %v3385_v4, %v3301_v52 }
0x19cf   :  { %3392 = vrot.lane.b32.xlu1 %v3388_v55, %s4771_s2 }
0x1a29   :  { %v3395_v1 = vpop.permute.xlu0 %3394 }
0x1a41   :  { %v3393_v15 = vpop.permute.xlu1 %3392 }
0x1a42   :  { %v3396_v40 = vsel %vm202_vm1, %v3393_v15, %v3395_v1  ;;  %v7959_v48 = vadd.f32 %v3393_v15, %v3377_v3  ;;  %v4671_v3 = vld [vmem:[%s8245_s6 + $0x240] sm:$0xff]  ;;  %v4674_v15 = vld [vmem:[%s8245_s6 + $0x1f0] sm:$0xff] }
0x1a43   :  { %v7961_v63 = vadd.f32 %v3396_v40, %v3378_v28  ;;  %v4672_v1 = vld [vmem:[%s8245_s6 + $0x2a0] sm:$0xff]  ;;  %v4673_v28 = vld [vmem:[%s8245_s6 + $0x218] sm:$0xff]  ;;  %v4675_v40 = vld [vmem:[%s8245_s6 + $0x1c8] sm:$0xff] }
0x1a44   :  { %4335 = vtanh.f32 %v7959_v48 }
0x1a45   :  { %4337 = vtanh.f32 %v7961_v63 }
0x1a46   :  { %4339 = vpow2.f32 %v4146_v45  ;;  %v4678_v45 = vld [vmem:[%s8244_s5] sm:$0xff] }
0x1a4a   :  { %v4336_v16 = vpop.eup %4335 }
0x1a4b   :  { %v4338_v31 = vpop.eup %4337  ;;  %3405 = vrot.lane.b32.xlu2 %v4336_v16, %s4773_s29  ;;  %v4676_v16 = vld [vmem:[%s8244_s5 + $0x28] sm:$0xff] }
0x1a4c   :  { %3407 = vrot.lane.b32.xlu0 %v4338_v31, %s4773_s29  ;;  %v4340_v6 = vpop.eup %4339  ;;  %v4677_v31 = vld [vmem:[%s8245_s6 + $0x1a0] sm:$0xff] }
0x1a4d   :  { %v3345_v26 = vadd.f32 1.0, %v4340_v6  ;;  %v4679_v6 = vld [vmem:[%s8245_s6 + $0x178] sm:$0xff] }
0x1a4f   :  { %4341 = vrcp.f32 %v3345_v26  ;;  %v3358_v49 = vand.u32 2147483648, %v3345_v26  ;;  %vm3352_vm15 = vweird.f32 %v3345_v26  ;;  %v3356_v19 = vand.u32 2147483647, %v3345_v26 }
0x1a50   :  { %4343 = vpow2.f32 %v4147_v46  ;;  %v4687_v46 = vld [vmem:[%s8245_s6 + $0x88] sm:$0xff] }
0x1a51   :  { %v3359_v10 = vor.u32 1.1754944e-38, %v3358_v49  ;;  %vm3357_vm3 = vcmp.eq.f32.partialorder %v3356_v19, 8.507059e+37  ;;  %v4694_v49 = vld [vmem:[%s8244_s5 + $0x18] sm:$0xff] }
0x1a55   :  { %v4342_v17 = vpop.eup %4341 }
0x1a56   :  { %v3348_v47 = vmul.f32 %v4342_v17, %v3345_v26  ;;  %v4344_v34 = vpop.eup %4343  ;;  %vm3353_vm14 = vweird.f32 %v4342_v17  ;;  %v4681_v26 = vld [vmem:[%s8245_s6 + $0x128] sm:$0xff] }
0x1a57   :  { %v3346_v38 = vadd.f32 1.0, %v4344_v34  ;;  %vm3354_vm2 = vmor %vm3352_vm15, %vm3353_vm14  ;;  %v4691_v34 = vld [vmem:[%s8244_s5 + $0x30] sm:$0xff] }
0x1a58   :  { %v3349_v18 = vsub.f32 1.0, %v3348_v47  ;;  %v4688_v47 = vld [vmem:[%s8245_s6 + $0x60] sm:$0xff] }
0x1a59   :  { %4345 = vrcp.f32 %v3346_v38  ;;  %v3373_v23 = vand.u32 2147483648, %v3346_v38  ;;  %vm3367_vm6 = vweird.f32 %v3346_v38  ;;  %v3371_v35 = vand.u32 2147483647, %v3346_v38 }
0x1a5a   :  { %v3350_v39 = vmul.f32 %v4342_v17, %v3349_v18  ;;  %v4689_v18 = vld [vmem:[%s8245_s6 + $0x38] sm:$0xff] }
0x1a5b   :  { %v3374_v52 = vor.u32 1.1754944e-38, %v3373_v23  ;;  %vm3372_vm8 = vcmp.eq.f32.partialorder %v3371_v35, 8.507059e+37 }
0x1a5c   :  { %v3351_v32 = vadd.f32 %v4342_v17, %v3350_v39  ;;  %v4690_v39 = vld [vmem:[%s8245_s6 + $0x10] sm:$0xff] }
0x1a5e   :  { %v3355_v50 = vsel %vm3354_vm2, %v4342_v17, %v3351_v32  ;;  %v4686_v17 = vld [vmem:[%s8245_s6 + $0xb0] sm:$0xff]  ;;  %v4692_v32 = vld [vmem:[%s8244_s5 + $0x8] sm:$0xff] }
0x1a5f   :  { %v3360_v11 = vsel %vm3357_vm3, %v3359_v10, %v3355_v50  ;;  %v4346_v56 = vpop.eup %4345 }
0x1a60   :  { %v3363_v9 = vmul.f32 %v4346_v56, %v3346_v38  ;;  %vm3368_vm4 = vweird.f32 %v4346_v56  ;;  %v4693_v38 = vld [vmem:[%s8244_s5 + $0x40] sm:$0xff]  ;;  %s4150_s5 = sld [smem:[#allocation3 + $0x6]] }
0x1a61   :  { %vm3369_vm7 = vmor %vm3367_vm6, %vm3368_vm4 }
0x1a62   :  { %v3364_v53 = vsub.f32 1.0, %v3363_v9 }
0x1a64   :  { %v3365_v5 = vmul.f32 %v4346_v56, %v3364_v53 }
0x1a66   :  { %v3366_v58 = vadd.f32 %v4346_v56, %v3365_v5  ;;  %p3490_p5 = scmp.eq.s32.totalorder %s4150_s5, 1 }
0x1a68   :  { %v3370_v12 = vsel %vm3369_vm7, %v4346_v56, %v3366_v58  ;;  %s3493_s21 = scalar_select %p3490_p5, 1, 0 }
0x1a69   :  { %v3375_v55 = vsel %vm3372_vm8, %v3374_v52, %v3370_v12 }
0x1aa5   :  { %v3406_v37 = vpop.permute.xlu2 %3405 }
0x1aa6   :  { %v3412_v25 = vmul.f32 %v3406_v37, %v3360_v11 }
0x1aa8   :  { %3416 = vrot.lane.b32.xlu1 %v3412_v25, %s4774_s13 }
0x1abe   :  { %v3408_v4 = vpop.permute.xlu0 %3407 }
0x1abf   :  { %v3409_v29 = vsel %vm173_vm0, %v3406_v37, %v3408_v4 }
0x1ac0   :  { %v3413_v41 = vmul.f32 %v3409_v29, %v3375_v55 }
0x1ac2   :  { %3418 = vrot.lane.b32.xlu2 %v3413_v41, %s4774_s13 }
0x1b1a   :  { %v3417_v62 = vpop.permute.xlu1 %3416 }
0x1b1c   :  { %v3419_v60 = vpop.permute.xlu2 %3418 }
0x1b1d   :  { %4148 = vmatmul.msk.f32.vlgmr.msrb.gmra.mxu2 %vm202_vm1, %v3419_v60  ;;  %v7975_v54 = vsel %vm679_vm10, %v3417_v62, %v3419_v60 }
0x1b1e   :  { %3440 = vmatmul.f32.vlgmr.msrb.gmra.mxu3 %v7975_v54  ;;  %3536 = vmatmul.f32.vlgmr.msrb.gmra.mxu1 %v7975_v54 }
0x1b1f   :  { %3594 = vmatpush.msrb.mxu2 %v4663_v36  ;;  %3674 = vmatpush.msrb.mxu3 %v4664_v8  ;;  %v4151_v8 = vld [vmem:[%s8240_s1 + $0x18] sm:$0xf] }
0x1b20   :  { %3817 = vmatpush.msrb.mxu1 %v4665_v59 }
0x1b21   :  { %3595 = vmatpush.msrb.mxu2 %v4666_v14  ;;  %3675 = vmatpush.msrb.mxu3 %v4667_v30  ;;  %v4695_v30 = vld [vmem:[%s8245_s6 + $0x278] sm:$0xff] }
0x1b22   :  { %3818 = vmatpush.msrb.mxu1 %v4668_v13  ;;  %v4696_v13 = vld [vmem:[%s8245_s6 + $0x250] sm:$0xff] }
0x1b25   :  { %4153 = vmatmul.msk.f32.vlgmr.msra.gmra.mxu2 %vm202_vm1, %v3419_v60 }
0x1b26   :  { %3600 = vmatpush.msra.mxu2 %v4669_v21  ;;  %4155 = vmatmul.msk.f32.vlgmr.msra.gmra.mxu3 %vm202_vm1, %v3419_v60  ;;  %v4697_v21 = vld [vmem:[%s8245_s6 + $0x228] sm:$0xff] }
0x1b27   :  { %3656 = vmatmul.f32.vlgmr.msra.gmra.mxu1 %v7975_v54  ;;  %3714 = vmatpush.msra.mxu3 %v4670_v22  ;;  %v4700_v22 = vld [vmem:[%s8245_s6 + $0x1b0] sm:$0xff] }
0x1b28   :  { %3601 = vmatpush.msra.mxu2 %v4671_v3  ;;  %v4701_v3 = vld [vmem:[%s8245_s6 + $0x188] sm:$0xff] }
0x1b29   :  { %3715 = vmatpush.msra.mxu3 %v4672_v1  ;;  %v4702_v1 = vld [vmem:[%s8245_s6 + $0x160] sm:$0xff] }
0x1b2a   :  { %3602 = vmatpush.msra.mxu2 %v4673_v28  ;;  %v4703_v28 = vld [vmem:[%s8245_s6 + $0x138] sm:$0xff] }
0x1b2c   :  { %3603 = vmatpush.msra.mxu2 %v4674_v15  ;;  %v4704_v15 = vld [vmem:[%s8245_s6 + $0x110] sm:$0xff] }
0x1b2d   :  { %4154 = vmatmul.msk.f32.vlgmr.msrb.gmra.mxu2 %vm202_vm1, %v3419_v60 }
0x1b2e   :  { %3604 = vmatpush.msra.mxu2 %v4675_v40  ;;  %4156 = vmatmul.msk.f32.vlgmr.msrb.gmra.mxu3 %vm202_vm1, %v3419_v60  ;;  %v4705_v40 = vld [vmem:[%s8245_s6 + $0xe8] sm:$0xff] }
0x1b2f   :  { %3737 = vmatpush.msrb.mxu3 %v4676_v16  ;;  %v4706_v16 = vld [vmem:[%s8245_s6 + $0xc0] sm:$0xff] }
0x1b30   :  { %3605 = vmatpush.msra.mxu2 %v4677_v31  ;;  %v4707_v31 = vld [vmem:[%s8245_s6 + $0x98] sm:$0xff] }
0x1b31   :  { %3738 = vmatpush.msrb.mxu3 %v4678_v45  ;;  %v4708_v45 = vld [vmem:[%s8245_s6 + $0x70] sm:$0xff] }
0x1b32   :  { %3606 = vmatpush.msra.mxu2 %v4679_v6  ;;  %v4709_v6 = vld [vmem:[%s8245_s6 + $0x48] sm:$0xff] }
0x1b34   :  { %3607 = vmatpush.msra.mxu2 %v4680_v24  ;;  %v4710_v24 = vld [vmem:[%s8245_s6 + $0x20] sm:$0xff] }
0x1b36   :  { %3608 = vmatpush.msra.mxu2 %v4681_v26  ;;  %4157 = vmatmul.msk.f32.vlgmr.msra.gmra.mxu3 %vm202_vm1, %v3419_v60  ;;  %v3494_v60 = vstv %s3493_s21  ;;  %s4020_s21 = sshll.u32 %s8249_s10, 4  ;;  %s4021_s21 = int_to_ptr.hbm [resolvable:$true] %s4020_s21 }
0x1b37   :  { %3777 = vmatpush.msra.mxu3 %v4682_v43  ;;  %vm3495_vm13 = vcmp.eq.s32.totalorder %v3494_v60, 1  ;;  %v4711_v43 = vld [vmem:[%s8247_s8 + $0x78] sm:$0xff] }
0x1b38   :  { %3609 = vmatpush.msra.mxu2 %v4683_v7  ;;  %v4712_v7 = vld [vmem:[%s8247_s8 + $0x88] sm:$0xff] }
0x1b39   :  { %3778 = vmatpush.msra.mxu3 %v4684_v42  ;;  %v4714_v42 = vld [vmem:[%s8247_s8 + $0x80] sm:$0xff] }
0x1b3a   :  { %3610 = vmatpush.msra.mxu2 %v4685_v2  ;;  %v4715_v2 = vld [vmem:[%s8247_s8 + $0x68] sm:$0xff] }
0x1b3c   :  { %3611 = vmatpush.msra.mxu2 %v4686_v17  ;;  %v4716_v17 = vld [vmem:[%s8247_s8 + $0x60] sm:$0xff] }
0x1b3e   :  { %3612 = vmatpush.msra.mxu2 %v4687_v46  ;;  %v4717_v46 = vld [vmem:[%s8247_s8 + $0x58] sm:$0xff] }
0x1b40   :  { %3613 = vmatpush.msra.mxu2 %v4688_v47  ;;  %v4718_v47 = vld [vmem:[%s8247_s8 + $0x50] sm:$0xff] }
0x1b42   :  { %3614 = vmatpush.msra.mxu2 %v4689_v18  ;;  %v4719_v18 = vld [vmem:[%s8247_s8 + $0x48] sm:$0xff] }
0x1b44   :  { %3615 = vmatpush.msra.mxu2 %v4690_v39  ;;  %v4720_v39 = vld [vmem:[%s8247_s8 + $0x40] sm:$0xff] }
0x1b45   :  { %3616 = vmatmul.f32.vlgmr.msra.gmra.mxu2 %v7975_v54 }
0x1b46   :  { %3757 = vmatpush.msrb.mxu2 %v4691_v34  ;;  %v4721_v34 = vld [vmem:[%s8247_s8 + $0x38] sm:$0xff] }
0x1b48   :  { %3758 = vmatpush.msrb.mxu2 %v4692_v32  ;;  %v4722_v32 = vld [vmem:[%s8247_s8 + $0x30] sm:$0xff] }
0x1b4a   :  { %3797 = vmatpush.msra.mxu2 %v4693_v38  ;;  %v4723_v38 = vld [vmem:[%s8247_s8 + $0x28] sm:$0xff] }
0x1b4c   :  { %3798 = vmatpush.msra.mxu2 %v4694_v49  ;;  %v4724_v49 = vld [vmem:[%s8247_s8 + $0x20] sm:$0xff] }
0x1b9b   :  { %v3537_v25 = vpop.f32.mrf.mxu1 }
0x1ba0   :  { %v3461_v19 = vpop.f32.mrf.mxu2 }
0x1ba1   :  { %v3441_v50 = vpop.f32.mrf.mxu3 }
0x1ba2   :  { %v3442_v10 = vadd.f32 %v7773_v61, %v3441_v50  ;;  %v4726_v50 = vld [vmem:[%s8247_s8 + $0x10] sm:$0xff] }
0x1ba4   :  { %v3462_v11 = vadd.f32 %v3461_v19, %v3442_v10  ;;  %v4725_v19 = vld [vmem:[%s8247_s8 + $0x18] sm:$0xff]  ;;  %v4727_v10 = vld [vmem:[%s8247_s8 + $0x8] sm:$0xff] }
0x1ba6   :  { %3465 = vst.msk [vmem:[#allocation4 + $0x18] sm:$0xf] %vm168_vm11, %v3462_v11  ;;  %v3466_v37 = vsel %vm168_vm11, %v3462_v11, -inf }
0x1ba7   :  { %3467 = vmax.xlane.f32.xlu0 %v3466_v37 }
0x1ba8   :  { %v3557_v56 = vpop.f32.mrf.mxu2 }
0x1ba9   :  { %v8085_v9 = vadd.f32 %v3557_v56, %v3537_v25  ;;  %v3637_v37 = vpop.f32.mrf.mxu3 }
0x1bb0   :  { %v3597_v56 = vpop.f32.mrf.mxu2 }
0x1bb1   :  { %v3677_v25 = vpop.f32.mrf.mxu3 }
0x1c1a   :  { %v3468_v53 = vpop.xlane.xlu0 %3467 }
0x1c1b   :  { %vm3469_vm9 = vcmp.eq.f32.partialorder %v3462_v11, %v3468_v53  ;;  %v4728_v11 = vld [vmem:[%s8247_s8] sm:$0xff]  ;;  %v8204_v53 = vpop.f32.mrf.mxu3 }
0x1c1c   :  { %v3470_v5 = vsel %vm3469_vm9, %v5819_v51, 32 }
0x1c1d   :  { %v3471_v58 = vsel %vm168_vm11, %v3470_v5, 2147483647  ;;  %v3617_v5 = vpop.f32.mrf.mxu2 }
0x1c1e   :  { %v3473_v23 = vshra.s32 %v3471_v58, 16  ;;  %v3472_v61 = vand.u32 65535, %v3471_v58 }
0x1c20   :  { %v3475_v35 = vcvt.s32.f32 %v3473_v23  ;;  %v3474_v52 = vcvt.s32.f32 %v3472_v61  ;;  %v3657_v61 = vpop.f32.mrf.mxu1 }
0x1c22   :  { %3476 = vmin.xlane.f32.xlu1 %v3475_v35 }
0x1c95   :  { %v3477_v12 = vpop.xlane.xlu1 %3476 }
0x1c96   :  { %vm3478_vm12 = vcmp.eq.f32.partialorder %v3475_v35, %v3477_v12  ;;  %v3483_v55 = vcvt.f32.s32 %v3477_v12  ;;  %v3678_v12 = vadd.f32 %v3677_v25, %v3657_v61 }
0x1c97   :  { %v3479_v4 = vsel %vm3478_vm12, %v3474_v52, inf  ;;  %v3638_v52 = vadd.f32 %v3637_v37, %v3617_v5 }
0x1c98   :  { %3480 = vmin.xlane.f32.xlu2 %v3479_v4  ;;  %v3484_v41 = vshll.u32 %v3483_v55, 16 }
0x1d0b   :  { %v3481_v29 = vpop.xlane.xlu2 %3480 }
0x1d0c   :  { %v3482_v62 = vcvt.f32.s32 %v3481_v29 }
0x1d0e   :  { %v3485_v36 = vadd.s32 %v3484_v41, %v3482_v62 }
0x1d10   :  { %vm3486_vm14 = vcmp.eq.s32.totalorder %v5819_v51, %v3485_v36  ;;  %v4698_v51 = vld [vmem:[%s8245_s6 + $0x200] sm:$0xff] }
0x1d11   :  { %v4149_v59 = vsel %vm3486_vm14, 1.0, %v8539_v27  ;;  %v4699_v27 = vld [vmem:[%s8245_s6 + $0x1d8] sm:$0xff] }
0x1d12   :  { %v3496_v14 = vsel %vm3495_vm13, %v4151_v8, %v4149_v59 }
0x1d13   :  { %4152 = vmatmul.msk.f32.vlgmr.msrb.gmra.mxu0 %vm173_vm0, %v3496_v14 }
0x1d14   :  { %3680 = vmatpush.msrb.mxu0 %v4695_v30 }
0x1d16   :  { %3681 = vmatpush.msrb.mxu0 %v4696_v13 }
0x1d18   :  { %3682 = vmatpush.msrb.mxu0 %v4697_v21 }
0x1d1a   :  { %3683 = vmatpush.msrb.mxu0 %v4698_v51 }
0x1d1b   :  { %3576 = vmatmul.f32.vlgmr.msra.gmra.mxu0 %v7975_v54 }
0x1d1c   :  { %3684 = vmatpush.msrb.mxu0 %v4699_v27 }
0x1d1e   :  { %3685 = vmatpush.msrb.mxu0 %v4700_v22 }
0x1d20   :  { %3686 = vmatpush.msrb.mxu0 %v4701_v3 }
0x1d22   :  { %3687 = vmatpush.msrb.mxu0 %v4702_v1 }
0x1d24   :  { %3688 = vmatpush.msrb.mxu0 %v4703_v28 }
0x1d26   :  { %3689 = vmatpush.msrb.mxu0 %v4704_v15 }
0x1d28   :  { %3690 = vmatpush.msrb.mxu0 %v4705_v40 }
0x1d2a   :  { %3691 = vmatpush.msrb.mxu0 %v4706_v16 }
0x1d2c   :  { %3692 = vmatpush.msrb.mxu0 %v4707_v31 }
0x1d2e   :  { %3693 = vmatpush.msrb.mxu0 %v4708_v45 }
0x1d30   :  { %3694 = vmatpush.msrb.mxu0 %v4709_v6 }
0x1d32   :  { %3695 = vmatpush.msrb.mxu0 %v4710_v24 }
0x1d33   :  { %3696 = vmatmul.f32.vlgmr.msrb.gmra.mxu0 %v7975_v54  ;;  %v4713_v54 = vld [vmem:[%s8247_s8 + $0x70] sm:$0xff]  ;;  %s4776_s8 = smov [#allocation4]  }
0x1d90   :  { %v3517_v26 = vpop.f32.mrf.mxu0 }
0x1d91   :  { %4158 = vmatmul.msk.f32.vlgmr.msrb.gmra.mxu3 %vm202_vm1, %v3517_v26  ;;  %4159 = vmatmul.msk.f32.vlgmr.msrb.gmra.mxu2 %vm202_vm1, %v3517_v26 }
0x1d92   :  { %4162 = vmatmul.msk.f32.vlgmr.msrb.gmra.mxu1 %vm202_vm1, %v3517_v26  ;;  %3972 = vmatpush.msrb.mxu3 %v4711_v43 }
0x1d93   :  { %4006 = vmatpush.msrb.mxu2 %v4712_v7 }
0x1d94   :  { %3973 = vmatpush.msrb.mxu3 %v4713_v54 }
0x1d95   :  { %4007 = vmatpush.msrb.mxu2 %v4714_v42 }
0x1d96   :  { %3974 = vmatpush.msrb.mxu3 %v4715_v2 }
0x1d98   :  { %3975 = vmatpush.msrb.mxu3 %v4716_v17 }
0x1d99   :  { %4160 = vmatmul.msk.f32.vlgmr.msra.gmra.mxu3 %vm202_vm1, %v3517_v26  ;;  %4161 = vmatmul.msk.f32.vlgmr.msra.gmra.mxu2 %vm202_vm1, %v3517_v26 }
0x1d9a   :  { %3976 = vmatpush.msrb.mxu3 %v4717_v46 }
0x1d9c   :  { %3977 = vmatpush.msrb.mxu3 %v4718_v47 }
0x1d9e   :  { %3978 = vmatpush.msrb.mxu3 %v4719_v18 }
0x1da0   :  { %3979 = vmatpush.msrb.mxu3 %v4720_v39 }
0x1da2   :  { %3980 = vmatpush.msrb.mxu3 %v4721_v34 }
0x1da4   :  { %3981 = vmatpush.msrb.mxu3 %v4722_v32 }
0x1da6   :  { %3982 = vmatpush.msrb.mxu3 %v4723_v38 }
0x1da8   :  { %3983 = vmatpush.msrb.mxu3 %v4724_v49 }
0x1daa   :  { %3984 = vmatpush.msrb.mxu3 %v4725_v19 }
0x1dac   :  { %3985 = vmatpush.msrb.mxu3 %v4726_v50 }
0x1dae   :  { %3986 = vmatpush.msrb.mxu3 %v4727_v10 }
0x1db0   :  { %3987 = vmatpush.msrb.mxu3 %v4728_v11 }
0x1e14   :  { %v3740_v58 = vpop.f32.mrf.mxu3  ;;  %v3760_v23 = vpop.f32.mrf.mxu2 }
0x1e15   :  { %v3741_v35 = vadd.f32 %v3740_v58, %v8085_v9  ;;  %v3577_v9 = vpop.f32.mrf.mxu0 }
0x1e16   :  { %v3598_v59 = vadd.f32 %v3597_v56, %v3577_v9 }
0x1e17   :  { %v3823_v13 = vadd.f32 %v3741_v35, %v8725_v0 }
0x1e18   :  { %v3761_v14 = vadd.f32 %v3760_v23, %v3598_v59 }
0x1e19   :  { %v4163_v21 = vmul.f32 -1.442695, %v3823_v13 }
0x1e1a   :  { %v3824_v30 = vadd.f32 %v3761_v14, %v8676_v33  ;;  %v3820_v14 = vpop.f32.mrf.mxu1 }
0x1e1c   :  { %v3780_v4 = vpop.f32.mrf.mxu3  ;;  %v3800_v55 = vpop.f32.mrf.mxu2 }
0x1e1d   :  { %v3781_v29 = vadd.f32 %v3780_v4, %v3638_v52  ;;  %v3801_v41 = vadd.f32 %v3800_v55, %v3678_v12  ;;  %v3697_v9 = vpop.f32.mrf.mxu0 }
0x1e1f   :  { %v3825_v62 = vadd.f32 %v3781_v29, %v8723_v44  ;;  %v8209_v60 = vadd.f32 %v3801_v41, %v8724_v57  ;;  %v4164_v44 = vmul.f32 -1.442695, %v3824_v30  ;;  %v3718_v30 = vadd.f32 %v8204_v53, %v3697_v9 }
0x1e21   :  { %4347 = vtanh.f32 %v3825_v62  ;;  %v4165_v38 = vmul.f32 -1.442695, %v3825_v62  ;;  %v3821_v13 = vadd.f32 %v3820_v14, %v3718_v30 }
0x1e22   :  { %4349 = vtanh.f32 %v8209_v60 }
0x1e23   :  { %4351 = vpow2.f32 %v4164_v44 }
0x1e24   :  { %4353 = vpow2.f32 %v4163_v21 }
0x1e27   :  { %v4348_v36 = vpop.eup %4347 }
0x1e28   :  { %v4350_v8 = vpop.eup %4349  ;;  %3929 = vrot.lane.b32.xlu0 %v4348_v36, %s4772_s7  ;;  %v4166_v36 = vmul.f32 -1.442695, %v8209_v60 }
0x1e29   :  { %3931 = vrot.lane.b32.xlu1 %v4350_v8, %s4772_s7  ;;  %v4352_v57 = vpop.eup %4351 }
0x1e2a   :  { %v4354_v51 = vpop.eup %4353  ;;  %v3835_v27 = vadd.f32 1.0, %v4352_v57 }
0x1e2b   :  { %v3834_v22 = vadd.f32 1.0, %v4354_v51 }
0x1e2c   :  { %4355 = vrcp.f32 %v3835_v27  ;;  %v3862_v0 = vand.u32 2147483648, %v3835_v27  ;;  %vm3856_vm3 = vweird.f32 %v3835_v27  ;;  %v3860_v24 = vand.u32 2147483647, %v3835_v27 }
0x1e2d   :  { %4357 = vrcp.f32 %v3834_v22  ;;  %v3847_v26 = vand.u32 2147483648, %v3834_v22  ;;  %vm3841_vm6 = vweird.f32 %v3834_v22  ;;  %v3845_v43 = vand.u32 2147483647, %v3834_v22 }
0x1e2e   :  { %v3863_v54 = vor.u32 1.1754944e-38, %v3862_v0  ;;  %vm3861_vm8 = vcmp.eq.f32.partialorder %v3860_v24, 8.507059e+37  ;;  %4359 = vpow2.f32 %v4165_v38 }
0x1e2f   :  { %v3848_v17 = vor.u32 1.1754944e-38, %v3847_v26  ;;  %vm3846_vm9 = vcmp.eq.f32.partialorder %v3845_v43, 8.507059e+37 }
0x1e32   :  { %v4356_v3 = vpop.eup %4355 }
0x1e33   :  { %v4358_v1 = vpop.eup %4357  ;;  %v3852_v28 = vmul.f32 %v4356_v3, %v3835_v27  ;;  %vm3857_vm15 = vweird.f32 %v4356_v3 }
0x1e34   :  { %v3837_v15 = vmul.f32 %v4358_v1, %v3834_v22  ;;  %vm3842_vm2 = vweird.f32 %v4358_v1  ;;  %vm3858_vm4 = vmor %vm3856_vm3, %vm3857_vm15  ;;  %v4360_v49 = vpop.eup %4359 }
0x1e35   :  { %v3853_v40 = vsub.f32 1.0, %v3852_v28  ;;  %vm3843_vm7 = vmor %vm3841_vm6, %vm3842_vm2  ;;  %v3869_v19 = vadd.f32 1.0, %v4360_v49 }
0x1e36   :  { %v3838_v16 = vsub.f32 1.0, %v3837_v15 }
0x1e37   :  { %v3854_v31 = vmul.f32 %v4356_v3, %v3853_v40  ;;  %4361 = vrcp.f32 %v3869_v19  ;;  %v3881_v35 = vand.u32 2147483648, %v3869_v19  ;;  %vm3875_vm12 = vweird.f32 %v3869_v19 }
0x1e38   :  { %v3839_v33 = vmul.f32 %v4358_v1, %v3838_v16  ;;  %v3879_v61 = vand.u32 2147483647, %v3869_v19 }
0x1e39   :  { %v3855_v45 = vadd.f32 %v4356_v3, %v3854_v31  ;;  %v3882_v52 = vor.u32 1.1754944e-38, %v3881_v35 }
0x1e3a   :  { %v3840_v6 = vadd.f32 %v4358_v1, %v3839_v33  ;;  %vm3880_vm14 = vcmp.eq.f32.partialorder %v3879_v61, 8.507059e+37 }
0x1e3b   :  { %v3859_v7 = vsel %vm3858_vm4, %v4356_v3, %v3855_v45 }
0x1e3c   :  { %v3844_v42 = vsel %vm3843_vm7, %v4358_v1, %v3840_v6  ;;  %v3864_v47 = vsel %vm3861_vm8, %v3863_v54, %v3859_v7 }
0x1e3d   :  { %v3849_v39 = vsel %vm3846_vm9, %v3848_v17, %v3844_v42  ;;  %v4362_v50 = vpop.eup %4361  ;;  %v3925_v10 = vmul.f32 %v3864_v47, %v7959_v48 }
0x1e3e   :  { %v3871_v25 = vmul.f32 %v4362_v50, %v3869_v19 }
0x1e40   :  { %v3872_v56 = vsub.f32 1.0, %v3871_v25 }
0x1e42   :  { %v3873_v58 = vmul.f32 %v4362_v50, %v3872_v56 }
0x1e44   :  { %v3874_v23 = vadd.f32 %v4362_v50, %v3873_v58 }
0x1e9a   :  { %v3930_v2 = vpop.permute.xlu0 %3929 }
0x1e9b   :  { %v3932_v46 = vpop.permute.xlu1 %3931 }
0x1e9c   :  { %v3937_v18 = vmul.f32 %v3932_v46, %v3864_v47  ;;  %v3933_v34 = vsel %vm640_vm5, %v3930_v2, %v3932_v46  ;;  %vm3876_vm5 = vweird.f32 %v4362_v50 }
0x1e9d   :  { %v3936_v32 = vmul.f32 %v3933_v34, %v3849_v39  ;;  %vm3877_vm13 = vmor %vm3875_vm12, %vm3876_vm5  ;;  %v4729_v34 = vld [vmem:[%s8248_s9] ss:$0 sm:$0xff] }
0x1e9e   :  { %3942 = vrot.lane.b32.xlu0 %v3937_v18, %s4771_s2  ;;  %v3878_v12 = vsel %vm3877_vm13, %v4362_v50, %v3874_v23 }
0x1e9f   :  { %3940 = vrot.lane.b32.xlu2 %v3936_v32, %s4771_s2  ;;  %v3883_v4 = vsel %vm3880_vm14, %v3882_v52, %v3878_v12  ;;  %s4018_s2 = sshll.u32 %s4776_s8, 4  ;;  %s4019_s2 = int_to_ptr.vmem [resolvable:$true] %s4018_s2 }
0x1ea0   :  { %v3926_v48 = vmul.f32 %v3883_v4, %v7961_v63  ;;  %v3827_v63 = vadd.f32 %v3821_v13, %v8508_v20 }
0x1ea2   :  { %v4167_v21 = vmul.f32 -1.442695, %v3827_v63 }
0x1ef9   :  { %v3941_v11 = vpop.permute.xlu2 %3940 }
0x1efa   :  { %v3947_v37 = vadd.f32 %v3941_v11, %v3925_v10 }
0x1efc   :  { %4363 = vtanh.f32 %v3947_v37 }
0x1f02   :  { %v4364_v5 = vpop.eup %4363 }
0x1f03   :  { %3953 = vrot.lane.b32.xlu1 %v4364_v5, %s4773_s29 }
0x1f10   :  { %v3943_v55 = vpop.permute.xlu0 %3942 }
0x1f11   :  { %v3944_v29 = vsel %vm202_vm1, %v3941_v11, %v3943_v55 }
0x1f12   :  { %v3948_v41 = vadd.f32 %v3944_v29, %v3926_v48 }
0x1f14   :  { %4365 = vtanh.f32 %v3948_v41 }
0x1f15   :  { %4367 = vpow2.f32 %v4166_v36 }
0x1f1a   :  { %v4366_v62 = vpop.eup %4365 }
0x1f1b   :  { %3955 = vrot.lane.b32.xlu0 %v4366_v62, %s4773_s29  ;;  %v4368_v8 = vpop.eup %4367 }
0x1f1c   :  { %v3893_v59 = vadd.f32 1.0, %v4368_v8 }
0x1f1e   :  { %4369 = vrcp.f32 %v3893_v59  ;;  %v3906_v1 = vand.u32 2147483648, %v3893_v59  ;;  %vm3900_vm2 = vweird.f32 %v3893_v59  ;;  %v3904_v28 = vand.u32 2147483647, %v3893_v59 }
0x1f1f   :  { %4371 = vpow2.f32 %v4167_v21 }
0x1f20   :  { %v3907_v15 = vor.u32 1.1754944e-38, %v3906_v1  ;;  %vm3905_vm4 = vcmp.eq.f32.partialorder %v3904_v28, 8.507059e+37 }
0x1f24   :  { %v4370_v44 = vpop.eup %4369 }
0x1f25   :  { %v3896_v57 = vmul.f32 %v4370_v44, %v3893_v59  ;;  %v4372_v22 = vpop.eup %4371  ;;  %vm3901_vm15 = vweird.f32 %v4370_v44 }
0x1f26   :  { %v3894_v3 = vadd.f32 1.0, %v4372_v22  ;;  %vm3902_vm3 = vmor %vm3900_vm2, %vm3901_vm15 }
0x1f27   :  { %v3897_v51 = vsub.f32 1.0, %v3896_v57 }
0x1f28   :  { %4373 = vrcp.f32 %v3894_v3  ;;  %v3921_v24 = vand.u32 2147483648, %v3894_v3  ;;  %vm3915_vm7 = vweird.f32 %v3894_v3  ;;  %v3919_v26 = vand.u32 2147483647, %v3894_v3 }
0x1f29   :  { %v3898_v27 = vmul.f32 %v4370_v44, %v3897_v51 }
0x1f2a   :  { %v3922_v7 = vor.u32 1.1754944e-38, %v3921_v24  ;;  %vm3920_vm9 = vcmp.eq.f32.partialorder %v3919_v26, 8.507059e+37 }
0x1f2b   :  { %v3899_v60 = vadd.f32 %v4370_v44, %v3898_v27 }
0x1f2d   :  { %v3903_v53 = vsel %vm3902_vm3, %v4370_v44, %v3899_v60 }
0x1f2e   :  { %v3908_v40 = vsel %vm3905_vm4, %v3907_v15, %v3903_v53  ;;  %v4374_v31 = vpop.eup %4373 }
0x1f2f   :  { %v3911_v33 = vmul.f32 %v4374_v31, %v3894_v3  ;;  %vm3916_vm6 = vweird.f32 %v4374_v31 }
0x1f30   :  { %vm3917_vm8 = vmor %vm3915_vm7, %vm3916_vm6 }
0x1f31   :  { %v3912_v45 = vsub.f32 1.0, %v3911_v33 }
0x1f33   :  { %v3913_v0 = vmul.f32 %v4374_v31, %v3912_v45 }
0x1f35   :  { %v3914_v6 = vadd.f32 %v4374_v31, %v3913_v0 }
0x1f37   :  { %v3918_v43 = vsel %vm3917_vm8, %v4374_v31, %v3914_v6 }
0x1f38   :  { %v3923_v42 = vsel %vm3920_vm9, %v3922_v7, %v3918_v43 }
0x1f75   :  { %v3954_v20 = vpop.permute.xlu1 %3953 }
0x1f76   :  { %v3960_v16 = vmul.f32 %v3954_v20, %v3908_v40 }
0x1f78   :  { %3964 = vrot.lane.b32.xlu2 %v3960_v16, %s4774_s13 }
0x1f8d   :  { %v3956_v54 = vpop.permute.xlu0 %3955 }
0x1f8e   :  { %v3957_v2 = vsel %vm173_vm0, %v3954_v20, %v3956_v54 }
0x1f8f   :  { %v3961_v17 = vmul.f32 %v3957_v2, %v3923_v42 }
0x1f91   :  { %3966 = vrot.lane.b32.xlu1 %v3961_v17, %s4774_s13  ;;  %s4777_s13 = smov 64  }
0x1fd2   :  { %v3965_v46 = vpop.permute.xlu2 %3964 }
0x2003   :  { %v3967_v47 = vpop.permute.xlu1 %3966 }
0x2004   :  { %v3968_v18 = vsel %vm679_vm10, %v3965_v46, %v3967_v47  ;;  %4168 = vmatmul.msk.f32.vlgmr.msrb.gmra.mxu2 %vm202_vm1, %v3967_v47 }
0x2005   :  { %3988 = vmatmul.f32.vlgmr.msrb.gmra.mxu3 %v3968_v18 }
0x2087   :  { %v4009_v38 = vpop.f32.mrf.mxu2 }
0x2088   :  { %v3989_v39 = vpop.f32.mrf.mxu3 }
0x2089   :  { %v3990_v32 = vadd.f32 %v4729_v34, %v3989_v39 }
0x208b   :  { %v4010_v49 = vadd.f32 %v4009_v38, %v3990_v32 }
0x208d   :  { %4013 = vst.msk [vmem:[#allocation4 + $0x1c] sm:$0xf] %vm168_vm11, %v4010_v49 }
0x208e   :  { %4026 = dma.vmem_to_hbm [thread:$0]  %s4019_s2, 512, %s4021_s21, [#allocation5], %s4777_s13, %s4777_s13, %s4778_s23  }
0x208f   :  { %4768 = dma.done.wait [#allocation5], 512  }
0x2090   :  { %4769 = vsyncadd [#allocation5], 4294966784 }
0x2091   :  { %4031 = vsyncpa [#allocation5], 1 }

</bundles_post_ra>
